<compile_context>
chip_gen: v7x
topology: tpu7x:2x2x1
jax: 0.10.0
libtpu: 0.0.40
codegen_flags: <defaults>
</compile_context>

<pallas_src>
import functools

import jax
import jax.numpy as jnp
from jax.experimental import pallas as pl
from jax.experimental.pallas import tpu as pltpu

N_CLASSES = 10
HEAD_PAD = 128                      # lane-dense classifier head (sliced back to 10 outside)
VMEM_LIMIT = 48 * 1024 * 1024       # explicit scoped-VMEM ceiling (headroom under v7x's 64 MiB)
CONV_TB_CAP = 32                    # conv batch-tile cap: ~0.7 MB/image for conv2 -> ~22 MB peak


def _round_up(a, b):
    return -(-a // b) * b


# ---------------------------------------------------------------------------
# Generic fused linear kernel:  act(x @ w + b)   (used for conv1's im2col GEMM)
# ---------------------------------------------------------------------------
def _linear_kernel(x_ref, w_ref, b_ref, o_ref, *, activation):
    # Always MXU (even K=9 for conv1): a small-K dot is one cheap pass, the
    # old per-column VPU broadcast path was XLU/relayout-heavy.
    z = jnp.dot(x_ref[...], w_ref[...], preferred_element_type=jnp.float32)
    z = z + b_ref[...]
    if activation == "relu":
        z = jnp.maximum(z, 0.0)
    o_ref[...] = z.astype(o_ref.dtype)


def pallas_linear(x, w, b, activation=None, out_dtype=jnp.bfloat16, tm_max=2048):
    """y = act(x @ w + b).  x:(M,K) bf16, w:(K,N) bf16, b:(1,N) f32."""
    m, k = x.shape
    k2, n = w.shape
    assert k == k2, (k, k2)
    # Large row tiles; >=2 grid steps when M allows (v7x megacore).  M is padded
    # up to the tile instead of searching for a divisor.
    if m >= 16:
        tm = min(tm_max, _round_up(pl.cdiv(m, 2), 8))
    else:
        tm = _round_up(m, 8)
    grid = pl.cdiv(m, tm)
    m_pad = grid * tm
    if m_pad != m:
        x = jnp.pad(x, ((0, m_pad - m), (0, 0)))
    kernel = functools.partial(_linear_kernel, activation=activation)
    cost = pl.CostEstimate(
        flops=2 * m_pad * k * n,
        transcendentals=0,
        bytes_accessed=int(m_pad * k * 2 + w.size * 2 + b.size * 4
                           + m_pad * n * jnp.dtype(out_dtype).itemsize),
    )
    out = pl.pallas_call(
        kernel,
        out_shape=jax.ShapeDtypeStruct((m_pad, n), out_dtype),
        grid=(grid,),
        in_specs=[
            pl.BlockSpec((tm, k), lambda i: (i, 0)),
            pl.BlockSpec((k, n), lambda i: (0, 0)),
            pl.BlockSpec((1, n), lambda i: (0, 0)),
        ],
        out_specs=pl.BlockSpec((tm, n), lambda i: (i, 0)),
        compiler_params=pltpu.CompilerParams(
            dimension_semantics=("parallel",),
            vmem_limit_bytes=VMEM_LIMIT),
        cost_estimate=cost,
    )(x, w, b)
    return out[:m]


# ---------------------------------------------------------------------------
# Fused 3x3 stride-1 conv + bias + ReLU  (conv2 .. conv5)
# ---------------------------------------------------------------------------
def _conv3x3_kernel(x_ref, w_ref, b_ref, o_ref, row_ref, *, wq, cin, l):
    """Single-dot im2col conv on a flat 2-D activation view (padded coordinates).

    x_ref   : (MB, Cin)         flat view of (TB, hq, wq, Cin), bf16
    w_ref   : (9*Cin, Cout)     tap-major weights, bf16
    b_ref   : (1, Cout)         f32
    o_ref   : (MB, Cout)        output in padded coords, bf16 (valid rows sliced outside)
    row_ref : (l, 9*Cin)        VMEM scratch: full 3x3 im2col (never hits HBM)
    """
    # Full 3x3 im2col in VMEM: 9 shifted copies (wq is 8-aligned so the i-shift
    # offsets are sublane-aligned).
    for i in range(3):
        for j in range(3):
            t = i * 3 + j
            s = i * wq + j
            row_ref[:, t * cin:(t + 1) * cin] = x_ref[s:s + l, :]
    # One MXU dot, K = 9*Cin: K-accumulation stays inside the MXU, no f32
    # scratch read-modify-write.  Bias + ReLU + cast fused into the epilogue.
    z = jnp.dot(row_ref[...], w_ref[...], preferred_element_type=jnp.float32)
    z = z + b_ref[...]
    # Only the first l rows are meaningful/stored (l is 8-aligned); the block's
    # tail rows are never read downstream (sliced off in padded coords).
    o_ref[0:l, :] = jnp.maximum(z, 0.0).astype(o_ref.dtype)


def conv3x3_relu(p, x, padding, tb):
    """3x3 stride-1 conv (+bias, ReLU) on NHWC bf16 input (Cin >= 64)."""
    w, b = p                               # w: (9*Cin, Cout) bf16, b: (1, Cout) f32
    n, h, wdt, cin = x.shape
    kh = kw = 3
    hc, wc = h + 2 * padding, wdt + 2 * padding        # conv-padded sizes
    ho, wo = hc - kh + 1, wc - kw + 1                  # valid output sizes
    wq = _round_up(wc, 8)                              # sublane-aligned flat width
    hq = hc + 1                                        # +1 junk row/image -> room to 8-align l
    x = jnp.pad(x, ((0, 0), (padding, padding + hq - hc),
                    (padding, padding + wq - wc), (0, 0)))
    cout = w.shape[-1]
    x2 = x.reshape(n * hq * wq, cin)                   # free row-major 2-D view (1x HBM traffic)
    mb = tb * hq * wq
    # Last valid output row within a tile is at flat index l_needed-1; rows past
    # it read across image boundaries but live entirely in the sliced-off
    # padded-coordinate region (safe by construction, asserted below).
    l_needed = (tb - 1) * hq * wq + (ho - 1) * wq + wo
    l = _round_up(l_needed, 8)
    assert l + (kh - 1) * wq + (kw - 1) <= mb          # shifted reads stay inside the tile
    kernel = functools.partial(_conv3x3_kernel, wq=wq, cin=cin, l=l)
    cost = pl.CostEstimate(
        flops=2 * (n // tb) * l * 9 * cin * cout,
        transcendentals=0,
        bytes_accessed=int(x2.size * 2 + w.size * 2 + b.size * 4 + n * hq * wq * cout * 2),
    )
    out = pl.pallas_call(
        kernel,
        out_shape=jax.ShapeDtypeStruct((n * hq * wq, cout), jnp.bfloat16),
        grid=(n // tb,),
        in_specs=[
            pl.BlockSpec((mb, cin), lambda i: (i, 0)),
            pl.BlockSpec((9 * cin, cout), lambda i: (0, 0)),
            pl.BlockSpec((1, cout), lambda i: (0, 0)),
        ],
        out_specs=pl.BlockSpec((mb, cout), lambda i: (i, 0)),
        scratch_shapes=[pltpu.VMEM((l, 9 * cin), jnp.bfloat16)],
        compiler_params=pltpu.CompilerParams(
            dimension_semantics=("parallel",),
            vmem_limit_bytes=VMEM_LIMIT),
        cost_estimate=cost,
    )(x2, w, b)
    # Extract the valid window; XLA fuses this slice into the consumer
    # (maxpool / next layer's pad), so it costs no extra HBM round trip.
    return out.reshape(n, hq, wq, cout)[:, :ho, :wo, :]


def conv1_relu(p, x):
    """conv1 (Cin=1): tiny plain-JAX im2col + K=9 MXU dot in the linear kernel."""
    w, b = p                               # w: (9, 64) bf16, b: (1, 64) f32
    n = x.shape[0]
    xp = jnp.pad(x[..., 0], ((0, 0), (1, 1), (1, 1)))                 # (N, 30, 30)
    cols = [xp[:, i:i + 28, j:j + 28] for i in range(3) for j in range(3)]
    patches = jnp.stack(cols, axis=-1).reshape(n * 28 * 28, 9)        # 9x of a tiny 1-channel map
    y = pallas_linear(patches, w, b, activation="relu", tm_max=2048)
    return y.reshape(n, 28, 28, 64)


def maxpool2x2(x):
    """MaxPool2d(2, 2), floor mode, NHWC.  Plain-JAX strided maxima (fused by XLA)."""
    n, h, w, c = x.shape
    ho, wo = h // 2, w // 2
    x = x[:, :2 * ho, :2 * wo, :]
    x = jnp.maximum(x[:, 0::2], x[:, 1::2])
    x = jnp.maximum(x[:, :, 0::2], x[:, :, 1::2])
    return x
    # TODO(synk): 2x2 pool could be fused into the conv1/conv2 kernel epilogues
    # (strided in-VMEM max before the store) for an extra HBM-pass saving.


# ---------------------------------------------------------------------------
# Fused classifier head:  log_softmax(relu(relu(x@W1+b1)@W2+b2)@W3+b3)
# ---------------------------------------------------------------------------
def _mlp_head_kernel(x_ref, w1_ref, b1_ref, w2_ref, b2_ref, w3_ref, b3_ref,
                     o_ref, *, n_valid):
    h = jnp.dot(x_ref[...], w1_ref[...], preferred_element_type=jnp.float32) + b1_ref[...]
    h = jnp.maximum(h, 0.0).astype(jnp.bfloat16)
    # TODO(synk): Dropout(0.5) is identity in eval mode; train-mode masking not implemented.
    h = jnp.dot(h, w2_ref[...], preferred_element_type=jnp.float32) + b2_ref[...]
    h = jnp.maximum(h, 0.0).astype(jnp.bfloat16)
    z = jnp.dot(h, w3_ref[...], preferred_element_type=jnp.float32) + b3_ref[...]
    # Mask the padded classes with a large *finite* negative (no -inf/NaN risk
    # if anything ever reduces over the padded 128-wide buffer).
    col = jax.lax.broadcasted_iota(jnp.int32, z.shape, 1)
    z = jnp.where(col < n_valid, z, -1e30)
    m = jnp.max(z, axis=-1, keepdims=True)
    z = z - m
    z = z - jnp.log(jnp.sum(jnp.exp(z), axis=-1, keepdims=True))
    o_ref[...] = z


def mlp_head(params, x):
    """All three FC layers in one kernel: intermediates never leave VMEM."""
    w1, b1 = params["f1"]
    w2, b2 = params["f2"]
    w3, b3 = params["f3"]
    m, k = x.shape
    if m >= 16:
        tm = min(256, _round_up(pl.cdiv(m, 2), 8))     # >=2 steps for v7x megacore
    else:
        tm = _round_up(m, 8)
    grid = pl.cdiv(m, tm)
    m_pad = grid * tm
    if m_pad != m:
        x = jnp.pad(x, ((0, m_pad - m), (0, 0)))
    cost = pl.CostEstimate(
        flops=2 * m_pad * (k * w1.shape[1] + w1.shape[1] * w2.shape[1]
                           + w2.shape[1] * w3.shape[1]),
        transcendentals=m_pad * HEAD_PAD,
        bytes_accessed=int(m_pad * k * 2 + (w1.size + w2.size + w3.size) * 2
                           + (b1.size + b2.size + b3.size) * 4 + m_pad * HEAD_PAD * 4),
    )
    out = pl.pallas_call(
        functools.partial(_mlp_head_kernel, n_valid=N_CLASSES),
        out_shape=jax.ShapeDtypeStruct((m_pad, HEAD_PAD), jnp.float32),
        grid=(grid,),
        in_specs=[
            pl.BlockSpec((tm, k), lambda i: (i, 0)),
            pl.BlockSpec(w1.shape, lambda i: (0, 0)),
            pl.BlockSpec(b1.shape, lambda i: (0, 0)),
            pl.BlockSpec(w2.shape, lambda i: (0, 0)),
            pl.BlockSpec(b2.shape, lambda i: (0, 0)),
            pl.BlockSpec(w3.shape, lambda i: (0, 0)),
            pl.BlockSpec(b3.shape, lambda i: (0, 0)),
        ],
        out_specs=pl.BlockSpec((tm, HEAD_PAD), lambda i: (i, 0)),
        compiler_params=pltpu.CompilerParams(
            dimension_semantics=("parallel",),
            vmem_limit_bytes=VMEM_LIMIT),
        cost_estimate=cost,
    )(x, w1, b1, w2, b2, w3, b3)
    return out[:m]


# ---------------------------------------------------------------------------
# Parameter init (deterministic, PyTorch-default-style uniform, pre-laid-out)
# ---------------------------------------------------------------------------
def _init_conv(key, cout, cin, k=3):
    k1, k2 = jax.random.split(key)
    bound = 1.0 / (cin * k * k) ** 0.5
    w = jax.random.uniform(k1, (cout, cin, k, k), jnp.float32, -bound, bound)
    b = jax.random.uniform(k2, (cout,), jnp.float32, -bound, bound)
    # (cout, cin, kh, kw) -> (kh, kw, cin, cout) -> (kh*kw*cin, cout): tap-major,
    # matching the im2col column order built inside the conv kernel.
    w = jnp.transpose(w, (2, 3, 1, 0)).reshape(k * k * cin, cout)
    return w.astype(jnp.bfloat16), b.reshape(1, cout)


def _init_fc(key, in_f, out_f, pad_out=None):
    k1, k2 = jax.random.split(key)
    bound = 1.0 / in_f ** 0.5
    w = jax.random.uniform(k1, (out_f, in_f), jnp.float32, -bound, bound).T   # (in, out)
    b = jax.random.uniform(k2, (out_f,), jnp.float32, -bound, bound)
    if pad_out is not None and pad_out > out_f:
        w = jnp.pad(w, ((0, 0), (0, pad_out - out_f)))
        b = jnp.pad(b, (0, pad_out - out_f))
    return w.astype(jnp.bfloat16), b.reshape(1, -1)


def init_params(key):
    ks = jax.random.split(key, 8)
    return {
        "c1": _init_conv(ks[0], 64, 1),
        "c2": _init_conv(ks[1], 128, 64),
        "c3": _init_conv(ks[2], 256, 128),
        "c4": _init_conv(ks[3], 256, 256),
        "c5": _init_conv(ks[4], 256, 256),
        "f1": _init_fc(ks[5], 256, 1024),
        "f2": _init_fc(ks[6], 1024, 512),
        "f3": _init_fc(ks[7], 512, N_CLASSES, pad_out=HEAD_PAD),
    }


# ---------------------------------------------------------------------------
# Forward pass (matches the PyTorch AlexNet module, eval semantics)
# ---------------------------------------------------------------------------
def alexnet_forward(params, x_nchw):
    n = x_nchw.shape[0]
    # Conv batch tile: >=2 grid steps whenever n >= 2 (v7x megacore), capped so
    # VMEM stays well under v7x's 64 MiB even for conv2 (the fattest layer).
    tb = max(1, min(CONV_TB_CAP, pl.cdiv(n, 2)))
    n_pad = _round_up(n, tb)
    x = jnp.transpose(x_nchw, (0, 2, 3, 1)).astype(jnp.bfloat16)      # NCHW -> NHWC, bf16
    if n_pad != n:
        x = jnp.pad(x, ((0, n_pad - n), (0, 0), (0, 0), (0, 0)))

    x = conv1_relu(params["c1"], x)                       # (Np, 28, 28, 64)
    x = maxpool2x2(x)                                     # (Np, 14, 14, 64)
    x = conv3x3_relu(params["c2"], x, padding=1, tb=tb)   # (Np, 14, 14, 128)
    x = maxpool2x2(x)                                     # (Np, 7, 7, 128)
    x = conv3x3_relu(params["c3"], x, padding=1, tb=tb)   # (Np, 7, 7, 256)
    x = conv3x3_relu(params["c4"], x, padding=0, tb=tb)   # (Np, 5, 5, 256)
    x = conv3x3_relu(params["c5"], x, padding=0, tb=tb)   # (Np, 3, 3, 256)
    x = maxpool2x2(x)                                     # (Np, 1, 1, 256)
    x = x.reshape(n_pad, 256)                             # H=W=1, so NHWC == NCHW order

    logp = mlp_head(params, x)                            # (Np, 128) f32, fused f1/f2/f3
    return logp[:n, :N_CLASSES]


if __name__ == "__main__":
    key = jax.random.PRNGKey(0)
    pkey, xkey = jax.random.split(key)
    params = init_params(pkey)
    # FashionMNIST-shaped input (flatten to 256*1*1 requires 28x28), batch=2, NCHW.
    x = jax.random.normal(xkey, (2, 1, 28, 28), dtype=jnp.float32)

    fwd = jax.jit(alexnet_forward)
    out = jax.block_until_ready(fwd(params, x))

    assert out.shape == (2, N_CLASSES), out.shape
    # log-softmax rows must exponentiate-and-sum to ~1
    assert jnp.allclose(jnp.sum(jnp.exp(out), axis=1), 1.0, atol=1e-3)
    assert bool(jnp.all(jnp.isfinite(out)))
    print("KERNEL_OK")
</pallas_src>

<mosaic_0001>
module attributes {stable_mosaic.version = 11 : i64} {
  func.func @_linear_kernel(%arg0: i32, %arg1: memref<784x9xbf16, #tpu.memory_space<vmem>>, %arg2: memref<9x64xbf16, #tpu.memory_space<vmem>>, %arg3: memref<1x64xf32, #tpu.memory_space<vmem>>, %arg4: memref<784x64xbf16, #tpu.memory_space<vmem>>) attributes {dimension_semantics = [#tpu.dimension_semantics<parallel>], iteration_bounds = array<i64: 2>, scalar_prefetch = 0 : i64, scratch_operands = 0 : i64, tpu.core_type = #tpu.core_type<tc>, window_params = [{transform_indices = @transform_0, window_bounds = array<i64: 784, 9>}, {pipeline_mode = #tpu.pipeline_mode<synchronous>, transform_indices = @transform_1, window_bounds = array<i64: 9, 64>}, {pipeline_mode = #tpu.pipeline_mode<synchronous>, transform_indices = @transform_2, window_bounds = array<i64: 1, 64>}, {transform_indices = @transform_3, window_bounds = array<i64: 784, 64>}]} {
    %c0 = arith.constant 0 : index
    %c0_0 = arith.constant 0 : index
    %0 = vector.load %arg1[%c0, %c0_0] : memref<784x9xbf16, #tpu.memory_space<vmem>>, vector<784x9xbf16>
    %c0_1 = arith.constant 0 : index
    %c0_2 = arith.constant 0 : index
    %1 = vector.load %arg2[%c0_1, %c0_2] : memref<9x64xbf16, #tpu.memory_space<vmem>>, vector<9x64xbf16>
    %cst = arith.constant dense<0.000000e+00> : vector<784x64xf32>
    %2 = tpu.matmul %0, %1, %cst {dimension_numbers = #tpu.dot_dimension_numbers<[1], [0], [0], [1], [0, 0, 1, 1], [], []>} : vector<784x9xbf16>, vector<9x64xbf16>, vector<784x64xf32> -> vector<784x64xf32>
    %c0_3 = arith.constant 0 : index
    %c0_4 = arith.constant 0 : index
    %3 = vector.load %arg3[%c0_3, %c0_4] : memref<1x64xf32, #tpu.memory_space<vmem>>, vector<1x64xf32>
    %4 = vector.broadcast %3 : vector<1x64xf32> to vector<784x64xf32>
    %5 = arith.addf %2, %4 : vector<784x64xf32>
    %cst_5 = arith.constant 0.000000e+00 : f32
    %6 = vector.broadcast %cst_5 : f32 to vector<784x64xf32>
    %7 = arith.maximumf %5, %6 : vector<784x64xf32>
    %8 = arith.truncf %7 : vector<784x64xf32> to vector<784x64xbf16>
    %c0_6 = arith.constant 0 : index
    %c0_7 = arith.constant 0 : index
    %9 = vector.load %arg4[%c0_6, %c0_7] : memref<784x64xbf16, #tpu.memory_space<vmem>>, vector<784x64xbf16>
    tpu.vector_store %arg4[%c0_6, %c0_7], %8 {strides = array<i32>} : memref<784x64xbf16, #tpu.memory_space<vmem>>, vector<784x64xbf16>,
    return
  }
  func.func @transform_0(%arg0: i32) -> (i32, i32) {
    %c0_i32 = arith.constant 0 : i32
    %c0_i32_0 = arith.constant 0 : i32
    return %arg0, %c0_i32 : i32, i32
  }
  func.func @transform_1(%arg0: i32) -> (i32, i32) {
    %c0_i32 = arith.constant 0 : i32
    %c0_i32_0 = arith.constant 0 : i32
    %c0_i32_1 = arith.constant 0 : i32
    return %c0_i32, %c0_i32_0 : i32, i32
  }
  func.func @transform_2(%arg0: i32) -> (i32, i32) {
    %c0_i32 = arith.constant 0 : i32
    %c0_i32_0 = arith.constant 0 : i32
    %c0_i32_1 = arith.constant 0 : i32
    return %c0_i32, %c0_i32_0 : i32, i32
  }
  func.func @transform_3(%arg0: i32) -> (i32, i32) {
    %c0_i32 = arith.constant 0 : i32
    %c0_i32_0 = arith.constant 0 : i32
    return %arg0, %c0_i32 : i32, i32
  }
}

module attributes {stable_mosaic.version = 11 : i64} {
  func.func @_conv3x3_kernel(%arg0: i32, %arg1: memref<272x64xbf16, #tpu.memory_space<vmem>>, %arg2: memref<576x128xbf16, #tpu.memory_space<vmem>>, %arg3: memref<1x128xf32, #tpu.memory_space<vmem>>, %arg4: memref<272x128xbf16, #tpu.memory_space<vmem>>, %arg5: memref<224x576xbf16, #tpu.memory_space<vmem>>) attributes {dimension_semantics = [#tpu.dimension_semantics<parallel>], iteration_bounds = array<i64: 2>, scalar_prefetch = 0 : i64, scratch_operands = 1 : i64, tpu.core_type = #tpu.core_type<tc>, window_params = [{transform_indices = @transform_0, window_bounds = array<i64: 272, 64>}, {pipeline_mode = #tpu.pipeline_mode<synchronous>, transform_indices = @transform_1, window_bounds = array<i64: 576, 128>}, {pipeline_mode = #tpu.pipeline_mode<synchronous>, transform_indices = @transform_2, window_bounds = array<i64: 1, 128>}, {transform_indices = @transform_3, window_bounds = array<i64: 272, 128>}]} {
    %c0 = arith.constant 0 : index
    %c0_0 = arith.constant 0 : index
    %0 = vector.load %arg1[%c0, %c0_0] : memref<272x64xbf16, #tpu.memory_space<vmem>>, vector<224x64xbf16>
    %c0_1 = arith.constant 0 : index
    %c0_2 = arith.constant 0 : index
    %1 = vector.load %arg5[%c0_1, %c0_2] : memref<224x576xbf16, #tpu.memory_space<vmem>>, vector<224x64xbf16>
    tpu.vector_store %arg5[%c0_1, %c0_2], %0 {strides = array<i32>} : memref<224x576xbf16, #tpu.memory_space<vmem>>, vector<224x64xbf16>,
    %c1 = arith.constant 1 : index
    %c0_3 = arith.constant 0 : index
    %2 = vector.load %arg1[%c1, %c0_3] : memref<272x64xbf16, #tpu.memory_space<vmem>>, vector<224x64xbf16>
    %c0_4 = arith.constant 0 : index
    %c64 = arith.constant 64 : index
    %3 = vector.load %arg5[%c0_4, %c64] : memref<224x576xbf16, #tpu.memory_space<vmem>>, vector<224x64xbf16>
    tpu.vector_store %arg5[%c0_4, %c64], %2 {strides = array<i32>} : memref<224x576xbf16, #tpu.memory_space<vmem>>, vector<224x64xbf16>,
    %c2 = arith.constant 2 : index
    %c0_5 = arith.constant 0 : index
    %4 = vector.load %arg1[%c2, %c0_5] : memref<272x64xbf16, #tpu.memory_space<vmem>>, vector<224x64xbf16>
    %c0_6 = arith.constant 0 : index
    %c128 = arith.constant 128 : index
    %5 = vector.load %arg5[%c0_6, %c128] : memref<224x576xbf16, #tpu.memory_space<vmem>>, vector<224x64xbf16>
    tpu.vector_store %arg5[%c0_6, %c128], %4 {strides = array<i32>} : memref<224x576xbf16, #tpu.memory_space<vmem>>, vector<224x64xbf16>,
    %c16 = arith.constant 16 : index
    %c0_7 = arith.constant 0 : index
    %6 = vector.load %arg1[%c16, %c0_7] : memref<272x64xbf16, #tpu.memory_space<vmem>>, vector<224x64xbf16>
    %c0_8 = arith.constant 0 : index
    %c192 = arith.constant 192 : index
    %7 = vector.load %arg5[%c0_8, %c192] : memref<224x576xbf16, #tpu.memory_space<vmem>>, vector<224x64xbf16>
    tpu.vector_store %arg5[%c0_8, %c192], %6 {strides = array<i32>} : memref<224x576xbf16, #tpu.memory_space<vmem>>, vector<224x64xbf16>,
    %c17 = arith.constant 17 : index
    %c0_9 = arith.constant 0 : index
    %8 = vector.load %arg1[%c17, %c0_9] : memref<272x64xbf16, #tpu.memory_space<vmem>>, vector<224x64xbf16>
    %c0_10 = arith.constant 0 : index
    %c256 = arith.constant 256 : index
    %9 = vector.load %arg5[%c0_10, %c256] : memref<224x576xbf16, #tpu.memory_space<vmem>>, vector<224x64xbf16>
    tpu.vector_store %arg5[%c0_10, %c256], %8 {strides = array<i32>} : memref<224x576xbf16, #tpu.memory_space<vmem>>, vector<224x64xbf16>,
    %c18 = arith.constant 18 : index
    %c0_11 = arith.constant 0 : index
    %10 = vector.load %arg1[%c18, %c0_11] : memref<272x64xbf16, #tpu.memory_space<vmem>>, vector<224x64xbf16>
    %c0_12 = arith.constant 0 : index
    %c320 = arith.constant 320 : index
    %11 = vector.load %arg5[%c0_12, %c320] : memref<224x576xbf16, #tpu.memory_space<vmem>>, vector<224x64xbf16>
    tpu.vector_store %arg5[%c0_12, %c320], %10 {strides = array<i32>} : memref<224x576xbf16, #tpu.memory_space<vmem>>, vector<224x64xbf16>,
    %c32 = arith.constant 32 : index
    %c0_13 = arith.constant 0 : index
    %12 = vector.load %arg1[%c32, %c0_13] : memref<272x64xbf16, #tpu.memory_space<vmem>>, vector<224x64xbf16>
    %c0_14 = arith.constant 0 : index
    %c384 = arith.constant 384 : index
    %13 = vector.load %arg5[%c0_14, %c384] : memref<224x576xbf16, #tpu.memory_space<vmem>>, vector<224x64xbf16>
    tpu.vector_store %arg5[%c0_14, %c384], %12 {strides = array<i32>} : memref<224x576xbf16, #tpu.memory_space<vmem>>, vector<224x64xbf16>,
    %c33 = arith.constant 33 : index
    %c0_15 = arith.constant 0 : index
    %14 = vector.load %arg1[%c33, %c0_15] : memref<272x64xbf16, #tpu.memory_space<vmem>>, vector<224x64xbf16>
    %c0_16 = arith.constant 0 : index
    %c448 = arith.constant 448 : index
    %15 = vector.load %arg5[%c0_16, %c448] : memref<224x576xbf16, #tpu.memory_space<vmem>>, vector<224x64xbf16>
    tpu.vector_store %arg5[%c0_16, %c448], %14 {strides = array<i32>} : memref<224x576xbf16, #tpu.memory_space<vmem>>, vector<224x64xbf16>,
    %c34 = arith.constant 34 : index
    %c0_17 = arith.constant 0 : index
    %16 = vector.load %arg1[%c34, %c0_17] : memref<272x64xbf16, #tpu.memory_space<vmem>>, vector<224x64xbf16>
    %c0_18 = arith.constant 0 : index
    %c512 = arith.constant 512 : index
    %17 = vector.load %arg5[%c0_18, %c512] : memref<224x576xbf16, #tpu.memory_space<vmem>>, vector<224x64xbf16>
    tpu.vector_store %arg5[%c0_18, %c512], %16 {strides = array<i32>} : memref<224x576xbf16, #tpu.memory_space<vmem>>, vector<224x64xbf16>,
    %c0_19 = arith.constant 0 : index
    %c0_20 = arith.constant 0 : index
    %18 = vector.load %arg5[%c0_19, %c0_20] : memref<224x576xbf16, #tpu.memory_space<vmem>>, vector<224x576xbf16>
    %c0_21 = arith.constant 0 : index
    %c0_22 = arith.constant 0 : index
    %19 = vector.load %arg2[%c0_21, %c0_22] : memref<576x128xbf16, #tpu.memory_space<vmem>>, vector<576x128xbf16>
    %cst = arith.constant dense<0.000000e+00> : vector<224x128xf32>
    %20 = tpu.matmul %18, %19, %cst {dimension_numbers = #tpu.dot_dimension_numbers<[1], [0], [0], [1], [0, 0, 1, 1], [], []>} : vector<224x576xbf16>, vector<576x128xbf16>, vector<224x128xf32> -> vector<224x128xf32>
    %c0_23 = arith.constant 0 : index
    %c0_24 = arith.constant 0 : index
    %21 = vector.load %arg3[%c0_23, %c0_24] : memref<1x128xf32, #tpu.memory_space<vmem>>, vector<1x128xf32>
    %22 = vector.broadcast %21 : vector<1x128xf32> to vector<224x128xf32>
    %23 = arith.addf %20, %22 : vector<224x128xf32>
    %cst_25 = arith.constant 0.000000e+00 : f32
    %24 = vector.broadcast %cst_25 : f32 to vector<224x128xf32>
    %25 = arith.maximumf %23, %24 : vector<224x128xf32>
    %26 = arith.truncf %25 : vector<224x128xf32> to vector<224x128xbf16>
    %c0_26 = arith.constant 0 : index
    %c0_27 = arith.constant 0 : index
    %27 = vector.load %arg4[%c0_26, %c0_27] : memref<272x128xbf16, #tpu.memory_space<vmem>>, vector<224x128xbf16>
    tpu.vector_store %arg4[%c0_26, %c0_27], %26 {strides = array<i32>} : memref<272x128xbf16, #tpu.memory_space<vmem>>, vector<224x128xbf16>,
    return
  }
  func.func @transform_0(%arg0: i32) -> (i32, i32) {
    %c0_i32 = arith.constant 0 : i32
    %c0_i32_0 = arith.constant 0 : i32
    return %arg0, %c0_i32 : i32, i32
  }
  func.func @transform_1(%arg0: i32) -> (i32, i32) {
    %c0_i32 = arith.constant 0 : i32
    %c0_i32_0 = arith.constant 0 : i32
    %c0_i32_1 = arith.constant 0 : i32
    return %c0_i32, %c0_i32_0 : i32, i32
  }
  func.func @transform_2(%arg0: i32) -> (i32, i32) {
    %c0_i32 = arith.constant 0 : i32
    %c0_i32_0 = arith.constant 0 : i32
    %c0_i32_1 = arith.constant 0 : i32
    return %c0_i32, %c0_i32_0 : i32, i32
  }
  func.func @transform_3(%arg0: i32) -> (i32, i32) {
    %c0_i32 = arith.constant 0 : i32
    %c0_i32_0 = arith.constant 0 : i32
    return %arg0, %c0_i32 : i32, i32
  }
}

module attributes {stable_mosaic.version = 11 : i64} {
  func.func @_conv3x3_kernel(%arg0: i32, %arg1: memref<64x256xbf16, #tpu.memory_space<vmem>>, %arg2: memref<2304x256xbf16, #tpu.memory_space<vmem>>, %arg3: memref<1x256xf32, #tpu.memory_space<vmem>>, %arg4: memref<64x256xbf16, #tpu.memory_space<vmem>>, %arg5: memref<40x2304xbf16, #tpu.memory_space<vmem>>) attributes {dimension_semantics = [#tpu.dimension_semantics<parallel>], iteration_bounds = array<i64: 2>, scalar_prefetch = 0 : i64, scratch_operands = 1 : i64, tpu.core_type = #tpu.core_type<tc>, window_params = [{transform_indices = @transform_0, window_bounds = array<i64: 64, 256>}, {pipeline_mode = #tpu.pipeline_mode<synchronous>, transform_indices = @transform_1, window_bounds = array<i64: 2304, 256>}, {pipeline_mode = #tpu.pipeline_mode<synchronous>, transform_indices = @transform_2, window_bounds = array<i64: 1, 256>}, {transform_indices = @transform_3, window_bounds = array<i64: 64, 256>}]} {
    %c0 = arith.constant 0 : index
    %c0_0 = arith.constant 0 : index
    %0 = vector.load %arg1[%c0, %c0_0] : memref<64x256xbf16, #tpu.memory_space<vmem>>, vector<40x256xbf16>
    %c0_1 = arith.constant 0 : index
    %c0_2 = arith.constant 0 : index
    %1 = vector.load %arg5[%c0_1, %c0_2] : memref<40x2304xbf16, #tpu.memory_space<vmem>>, vector<40x256xbf16>
    tpu.vector_store %arg5[%c0_1, %c0_2], %0 {strides = array<i32>} : memref<40x2304xbf16, #tpu.memory_space<vmem>>, vector<40x256xbf16>,
    %c1 = arith.constant 1 : index
    %c0_3 = arith.constant 0 : index
    %2 = vector.load %arg1[%c1, %c0_3] : memref<64x256xbf16, #tpu.memory_space<vmem>>, vector<40x256xbf16>
    %c0_4 = arith.constant 0 : index
    %c256 = arith.constant 256 : index
    %3 = vector.load %arg5[%c0_4, %c256] : memref<40x2304xbf16, #tpu.memory_space<vmem>>, vector<40x256xbf16>
    tpu.vector_store %arg5[%c0_4, %c256], %2 {strides = array<i32>} : memref<40x2304xbf16, #tpu.memory_space<vmem>>, vector<40x256xbf16>,
    %c2 = arith.constant 2 : index
    %c0_5 = arith.constant 0 : index
    %4 = vector.load %arg1[%c2, %c0_5] : memref<64x256xbf16, #tpu.memory_space<vmem>>, vector<40x256xbf16>
    %c0_6 = arith.constant 0 : index
    %c512 = arith.constant 512 : index
    %5 = vector.load %arg5[%c0_6, %c512] : memref<40x2304xbf16, #tpu.memory_space<vmem>>, vector<40x256xbf16>
    tpu.vector_store %arg5[%c0_6, %c512], %4 {strides = array<i32>} : memref<40x2304xbf16, #tpu.memory_space<vmem>>, vector<40x256xbf16>,
    %c8 = arith.constant 8 : index
    %c0_7 = arith.constant 0 : index
    %6 = vector.load %arg1[%c8, %c0_7] : memref<64x256xbf16, #tpu.memory_space<vmem>>, vector<40x256xbf16>
    %c0_8 = arith.constant 0 : index
    %c768 = arith.constant 768 : index
    %7 = vector.load %arg5[%c0_8, %c768] : memref<40x2304xbf16, #tpu.memory_space<vmem>>, vector<40x256xbf16>
    tpu.vector_store %arg5[%c0_8, %c768], %6 {strides = array<i32>} : memref<40x2304xbf16, #tpu.memory_space<vmem>>, vector<40x256xbf16>,
    %c9 = arith.constant 9 : index
    %c0_9 = arith.constant 0 : index
    %8 = vector.load %arg1[%c9, %c0_9] : memref<64x256xbf16, #tpu.memory_space<vmem>>, vector<40x256xbf16>
    %c0_10 = arith.constant 0 : index
    %c1024 = arith.constant 1024 : index
    %9 = vector.load %arg5[%c0_10, %c1024] : memref<40x2304xbf16, #tpu.memory_space<vmem>>, vector<40x256xbf16>
    tpu.vector_store %arg5[%c0_10, %c1024], %8 {strides = array<i32>} : memref<40x2304xbf16, #tpu.memory_space<vmem>>, vector<40x256xbf16>,
    %c10 = arith.constant 10 : index
    %c0_11 = arith.constant 0 : index
    %10 = vector.load %arg1[%c10, %c0_11] : memref<64x256xbf16, #tpu.memory_space<vmem>>, vector<40x256xbf16>
    %c0_12 = arith.constant 0 : index
    %c1280 = arith.constant 1280 : index
    %11 = vector.load %arg5[%c0_12, %c1280] : memref<40x2304xbf16, #tpu.memory_space<vmem>>, vector<40x256xbf16>
    tpu.vector_store %arg5[%c0_12, %c1280], %10 {strides = array<i32>} : memref<40x2304xbf16, #tpu.memory_space<vmem>>, vector<40x256xbf16>,
    %c16 = arith.constant 16 : index
    %c0_13 = arith.constant 0 : index
    %12 = vector.load %arg1[%c16, %c0_13] : memref<64x256xbf16, #tpu.memory_space<vmem>>, vector<40x256xbf16>
    %c0_14 = arith.constant 0 : index
    %c1536 = arith.constant 1536 : index
    %13 = vector.load %arg5[%c0_14, %c1536] : memref<40x2304xbf16, #tpu.memory_space<vmem>>, vector<40x256xbf16>
    tpu.vector_store %arg5[%c0_14, %c1536], %12 {strides = array<i32>} : memref<40x2304xbf16, #tpu.memory_space<vmem>>, vector<40x256xbf16>,
    %c17 = arith.constant 17 : index
    %c0_15 = arith.constant 0 : index
    %14 = vector.load %arg1[%c17, %c0_15] : memref<64x256xbf16, #tpu.memory_space<vmem>>, vector<40x256xbf16>
    %c0_16 = arith.constant 0 : index
    %c1792 = arith.constant 1792 : index
    %15 = vector.load %arg5[%c0_16, %c1792] : memref<40x2304xbf16, #tpu.memory_space<vmem>>, vector<40x256xbf16>
    tpu.vector_store %arg5[%c0_16, %c1792], %14 {strides = array<i32>} : memref<40x2304xbf16, #tpu.memory_space<vmem>>, vector<40x256xbf16>,
    %c18 = arith.constant 18 : index
    %c0_17 = arith.constant 0 : index
    %16 = vector.load %arg1[%c18, %c0_17] : memref<64x256xbf16, #tpu.memory_space<vmem>>, vector<40x256xbf16>
    %c0_18 = arith.constant 0 : index
    %c2048 = arith.constant 2048 : index
    %17 = vector.load %arg5[%c0_18, %c2048] : memref<40x2304xbf16, #tpu.memory_space<vmem>>, vector<40x256xbf16>
    tpu.vector_store %arg5[%c0_18, %c2048], %16 {strides = array<i32>} : memref<40x2304xbf16, #tpu.memory_space<vmem>>, vector<40x256xbf16>,
    %c0_19 = arith.constant 0 : index
    %c0_20 = arith.constant 0 : index
    %18 = vector.load %arg5[%c0_19, %c0_20] : memref<40x2304xbf16, #tpu.memory_space<vmem>>, vector<40x2304xbf16>
    %c0_21 = arith.constant 0 : index
    %c0_22 = arith.constant 0 : index
    %19 = vector.load %arg2[%c0_21, %c0_22] : memref<2304x256xbf16, #tpu.memory_space<vmem>>, vector<2304x256xbf16>
    %cst = arith.constant dense<0.000000e+00> : vector<40x256xf32>
    %20 = tpu.matmul %18, %19, %cst {dimension_numbers = #tpu.dot_dimension_numbers<[1], [0], [0], [1], [0, 0, 1, 1], [], []>} : vector<40x2304xbf16>, vector<2304x256xbf16>, vector<40x256xf32> -> vector<40x256xf32>
    %c0_23 = arith.constant 0 : index
    %c0_24 = arith.constant 0 : index
    %21 = vector.load %arg3[%c0_23, %c0_24] : memref<1x256xf32, #tpu.memory_space<vmem>>, vector<1x256xf32>
    %22 = vector.broadcast %21 : vector<1x256xf32> to vector<40x256xf32>
    %23 = arith.addf %20, %22 : vector<40x256xf32>
    %cst_25 = arith.constant 0.000000e+00 : f32
    %24 = vector.broadcast %cst_25 : f32 to vector<40x256xf32>
    %25 = arith.maximumf %23, %24 : vector<40x256xf32>
    %26 = arith.truncf %25 : vector<40x256xf32> to vector<40x256xbf16>
    %c0_26 = arith.constant 0 : index
    %c0_27 = arith.constant 0 : index
    %27 = vector.load %arg4[%c0_26, %c0_27] : memref<64x256xbf16, #tpu.memory_space<vmem>>, vector<40x256xbf16>
    tpu.vector_store %arg4[%c0_26, %c0_27], %26 {strides = array<i32>} : memref<64x256xbf16, #tpu.memory_space<vmem>>, vector<40x256xbf16>,
    return
  }
  func.func @transform_0(%arg0: i32) -> (i32, i32) {
    %c0_i32 = arith.constant 0 : i32
    %c0_i32_0 = arith.constant 0 : i32
    return %arg0, %c0_i32 : i32, i32
  }
  func.func @transform_1(%arg0: i32) -> (i32, i32) {
    %c0_i32 = arith.constant 0 : i32
    %c0_i32_0 = arith.constant 0 : i32
    %c0_i32_1 = arith.constant 0 : i32
    return %c0_i32, %c0_i32_0 : i32, i32
  }
  func.func @transform_2(%arg0: i32) -> (i32, i32) {
    %c0_i32 = arith.constant 0 : i32
    %c0_i32_0 = arith.constant 0 : i32
    %c0_i32_1 = arith.constant 0 : i32
    return %c0_i32, %c0_i32_0 : i32, i32
  }
  func.func @transform_3(%arg0: i32) -> (i32, i32) {
    %c0_i32 = arith.constant 0 : i32
    %c0_i32_0 = arith.constant 0 : i32
    return %arg0, %c0_i32 : i32, i32
  }
}

module attributes {stable_mosaic.version = 11 : i64} {
  func.func @_conv3x3_kernel(%arg0: i32, %arg1: memref<160x128xbf16, #tpu.memory_space<vmem>>, %arg2: memref<1152x256xbf16, #tpu.memory_space<vmem>>, %arg3: memref<1x256xf32, #tpu.memory_space<vmem>>, %arg4: memref<160x256xbf16, #tpu.memory_space<vmem>>, %arg5: memref<104x1152xbf16, #tpu.memory_space<vmem>>) attributes {dimension_semantics = [#tpu.dimension_semantics<parallel>], iteration_bounds = array<i64: 2>, scalar_prefetch = 0 : i64, scratch_operands = 1 : i64, tpu.core_type = #tpu.core_type<tc>, window_params = [{transform_indices = @transform_0, window_bounds = array<i64: 160, 128>}, {pipeline_mode = #tpu.pipeline_mode<synchronous>, transform_indices = @transform_1, window_bounds = array<i64: 1152, 256>}, {pipeline_mode = #tpu.pipeline_mode<synchronous>, transform_indices = @transform_2, window_bounds = array<i64: 1, 256>}, {transform_indices = @transform_3, window_bounds = array<i64: 160, 256>}]} {
    %c0 = arith.constant 0 : index
    %c0_0 = arith.constant 0 : index
    %0 = vector.load %arg1[%c0, %c0_0] : memref<160x128xbf16, #tpu.memory_space<vmem>>, vector<104x128xbf16>
    %c0_1 = arith.constant 0 : index
    %c0_2 = arith.constant 0 : index
    %1 = vector.load %arg5[%c0_1, %c0_2] : memref<104x1152xbf16, #tpu.memory_space<vmem>>, vector<104x128xbf16>
    tpu.vector_store %arg5[%c0_1, %c0_2], %0 {strides = array<i32>} : memref<104x1152xbf16, #tpu.memory_space<vmem>>, vector<104x128xbf16>,
    %c1 = arith.constant 1 : index
    %c0_3 = arith.constant 0 : index
    %2 = vector.load %arg1[%c1, %c0_3] : memref<160x128xbf16, #tpu.memory_space<vmem>>, vector<104x128xbf16>
    %c0_4 = arith.constant 0 : index
    %c128 = arith.constant 128 : index
    %3 = vector.load %arg5[%c0_4, %c128] : memref<104x1152xbf16, #tpu.memory_space<vmem>>, vector<104x128xbf16>
    tpu.vector_store %arg5[%c0_4, %c128], %2 {strides = array<i32>} : memref<104x1152xbf16, #tpu.memory_space<vmem>>, vector<104x128xbf16>,
    %c2 = arith.constant 2 : index
    %c0_5 = arith.constant 0 : index
    %4 = vector.load %arg1[%c2, %c0_5] : memref<160x128xbf16, #tpu.memory_space<vmem>>, vector<104x128xbf16>
    %c0_6 = arith.constant 0 : index
    %c256 = arith.constant 256 : index
    %5 = vector.load %arg5[%c0_6, %c256] : memref<104x1152xbf16, #tpu.memory_space<vmem>>, vector<104x128xbf16>
    tpu.vector_store %arg5[%c0_6, %c256], %4 {strides = array<i32>} : memref<104x1152xbf16, #tpu.memory_space<vmem>>, vector<104x128xbf16>,
    %c16 = arith.constant 16 : index
    %c0_7 = arith.constant 0 : index
    %6 = vector.load %arg1[%c16, %c0_7] : memref<160x128xbf16, #tpu.memory_space<vmem>>, vector<104x128xbf16>
    %c0_8 = arith.constant 0 : index
    %c384 = arith.constant 384 : index
    %7 = vector.load %arg5[%c0_8, %c384] : memref<104x1152xbf16, #tpu.memory_space<vmem>>, vector<104x128xbf16>
    tpu.vector_store %arg5[%c0_8, %c384], %6 {strides = array<i32>} : memref<104x1152xbf16, #tpu.memory_space<vmem>>, vector<104x128xbf16>,
    %c17 = arith.constant 17 : index
    %c0_9 = arith.constant 0 : index
    %8 = vector.load %arg1[%c17, %c0_9] : memref<160x128xbf16, #tpu.memory_space<vmem>>, vector<104x128xbf16>
    %c0_10 = arith.constant 0 : index
    %c512 = arith.constant 512 : index
    %9 = vector.load %arg5[%c0_10, %c512] : memref<104x1152xbf16, #tpu.memory_space<vmem>>, vector<104x128xbf16>
    tpu.vector_store %arg5[%c0_10, %c512], %8 {strides = array<i32>} : memref<104x1152xbf16, #tpu.memory_space<vmem>>, vector<104x128xbf16>,
    %c18 = arith.constant 18 : index
    %c0_11 = arith.constant 0 : index
    %10 = vector.load %arg1[%c18, %c0_11] : memref<160x128xbf16, #tpu.memory_space<vmem>>, vector<104x128xbf16>
    %c0_12 = arith.constant 0 : index
    %c640 = arith.constant 640 : index
    %11 = vector.load %arg5[%c0_12, %c640] : memref<104x1152xbf16, #tpu.memory_space<vmem>>, vector<104x128xbf16>
    tpu.vector_store %arg5[%c0_12, %c640], %10 {strides = array<i32>} : memref<104x1152xbf16, #tpu.memory_space<vmem>>, vector<104x128xbf16>,
    %c32 = arith.constant 32 : index
    %c0_13 = arith.constant 0 : index
    %12 = vector.load %arg1[%c32, %c0_13] : memref<160x128xbf16, #tpu.memory_space<vmem>>, vector<104x128xbf16>
    %c0_14 = arith.constant 0 : index
    %c768 = arith.constant 768 : index
    %13 = vector.load %arg5[%c0_14, %c768] : memref<104x1152xbf16, #tpu.memory_space<vmem>>, vector<104x128xbf16>
    tpu.vector_store %arg5[%c0_14, %c768], %12 {strides = array<i32>} : memref<104x1152xbf16, #tpu.memory_space<vmem>>, vector<104x128xbf16>,
    %c33 = arith.constant 33 : index
    %c0_15 = arith.constant 0 : index
    %14 = vector.load %arg1[%c33, %c0_15] : memref<160x128xbf16, #tpu.memory_space<vmem>>, vector<104x128xbf16>
    %c0_16 = arith.constant 0 : index
    %c896 = arith.constant 896 : index
    %15 = vector.load %arg5[%c0_16, %c896] : memref<104x1152xbf16, #tpu.memory_space<vmem>>, vector<104x128xbf16>
    tpu.vector_store %arg5[%c0_16, %c896], %14 {strides = array<i32>} : memref<104x1152xbf16, #tpu.memory_space<vmem>>, vector<104x128xbf16>,
    %c34 = arith.constant 34 : index
    %c0_17 = arith.constant 0 : index
    %16 = vector.load %arg1[%c34, %c0_17] : memref<160x128xbf16, #tpu.memory_space<vmem>>, vector<104x128xbf16>
    %c0_18 = arith.constant 0 : index
    %c1024 = arith.constant 1024 : index
    %17 = vector.load %arg5[%c0_18, %c1024] : memref<104x1152xbf16, #tpu.memory_space<vmem>>, vector<104x128xbf16>
    tpu.vector_store %arg5[%c0_18, %c1024], %16 {strides = array<i32>} : memref<104x1152xbf16, #tpu.memory_space<vmem>>, vector<104x128xbf16>,
    %c0_19 = arith.constant 0 : index
    %c0_20 = arith.constant 0 : index
    %18 = vector.load %arg5[%c0_19, %c0_20] : memref<104x1152xbf16, #tpu.memory_space<vmem>>, vector<104x1152xbf16>
    %c0_21 = arith.constant 0 : index
    %c0_22 = arith.constant 0 : index
    %19 = vector.load %arg2[%c0_21, %c0_22] : memref<1152x256xbf16, #tpu.memory_space<vmem>>, vector<1152x256xbf16>
    %cst = arith.constant dense<0.000000e+00> : vector<104x256xf32>
    %20 = tpu.matmul %18, %19, %cst {dimension_numbers = #tpu.dot_dimension_numbers<[1], [0], [0], [1], [0, 0, 1, 1], [], []>} : vector<104x1152xbf16>, vector<1152x256xbf16>, vector<104x256xf32> -> vector<104x256xf32>
    %c0_23 = arith.constant 0 : index
    %c0_24 = arith.constant 0 : index
    %21 = vector.load %arg3[%c0_23, %c0_24] : memref<1x256xf32, #tpu.memory_space<vmem>>, vector<1x256xf32>
    %22 = vector.broadcast %21 : vector<1x256xf32> to vector<104x256xf32>
    %23 = arith.addf %20, %22 : vector<104x256xf32>
    %cst_25 = arith.constant 0.000000e+00 : f32
    %24 = vector.broadcast %cst_25 : f32 to vector<104x256xf32>
    %25 = arith.maximumf %23, %24 : vector<104x256xf32>
    %26 = arith.truncf %25 : vector<104x256xf32> to vector<104x256xbf16>
    %c0_26 = arith.constant 0 : index
    %c0_27 = arith.constant 0 : index
    %27 = vector.load %arg4[%c0_26, %c0_27] : memref<160x256xbf16, #tpu.memory_space<vmem>>, vector<104x256xbf16>
    tpu.vector_store %arg4[%c0_26, %c0_27], %26 {strides = array<i32>} : memref<160x256xbf16, #tpu.memory_space<vmem>>, vector<104x256xbf16>,
    return
  }
  func.func @transform_0(%arg0: i32) -> (i32, i32) {
    %c0_i32 = arith.constant 0 : i32
    %c0_i32_0 = arith.constant 0 : i32
    return %arg0, %c0_i32 : i32, i32
  }
  func.func @transform_1(%arg0: i32) -> (i32, i32) {
    %c0_i32 = arith.constant 0 : i32
    %c0_i32_0 = arith.constant 0 : i32
    %c0_i32_1 = arith.constant 0 : i32
    return %c0_i32, %c0_i32_0 : i32, i32
  }
  func.func @transform_2(%arg0: i32) -> (i32, i32) {
    %c0_i32 = arith.constant 0 : i32
    %c0_i32_0 = arith.constant 0 : i32
    %c0_i32_1 = arith.constant 0 : i32
    return %c0_i32, %c0_i32_0 : i32, i32
  }
  func.func @transform_3(%arg0: i32) -> (i32, i32) {
    %c0_i32 = arith.constant 0 : i32
    %c0_i32_0 = arith.constant 0 : i32
    return %arg0, %c0_i32 : i32, i32
  }
}

module attributes {stable_mosaic.version = 11 : i64} {
  func.func @_conv3x3_kernel(%arg0: i32, %arg1: memref<48x256xbf16, #tpu.memory_space<vmem>>, %arg2: memref<2304x256xbf16, #tpu.memory_space<vmem>>, %arg3: memref<1x256xf32, #tpu.memory_space<vmem>>, %arg4: memref<48x256xbf16, #tpu.memory_space<vmem>>, %arg5: memref<24x2304xbf16, #tpu.memory_space<vmem>>) attributes {dimension_semantics = [#tpu.dimension_semantics<parallel>], iteration_bounds = array<i64: 2>, scalar_prefetch = 0 : i64, scratch_operands = 1 : i64, tpu.core_type = #tpu.core_type<tc>, window_params = [{transform_indices = @transform_0, window_bounds = array<i64: 48, 256>}, {pipeline_mode = #tpu.pipeline_mode<synchronous>, transform_indices = @transform_1, window_bounds = array<i64: 2304, 256>}, {pipeline_mode = #tpu.pipeline_mode<synchronous>, transform_indices = @transform_2, window_bounds = array<i64: 1, 256>}, {transform_indices = @transform_3, window_bounds = array<i64: 48, 256>}]} {
    %c0 = arith.constant 0 : index
    %c0_0 = arith.constant 0 : index
    %0 = vector.load %arg1[%c0, %c0_0] : memref<48x256xbf16, #tpu.memory_space<vmem>>, vector<24x256xbf16>
    %c0_1 = arith.constant 0 : index
    %c0_2 = arith.constant 0 : index
    %1 = vector.load %arg5[%c0_1, %c0_2] : memref<24x2304xbf16, #tpu.memory_space<vmem>>, vector<24x256xbf16>
    tpu.vector_store %arg5[%c0_1, %c0_2], %0 {strides = array<i32>} : memref<24x2304xbf16, #tpu.memory_space<vmem>>, vector<24x256xbf16>,
    %c1 = arith.constant 1 : index
    %c0_3 = arith.constant 0 : index
    %2 = vector.load %arg1[%c1, %c0_3] : memref<48x256xbf16, #tpu.memory_space<vmem>>, vector<24x256xbf16>
    %c0_4 = arith.constant 0 : index
    %c256 = arith.constant 256 : index
    %3 = vector.load %arg5[%c0_4, %c256] : memref<24x2304xbf16, #tpu.memory_space<vmem>>, vector<24x256xbf16>
    tpu.vector_store %arg5[%c0_4, %c256], %2 {strides = array<i32>} : memref<24x2304xbf16, #tpu.memory_space<vmem>>, vector<24x256xbf16>,
    %c2 = arith.constant 2 : index
    %c0_5 = arith.constant 0 : index
    %4 = vector.load %arg1[%c2, %c0_5] : memref<48x256xbf16, #tpu.memory_space<vmem>>, vector<24x256xbf16>
    %c0_6 = arith.constant 0 : index
    %c512 = arith.constant 512 : index
    %5 = vector.load %arg5[%c0_6, %c512] : memref<24x2304xbf16, #tpu.memory_space<vmem>>, vector<24x256xbf16>
    tpu.vector_store %arg5[%c0_6, %c512], %4 {strides = array<i32>} : memref<24x2304xbf16, #tpu.memory_space<vmem>>, vector<24x256xbf16>,
    %c8 = arith.constant 8 : index
    %c0_7 = arith.constant 0 : index
    %6 = vector.load %arg1[%c8, %c0_7] : memref<48x256xbf16, #tpu.memory_space<vmem>>, vector<24x256xbf16>
    %c0_8 = arith.constant 0 : index
    %c768 = arith.constant 768 : index
    %7 = vector.load %arg5[%c0_8, %c768] : memref<24x2304xbf16, #tpu.memory_space<vmem>>, vector<24x256xbf16>
    tpu.vector_store %arg5[%c0_8, %c768], %6 {strides = array<i32>} : memref<24x2304xbf16, #tpu.memory_space<vmem>>, vector<24x256xbf16>,
    %c9 = arith.constant 9 : index
    %c0_9 = arith.constant 0 : index
    %8 = vector.load %arg1[%c9, %c0_9] : memref<48x256xbf16, #tpu.memory_space<vmem>>, vector<24x256xbf16>
    %c0_10 = arith.constant 0 : index
    %c1024 = arith.constant 1024 : index
    %9 = vector.load %arg5[%c0_10, %c1024] : memref<24x2304xbf16, #tpu.memory_space<vmem>>, vector<24x256xbf16>
    tpu.vector_store %arg5[%c0_10, %c1024], %8 {strides = array<i32>} : memref<24x2304xbf16, #tpu.memory_space<vmem>>, vector<24x256xbf16>,
    %c10 = arith.constant 10 : index
    %c0_11 = arith.constant 0 : index
    %10 = vector.load %arg1[%c10, %c0_11] : memref<48x256xbf16, #tpu.memory_space<vmem>>, vector<24x256xbf16>
    %c0_12 = arith.constant 0 : index
    %c1280 = arith.constant 1280 : index
    %11 = vector.load %arg5[%c0_12, %c1280] : memref<24x2304xbf16, #tpu.memory_space<vmem>>, vector<24x256xbf16>
    tpu.vector_store %arg5[%c0_12, %c1280], %10 {strides = array<i32>} : memref<24x2304xbf16, #tpu.memory_space<vmem>>, vector<24x256xbf16>,
    %c16 = arith.constant 16 : index
    %c0_13 = arith.constant 0 : index
    %12 = vector.load %arg1[%c16, %c0_13] : memref<48x256xbf16, #tpu.memory_space<vmem>>, vector<24x256xbf16>
    %c0_14 = arith.constant 0 : index
    %c1536 = arith.constant 1536 : index
    %13 = vector.load %arg5[%c0_14, %c1536] : memref<24x2304xbf16, #tpu.memory_space<vmem>>, vector<24x256xbf16>
    tpu.vector_store %arg5[%c0_14, %c1536], %12 {strides = array<i32>} : memref<24x2304xbf16, #tpu.memory_space<vmem>>, vector<24x256xbf16>,
    %c17 = arith.constant 17 : index
    %c0_15 = arith.constant 0 : index
    %14 = vector.load %arg1[%c17, %c0_15] : memref<48x256xbf16, #tpu.memory_space<vmem>>, vector<24x256xbf16>
    %c0_16 = arith.constant 0 : index
    %c1792 = arith.constant 1792 : index
    %15 = vector.load %arg5[%c0_16, %c1792] : memref<24x2304xbf16, #tpu.memory_space<vmem>>, vector<24x256xbf16>
    tpu.vector_store %arg5[%c0_16, %c1792], %14 {strides = array<i32>} : memref<24x2304xbf16, #tpu.memory_space<vmem>>, vector<24x256xbf16>,
    %c18 = arith.constant 18 : index
    %c0_17 = arith.constant 0 : index
    %16 = vector.load %arg1[%c18, %c0_17] : memref<48x256xbf16, #tpu.memory_space<vmem>>, vector<24x256xbf16>
    %c0_18 = arith.constant 0 : index
    %c2048 = arith.constant 2048 : index
    %17 = vector.load %arg5[%c0_18, %c2048] : memref<24x2304xbf16, #tpu.memory_space<vmem>>, vector<24x256xbf16>
    tpu.vector_store %arg5[%c0_18, %c2048], %16 {strides = array<i32>} : memref<24x2304xbf16, #tpu.memory_space<vmem>>, vector<24x256xbf16>,
    %c0_19 = arith.constant 0 : index
    %c0_20 = arith.constant 0 : index
    %18 = vector.load %arg5[%c0_19, %c0_20] : memref<24x2304xbf16, #tpu.memory_space<vmem>>, vector<24x2304xbf16>
    %c0_21 = arith.constant 0 : index
    %c0_22 = arith.constant 0 : index
    %19 = vector.load %arg2[%c0_21, %c0_22] : memref<2304x256xbf16, #tpu.memory_space<vmem>>, vector<2304x256xbf16>
    %cst = arith.constant dense<0.000000e+00> : vector<24x256xf32>
    %20 = tpu.matmul %18, %19, %cst {dimension_numbers = #tpu.dot_dimension_numbers<[1], [0], [0], [1], [0, 0, 1, 1], [], []>} : vector<24x2304xbf16>, vector<2304x256xbf16>, vector<24x256xf32> -> vector<24x256xf32>
    %c0_23 = arith.constant 0 : index
    %c0_24 = arith.constant 0 : index
    %21 = vector.load %arg3[%c0_23, %c0_24] : memref<1x256xf32, #tpu.memory_space<vmem>>, vector<1x256xf32>
    %22 = vector.broadcast %21 : vector<1x256xf32> to vector<24x256xf32>
    %23 = arith.addf %20, %22 : vector<24x256xf32>
    %cst_25 = arith.constant 0.000000e+00 : f32
    %24 = vector.broadcast %cst_25 : f32 to vector<24x256xf32>
    %25 = arith.maximumf %23, %24 : vector<24x256xf32>
    %26 = arith.truncf %25 : vector<24x256xf32> to vector<24x256xbf16>
    %c0_26 = arith.constant 0 : index
    %c0_27 = arith.constant 0 : index
    %27 = vector.load %arg4[%c0_26, %c0_27] : memref<48x256xbf16, #tpu.memory_space<vmem>>, vector<24x256xbf16>
    tpu.vector_store %arg4[%c0_26, %c0_27], %26 {strides = array<i32>} : memref<48x256xbf16, #tpu.memory_space<vmem>>, vector<24x256xbf16>,
    return
  }
  func.func @transform_0(%arg0: i32) -> (i32, i32) {
    %c0_i32 = arith.constant 0 : i32
    %c0_i32_0 = arith.constant 0 : i32
    return %arg0, %c0_i32 : i32, i32
  }
  func.func @transform_1(%arg0: i32) -> (i32, i32) {
    %c0_i32 = arith.constant 0 : i32
    %c0_i32_0 = arith.constant 0 : i32
    %c0_i32_1 = arith.constant 0 : i32
    return %c0_i32, %c0_i32_0 : i32, i32
  }
  func.func @transform_2(%arg0: i32) -> (i32, i32) {
    %c0_i32 = arith.constant 0 : i32
    %c0_i32_0 = arith.constant 0 : i32
    %c0_i32_1 = arith.constant 0 : i32
    return %c0_i32, %c0_i32_0 : i32, i32
  }
  func.func @transform_3(%arg0: i32) -> (i32, i32) {
    %c0_i32 = arith.constant 0 : i32
    %c0_i32_0 = arith.constant 0 : i32
    return %arg0, %c0_i32 : i32, i32
  }
}

module attributes {stable_mosaic.version = 11 : i64} {
  func.func @_mlp_head_kernel(%arg0: i32, %arg1: memref<8x256xbf16, #tpu.memory_space<vmem>>, %arg2: memref<256x1024xbf16, #tpu.memory_space<vmem>>, %arg3: memref<1x1024xf32, #tpu.memory_space<vmem>>, %arg4: memref<1024x512xbf16, #tpu.memory_space<vmem>>, %arg5: memref<1x512xf32, #tpu.memory_space<vmem>>, %arg6: memref<512x128xbf16, #tpu.memory_space<vmem>>, %arg7: memref<1x128xf32, #tpu.memory_space<vmem>>, %arg8: memref<8x128xf32, #tpu.memory_space<vmem>>) attributes {dimension_semantics = [#tpu.dimension_semantics<parallel>], iteration_bounds = array<i64: 1>, scalar_prefetch = 0 : i64, scratch_operands = 0 : i64, tpu.core_type = #tpu.core_type<tc>, window_params = [{transform_indices = @transform_0, window_bounds = array<i64: 8, 256>}, {pipeline_mode = #tpu.pipeline_mode<synchronous>, transform_indices = @transform_1, window_bounds = array<i64: 256, 1024>}, {pipeline_mode = #tpu.pipeline_mode<synchronous>, transform_indices = @transform_2, window_bounds = array<i64: 1, 1024>}, {pipeline_mode = #tpu.pipeline_mode<synchronous>, transform_indices = @transform_3, window_bounds = array<i64: 1024, 512>}, {pipeline_mode = #tpu.pipeline_mode<synchronous>, transform_indices = @transform_4, window_bounds = array<i64: 1, 512>}, {pipeline_mode = #tpu.pipeline_mode<synchronous>, transform_indices = @transform_5, window_bounds = array<i64: 512, 128>}, {pipeline_mode = #tpu.pipeline_mode<synchronous>, transform_indices = @transform_6, window_bounds = array<i64: 1, 128>}, {transform_indices = @transform_7, window_bounds = array<i64: 8, 128>}]} {
    %c0 = arith.constant 0 : index
    %c0_0 = arith.constant 0 : index
    %0 = vector.load %arg1[%c0, %c0_0] : memref<8x256xbf16, #tpu.memory_space<vmem>>, vector<8x256xbf16>
    %c0_1 = arith.constant 0 : index
    %c0_2 = arith.constant 0 : index
    %1 = vector.load %arg2[%c0_1, %c0_2] : memref<256x1024xbf16, #tpu.memory_space<vmem>>, vector<256x1024xbf16>
    %cst = arith.constant dense<0.000000e+00> : vector<8x1024xf32>
    %2 = tpu.matmul %0, %1, %cst {dimension_numbers = #tpu.dot_dimension_numbers<[1], [0], [0], [1], [0, 0, 1, 1], [], []>} : vector<8x256xbf16>, vector<256x1024xbf16>, vector<8x1024xf32> -> vector<8x1024xf32>
    %c0_3 = arith.constant 0 : index
    %c0_4 = arith.constant 0 : index
    %3 = vector.load %arg3[%c0_3, %c0_4] : memref<1x1024xf32, #tpu.memory_space<vmem>>, vector<1x1024xf32>
    %4 = vector.broadcast %3 : vector<1x1024xf32> to vector<8x1024xf32>
    %5 = arith.addf %2, %4 : vector<8x1024xf32>
    %cst_5 = arith.constant 0.000000e+00 : f32
    %6 = vector.broadcast %cst_5 : f32 to vector<8x1024xf32>
    %7 = arith.maximumf %5, %6 : vector<8x1024xf32>
    %8 = arith.truncf %7 : vector<8x1024xf32> to vector<8x1024xbf16>
    %c0_6 = arith.constant 0 : index
    %c0_7 = arith.constant 0 : index
    %9 = vector.load %arg4[%c0_6, %c0_7] : memref<1024x512xbf16, #tpu.memory_space<vmem>>, vector<1024x512xbf16>
    %cst_8 = arith.constant dense<0.000000e+00> : vector<8x512xf32>
    %10 = tpu.matmul %8, %9, %cst_8 {dimension_numbers = #tpu.dot_dimension_numbers<[1], [0], [0], [1], [0, 0, 1, 1], [], []>} : vector<8x1024xbf16>, vector<1024x512xbf16>, vector<8x512xf32> -> vector<8x512xf32>
    %c0_9 = arith.constant 0 : index
    %c0_10 = arith.constant 0 : index
    %11 = vector.load %arg5[%c0_9, %c0_10] : memref<1x512xf32, #tpu.memory_space<vmem>>, vector<1x512xf32>
    %12 = vector.broadcast %11 : vector<1x512xf32> to vector<8x512xf32>
    %13 = arith.addf %10, %12 : vector<8x512xf32>
    %cst_11 = arith.constant 0.000000e+00 : f32
    %14 = vector.broadcast %cst_11 : f32 to vector<8x512xf32>
    %15 = arith.maximumf %13, %14 : vector<8x512xf32>
    %16 = arith.truncf %15 : vector<8x512xf32> to vector<8x512xbf16>
    %c0_12 = arith.constant 0 : index
    %c0_13 = arith.constant 0 : index
    %17 = vector.load %arg6[%c0_12, %c0_13] : memref<512x128xbf16, #tpu.memory_space<vmem>>, vector<512x128xbf16>
    %cst_14 = arith.constant dense<0.000000e+00> : vector<8x128xf32>
    %18 = tpu.matmul %16, %17, %cst_14 {dimension_numbers = #tpu.dot_dimension_numbers<[1], [0], [0], [1], [0, 0, 1, 1], [], []>} : vector<8x512xbf16>, vector<512x128xbf16>, vector<8x128xf32> -> vector<8x128xf32>
    %c0_15 = arith.constant 0 : index
    %c0_16 = arith.constant 0 : index
    %19 = vector.load %arg7[%c0_15, %c0_16] : memref<1x128xf32, #tpu.memory_space<vmem>>, vector<1x128xf32>
    %20 = vector.broadcast %19 : vector<1x128xf32> to vector<8x128xf32>
    %21 = arith.addf %18, %20 : vector<8x128xf32>
    %22 = tpu.iota {dimensions = array<i32: 1>} : vector<8x128xi32>
    %c10_i32 = arith.constant 10 : i32
    %23 = vector.broadcast %c10_i32 : i32 to vector<8x128xi32>
    %24 = arith.cmpi slt, %22, %23 : vector<8x128xi32>
    %cst_17 = arith.constant -1.000000e+30 : f32
    %25 = vector.broadcast %cst_17 : f32 to vector<8x128xf32>
    %26 = arith.select %24, %21, %25 : vector<8x128xi1>, vector<8x128xf32>
    %cst_18 = arith.constant dense<0xFF800000> : vector<8xf32>
    %27 = vector.multi_reduction <maximumf>, %26, %cst_18 [1] : vector<8x128xf32> to vector<8xf32>
    %28 = vector.shape_cast %27 : vector<8xf32> to vector<8x1xf32>
    %29 = vector.broadcast %28 : vector<8x1xf32> to vector<8x128xf32>
    %30 = arith.subf %26, %29 : vector<8x128xf32>
    %31 = math.exp %30 : vector<8x128xf32>
    %cst_19 = arith.constant dense<0.000000e+00> : vector<8xf32>
    %32 = vector.multi_reduction <add>, %31, %cst_19 [1] : vector<8x128xf32> to vector<8xf32>
    %33 = vector.shape_cast %32 : vector<8xf32> to vector<8x1xf32>
    %34 = math.log %33 : vector<8x1xf32>
    %35 = vector.broadcast %34 : vector<8x1xf32> to vector<8x128xf32>
    %36 = arith.subf %30, %35 : vector<8x128xf32>
    %c0_20 = arith.constant 0 : index
    %c0_21 = arith.constant 0 : index
    %37 = vector.load %arg8[%c0_20, %c0_21] : memref<8x128xf32, #tpu.memory_space<vmem>>, vector<8x128xf32>
    tpu.vector_store %arg8[%c0_20, %c0_21], %36 {strides = array<i32>} : memref<8x128xf32, #tpu.memory_space<vmem>>, vector<8x128xf32>,
    return
  }
  func.func @transform_0(%arg0: i32) -> (i32, i32) {
    %c0_i32 = arith.constant 0 : i32
    %c0_i32_0 = arith.constant 0 : i32
    return %arg0, %c0_i32 : i32, i32
  }
  func.func @transform_1(%arg0: i32) -> (i32, i32) {
    %c0_i32 = arith.constant 0 : i32
    %c0_i32_0 = arith.constant 0 : i32
    %c0_i32_1 = arith.constant 0 : i32
    return %c0_i32, %c0_i32_0 : i32, i32
  }
  func.func @transform_2(%arg0: i32) -> (i32, i32) {
    %c0_i32 = arith.constant 0 : i32
    %c0_i32_0 = arith.constant 0 : i32
    %c0_i32_1 = arith.constant 0 : i32
    return %c0_i32, %c0_i32_0 : i32, i32
  }
  func.func @transform_3(%arg0: i32) -> (i32, i32) {
    %c0_i32 = arith.constant 0 : i32
    %c0_i32_0 = arith.constant 0 : i32
    %c0_i32_1 = arith.constant 0 : i32
    return %c0_i32, %c0_i32_0 : i32, i32
  }
  func.func @transform_4(%arg0: i32) -> (i32, i32) {
    %c0_i32 = arith.constant 0 : i32
    %c0_i32_0 = arith.constant 0 : i32
    %c0_i32_1 = arith.constant 0 : i32
    return %c0_i32, %c0_i32_0 : i32, i32
  }
  func.func @transform_5(%arg0: i32) -> (i32, i32) {
    %c0_i32 = arith.constant 0 : i32
    %c0_i32_0 = arith.constant 0 : i32
    %c0_i32_1 = arith.constant 0 : i32
    return %c0_i32, %c0_i32_0 : i32, i32
  }
  func.func @transform_6(%arg0: i32) -> (i32, i32) {
    %c0_i32 = arith.constant 0 : i32
    %c0_i32_0 = arith.constant 0 : i32
    %c0_i32_1 = arith.constant 0 : i32
    return %c0_i32, %c0_i32_0 : i32, i32
  }
  func.func @transform_7(%arg0: i32) -> (i32, i32) {
    %c0_i32 = arith.constant 0 : i32
    %c0_i32_0 = arith.constant 0 : i32
    return %arg0, %c0_i32 : i32, i32
  }
}

</mosaic_0001>

<bundles_post_ra>
// kernel: alexnet_forward.6
= control target key start
LH: loop header
LB: loop body
LE: loop exit
PB: predicated region body
PF: predicated region fallthrough
CT: control target
= control target key end

     0   :  { %s2405_s12 = smov 0   ;;  %s2938_s0 = inlined_call_operand.vmem [shape: bf16[1568,9], index: 0, kind: input, shape index: {}]   ;;  %s2939_s1 = inlined_call_operand.vmem [shape: bf16[9,64], index: 1, kind: input, shape index: {}]   ;;  %s2940_s2 = inlined_call_operand.vmem [shape: f32[1,64], index: 2, kind: input, shape index: {}]   ;;  %s2941_s3 = inlined_call_operand.vmem [shape: bf16[1568,64], index: 3, kind: output, shape index: {}]  }
   0x1 LB: > { %s1757_s13 = sadd.s32 4294967295, %s2380_s12   ;;  %p1761_p0 = scmp.ge.s32.totalorder %s2380_s12, 1  ;;  %s2380_s12 = sphi %s2405_s12, %s13_s12  }
   0x2   : > { %p138_p1 = scmp.lt.s32.totalorder %s2380_s12, 3 }
   0x4   : > { %p139_p2 = pnand %p1761_p0, %p138_p1 }
   0x5   : > { %vm680_vm0 = vcmask (!%p139_p2), 1043456   ;;  %v2382_v0 = vmov (!%p139_p2), 0.0   ;;  %v2323_v1 = vld [vmem:[%s2939_s1] sm:$0x1f] (!%p139_p2)   ;;  %vm681_vm1 = vcmask (!%p139_p2), 1044480   ;;  %s162_s16 = smul.u32 (!%p139_p2), 98, %s1757_s13 }
   0x6   : > { %142 = sbr.rel (%p139_p2) target bundleno = 430 (0x1ae), region = 32  ;;  %2112 = vmatprep.subr.bf16.mxu0 (!%p139_p2), %v2382_v0  ;;  %2310 = vmatprep.subr.bf16.mxu1 (!%p139_p2), %v2382_v0  ;;  %v2383_v2 = vmov (!%p139_p2), 65535   ;;  %vm2384_vm2 = vmmov (!%p139_p2), 0   ;;  %vm532_vm3 = vcmask (!%p139_p2), 72704   ;;  %v2627_v55 = vld [vmem:[%s2940_s2] ss:$0 sm:$0xff] (!%p139_p2) }
   0x7   : > { %v682_v3 = vsel (!%p139_p2), %vm680_vm0, 4294967295, %v2383_v2  ;;  %2114 = vmatprep.mubr.msk.bf16.mxu0 (!%p139_p2), %vm2384_vm2, %v2382_v0  ;;  %2214 = vmatprep.mubr.msk.bf16.mxu1 (!%p139_p2), %vm2384_vm2, %v2382_v0  ;;  %p163_p3 = scmp.lt.s32.totalorder (!%p139_p2), %s162_s16, 195  ;;  %vm1602_vm4 = vcmask (!%p139_p2), 519168  }
   0x8   : > { %v683_v4 = vsel (!%p139_p2), %vm681_vm1, %v682_v3, 0 }
   0x9   : > { %v685_v5 = vand.u32 (!%p139_p2), %v2323_v1, %v683_v4 }
   0xb   : > { %2113 = vmatpush3.bf16.msra.mxu0 (!%p139_p2), %v685_v5  ;;  %2311 = vmatpush3.bf16.msra.mxu1 (!%p139_p2), %v685_v5 }
   0xd   : > { %s2943_s16 = smov (!%p163_p3, %s162_s16), 195 }
   0xe   : > { %s1762_s17 = sshll.u32 %s2943_s16, 2 }
   0xf   : > { %s2430_s20 = scalar_lea.vmem %s2938_s0, %s1762_s17  ;;  %s2637_s25 = scalar_lea.vmem %s2941_s3, %s1762_s17 }
  0x10   : > { %v2324_v6 = vld [vmem:[%s2430_s20] sm:$0xff]   ;;  %v2325_v7 = vld [vmem:[%s2430_s20 + $0xc8] sm:$0xff]   ;;  %v2327_v9 = vld [vmem:[%s2430_s20 + $0xd0] sm:$0xff]  }
  0x11   : > { %2115 = vmatmul.mubr.msk.bf16.vlgmr.msra.gmra.mrb[0].mxu0 %vm532_vm3, %v2324_v6  ;;  %2215 = vmatmul.mubr.msk.bf16.vlgmr.msra.gmra.mrb[0].mxu1 %vm532_vm3, %v2325_v7  ;;  %v2326_v8 = vld [vmem:[%s2430_s20 + $0x8] sm:$0xff]   ;;  %v2328_v10 = vld [vmem:[%s2430_s20 + $0x10] sm:$0xff]   ;;  %v2329_v11 = vld [vmem:[%s2430_s20 + $0xd8] sm:$0xff]  }
  0x12   : > { %2118 = vmatprep.mubr.msk.bf16.mxu0 %vm2384_vm2, %v2382_v0  ;;  %2218 = vmatprep.mubr.msk.bf16.mxu1 %vm2384_vm2, %v2382_v0  ;;  %v2330_v12 = vld [vmem:[%s2430_s20 + $0x18] sm:$0xff]   ;;  %v2331_v13 = vld [vmem:[%s2430_s20 + $0xe0] sm:$0xff]   ;;  %v2333_v15 = vld [vmem:[%s2430_s20 + $0xe8] sm:$0xff]  }
  0x13   : > { %v2332_v14 = vld [vmem:[%s2430_s20 + $0x20] sm:$0xff]   ;;  %v2334_v16 = vld [vmem:[%s2430_s20 + $0x28] sm:$0xff]   ;;  %v2335_v17 = vld [vmem:[%s2430_s20 + $0xf0] sm:$0xff]  }
  0x14   : > { %v2336_v18 = vld [vmem:[%s2430_s20 + $0x30] sm:$0xff]   ;;  %v2337_v19 = vld [vmem:[%s2430_s20 + $0xf8] sm:$0xff]   ;;  %v2339_v21 = vld [vmem:[%s2430_s20 + $0x100] sm:$0xff]  }
  0x15   : > { %v2338_v20 = vld [vmem:[%s2430_s20 + $0x38] sm:$0xff]   ;;  %v2340_v22 = vld [vmem:[%s2430_s20 + $0x40] sm:$0xff]   ;;  %v2341_v23 = vld [vmem:[%s2430_s20 + $0x108] sm:$0xff]  }
  0x16   : > { %v2342_v24 = vld [vmem:[%s2430_s20 + $0x48] sm:$0xff]   ;;  %v2343_v25 = vld [vmem:[%s2430_s20 + $0x110] sm:$0xff]   ;;  %v2345_v27 = vld [vmem:[%s2430_s20 + $0x118] sm:$0xff]  }
  0x17   : > { %v2344_v26 = vld [vmem:[%s2430_s20 + $0x50] sm:$0xff]   ;;  %v2346_v28 = vld [vmem:[%s2430_s20 + $0x58] sm:$0xff]   ;;  %v2347_v29 = vld [vmem:[%s2430_s20 + $0x120] sm:$0xff]  }
  0x18   : > { %v2348_v30 = vld [vmem:[%s2430_s20 + $0x60] sm:$0xff]   ;;  %v2349_v31 = vld [vmem:[%s2430_s20 + $0x128] sm:$0xff]   ;;  %v2351_v33 = vld [vmem:[%s2430_s20 + $0x130] sm:$0xff]  }
  0x19   : > { %2119 = vmatmul.mubr.msk.bf16.gmra.mrb[4].mxu0 %vm532_vm3, %v2326_v8  ;;  %2219 = vmatmul.mubr.msk.bf16.gmra.mrb[4].mxu1 %vm532_vm3, %v2327_v9  ;;  %v2350_v32 = vld [vmem:[%s2430_s20 + $0x68] sm:$0xff]   ;;  %v2352_v34 = vld [vmem:[%s2430_s20 + $0x70] sm:$0xff]   ;;  %v2353_v35 = vld [vmem:[%s2430_s20 + $0x138] sm:$0xff]  }
  0x1a   : > { %2122 = vmatprep.mubr.msk.bf16.mxu0 %vm2384_vm2, %v2382_v0  ;;  %2222 = vmatprep.mubr.msk.bf16.mxu1 %vm2384_vm2, %v2382_v0  ;;  %v2354_v36 = vld [vmem:[%s2430_s20 + $0x78] sm:$0xff]   ;;  %v2355_v37 = vld [vmem:[%s2430_s20 + $0x140] sm:$0xff]   ;;  %v2357_v39 = vld [vmem:[%s2430_s20 + $0x148] sm:$0xff]  }
  0x1b   : > { %v2356_v38 = vld [vmem:[%s2430_s20 + $0x80] sm:$0xff]   ;;  %v2358_v40 = vld [vmem:[%s2430_s20 + $0x88] sm:$0xff]   ;;  %v2359_v41 = vld [vmem:[%s2430_s20 + $0x150] sm:$0xff]  }
  0x1c   : > { %v2360_v42 = vld [vmem:[%s2430_s20 + $0x90] sm:$0xff]   ;;  %v2361_v43 = vld [vmem:[%s2430_s20 + $0x158] sm:$0xff]   ;;  %v2363_v45 = vld [vmem:[%s2430_s20 + $0x160] sm:$0xff]  }
  0x1d   : > { %v2362_v44 = vld [vmem:[%s2430_s20 + $0x98] sm:$0xff]   ;;  %v2364_v46 = vld [vmem:[%s2430_s20 + $0xa0] sm:$0xff]   ;;  %v2365_v47 = vld [vmem:[%s2430_s20 + $0x168] sm:$0xff]  }
  0x1e   : > { %v2366_v48 = vld [vmem:[%s2430_s20 + $0xa8] sm:$0xff]   ;;  %v2367_v49 = vld [vmem:[%s2430_s20 + $0x170] sm:$0xff]   ;;  %v2369_v51 = vld [vmem:[%s2430_s20 + $0x178] sm:$0xff]  }
  0x1f   : > { %v2368_v50 = vld [vmem:[%s2430_s20 + $0xb0] sm:$0xff]   ;;  %v2370_v52 = vld [vmem:[%s2430_s20 + $0xb8] sm:$0xff]   ;;  %v2371_v53 = vld [vmem:[%s2430_s20 + $0x180] sm:$0xff]  }
  0x20   : > { %v2372_v54 = vld [vmem:[%s2430_s20 + $0xc0] sm:$0xff]  }
  0x21   : > { %2123 = vmatmul.mubr.msk.bf16.gmra.mrb[8].mxu0 %vm532_vm3, %v2328_v10  ;;  %2223 = vmatmul.mubr.msk.bf16.gmra.mrb[8].mxu1 %vm532_vm3, %v2329_v11 }
  0x22   : > { %2126 = vmatprep.mubr.msk.bf16.mxu0 %vm2384_vm2, %v2382_v0  ;;  %2226 = vmatprep.mubr.msk.bf16.mxu1 %vm2384_vm2, %v2382_v0 }
  0x29   : > { %2127 = vmatmul.mubr.msk.bf16.gmra.mrb[12].mxu0 %vm532_vm3, %v2330_v12  ;;  %2227 = vmatmul.mubr.msk.bf16.gmra.mrb[12].mxu1 %vm532_vm3, %v2331_v13 }
  0x2a   : > { %2130 = vmatprep.mubr.msk.bf16.mxu0 %vm2384_vm2, %v2382_v0  ;;  %2230 = vmatprep.mubr.msk.bf16.mxu1 %vm2384_vm2, %v2382_v0 }
  0x31   : > { %2131 = vmatmul.mubr.msk.bf16.gmra.mrb[16].mxu0 %vm532_vm3, %v2332_v14  ;;  %2231 = vmatmul.mubr.msk.bf16.gmra.mrb[16].mxu1 %vm532_vm3, %v2333_v15 }
  0x32   : > { %2134 = vmatprep.mubr.msk.bf16.mxu0 %vm2384_vm2, %v2382_v0  ;;  %2234 = vmatprep.mubr.msk.bf16.mxu1 %vm2384_vm2, %v2382_v0 }
  0x39   : > { %2135 = vmatmul.mubr.msk.bf16.gmra.mrb[20].mxu0 %vm532_vm3, %v2334_v16  ;;  %2235 = vmatmul.mubr.msk.bf16.gmra.mrb[20].mxu1 %vm532_vm3, %v2335_v17 }
  0x3a   : > { %2138 = vmatprep.mubr.msk.bf16.mxu0 %vm2384_vm2, %v2382_v0  ;;  %2238 = vmatprep.mubr.msk.bf16.mxu1 %vm2384_vm2, %v2382_v0 }
  0x41   : > { %2139 = vmatmul.mubr.msk.bf16.gmra.mrb[24].mxu0 %vm532_vm3, %v2336_v18  ;;  %2239 = vmatmul.mubr.msk.bf16.gmra.mrb[24].mxu1 %vm532_vm3, %v2337_v19 }
  0x42   : > { %2142 = vmatprep.mubr.msk.bf16.mxu0 %vm2384_vm2, %v2382_v0  ;;  %2242 = vmatprep.mubr.msk.bf16.mxu1 %vm2384_vm2, %v2382_v0 }
  0x49   : > { %2143 = vmatmul.mubr.msk.bf16.gmra.mrb[28].mxu0 %vm532_vm3, %v2338_v20  ;;  %2243 = vmatmul.mubr.msk.bf16.gmra.mrb[28].mxu1 %vm532_vm3, %v2339_v21 }
  0x4a   : > { %2146 = vmatprep.mubr.msk.bf16.mxu0 %vm2384_vm2, %v2382_v0  ;;  %2246 = vmatprep.mubr.msk.bf16.mxu1 %vm2384_vm2, %v2382_v0 }
  0x51   : > { %2147 = vmatmul.mubr.msk.bf16.gmra.mrb[32].mxu0 %vm532_vm3, %v2340_v22  ;;  %2247 = vmatmul.mubr.msk.bf16.gmra.mrb[32].mxu1 %vm532_vm3, %v2341_v23 }
  0x52   : > { %2150 = vmatprep.mubr.msk.bf16.mxu0 %vm2384_vm2, %v2382_v0  ;;  %2250 = vmatprep.mubr.msk.bf16.mxu1 %vm2384_vm2, %v2382_v0 }
  0x59   : > { %2151 = vmatmul.mubr.msk.bf16.gmra.mrb[36].mxu0 %vm532_vm3, %v2342_v24  ;;  %2251 = vmatmul.mubr.msk.bf16.gmra.mrb[36].mxu1 %vm532_vm3, %v2343_v25 }
  0x5a   : > { %2154 = vmatprep.mubr.msk.bf16.mxu0 %vm2384_vm2, %v2382_v0  ;;  %2254 = vmatprep.mubr.msk.bf16.mxu1 %vm2384_vm2, %v2382_v0 }
  0x61   : > { %2155 = vmatmul.mubr.msk.bf16.gmra.mrb[40].mxu0 %vm532_vm3, %v2344_v26  ;;  %2255 = vmatmul.mubr.msk.bf16.gmra.mrb[40].mxu1 %vm532_vm3, %v2345_v27 }
  0x62   : > { %2158 = vmatprep.mubr.msk.bf16.mxu0 %vm2384_vm2, %v2382_v0  ;;  %2258 = vmatprep.mubr.msk.bf16.mxu1 %vm2384_vm2, %v2382_v0 }
  0x69   : > { %2159 = vmatmul.mubr.msk.bf16.gmra.mrb[44].mxu0 %vm532_vm3, %v2346_v28  ;;  %2259 = vmatmul.mubr.msk.bf16.gmra.mrb[44].mxu1 %vm532_vm3, %v2347_v29 }
  0x6a   : > { %2162 = vmatprep.mubr.msk.bf16.mxu0 %vm2384_vm2, %v2382_v0  ;;  %2262 = vmatprep.mubr.msk.bf16.mxu1 %vm2384_vm2, %v2382_v0 }
  0x71   : > { %2163 = vmatmul.mubr.msk.bf16.gmra.mrb[48].mxu0 %vm532_vm3, %v2348_v30  ;;  %2263 = vmatmul.mubr.msk.bf16.gmra.mrb[48].mxu1 %vm532_vm3, %v2349_v31 }
  0x72   : > { %2166 = vmatprep.mubr.msk.bf16.mxu0 %vm2384_vm2, %v2382_v0  ;;  %2266 = vmatprep.mubr.msk.bf16.mxu1 %vm2384_vm2, %v2382_v0 }
  0x79   : > { %2167 = vmatmul.mubr.msk.bf16.gmra.mrb[52].mxu0 %vm532_vm3, %v2350_v32  ;;  %2267 = vmatmul.mubr.msk.bf16.gmra.mrb[52].mxu1 %vm532_vm3, %v2351_v33 }
  0x7a   : > { %2170 = vmatprep.mubr.msk.bf16.mxu0 %vm2384_vm2, %v2382_v0  ;;  %2270 = vmatprep.mubr.msk.bf16.mxu1 %vm2384_vm2, %v2382_v0 }
  0x81   : > { %2171 = vmatmul.mubr.msk.bf16.gmra.mrb[56].mxu0 %vm532_vm3, %v2352_v34  ;;  %2271 = vmatmul.mubr.msk.bf16.gmra.mrb[56].mxu1 %vm532_vm3, %v2353_v35 }
  0x82   : > { %2174 = vmatprep.mubr.msk.bf16.mxu0 %vm2384_vm2, %v2382_v0  ;;  %2274 = vmatprep.mubr.msk.bf16.mxu1 %vm2384_vm2, %v2382_v0 }
  0x89   : > { %2175 = vmatmul.mubr.msk.bf16.gmra.mrb[60].mxu0 %vm532_vm3, %v2354_v36  ;;  %2275 = vmatmul.mubr.msk.bf16.gmra.mrb[60].mxu1 %vm532_vm3, %v2355_v37 }
  0x8a   : > { %2178 = vmatprep.mubr.msk.bf16.mxu0 %vm2384_vm2, %v2382_v0  ;;  %2278 = vmatprep.mubr.msk.bf16.mxu1 %vm2384_vm2, %v2382_v0 }
  0x91   : > { %2179 = vmatmul.mubr.msk.bf16.gmra.mrb[64].mxu0 %vm532_vm3, %v2356_v38  ;;  %2279 = vmatmul.mubr.msk.bf16.gmra.mrb[64].mxu1 %vm532_vm3, %v2357_v39 }
  0x92   : > { %2182 = vmatprep.mubr.msk.bf16.mxu0 %vm2384_vm2, %v2382_v0  ;;  %2282 = vmatprep.mubr.msk.bf16.mxu1 %vm2384_vm2, %v2382_v0 }
  0x99   : > { %2183 = vmatmul.mubr.msk.bf16.gmra.mrb[68].mxu0 %vm532_vm3, %v2358_v40  ;;  %2283 = vmatmul.mubr.msk.bf16.gmra.mrb[68].mxu1 %vm532_vm3, %v2359_v41 }
  0x9a   : > { %2186 = vmatprep.mubr.msk.bf16.mxu0 %vm2384_vm2, %v2382_v0  ;;  %2286 = vmatprep.mubr.msk.bf16.mxu1 %vm2384_vm2, %v2382_v0 }
  0xa1   : > { %2187 = vmatmul.mubr.msk.bf16.gmra.mrb[72].mxu0 %vm532_vm3, %v2360_v42  ;;  %2287 = vmatmul.mubr.msk.bf16.gmra.mrb[72].mxu1 %vm532_vm3, %v2361_v43 }
  0xa2   : > { %2190 = vmatprep.mubr.msk.bf16.mxu0 %vm2384_vm2, %v2382_v0  ;;  %2290 = vmatprep.mubr.msk.bf16.mxu1 %vm2384_vm2, %v2382_v0 }
  0xa9   : > { %2191 = vmatmul.mubr.msk.bf16.gmra.mrb[76].mxu0 %vm532_vm3, %v2362_v44  ;;  %2291 = vmatmul.mubr.msk.bf16.gmra.mrb[76].mxu1 %vm532_vm3, %v2363_v45 }
  0xaa   : > { %2194 = vmatprep.mubr.msk.bf16.mxu0 %vm2384_vm2, %v2382_v0  ;;  %2294 = vmatprep.mubr.msk.bf16.mxu1 %vm2384_vm2, %v2382_v0 }
  0xb1   : > { %2195 = vmatmul.mubr.msk.bf16.gmra.mrb[80].mxu0 %vm532_vm3, %v2364_v46  ;;  %2295 = vmatmul.mubr.msk.bf16.gmra.mrb[80].mxu1 %vm532_vm3, %v2365_v47 }
  0xb2   : > { %2198 = vmatprep.mubr.msk.bf16.mxu0 %vm2384_vm2, %v2382_v0  ;;  %2298 = vmatprep.mubr.msk.bf16.mxu1 %vm2384_vm2, %v2382_v0 }
  0xb9   : > { %2199 = vmatmul.mubr.msk.bf16.gmra.mrb[84].mxu0 %vm532_vm3, %v2366_v48  ;;  %2299 = vmatmul.mubr.msk.bf16.gmra.mrb[84].mxu1 %vm532_vm3, %v2367_v49 }
  0xba   : > { %2202 = vmatprep.mubr.msk.bf16.mxu0 %vm2384_vm2, %v2382_v0  ;;  %2302 = vmatprep.mubr.msk.bf16.mxu1 %vm2384_vm2, %v2382_v0 }
  0xc1   : > { %2203 = vmatmul.mubr.msk.bf16.gmra.mrb[88].mxu0 %vm532_vm3, %v2368_v50  ;;  %2303 = vmatmul.mubr.msk.bf16.gmra.mrb[88].mxu1 %vm532_vm3, %v2369_v51 }
  0xc2   : > { %2206 = vmatprep.mubr.msk.bf16.mxu0 %vm2384_vm2, %v2382_v0  ;;  %2306 = vmatprep.mubr.msk.bf16.mxu1 %vm2384_vm2, %v2382_v0 }
  0xc9   : > { %2207 = vmatmul.mubr.msk.bf16.gmra.mrb[92].mxu0 %vm532_vm3, %v2370_v52  ;;  %2307 = vmatmul.mubr.msk.bf16.gmra.mrb[92].mxu1 %vm532_vm3, %v2371_v53 }
  0xca   : > { %2210 = vmatprep.mubr.msk.bf16.mxu0 %vm2384_vm2, %v2382_v0 }
  0xd1   : > { %2211 = vmatmul.mubr.msk.bf16.gmra.mrb[96].mxu0 %vm532_vm3, %v2372_v54 }
  0xe4   : > { %v721_v56 = vpop.f32.mrb[0].mxu0  ;;  %v921_v59 = vpop.f32.mrb[0].mxu1 }
  0xe5   : > { %v722_v57 = vadd.f32 %v2627_v55, %v721_v56  ;;  %v2116_v58 = vpop.f32.mrb[1].mxu0  ;;  %v922_v61 = vadd.f32 %v2627_v55, %v921_v59  ;;  %v2216_v62 = vpop.f32.mrb[1].mxu1 }
  0xe6   : > { %v724_v60 = vpop.f32.mrb[2].mxu0  ;;  %v924_v2 = vpop.f32.mrb[2].mxu1 }
  0xe7   : > { %v1112_v63 = vmax.f32 %v722_v57, 0.0  ;;  %v725_v0 = vadd.f32 %v2627_v55, %v724_v60  ;;  %v2117_v1 = vpop.f32.mrb[3].mxu0  ;;  %v1162_v3 = vmax.f32 %v922_v61, 0.0  ;;  %v925_v4 = vadd.f32 %v2627_v55, %v924_v2  ;;  %v2217_v5 = vpop.f32.mrb[3].mxu1 }
  0xe9   : > { %v1964_v6 = vpack.c.bf16 %v1112_v63, %v1112_v63  ;;  %v1113_v7 = vmax.f32 %v725_v0, 0.0  ;;  %v2014_v8 = vpack.c.bf16 %v1162_v3, %v1162_v3  ;;  %v1163_v9 = vmax.f32 %v925_v4, 0.0 }
  0xeb   : > { %1603 = vst.msk [vmem:[%s2637_s25] sm:$0xf] %vm1602_vm4, %v1964_v6  ;;  %v1965_v10 = vpack.c.bf16 %v1113_v7, %v1113_v7  ;;  %1653 = vst.msk [vmem:[%s2637_s25 + $0xc8] sm:$0xf] %vm1602_vm4, %v2014_v8  ;;  %v2015_v11 = vpack.c.bf16 %v1163_v9, %v1163_v9 }
  0xec   : > { %v729_v12 = vpop.f32.mrb[4].mxu0  ;;  %v929_v15 = vpop.f32.mrb[4].mxu1 }
  0xed   : > { %1604 = vst.msk [vmem:[%s2637_s25 + $0x4] sm:$0xf] %vm1602_vm4, %v1965_v10  ;;  %v730_v13 = vadd.f32 %v2627_v55, %v729_v12  ;;  %v2120_v14 = vpop.f32.mrb[5].mxu0  ;;  %1654 = vst.msk [vmem:[%s2637_s25 + $0xcc] sm:$0xf] %vm1602_vm4, %v2015_v11  ;;  %v930_v17 = vadd.f32 %v2627_v55, %v929_v15  ;;  %v2220_v18 = vpop.f32.mrb[5].mxu1 }
  0xee   : > { %v732_v16 = vpop.f32.mrb[6].mxu0  ;;  %v932_v22 = vpop.f32.mrb[6].mxu1 }
  0xef   : > { %v1114_v19 = vmax.f32 %v730_v13, 0.0  ;;  %v733_v20 = vadd.f32 %v2627_v55, %v732_v16  ;;  %v2121_v21 = vpop.f32.mrb[7].mxu0  ;;  %v1164_v23 = vmax.f32 %v930_v17, 0.0  ;;  %v933_v24 = vadd.f32 %v2627_v55, %v932_v22  ;;  %v2221_v25 = vpop.f32.mrb[7].mxu1 }
  0xf1   : > { %v1966_v26 = vpack.c.bf16 %v1114_v19, %v1114_v19  ;;  %v1115_v27 = vmax.f32 %v733_v20, 0.0  ;;  %v2016_v28 = vpack.c.bf16 %v1164_v23, %v1164_v23  ;;  %v1165_v29 = vmax.f32 %v933_v24, 0.0 }
  0xf3   : > { %1605 = vst.msk [vmem:[%s2637_s25 + $0x8] sm:$0xf] %vm1602_vm4, %v1966_v26  ;;  %v1967_v30 = vpack.c.bf16 %v1115_v27, %v1115_v27  ;;  %1655 = vst.msk [vmem:[%s2637_s25 + $0xd0] sm:$0xf] %vm1602_vm4, %v2016_v28  ;;  %v2017_v31 = vpack.c.bf16 %v1165_v29, %v1165_v29 }
  0xf4   : > { %v737_v32 = vpop.f32.mrb[8].mxu0  ;;  %v937_v35 = vpop.f32.mrb[8].mxu1 }
  0xf5   : > { %1606 = vst.msk [vmem:[%s2637_s25 + $0xc] sm:$0xf] %vm1602_vm4, %v1967_v30  ;;  %v738_v33 = vadd.f32 %v2627_v55, %v737_v32  ;;  %v2124_v34 = vpop.f32.mrb[9].mxu0  ;;  %1656 = vst.msk [vmem:[%s2637_s25 + $0xd4] sm:$0xf] %vm1602_vm4, %v2017_v31  ;;  %v938_v37 = vadd.f32 %v2627_v55, %v937_v35  ;;  %v2224_v38 = vpop.f32.mrb[9].mxu1 }
  0xf6   : > { %v740_v36 = vpop.f32.mrb[10].mxu0  ;;  %v940_v42 = vpop.f32.mrb[10].mxu1 }
  0xf7   : > { %v1116_v39 = vmax.f32 %v738_v33, 0.0  ;;  %v741_v40 = vadd.f32 %v2627_v55, %v740_v36  ;;  %v2125_v41 = vpop.f32.mrb[11].mxu0  ;;  %v1166_v43 = vmax.f32 %v938_v37, 0.0  ;;  %v941_v44 = vadd.f32 %v2627_v55, %v940_v42  ;;  %v2225_v45 = vpop.f32.mrb[11].mxu1 }
  0xf9   : > { %v1968_v46 = vpack.c.bf16 %v1116_v39, %v1116_v39  ;;  %v1117_v47 = vmax.f32 %v741_v40, 0.0  ;;  %v2018_v48 = vpack.c.bf16 %v1166_v43, %v1166_v43  ;;  %v1167_v49 = vmax.f32 %v941_v44, 0.0 }
  0xfb   : > { %1607 = vst.msk [vmem:[%s2637_s25 + $0x10] sm:$0xf] %vm1602_vm4, %v1968_v46  ;;  %v1969_v50 = vpack.c.bf16 %v1117_v47, %v1117_v47  ;;  %1657 = vst.msk [vmem:[%s2637_s25 + $0xd8] sm:$0xf] %vm1602_vm4, %v2018_v48  ;;  %v2019_v51 = vpack.c.bf16 %v1167_v49, %v1167_v49 }
  0xfc   : > { %v745_v52 = vpop.f32.mrb[12].mxu0  ;;  %v945_v56 = vpop.f32.mrb[12].mxu1 }
  0xfd   : > { %1608 = vst.msk [vmem:[%s2637_s25 + $0x14] sm:$0xf] %vm1602_vm4, %v1969_v50  ;;  %v746_v53 = vadd.f32 %v2627_v55, %v745_v52  ;;  %v2128_v54 = vpop.f32.mrb[13].mxu0  ;;  %1658 = vst.msk [vmem:[%s2637_s25 + $0xdc] sm:$0xf] %vm1602_vm4, %v2019_v51  ;;  %v946_v58 = vadd.f32 %v2627_v55, %v945_v56  ;;  %v2228_v59 = vpop.f32.mrb[13].mxu1 }
  0xfe   : > { %v748_v57 = vpop.f32.mrb[14].mxu0  ;;  %v948_v63 = vpop.f32.mrb[14].mxu1 }
  0xff   : > { %v1118_v60 = vmax.f32 %v746_v53, 0.0  ;;  %v749_v61 = vadd.f32 %v2627_v55, %v748_v57  ;;  %v2129_v62 = vpop.f32.mrb[15].mxu0  ;;  %v1168_v0 = vmax.f32 %v946_v58, 0.0  ;;  %v949_v1 = vadd.f32 %v2627_v55, %v948_v63  ;;  %v2229_v2 = vpop.f32.mrb[15].mxu1 }
 0x101   : > { %v1970_v3 = vpack.c.bf16 %v1118_v60, %v1118_v60  ;;  %v1119_v4 = vmax.f32 %v749_v61, 0.0  ;;  %v2020_v5 = vpack.c.bf16 %v1168_v0, %v1168_v0  ;;  %v1169_v6 = vmax.f32 %v949_v1, 0.0 }
 0x103   : > { %1609 = vst.msk [vmem:[%s2637_s25 + $0x18] sm:$0xf] %vm1602_vm4, %v1970_v3  ;;  %v1971_v7 = vpack.c.bf16 %v1119_v4, %v1119_v4  ;;  %1659 = vst.msk [vmem:[%s2637_s25 + $0xe0] sm:$0xf] %vm1602_vm4, %v2020_v5  ;;  %v2021_v8 = vpack.c.bf16 %v1169_v6, %v1169_v6 }
 0x104   : > { %v753_v9 = vpop.f32.mrb[16].mxu0  ;;  %v953_v12 = vpop.f32.mrb[16].mxu1 }
 0x105   : > { %1610 = vst.msk [vmem:[%s2637_s25 + $0x1c] sm:$0xf] %vm1602_vm4, %v1971_v7  ;;  %v754_v10 = vadd.f32 %v2627_v55, %v753_v9  ;;  %v2132_v11 = vpop.f32.mrb[17].mxu0  ;;  %1660 = vst.msk [vmem:[%s2637_s25 + $0xe4] sm:$0xf] %vm1602_vm4, %v2021_v8  ;;  %v954_v14 = vadd.f32 %v2627_v55, %v953_v12  ;;  %v2232_v15 = vpop.f32.mrb[17].mxu1 }
 0x106   : > { %v756_v13 = vpop.f32.mrb[18].mxu0  ;;  %v956_v19 = vpop.f32.mrb[18].mxu1 }
 0x107   : > { %v1120_v16 = vmax.f32 %v754_v10, 0.0  ;;  %v757_v17 = vadd.f32 %v2627_v55, %v756_v13  ;;  %v2133_v18 = vpop.f32.mrb[19].mxu0  ;;  %v1170_v20 = vmax.f32 %v954_v14, 0.0  ;;  %v957_v21 = vadd.f32 %v2627_v55, %v956_v19  ;;  %v2233_v22 = vpop.f32.mrb[19].mxu1 }
 0x109   : > { %v1972_v23 = vpack.c.bf16 %v1120_v16, %v1120_v16  ;;  %v1121_v24 = vmax.f32 %v757_v17, 0.0  ;;  %v2022_v25 = vpack.c.bf16 %v1170_v20, %v1170_v20  ;;  %v1171_v26 = vmax.f32 %v957_v21, 0.0 }
 0x10b   : > { %1611 = vst.msk [vmem:[%s2637_s25 + $0x20] sm:$0xf] %vm1602_vm4, %v1972_v23  ;;  %v1973_v27 = vpack.c.bf16 %v1121_v24, %v1121_v24  ;;  %1661 = vst.msk [vmem:[%s2637_s25 + $0xe8] sm:$0xf] %vm1602_vm4, %v2022_v25  ;;  %v2023_v28 = vpack.c.bf16 %v1171_v26, %v1171_v26 }
 0x10c   : > { %v761_v29 = vpop.f32.mrb[20].mxu0  ;;  %v961_v32 = vpop.f32.mrb[20].mxu1 }
 0x10d   : > { %1612 = vst.msk [vmem:[%s2637_s25 + $0x24] sm:$0xf] %vm1602_vm4, %v1973_v27  ;;  %v762_v30 = vadd.f32 %v2627_v55, %v761_v29  ;;  %v2136_v31 = vpop.f32.mrb[21].mxu0  ;;  %1662 = vst.msk [vmem:[%s2637_s25 + $0xec] sm:$0xf] %vm1602_vm4, %v2023_v28  ;;  %v962_v34 = vadd.f32 %v2627_v55, %v961_v32  ;;  %v2236_v35 = vpop.f32.mrb[21].mxu1 }
 0x10e   : > { %v764_v33 = vpop.f32.mrb[22].mxu0  ;;  %v964_v39 = vpop.f32.mrb[22].mxu1 }
 0x10f   : > { %v1122_v36 = vmax.f32 %v762_v30, 0.0  ;;  %v765_v37 = vadd.f32 %v2627_v55, %v764_v33  ;;  %v2137_v38 = vpop.f32.mrb[23].mxu0  ;;  %v1172_v40 = vmax.f32 %v962_v34, 0.0  ;;  %v965_v41 = vadd.f32 %v2627_v55, %v964_v39  ;;  %v2237_v42 = vpop.f32.mrb[23].mxu1 }
 0x111   : > { %v1974_v43 = vpack.c.bf16 %v1122_v36, %v1122_v36  ;;  %v1123_v44 = vmax.f32 %v765_v37, 0.0  ;;  %v2024_v45 = vpack.c.bf16 %v1172_v40, %v1172_v40  ;;  %v1173_v46 = vmax.f32 %v965_v41, 0.0 }
 0x113   : > { %1613 = vst.msk [vmem:[%s2637_s25 + $0x28] sm:$0xf] %vm1602_vm4, %v1974_v43  ;;  %v1975_v47 = vpack.c.bf16 %v1123_v44, %v1123_v44  ;;  %1663 = vst.msk [vmem:[%s2637_s25 + $0xf0] sm:$0xf] %vm1602_vm4, %v2024_v45  ;;  %v2025_v48 = vpack.c.bf16 %v1173_v46, %v1173_v46 }
 0x114   : > { %v769_v49 = vpop.f32.mrb[24].mxu0  ;;  %v969_v52 = vpop.f32.mrb[24].mxu1 }
 0x115   : > { %1614 = vst.msk [vmem:[%s2637_s25 + $0x2c] sm:$0xf] %vm1602_vm4, %v1975_v47  ;;  %v770_v50 = vadd.f32 %v2627_v55, %v769_v49  ;;  %v2140_v51 = vpop.f32.mrb[25].mxu0  ;;  %1664 = vst.msk [vmem:[%s2637_s25 + $0xf4] sm:$0xf] %vm1602_vm4, %v2025_v48  ;;  %v970_v54 = vadd.f32 %v2627_v55, %v969_v52  ;;  %v2240_v56 = vpop.f32.mrb[25].mxu1 }
 0x116   : > { %v772_v53 = vpop.f32.mrb[26].mxu0  ;;  %v972_v60 = vpop.f32.mrb[26].mxu1 }
 0x117   : > { %v1124_v57 = vmax.f32 %v770_v50, 0.0  ;;  %v773_v58 = vadd.f32 %v2627_v55, %v772_v53  ;;  %v2141_v59 = vpop.f32.mrb[27].mxu0  ;;  %v1174_v61 = vmax.f32 %v970_v54, 0.0  ;;  %v973_v62 = vadd.f32 %v2627_v55, %v972_v60  ;;  %v2241_v63 = vpop.f32.mrb[27].mxu1 }
 0x119   : > { %v1976_v0 = vpack.c.bf16 %v1124_v57, %v1124_v57  ;;  %v1125_v1 = vmax.f32 %v773_v58, 0.0  ;;  %v2026_v2 = vpack.c.bf16 %v1174_v61, %v1174_v61  ;;  %v1175_v3 = vmax.f32 %v973_v62, 0.0 }
 0x11b   : > { %1615 = vst.msk [vmem:[%s2637_s25 + $0x30] sm:$0xf] %vm1602_vm4, %v1976_v0  ;;  %v1977_v4 = vpack.c.bf16 %v1125_v1, %v1125_v1  ;;  %1665 = vst.msk [vmem:[%s2637_s25 + $0xf8] sm:$0xf] %vm1602_vm4, %v2026_v2  ;;  %v2027_v5 = vpack.c.bf16 %v1175_v3, %v1175_v3 }
 0x11c   : > { %v777_v6 = vpop.f32.mrb[28].mxu0  ;;  %v977_v9 = vpop.f32.mrb[28].mxu1 }
 0x11d   : > { %1616 = vst.msk [vmem:[%s2637_s25 + $0x34] sm:$0xf] %vm1602_vm4, %v1977_v4  ;;  %v778_v7 = vadd.f32 %v2627_v55, %v777_v6  ;;  %v2144_v8 = vpop.f32.mrb[29].mxu0  ;;  %1666 = vst.msk [vmem:[%s2637_s25 + $0xfc] sm:$0xf] %vm1602_vm4, %v2027_v5  ;;  %v978_v11 = vadd.f32 %v2627_v55, %v977_v9  ;;  %v2244_v12 = vpop.f32.mrb[29].mxu1 }
 0x11e   : > { %v780_v10 = vpop.f32.mrb[30].mxu0  ;;  %v980_v16 = vpop.f32.mrb[30].mxu1 }
 0x11f   : > { %v1126_v13 = vmax.f32 %v778_v7, 0.0  ;;  %v781_v14 = vadd.f32 %v2627_v55, %v780_v10  ;;  %v2145_v15 = vpop.f32.mrb[31].mxu0  ;;  %v1176_v17 = vmax.f32 %v978_v11, 0.0  ;;  %v981_v18 = vadd.f32 %v2627_v55, %v980_v16  ;;  %v2245_v19 = vpop.f32.mrb[31].mxu1 }
 0x121   : > { %v1978_v20 = vpack.c.bf16 %v1126_v13, %v1126_v13  ;;  %v1127_v21 = vmax.f32 %v781_v14, 0.0  ;;  %v2028_v22 = vpack.c.bf16 %v1176_v17, %v1176_v17  ;;  %v1177_v23 = vmax.f32 %v981_v18, 0.0 }
 0x123   : > { %1617 = vst.msk [vmem:[%s2637_s25 + $0x38] sm:$0xf] %vm1602_vm4, %v1978_v20  ;;  %v1979_v24 = vpack.c.bf16 %v1127_v21, %v1127_v21  ;;  %1667 = vst.msk [vmem:[%s2637_s25 + $0x100] sm:$0xf] %vm1602_vm4, %v2028_v22  ;;  %v2029_v25 = vpack.c.bf16 %v1177_v23, %v1177_v23 }
 0x124   : > { %v785_v26 = vpop.f32.mrb[32].mxu0  ;;  %v985_v29 = vpop.f32.mrb[32].mxu1 }
 0x125   : > { %1618 = vst.msk [vmem:[%s2637_s25 + $0x3c] sm:$0xf] %vm1602_vm4, %v1979_v24  ;;  %v786_v27 = vadd.f32 %v2627_v55, %v785_v26  ;;  %v2148_v28 = vpop.f32.mrb[33].mxu0  ;;  %1668 = vst.msk [vmem:[%s2637_s25 + $0x104] sm:$0xf] %vm1602_vm4, %v2029_v25  ;;  %v986_v31 = vadd.f32 %v2627_v55, %v985_v29  ;;  %v2248_v32 = vpop.f32.mrb[33].mxu1 }
 0x126   : > { %v788_v30 = vpop.f32.mrb[34].mxu0  ;;  %v988_v36 = vpop.f32.mrb[34].mxu1 }
 0x127   : > { %v1128_v33 = vmax.f32 %v786_v27, 0.0  ;;  %v789_v34 = vadd.f32 %v2627_v55, %v788_v30  ;;  %v2149_v35 = vpop.f32.mrb[35].mxu0  ;;  %v1178_v37 = vmax.f32 %v986_v31, 0.0  ;;  %v989_v38 = vadd.f32 %v2627_v55, %v988_v36  ;;  %v2249_v39 = vpop.f32.mrb[35].mxu1 }
 0x129   : > { %v1980_v40 = vpack.c.bf16 %v1128_v33, %v1128_v33  ;;  %v1129_v41 = vmax.f32 %v789_v34, 0.0  ;;  %v2030_v42 = vpack.c.bf16 %v1178_v37, %v1178_v37  ;;  %v1179_v43 = vmax.f32 %v989_v38, 0.0 }
 0x12b   : > { %1619 = vst.msk [vmem:[%s2637_s25 + $0x40] sm:$0xf] %vm1602_vm4, %v1980_v40  ;;  %v1981_v44 = vpack.c.bf16 %v1129_v41, %v1129_v41  ;;  %1669 = vst.msk [vmem:[%s2637_s25 + $0x108] sm:$0xf] %vm1602_vm4, %v2030_v42  ;;  %v2031_v45 = vpack.c.bf16 %v1179_v43, %v1179_v43 }
 0x12c   : > { %v793_v46 = vpop.f32.mrb[36].mxu0  ;;  %v993_v49 = vpop.f32.mrb[36].mxu1 }
 0x12d   : > { %1620 = vst.msk [vmem:[%s2637_s25 + $0x44] sm:$0xf] %vm1602_vm4, %v1981_v44  ;;  %v794_v47 = vadd.f32 %v2627_v55, %v793_v46  ;;  %v2152_v48 = vpop.f32.mrb[37].mxu0  ;;  %1670 = vst.msk [vmem:[%s2637_s25 + $0x10c] sm:$0xf] %vm1602_vm4, %v2031_v45  ;;  %v994_v51 = vadd.f32 %v2627_v55, %v993_v49  ;;  %v2252_v52 = vpop.f32.mrb[37].mxu1 }
 0x12e   : > { %v796_v50 = vpop.f32.mrb[38].mxu0  ;;  %v996_v57 = vpop.f32.mrb[38].mxu1 }
 0x12f   : > { %v1130_v53 = vmax.f32 %v794_v47, 0.0  ;;  %v797_v54 = vadd.f32 %v2627_v55, %v796_v50  ;;  %v2153_v56 = vpop.f32.mrb[39].mxu0  ;;  %v1180_v58 = vmax.f32 %v994_v51, 0.0  ;;  %v997_v59 = vadd.f32 %v2627_v55, %v996_v57  ;;  %v2253_v60 = vpop.f32.mrb[39].mxu1 }
 0x131   : > { %v1982_v61 = vpack.c.bf16 %v1130_v53, %v1130_v53  ;;  %v1131_v62 = vmax.f32 %v797_v54, 0.0  ;;  %v2032_v63 = vpack.c.bf16 %v1180_v58, %v1180_v58  ;;  %v1181_v0 = vmax.f32 %v997_v59, 0.0 }
 0x133   : > { %1621 = vst.msk [vmem:[%s2637_s25 + $0x48] sm:$0xf] %vm1602_vm4, %v1982_v61  ;;  %v1983_v1 = vpack.c.bf16 %v1131_v62, %v1131_v62  ;;  %1671 = vst.msk [vmem:[%s2637_s25 + $0x110] sm:$0xf] %vm1602_vm4, %v2032_v63  ;;  %v2033_v2 = vpack.c.bf16 %v1181_v0, %v1181_v0 }
 0x134   : > { %v801_v3 = vpop.f32.mrb[40].mxu0  ;;  %v1001_v6 = vpop.f32.mrb[40].mxu1 }
 0x135   : > { %1622 = vst.msk [vmem:[%s2637_s25 + $0x4c] sm:$0xf] %vm1602_vm4, %v1983_v1  ;;  %v802_v4 = vadd.f32 %v2627_v55, %v801_v3  ;;  %v2156_v5 = vpop.f32.mrb[41].mxu0  ;;  %1672 = vst.msk [vmem:[%s2637_s25 + $0x114] sm:$0xf] %vm1602_vm4, %v2033_v2  ;;  %v1002_v8 = vadd.f32 %v2627_v55, %v1001_v6  ;;  %v2256_v9 = vpop.f32.mrb[41].mxu1 }
 0x136   : > { %v804_v7 = vpop.f32.mrb[42].mxu0  ;;  %v1004_v13 = vpop.f32.mrb[42].mxu1 }
 0x137   : > { %v1132_v10 = vmax.f32 %v802_v4, 0.0  ;;  %v805_v11 = vadd.f32 %v2627_v55, %v804_v7  ;;  %v2157_v12 = vpop.f32.mrb[43].mxu0  ;;  %v1182_v14 = vmax.f32 %v1002_v8, 0.0  ;;  %v1005_v15 = vadd.f32 %v2627_v55, %v1004_v13  ;;  %v2257_v16 = vpop.f32.mrb[43].mxu1 }
 0x139   : > { %v1984_v17 = vpack.c.bf16 %v1132_v10, %v1132_v10  ;;  %v1133_v18 = vmax.f32 %v805_v11, 0.0  ;;  %v2034_v19 = vpack.c.bf16 %v1182_v14, %v1182_v14  ;;  %v1183_v20 = vmax.f32 %v1005_v15, 0.0 }
 0x13b   : > { %1623 = vst.msk [vmem:[%s2637_s25 + $0x50] sm:$0xf] %vm1602_vm4, %v1984_v17  ;;  %v1985_v21 = vpack.c.bf16 %v1133_v18, %v1133_v18  ;;  %1673 = vst.msk [vmem:[%s2637_s25 + $0x118] sm:$0xf] %vm1602_vm4, %v2034_v19  ;;  %v2035_v22 = vpack.c.bf16 %v1183_v20, %v1183_v20 }
 0x13c   : > { %v809_v23 = vpop.f32.mrb[44].mxu0  ;;  %v1009_v26 = vpop.f32.mrb[44].mxu1 }
 0x13d   : > { %1624 = vst.msk [vmem:[%s2637_s25 + $0x54] sm:$0xf] %vm1602_vm4, %v1985_v21  ;;  %v810_v24 = vadd.f32 %v2627_v55, %v809_v23  ;;  %v2160_v25 = vpop.f32.mrb[45].mxu0  ;;  %1674 = vst.msk [vmem:[%s2637_s25 + $0x11c] sm:$0xf] %vm1602_vm4, %v2035_v22  ;;  %v1010_v28 = vadd.f32 %v2627_v55, %v1009_v26  ;;  %v2260_v29 = vpop.f32.mrb[45].mxu1 }
 0x13e   : > { %v812_v27 = vpop.f32.mrb[46].mxu0  ;;  %v1012_v33 = vpop.f32.mrb[46].mxu1 }
 0x13f   : > { %v1134_v30 = vmax.f32 %v810_v24, 0.0  ;;  %v813_v31 = vadd.f32 %v2627_v55, %v812_v27  ;;  %v2161_v32 = vpop.f32.mrb[47].mxu0  ;;  %v1184_v34 = vmax.f32 %v1010_v28, 0.0  ;;  %v1013_v35 = vadd.f32 %v2627_v55, %v1012_v33  ;;  %v2261_v36 = vpop.f32.mrb[47].mxu1 }
 0x141   : > { %v1986_v37 = vpack.c.bf16 %v1134_v30, %v1134_v30  ;;  %v1135_v38 = vmax.f32 %v813_v31, 0.0  ;;  %v2036_v39 = vpack.c.bf16 %v1184_v34, %v1184_v34  ;;  %v1185_v40 = vmax.f32 %v1013_v35, 0.0 }
 0x143   : > { %1625 = vst.msk [vmem:[%s2637_s25 + $0x58] sm:$0xf] %vm1602_vm4, %v1986_v37  ;;  %v1987_v41 = vpack.c.bf16 %v1135_v38, %v1135_v38  ;;  %1675 = vst.msk [vmem:[%s2637_s25 + $0x120] sm:$0xf] %vm1602_vm4, %v2036_v39  ;;  %v2037_v42 = vpack.c.bf16 %v1185_v40, %v1185_v40 }
 0x144   : > { %v817_v43 = vpop.f32.mrb[48].mxu0  ;;  %v1017_v46 = vpop.f32.mrb[48].mxu1 }
 0x145   : > { %1626 = vst.msk [vmem:[%s2637_s25 + $0x5c] sm:$0xf] %vm1602_vm4, %v1987_v41  ;;  %v818_v44 = vadd.f32 %v2627_v55, %v817_v43  ;;  %v2164_v45 = vpop.f32.mrb[49].mxu0  ;;  %1676 = vst.msk [vmem:[%s2637_s25 + $0x124] sm:$0xf] %vm1602_vm4, %v2037_v42  ;;  %v1018_v48 = vadd.f32 %v2627_v55, %v1017_v46  ;;  %v2264_v49 = vpop.f32.mrb[49].mxu1 }
 0x146   : > { %v820_v47 = vpop.f32.mrb[50].mxu0  ;;  %v1020_v53 = vpop.f32.mrb[50].mxu1 }
 0x147   : > { %v1136_v50 = vmax.f32 %v818_v44, 0.0  ;;  %v821_v51 = vadd.f32 %v2627_v55, %v820_v47  ;;  %v2165_v52 = vpop.f32.mrb[51].mxu0  ;;  %v1186_v54 = vmax.f32 %v1018_v48, 0.0  ;;  %v1021_v56 = vadd.f32 %v2627_v55, %v1020_v53  ;;  %v2265_v57 = vpop.f32.mrb[51].mxu1 }
 0x149   : > { %v1988_v58 = vpack.c.bf16 %v1136_v50, %v1136_v50  ;;  %v1137_v59 = vmax.f32 %v821_v51, 0.0  ;;  %v2038_v60 = vpack.c.bf16 %v1186_v54, %v1186_v54  ;;  %v1187_v61 = vmax.f32 %v1021_v56, 0.0 }
 0x14b   : > { %1627 = vst.msk [vmem:[%s2637_s25 + $0x60] sm:$0xf] %vm1602_vm4, %v1988_v58  ;;  %v1989_v62 = vpack.c.bf16 %v1137_v59, %v1137_v59  ;;  %1677 = vst.msk [vmem:[%s2637_s25 + $0x128] sm:$0xf] %vm1602_vm4, %v2038_v60  ;;  %v2039_v63 = vpack.c.bf16 %v1187_v61, %v1187_v61 }
 0x14c   : > { %v825_v0 = vpop.f32.mrb[52].mxu0  ;;  %v1025_v3 = vpop.f32.mrb[52].mxu1 }
 0x14d   : > { %1628 = vst.msk [vmem:[%s2637_s25 + $0x64] sm:$0xf] %vm1602_vm4, %v1989_v62  ;;  %v826_v1 = vadd.f32 %v2627_v55, %v825_v0  ;;  %v2168_v2 = vpop.f32.mrb[53].mxu0  ;;  %1678 = vst.msk [vmem:[%s2637_s25 + $0x12c] sm:$0xf] %vm1602_vm4, %v2039_v63  ;;  %v1026_v5 = vadd.f32 %v2627_v55, %v1025_v3  ;;  %v2268_v6 = vpop.f32.mrb[53].mxu1 }
 0x14e   : > { %v828_v4 = vpop.f32.mrb[54].mxu0  ;;  %v1028_v10 = vpop.f32.mrb[54].mxu1 }
 0x14f   : > { %v1138_v7 = vmax.f32 %v826_v1, 0.0  ;;  %v829_v8 = vadd.f32 %v2627_v55, %v828_v4  ;;  %v2169_v9 = vpop.f32.mrb[55].mxu0  ;;  %v1188_v11 = vmax.f32 %v1026_v5, 0.0  ;;  %v1029_v12 = vadd.f32 %v2627_v55, %v1028_v10  ;;  %v2269_v13 = vpop.f32.mrb[55].mxu1 }
 0x151   : > { %v1990_v14 = vpack.c.bf16 %v1138_v7, %v1138_v7  ;;  %v1139_v15 = vmax.f32 %v829_v8, 0.0  ;;  %v2040_v16 = vpack.c.bf16 %v1188_v11, %v1188_v11  ;;  %v1189_v17 = vmax.f32 %v1029_v12, 0.0 }
 0x153   : > { %1629 = vst.msk [vmem:[%s2637_s25 + $0x68] sm:$0xf] %vm1602_vm4, %v1990_v14  ;;  %v1991_v18 = vpack.c.bf16 %v1139_v15, %v1139_v15  ;;  %1679 = vst.msk [vmem:[%s2637_s25 + $0x130] sm:$0xf] %vm1602_vm4, %v2040_v16  ;;  %v2041_v19 = vpack.c.bf16 %v1189_v17, %v1189_v17 }
 0x154   : > { %v833_v20 = vpop.f32.mrb[56].mxu0  ;;  %v1033_v23 = vpop.f32.mrb[56].mxu1 }
 0x155   : > { %1630 = vst.msk [vmem:[%s2637_s25 + $0x6c] sm:$0xf] %vm1602_vm4, %v1991_v18  ;;  %v834_v21 = vadd.f32 %v2627_v55, %v833_v20  ;;  %v2172_v22 = vpop.f32.mrb[57].mxu0  ;;  %1680 = vst.msk [vmem:[%s2637_s25 + $0x134] sm:$0xf] %vm1602_vm4, %v2041_v19  ;;  %v1034_v25 = vadd.f32 %v2627_v55, %v1033_v23  ;;  %v2272_v26 = vpop.f32.mrb[57].mxu1 }
 0x156   : > { %v836_v24 = vpop.f32.mrb[58].mxu0  ;;  %v1036_v30 = vpop.f32.mrb[58].mxu1 }
 0x157   : > { %v1140_v27 = vmax.f32 %v834_v21, 0.0  ;;  %v837_v28 = vadd.f32 %v2627_v55, %v836_v24  ;;  %v2173_v29 = vpop.f32.mrb[59].mxu0  ;;  %v1190_v31 = vmax.f32 %v1034_v25, 0.0  ;;  %v1037_v32 = vadd.f32 %v2627_v55, %v1036_v30  ;;  %v2273_v33 = vpop.f32.mrb[59].mxu1 }
 0x159   : > { %v1992_v34 = vpack.c.bf16 %v1140_v27, %v1140_v27  ;;  %v1141_v35 = vmax.f32 %v837_v28, 0.0  ;;  %v2042_v36 = vpack.c.bf16 %v1190_v31, %v1190_v31  ;;  %v1191_v37 = vmax.f32 %v1037_v32, 0.0 }
 0x15b   : > { %1631 = vst.msk [vmem:[%s2637_s25 + $0x70] sm:$0xf] %vm1602_vm4, %v1992_v34  ;;  %v1993_v38 = vpack.c.bf16 %v1141_v35, %v1141_v35  ;;  %1681 = vst.msk [vmem:[%s2637_s25 + $0x138] sm:$0xf] %vm1602_vm4, %v2042_v36  ;;  %v2043_v39 = vpack.c.bf16 %v1191_v37, %v1191_v37 }
 0x15c   : > { %v841_v40 = vpop.f32.mrb[60].mxu0  ;;  %v1041_v43 = vpop.f32.mrb[60].mxu1 }
 0x15d   : > { %1632 = vst.msk [vmem:[%s2637_s25 + $0x74] sm:$0xf] %vm1602_vm4, %v1993_v38  ;;  %v842_v41 = vadd.f32 %v2627_v55, %v841_v40  ;;  %v2176_v42 = vpop.f32.mrb[61].mxu0  ;;  %1682 = vst.msk [vmem:[%s2637_s25 + $0x13c] sm:$0xf] %vm1602_vm4, %v2043_v39  ;;  %v1042_v45 = vadd.f32 %v2627_v55, %v1041_v43  ;;  %v2276_v46 = vpop.f32.mrb[61].mxu1 }
 0x15e   : > { %v844_v44 = vpop.f32.mrb[62].mxu0  ;;  %v1044_v50 = vpop.f32.mrb[62].mxu1 }
 0x15f   : > { %v1142_v47 = vmax.f32 %v842_v41, 0.0  ;;  %v845_v48 = vadd.f32 %v2627_v55, %v844_v44  ;;  %v2177_v49 = vpop.f32.mrb[63].mxu0  ;;  %v1192_v51 = vmax.f32 %v1042_v45, 0.0  ;;  %v1045_v52 = vadd.f32 %v2627_v55, %v1044_v50  ;;  %v2277_v53 = vpop.f32.mrb[63].mxu1 }
 0x161   : > { %v1994_v54 = vpack.c.bf16 %v1142_v47, %v1142_v47  ;;  %v1143_v56 = vmax.f32 %v845_v48, 0.0  ;;  %v2044_v57 = vpack.c.bf16 %v1192_v51, %v1192_v51  ;;  %v1193_v58 = vmax.f32 %v1045_v52, 0.0 }
 0x163   : > { %1633 = vst.msk [vmem:[%s2637_s25 + $0x78] sm:$0xf] %vm1602_vm4, %v1994_v54  ;;  %v1995_v59 = vpack.c.bf16 %v1143_v56, %v1143_v56  ;;  %1683 = vst.msk [vmem:[%s2637_s25 + $0x140] sm:$0xf] %vm1602_vm4, %v2044_v57  ;;  %v2045_v60 = vpack.c.bf16 %v1193_v58, %v1193_v58 }
 0x164   : > { %v849_v61 = vpop.f32.mrb[64].mxu0  ;;  %v1049_v0 = vpop.f32.mrb[64].mxu1 }
 0x165   : > { %1634 = vst.msk [vmem:[%s2637_s25 + $0x7c] sm:$0xf] %vm1602_vm4, %v1995_v59  ;;  %v850_v62 = vadd.f32 %v2627_v55, %v849_v61  ;;  %v2180_v63 = vpop.f32.mrb[65].mxu0  ;;  %1684 = vst.msk [vmem:[%s2637_s25 + $0x144] sm:$0xf] %vm1602_vm4, %v2045_v60  ;;  %v1050_v2 = vadd.f32 %v2627_v55, %v1049_v0  ;;  %v2280_v3 = vpop.f32.mrb[65].mxu1 }
 0x166   : > { %v852_v1 = vpop.f32.mrb[66].mxu0  ;;  %v1052_v7 = vpop.f32.mrb[66].mxu1 }
 0x167   : > { %v1144_v4 = vmax.f32 %v850_v62, 0.0  ;;  %v853_v5 = vadd.f32 %v2627_v55, %v852_v1  ;;  %v2181_v6 = vpop.f32.mrb[67].mxu0  ;;  %v1194_v8 = vmax.f32 %v1050_v2, 0.0  ;;  %v1053_v9 = vadd.f32 %v2627_v55, %v1052_v7  ;;  %v2281_v10 = vpop.f32.mrb[67].mxu1 }
 0x169   : > { %v1996_v11 = vpack.c.bf16 %v1144_v4, %v1144_v4  ;;  %v1145_v12 = vmax.f32 %v853_v5, 0.0  ;;  %v2046_v13 = vpack.c.bf16 %v1194_v8, %v1194_v8  ;;  %v1195_v14 = vmax.f32 %v1053_v9, 0.0 }
 0x16b   : > { %1635 = vst.msk [vmem:[%s2637_s25 + $0x80] sm:$0xf] %vm1602_vm4, %v1996_v11  ;;  %v1997_v15 = vpack.c.bf16 %v1145_v12, %v1145_v12  ;;  %1685 = vst.msk [vmem:[%s2637_s25 + $0x148] sm:$0xf] %vm1602_vm4, %v2046_v13  ;;  %v2047_v16 = vpack.c.bf16 %v1195_v14, %v1195_v14 }
 0x16c   : > { %v857_v17 = vpop.f32.mrb[68].mxu0  ;;  %v1057_v20 = vpop.f32.mrb[68].mxu1 }
 0x16d   : > { %1636 = vst.msk [vmem:[%s2637_s25 + $0x84] sm:$0xf] %vm1602_vm4, %v1997_v15  ;;  %v858_v18 = vadd.f32 %v2627_v55, %v857_v17  ;;  %v2184_v19 = vpop.f32.mrb[69].mxu0  ;;  %1686 = vst.msk [vmem:[%s2637_s25 + $0x14c] sm:$0xf] %vm1602_vm4, %v2047_v16  ;;  %v1058_v22 = vadd.f32 %v2627_v55, %v1057_v20  ;;  %v2284_v23 = vpop.f32.mrb[69].mxu1 }
 0x16e   : > { %v860_v21 = vpop.f32.mrb[70].mxu0  ;;  %v1060_v27 = vpop.f32.mrb[70].mxu1 }
 0x16f   : > { %v1146_v24 = vmax.f32 %v858_v18, 0.0  ;;  %v861_v25 = vadd.f32 %v2627_v55, %v860_v21  ;;  %v2185_v26 = vpop.f32.mrb[71].mxu0  ;;  %v1196_v28 = vmax.f32 %v1058_v22, 0.0  ;;  %v1061_v29 = vadd.f32 %v2627_v55, %v1060_v27  ;;  %v2285_v30 = vpop.f32.mrb[71].mxu1 }
 0x171   : > { %v1998_v31 = vpack.c.bf16 %v1146_v24, %v1146_v24  ;;  %v1147_v32 = vmax.f32 %v861_v25, 0.0  ;;  %v2048_v33 = vpack.c.bf16 %v1196_v28, %v1196_v28  ;;  %v1197_v34 = vmax.f32 %v1061_v29, 0.0 }
 0x173   : > { %1637 = vst.msk [vmem:[%s2637_s25 + $0x88] sm:$0xf] %vm1602_vm4, %v1998_v31  ;;  %v1999_v35 = vpack.c.bf16 %v1147_v32, %v1147_v32  ;;  %1687 = vst.msk [vmem:[%s2637_s25 + $0x150] sm:$0xf] %vm1602_vm4, %v2048_v33  ;;  %v2049_v36 = vpack.c.bf16 %v1197_v34, %v1197_v34 }
 0x174   : > { %v865_v37 = vpop.f32.mrb[72].mxu0  ;;  %v1065_v40 = vpop.f32.mrb[72].mxu1 }
 0x175   : > { %1638 = vst.msk [vmem:[%s2637_s25 + $0x8c] sm:$0xf] %vm1602_vm4, %v1999_v35  ;;  %v866_v38 = vadd.f32 %v2627_v55, %v865_v37  ;;  %v2188_v39 = vpop.f32.mrb[73].mxu0  ;;  %1688 = vst.msk [vmem:[%s2637_s25 + $0x154] sm:$0xf] %vm1602_vm4, %v2049_v36  ;;  %v1066_v42 = vadd.f32 %v2627_v55, %v1065_v40  ;;  %v2288_v43 = vpop.f32.mrb[73].mxu1 }
 0x176   : > { %v868_v41 = vpop.f32.mrb[74].mxu0  ;;  %v1068_v47 = vpop.f32.mrb[74].mxu1  ;;  %v2892_v39 = vld [vmem:[%s2940_s2] ss:$0 sm:$0xff] }
 0x177   : > { %v1148_v44 = vmax.f32 %v866_v38, 0.0  ;;  %v869_v45 = vadd.f32 %v2627_v55, %v868_v41  ;;  %v2189_v46 = vpop.f32.mrb[75].mxu0  ;;  %v1198_v48 = vmax.f32 %v1066_v42, 0.0  ;;  %v1069_v49 = vadd.f32 %v2627_v55, %v1068_v47  ;;  %v2289_v50 = vpop.f32.mrb[75].mxu1 }
 0x179   : > { %v2000_v51 = vpack.c.bf16 %v1148_v44, %v1148_v44  ;;  %v1149_v52 = vmax.f32 %v869_v45, 0.0  ;;  %v2050_v53 = vpack.c.bf16 %v1198_v48, %v1198_v48  ;;  %v1199_v54 = vmax.f32 %v1069_v49, 0.0 }
 0x17b   : > { %1639 = vst.msk [vmem:[%s2637_s25 + $0x90] sm:$0xf] %vm1602_vm4, %v2000_v51  ;;  %v2001_v56 = vpack.c.bf16 %v1149_v52, %v1149_v52  ;;  %1689 = vst.msk [vmem:[%s2637_s25 + $0x158] sm:$0xf] %vm1602_vm4, %v2050_v53  ;;  %v2051_v57 = vpack.c.bf16 %v1199_v54, %v1199_v54 }
 0x17c   : > { %v873_v58 = vpop.f32.mrb[76].mxu0  ;;  %v1073_v61 = vpop.f32.mrb[76].mxu1 }
 0x17d   : > { %1640 = vst.msk [vmem:[%s2637_s25 + $0x94] sm:$0xf] %vm1602_vm4, %v2001_v56  ;;  %v874_v59 = vadd.f32 %v2627_v55, %v873_v58  ;;  %v2192_v60 = vpop.f32.mrb[77].mxu0  ;;  %1690 = vst.msk [vmem:[%s2637_s25 + $0x15c] sm:$0xf] %vm1602_vm4, %v2051_v57  ;;  %v1074_v63 = vadd.f32 %v2627_v55, %v1073_v61  ;;  %v2292_v0 = vpop.f32.mrb[77].mxu1 }
 0x17e   : > { %v876_v62 = vpop.f32.mrb[78].mxu0  ;;  %v1076_v4 = vpop.f32.mrb[78].mxu1 }
 0x17f   : > { %v1150_v1 = vmax.f32 %v874_v59, 0.0  ;;  %v877_v2 = vadd.f32 %v2627_v55, %v876_v62  ;;  %v2193_v3 = vpop.f32.mrb[79].mxu0  ;;  %v1200_v5 = vmax.f32 %v1074_v63, 0.0  ;;  %v1077_v6 = vadd.f32 %v2627_v55, %v1076_v4  ;;  %v2293_v7 = vpop.f32.mrb[79].mxu1 }
 0x181   : > { %v2002_v8 = vpack.c.bf16 %v1150_v1, %v1150_v1  ;;  %v1151_v9 = vmax.f32 %v877_v2, 0.0  ;;  %v2052_v10 = vpack.c.bf16 %v1200_v5, %v1200_v5  ;;  %v1201_v11 = vmax.f32 %v1077_v6, 0.0 }
 0x183   : > { %1641 = vst.msk [vmem:[%s2637_s25 + $0x98] sm:$0xf] %vm1602_vm4, %v2002_v8  ;;  %v2003_v12 = vpack.c.bf16 %v1151_v9, %v1151_v9  ;;  %1691 = vst.msk [vmem:[%s2637_s25 + $0x160] sm:$0xf] %vm1602_vm4, %v2052_v10  ;;  %v2053_v13 = vpack.c.bf16 %v1201_v11, %v1201_v11 }
 0x184   : > { %v881_v14 = vpop.f32.mrb[80].mxu0  ;;  %v1081_v17 = vpop.f32.mrb[80].mxu1 }
 0x185   : > { %1642 = vst.msk [vmem:[%s2637_s25 + $0x9c] sm:$0xf] %vm1602_vm4, %v2003_v12  ;;  %v882_v15 = vadd.f32 %v2627_v55, %v881_v14  ;;  %v2196_v16 = vpop.f32.mrb[81].mxu0  ;;  %1692 = vst.msk [vmem:[%s2637_s25 + $0x164] sm:$0xf] %vm1602_vm4, %v2053_v13  ;;  %v1082_v19 = vadd.f32 %v2627_v55, %v1081_v17  ;;  %v2296_v20 = vpop.f32.mrb[81].mxu1 }
 0x186   : > { %v884_v18 = vpop.f32.mrb[82].mxu0  ;;  %v1084_v24 = vpop.f32.mrb[82].mxu1 }
 0x187   : > { %v1152_v21 = vmax.f32 %v882_v15, 0.0  ;;  %v885_v22 = vadd.f32 %v2627_v55, %v884_v18  ;;  %v2197_v23 = vpop.f32.mrb[83].mxu0  ;;  %v1202_v25 = vmax.f32 %v1082_v19, 0.0  ;;  %v1085_v26 = vadd.f32 %v2627_v55, %v1084_v24  ;;  %v2297_v27 = vpop.f32.mrb[83].mxu1 }
 0x189   : > { %v2004_v28 = vpack.c.bf16 %v1152_v21, %v1152_v21  ;;  %v1153_v29 = vmax.f32 %v885_v22, 0.0  ;;  %v2054_v30 = vpack.c.bf16 %v1202_v25, %v1202_v25  ;;  %v1203_v31 = vmax.f32 %v1085_v26, 0.0 }
 0x18b   : > { %1643 = vst.msk [vmem:[%s2637_s25 + $0xa0] sm:$0xf] %vm1602_vm4, %v2004_v28  ;;  %v2005_v32 = vpack.c.bf16 %v1153_v29, %v1153_v29  ;;  %1693 = vst.msk [vmem:[%s2637_s25 + $0x168] sm:$0xf] %vm1602_vm4, %v2054_v30  ;;  %v2055_v33 = vpack.c.bf16 %v1203_v31, %v1203_v31 }
 0x18c   : > { %v889_v34 = vpop.f32.mrb[84].mxu0  ;;  %v1089_v37 = vpop.f32.mrb[84].mxu1 }
 0x18d   : > { %1644 = vst.msk [vmem:[%s2637_s25 + $0xa4] sm:$0xf] %vm1602_vm4, %v2005_v32  ;;  %v890_v35 = vadd.f32 %v2627_v55, %v889_v34  ;;  %v2200_v36 = vpop.f32.mrb[85].mxu0  ;;  %1694 = vst.msk [vmem:[%s2637_s25 + $0x16c] sm:$0xf] %vm1602_vm4, %v2055_v33  ;;  %v1090_v40 = vadd.f32 %v2892_v39, %v1089_v37  ;;  %v2300_v41 = vpop.f32.mrb[85].mxu1 }
 0x18e   : > { %v892_v38 = vpop.f32.mrb[86].mxu0  ;;  %v1092_v44 = vpop.f32.mrb[86].mxu1 }
 0x18f   : > { %v1154_v42 = vmax.f32 %v890_v35, 0.0  ;;  %v893_v43 = vadd.f32 %v2892_v39, %v892_v38  ;;  %v2201_v55 = vpop.f32.mrb[87].mxu0  ;;  %v1204_v45 = vmax.f32 %v1090_v40, 0.0  ;;  %v1093_v46 = vadd.f32 %v2892_v39, %v1092_v44  ;;  %v2301_v47 = vpop.f32.mrb[87].mxu1 }
 0x191   : > { %v2006_v48 = vpack.c.bf16 %v1154_v42, %v1154_v42  ;;  %v1155_v49 = vmax.f32 %v893_v43, 0.0  ;;  %v2056_v50 = vpack.c.bf16 %v1204_v45, %v1204_v45  ;;  %v1205_v51 = vmax.f32 %v1093_v46, 0.0 }
 0x193   : > { %1645 = vst.msk [vmem:[%s2637_s25 + $0xa8] sm:$0xf] %vm1602_vm4, %v2006_v48  ;;  %v2007_v52 = vpack.c.bf16 %v1155_v49, %v1155_v49  ;;  %1695 = vst.msk [vmem:[%s2637_s25 + $0x170] sm:$0xf] %vm1602_vm4, %v2056_v50  ;;  %v2057_v53 = vpack.c.bf16 %v1205_v51, %v1205_v51 }
 0x194   : > { %v897_v54 = vpop.f32.mrb[88].mxu0  ;;  %v1097_v58 = vpop.f32.mrb[88].mxu1 }
 0x195   : > { %1646 = vst.msk [vmem:[%s2637_s25 + $0xac] sm:$0xf] %vm1602_vm4, %v2007_v52  ;;  %v898_v56 = vadd.f32 %v2892_v39, %v897_v54  ;;  %v2204_v57 = vpop.f32.mrb[89].mxu0  ;;  %1696 = vst.msk [vmem:[%s2637_s25 + $0x174] sm:$0xf] %vm1602_vm4, %v2057_v53  ;;  %v1098_v60 = vadd.f32 %v2892_v39, %v1097_v58  ;;  %v2304_v61 = vpop.f32.mrb[89].mxu1 }
 0x196   : > { %v900_v59 = vpop.f32.mrb[90].mxu0  ;;  %v1100_v1 = vpop.f32.mrb[90].mxu1 }
 0x197   : > { %v1156_v62 = vmax.f32 %v898_v56, 0.0  ;;  %v901_v63 = vadd.f32 %v2892_v39, %v900_v59  ;;  %v2205_v0 = vpop.f32.mrb[91].mxu0  ;;  %v1206_v2 = vmax.f32 %v1098_v60, 0.0  ;;  %v1101_v3 = vadd.f32 %v2892_v39, %v1100_v1  ;;  %v2305_v4 = vpop.f32.mrb[91].mxu1 }
 0x199   : > { %v2008_v5 = vpack.c.bf16 %v1156_v62, %v1156_v62  ;;  %v1157_v6 = vmax.f32 %v901_v63, 0.0  ;;  %v2058_v7 = vpack.c.bf16 %v1206_v2, %v1206_v2  ;;  %v1207_v8 = vmax.f32 %v1101_v3, 0.0 }
 0x19b   : > { %1647 = vst.msk [vmem:[%s2637_s25 + $0xb0] sm:$0xf] %vm1602_vm4, %v2008_v5  ;;  %v2009_v9 = vpack.c.bf16 %v1157_v6, %v1157_v6  ;;  %1697 = vst.msk [vmem:[%s2637_s25 + $0x178] sm:$0xf] %vm1602_vm4, %v2058_v7  ;;  %v2059_v10 = vpack.c.bf16 %v1207_v8, %v1207_v8 }
 0x19c   : > { %v905_v11 = vpop.f32.mrb[92].mxu0  ;;  %v1105_v14 = vpop.f32.mrb[92].mxu1 }
 0x19d   : > { %1648 = vst.msk [vmem:[%s2637_s25 + $0xb4] sm:$0xf] %vm1602_vm4, %v2009_v9  ;;  %v906_v12 = vadd.f32 %v2892_v39, %v905_v11  ;;  %v2208_v13 = vpop.f32.mrb[93].mxu0  ;;  %1698 = vst.msk [vmem:[%s2637_s25 + $0x17c] sm:$0xf] %vm1602_vm4, %v2059_v10  ;;  %v1106_v16 = vadd.f32 %v2892_v39, %v1105_v14  ;;  %v2308_v17 = vpop.f32.mrb[93].mxu1 }
 0x19e   : > { %v908_v15 = vpop.f32.mrb[94].mxu0  ;;  %v1108_v21 = vpop.f32.mrb[94].mxu1 }
 0x19f   : > { %v1158_v18 = vmax.f32 %v906_v12, 0.0  ;;  %v909_v19 = vadd.f32 %v2892_v39, %v908_v15  ;;  %v2209_v20 = vpop.f32.mrb[95].mxu0  ;;  %v1208_v22 = vmax.f32 %v1106_v16, 0.0  ;;  %v1109_v23 = vadd.f32 %v2892_v39, %v1108_v21  ;;  %v2309_v24 = vpop.f32.mrb[95].mxu1 }
 0x1a1   : > { %v2010_v25 = vpack.c.bf16 %v1158_v18, %v1158_v18  ;;  %v1159_v26 = vmax.f32 %v909_v19, 0.0  ;;  %v2060_v27 = vpack.c.bf16 %v1208_v22, %v1208_v22  ;;  %v1209_v28 = vmax.f32 %v1109_v23, 0.0 }
 0x1a3   : > { %1649 = vst.msk [vmem:[%s2637_s25 + $0xb8] sm:$0xf] %vm1602_vm4, %v2010_v25  ;;  %v2011_v29 = vpack.c.bf16 %v1159_v26, %v1159_v26  ;;  %1699 = vst.msk [vmem:[%s2637_s25 + $0x180] sm:$0xf] %vm1602_vm4, %v2060_v27  ;;  %v2061_v30 = vpack.c.bf16 %v1209_v28, %v1209_v28 }
 0x1a4   : > { %v913_v31 = vpop.f32.mrb[96].mxu0 }
 0x1a5   : > { %1650 = vst.msk [vmem:[%s2637_s25 + $0xbc] sm:$0xf] %vm1602_vm4, %v2011_v29  ;;  %v914_v32 = vadd.f32 %v2892_v39, %v913_v31  ;;  %v2212_v33 = vpop.f32.mrb[97].mxu0  ;;  %1700 = vst.msk [vmem:[%s2637_s25 + $0x184] sm:$0xf] %vm1602_vm4, %v2061_v30 }
 0x1a6   : > { %v916_v34 = vpop.f32.mrb[98].mxu0 }
 0x1a7   : > { %v1160_v35 = vmax.f32 %v914_v32, 0.0  ;;  %v917_v36 = vadd.f32 %v2892_v39, %v916_v34  ;;  %v2213_v37 = vpop.f32.mrb[99].mxu0 }
 0x1a9   : > { %v2012_v38 = vpack.c.bf16 %v1160_v35, %v1160_v35  ;;  %v1161_v40 = vmax.f32 %v917_v36, 0.0 }
 0x1ab   : > { %1651 = vst.msk [vmem:[%s2637_s25 + $0xc0] sm:$0xf] %vm1602_vm4, %v2012_v38  ;;  %v2013_v41 = vpack.c.bf16 %v1161_v40, %v1161_v40 }
 0x1ad   : > { %1652 = vst.msk [vmem:[%s2637_s25 + $0xc4] sm:$0xf] %vm1602_vm4, %v2013_v41 }
 0x1ae PF: > { %s13_s12 = sadd.s32 1, %s2380_s12  }
 0x1af   : > { %p10_p4 = scmp.ge.s32.totalorder %s13_s12, 4  }
 0x1b1   :  { %12 = sbr.rel (!%p10_p4) target bundleno = 1 (0x1), region = 62 }

// kernel: alexnet_forward.7
= control target key start
LH: loop header
LB: loop body
LE: loop exit
PB: predicated region body
PF: predicated region fallthrough
CT: control target
= control target key end

     0   :  { %s3749_s12 = smov 0   ;;  %s4600_s0 = inlined_call_operand.vmem [shape: bf16[544,64], index: 0, kind: input, shape index: {}]   ;;  %s4601_s1 = inlined_call_operand.vmem [shape: bf16[576,128], index: 1, kind: input, shape index: {}]   ;;  %s4602_s2 = inlined_call_operand.vmem [shape: f32[1,128], index: 2, kind: input, shape index: {}]   ;;  %s4603_s3 = inlined_call_operand.vmem [shape: bf16[544,128], index: 3, kind: output, shape index: {}]  }
   0x1 LB: > { %s2950_s13 = sadd.s32 4294967295, %s3726_s12   ;;  %p2954_p0 = scmp.ge.s32.totalorder %s3726_s12, 1  ;;  %s3726_s12 = sphi %s3749_s12, %s13_s12  }
   0x2   : > { %p138_p1 = scmp.lt.s32.totalorder %s3726_s12, 3 }
   0x4   : > { %p139_p2 = pnand %p2954_p0, %p138_p1 }
   0x5   : > { %s162_s14 = smul.u32 (!%p139_p2), 34, %s2950_s13  ;;  %v3602_v0 = vld [vmem:[%s4601_s1 + $0x40] sm:$0xff] (!%p139_p2)   ;;  %v3606_v2 = vld [vmem:[%s4601_s1 + $0x48] sm:$0xff] (!%p139_p2)   ;;  %v3612_v6 = vld [vmem:[%s4601_s1 + $0x50] sm:$0xff] (!%p139_p2)   ;;  %vm404_vm0 = vsmask.f32 (!%p139_p2), 7424 }
   0x6   : > { %142 = sbr.rel (%p139_p2) target bundleno = 506 (0x1fa), region = 32  ;;  %3281 = vmatprep.subr.bf16.mxu0 (!%p139_p2), %v3602_v0  ;;  %v3603_v1 = vld [vmem:[%s4601_s1] sm:$0xff] (!%p139_p2)   ;;  %v3607_v3 = vld [vmem:[%s4601_s1 + $0x8] sm:$0xff] (!%p139_p2)   ;;  %s3728_s6 = smov (!%p139_p2), 64   ;;  %vm680_vm1 = vcmask (!%p139_p2), 1046528   ;;  %vm287_vm2 = vcmask (!%p139_p2), 523264  }
   0x7   : > { %p163_p3 = scmp.lt.s32.totalorder (!%p139_p2), %s162_s14, 67  ;;  %3282 = vmatpush3.bf16.msra.mxu0 (!%p139_p2), %v3603_v1  ;;  %v3608_v4 = vld [vmem:[%s4601_s1 + $0xc0] sm:$0xff] (!%p139_p2)   ;;  %vm563_vm3 = vcmask (!%p139_p2), 1048064  }
   0x8   : > { %3283 = vmatprep.subr.bf16.mxu0 (!%p139_p2), %v3606_v2  ;;  %v3610_v5 = vld [vmem:[%s4601_s1 + $0x80] sm:$0xff] (!%p139_p2)   ;;  %3381 = vmatprep.subr.bf16.mxu1 (!%p139_p2), %v3608_v4 }
   0x9   : > { %3382 = vmatpush3.bf16.msra.mxu1 (!%p139_p2), %v3610_v5 }
   0xb   : > { %3284 = vmatpush3.bf16.msra.mxu0 (!%p139_p2), %v3607_v3 }
   0xc   : > { %3285 = vmatprep.subr.bf16.mxu0 (!%p139_p2), %v3612_v6 }
   0xd   : > { %s4605_s14 = smov (!%p163_p3, %s162_s14), 67 }
   0xe   : > { %s2955_s25 = sshll.u32 %s4605_s14, 2 }
   0xf   : > { %s3783_s30 = scalar_lea.vmem %s4600_s0, %s2955_s25  ;;  %s4560_s26 = scalar_lea.vmem %s4603_s3, %s2955_s25 }
  0x10   : > { %v3552_v7 = vld [vmem:[%s3783_s30 + $0x10] sm:$0xff]   ;;  %v3553_v8 = vld [vmem:[%s3783_s30 + $0x8] sm:$0xff]   ;;  %v3555_v10 = vld [vmem:[%s3783_s30 + $0x18] sm:$0xff]  }
  0x11   : > { %838 = vrot.lane.b32.xlu1 %v3552_v7, %s3728_s6  ;;  %836 = vrot.lane.b32.xlu0 %v3553_v8, %s3728_s6  ;;  %v3554_v9 = vld [vmem:[%s3783_s30 + $0x10] sm:$0xff]   ;;  %v1561_v13 = vshll.u32 %v3555_v10, 16  ;;  %v3556_v14 = vld [vmem:[%s3783_s30] sm:$0xff]   ;;  %v1565_v16 = vshrl.u32 %v3555_v10, 16 }
  0x12   : > { %v1554_v11 = vshrl.u32 %v3554_v9, 16  ;;  %v1556_v12 = vshll.u32 %v3554_v9, 16  ;;  %v3557_v15 = vld [vmem:[%s3783_s30 + $0x8] sm:$0xff]   ;;  %v406_v19 = vshrl.u32 %v3556_v14, 16  ;;  %v408_v20 = vshll.u32 %v3556_v14, 16  ;;  %v3559_v23 = vld [vmem:[%s3783_s30 + $0x10] sm:$0xff]  }
  0x13   : > { %v1563_v18 = vrot.slane %v1561_v13, 1  ;;  %v413_v21 = vshll.u32 %v3557_v15, 16  ;;  %v3558_v22 = vld [vmem:[%s3783_s30 + $0x8] sm:$0xfe]   ;;  %v3560_v26 = vld [vmem:[%s3783_s30 + $0x10] sm:$0xff]   ;;  %v1241_v29 = vrot.slane %v3559_v23, 1 }
  0x14   : > { %v1558_v17 = vrot.slane %v1556_v12, 1  ;;  %v410_v25 = vrot.slane %v408_v20, 1  ;;  %v1240_v28 = vrot.slane %v3558_v22, 1  ;;  %v417_v30 = vshrl.u32 %v3557_v15, 16  ;;  %v3561_v34 = vld [vmem:[%s3783_s30 + $0x20] sm:$0xff]   ;;  %v3563_v41 = vld [vmem:[%s3783_s30 + $0x18] sm:$0xff]  }
  0x15   : > { %v415_v27 = vrot.slane %v413_v21, 1  ;;  %v421_v33 = vshll.u32 %v3560_v26, 16  ;;  %v1567_v36 = vor.u32 %v1565_v16, %v1563_v18  ;;  %v1569_v40 = vshll.u32 %v3561_v34, 16  ;;  %v3564_v42 = vld [vmem:[%s3783_s30 + $0x18] sm:$0xff]   ;;  %v3565_v46 = vld [vmem:[%s3783_s30 + $0x28] sm:$0xff]   ;;  %v3568_v55 = vld [vmem:[%s3783_s30 + $0x20] sm:$0xff]  }
  0x16   : > { %v1559_v24 = vor.u32 %v1558_v17, %v1554_v11  ;;  %v411_v32 = vor.u32 %v410_v25, %v406_v19  ;;  %v1242_v38 = vsel %vm680_vm1, %v1240_v28, %v1241_v29  ;;  %v425_v45 = vshrl.u32 %v3560_v26, 16  ;;  %v3562_v52 = vld [vmem:[%s3783_s30 + $0x18] sm:$0xff]   ;;  %v3567_v56 = vld [vmem:[%s3783_s30 + $0x20] sm:$0xff]   ;;  %v3569_v60 = vld [vmem:[%s3783_s30 + $0x30] sm:$0xff]  }
  0x17   : > { %v419_v35 = vor.u32 %v417_v30, %v415_v27  ;;  %v423_v39 = vrot.slane %v421_v33, 1  ;;  %v1571_v44 = vrot.slane %v1569_v40, 1  ;;  %v1243_v47 = vrot.slane %v3563_v41, 1  ;;  %v3566_v4 = vld [vmem:[%s3783_s30 + $0x20] sm:$0xff]   ;;  %v3571_v7 = vld [vmem:[%s3783_s30 + $0x28] sm:$0xff]   ;;  %v3573_v12 = vld [vmem:[%s3783_s30 + $0x38] sm:$0xff]  }
  0x18   : > { %v1564_v31 = vsel %vm404_vm0, %v1559_v24, %v1563_v18  ;;  %v416_v37 = vsel %vm404_vm0, %v411_v32, %v415_v27  ;;  %v429_v48 = vshll.u32 %v3564_v42, 16  ;;  %v1573_v50 = vshrl.u32 %v3561_v34, 16  ;;  %v3572_v8 = vld [vmem:[%s3783_s30 + $0x28] sm:$0xff]   ;;  %v3576_v23 = vld [vmem:[%s3783_s30 + $0x30] sm:$0xff]   ;;  %v3577_v28 = vld [vmem:[%s3783_s30 + $0x40] sm:$0xff]  }
  0x19   : > { %1669 = vrot.lane.b32.xlu1 %v1564_v31, %s3728_s6  ;;  %521 = vrot.lane.b32.xlu0 %v416_v37, %s3728_s6  ;;  %v424_v43 = vsel %vm404_vm0, %v419_v35, %v423_v39  ;;  %v1572_v49 = vsel %vm404_vm0, %v1567_v36, %v1571_v44  ;;  %v1577_v51 = vshll.u32 %v3565_v46, 16  ;;  %v427_v53 = vor.u32 %v425_v45, %v423_v39  ;;  %v3570_v20 = vld [vmem:[%s3783_s30 + $0x28] sm:$0xff]   ;;  %v3575_v24 = vld [vmem:[%s3783_s30 + $0x30] sm:$0xff]  }
  0x1a   : > { %v431_v54 = vrot.slane %v429_v48, 1  ;;  %v1244_v57 = vsel %vm680_vm1, %v1241_v29, %v1243_v47  ;;  %v1575_v58 = vor.u32 %v1573_v50, %v1571_v44  ;;  %v433_v62 = vshrl.u32 %v3564_v42, 16  ;;  %v3574_v33 = vld [vmem:[%s3783_s30 + $0x30] sm:$0xff]   ;;  %v3579_v37 = vld [vmem:[%s3783_s30 + $0x38] sm:$0xff]   ;;  %v3581_v41 = vld [vmem:[%s3783_s30 + $0x48] sm:$0xff]  }
  0x1b   : > { %v1579_v59 = vrot.slane %v1577_v51, 1  ;;  %v437_v63 = vshll.u32 %v3568_v55, 16  ;;  %v1245_v0 = vrot.slane %v3567_v56, 1  ;;  %v1581_v2 = vshrl.u32 %v3565_v46, 16  ;;  %v3580_v40 = vld [vmem:[%s3783_s30 + $0x38] sm:$0xff]  }
  0x1c   : > { %v432_v61 = vsel %vm404_vm0, %v427_v53, %v431_v54  ;;  %v1585_v3 = vshll.u32 %v3569_v60, 16  ;;  %v435_v5 = vor.u32 %v433_v62, %v431_v54  ;;  %v441_v14 = vshrl.u32 %v3568_v55, 16  ;;  %v3578_v53 = vld [vmem:[%s3783_s30 + $0x38] sm:$0xff]   ;;  %v3861_v54 = vld [vmem:[%s3783_s30 + $0x40] sm:$0xff]  }
  0x1d   : > { %1269 = vrot.lane.b32.xlu1 %v1242_v38, %s3728_s6  ;;  %523 = vrot.lane.b32.xlu0 %v424_v43, %s3728_s6  ;;  %v1580_v1 = vsel %vm404_vm0, %v1575_v58, %v1579_v59  ;;  %v439_v6 = vrot.slane %v437_v63, 1  ;;  %v1246_v9 = vsel %vm680_vm1, %v1243_v47, %v1245_v0  ;;  %v1583_v10 = vor.u32 %v1581_v2, %v1579_v59  ;;  %v3868_v59 = vld [vmem:[%s3783_s30 + $0x48] sm:$0xff]  }
  0x1e   : > { %v1587_v11 = vrot.slane %v1585_v3, 1  ;;  %v445_v15 = vshll.u32 %v3572_v8, 16  ;;  %v1247_v16 = vrot.slane %v3571_v7, 1  ;;  %v1589_v18 = vshrl.u32 %v3569_v60, 16  ;;  %v3873_v63 = vld [vmem:[%s3783_s30 + $0x48] sm:$0xff]  }
  0x1f   : > { %v440_v13 = vsel %vm404_vm0, %v435_v5, %v439_v6  ;;  %v1593_v19 = vshll.u32 %v3573_v12, 16  ;;  %v443_v21 = vor.u32 %v441_v14, %v439_v6  ;;  %v449_v30 = vshrl.u32 %v3572_v8, 16 }
  0x20   : > { %v1588_v17 = vsel %vm404_vm0, %v1583_v10, %v1587_v11  ;;  %v447_v22 = vrot.slane %v445_v15, 1  ;;  %v1248_v25 = vsel %vm680_vm1, %v1245_v0, %v1247_v16  ;;  %v1591_v26 = vor.u32 %v1589_v18, %v1587_v11  ;;  %v3877_v0 = vld [vmem:[%s3783_s30 + $0x58] sm:$0xff]  }
  0x21   : > { %1671 = vrot.lane.b32.xlu1 %v1572_v49, %s3728_s6  ;;  %840 = vrot.lane.b32.xlu0 %v3562_v52, %s3728_s6  ;;  %v1595_v27 = vrot.slane %v1593_v19, 1  ;;  %v453_v31 = vshll.u32 %v3576_v23, 16  ;;  %v1249_v34 = vrot.slane %v3575_v24, 1  ;;  %v1597_v35 = vshrl.u32 %v3573_v12, 16  ;;  %v3856_v52 = vld [vmem:[%s3783_s30 + $0x40] sm:$0xff]   ;;  %v3890_v12 = vld [vmem:[%s3783_s30 + $0x50] sm:$0xff]  }
  0x22   : > { %v448_v29 = vsel %vm404_vm0, %v443_v21, %v447_v22  ;;  %v1601_v36 = vshll.u32 %v3577_v28, 16  ;;  %v451_v38 = vor.u32 %v449_v30, %v447_v22  ;;  %v457_v46 = vshrl.u32 %v3576_v23, 16  ;;  %v3901_v19 = vld [vmem:[%s3783_s30 + $0x60] sm:$0xff]   ;;  %v3613_v23 = vld [vmem:[%s4601_s1 + $0x10] sm:$0xff]   ;;  %v3586_v30 = vld [vmem:[%s3783_s30 + $0x48] sm:$0xff]  }
  0x23   : > { %v1596_v32 = vsel %vm404_vm0, %v1591_v26, %v1595_v27  ;;  %v455_v39 = vrot.slane %v453_v31, 1  ;;  %v1250_v42 = vsel %vm680_vm1, %v1247_v16, %v1249_v34  ;;  %v1599_v43 = vor.u32 %v1597_v35, %v1595_v27  ;;  %v3913_v26 = vld [vmem:[%s3783_s30 + $0x58] sm:$0xff]   ;;  %v3614_v27 = vld [vmem:[%s4601_s1 + $0xc8] sm:$0xff]   ;;  %3286 = vmatpush3.bf16.msra.mxu0 %v3613_v23 }
  0x24   : > { %v1603_v44 = vrot.slane %v1601_v36, 1  ;;  %v461_v47 = vshll.u32 %v3580_v40, 16  ;;  %v1251_v48 = vrot.slane %v3579_v37, 1  ;;  %v1609_v49 = vshll.u32 %v3581_v41, 16  ;;  %3383 = vmatprep.subr.bf16.mxu1 %v3614_v27  ;;  %v3931_v35 = vld [vmem:[%s3783_s30 + $0x68] sm:$0xff]   ;;  %v3618_v37 = vld [vmem:[%s4601_s1 + $0x58] sm:$0xff]  }
  0x25   : > { %1271 = vrot.lane.b32.xlu1 %v1244_v57, %s3728_s6  ;;  %525 = vrot.lane.b32.xlu0 %v432_v61, %s3728_s6  ;;  %v456_v45 = vsel %vm404_vm0, %v451_v38, %v455_v39  ;;  %v1605_v51 = vshrl.u32 %v3577_v28, 16  ;;  %v459_v55 = vor.u32 %v457_v46, %v455_v39  ;;  %v3864_v57 = vld [vmem:[%s3783_s30 + $0x50] sm:$0xff]   ;;  %v469_v62 = vshll.u32 %v3856_v52, 16 }
  0x26   : > { %v1604_v50 = vsel %vm404_vm0, %v1599_v43, %v1603_v44  ;;  %v463_v56 = vrot.slane %v461_v47, 1  ;;  %v1611_v58 = vrot.slane %v1609_v49, 1  ;;  %v1252_v60 = vsel %vm680_vm1, %v1249_v34, %v1251_v48  ;;  %3287 = vmatprep.subr.bf16.mxu0 %v3618_v37  ;;  %v3954_v47 = vld [vmem:[%s3783_s30 + $0x60] sm:$0xff]   ;;  %v3622_v49 = vld [vmem:[%s4601_s1 + $0x90] sm:$0xff]  }
  0x27   : > { %v1607_v61 = vor.u32 %v1605_v51, %v1603_v44  ;;  %v465_v2 = vshrl.u32 %v3580_v40, 16  ;;  %v1617_v3 = vshll.u32 %v3864_v57, 16  ;;  %v1253_v5 = vrot.slane %v3861_v54, 1  ;;  %v3619_v40 = vld [vmem:[%s4601_s1 + $0x18] sm:$0xff]   ;;  %v3590_v54 = vld [vmem:[%s3783_s30 + $0x50] sm:$0xff]  }
  0x28   : > { %v1613_v6 = vshrl.u32 %v3581_v41, 16  ;;  %v477_v7 = vshll.u32 %v3868_v59, 16  ;;  %v1255_v10 = vrot.slane %v3873_v63, 1  ;;  %v1625_v11 = vshll.u32 %v3877_v0, 16  ;;  %3288 = vmatpush3.bf16.msra.mxu0 %v3619_v40  ;;  %v3637_v37 = vld [vmem:[%s3783_s30 + $0x10] sm:$0xff]   ;;  %v3638_v40 = vld [vmem:[%s3783_s30] sm:$0xff]  }
  0x29   : > { %1673 = vrot.lane.b32.xlu1 %v1580_v1, %s3728_s6  ;;  %842 = vrot.lane.b32.xlu0 %v3566_v4, %s3728_s6  ;;  %v464_v1 = vsel %vm404_vm0, %v459_v55, %v463_v56  ;;  %v3582_v4 = vld [vmem:[%s3783_s30 + $0x40] sm:$0xff]   ;;  %v1612_v8 = vsel %vm404_vm0, %v1607_v61, %v1611_v58  ;;  %v1619_v14 = vrot.slane %v1617_v3, 1  ;;  %v473_v15 = vshrl.u32 %v3856_v52, 16  ;;  %v3967_v52 = vld [vmem:[%s3783_s30 + $0x70] sm:$0xff]   ;;  %1437 = vst.msk [vmem:[#allocation2 + $0x18] sm:$0xff] %vm287_vm2, %v3637_v37 }
  0x2a   : > { %v1621_v16 = vshrl.u32 %v3864_v57, 16  ;;  %v3898_v18 = vrot.slane %v477_v7, 1  ;;  %v1615_v21 = vor.u32 %v1613_v6, %v1611_v58  ;;  %v481_v22 = vshrl.u32 %v3868_v59, 16  ;;  %v3625_v59 = vld [vmem:[%s4601_s1 + $0xd8] sm:$0xff]   ;;  %v3630_v7 = vld [vmem:[%s3783_s30 + $0x8] sm:$0xff]   ;;  %288 = vst.msk [vmem:[#allocation2] sm:$0xff] %vm287_vm2, %v3638_v40 }
  0x2b   : > { %v3909_v24 = vrot.slane %v1625_v11, 1  ;;  %v1629_v34 = vshrl.u32 %v3877_v0, 16  ;;  %v1633_v36 = vshll.u32 %v3901_v19, 16  ;;  %v1259_v41 = vrot.slane %v3913_v26, 1  ;;  %v3627_v0 = vld [vmem:[%s4601_s1 + $0x98] sm:$0xff]   ;;  %v3646_v26 = vld [vmem:[%s4601_s1 + $0xf0] sm:$0xff]  }
  0x2c   : > { %v1256_v43 = vsel %vm680_vm1, %v1253_v5, %v1255_v10  ;;  %v1623_v44 = vor.u32 %v1621_v16, %v1619_v14  ;;  %v1641_v51 = vshll.u32 %v3931_v35, 16  ;;  %v1637_v58 = vshrl.u32 %v3901_v19, 16  ;;  %v3633_v19 = vld [vmem:[%s4601_s1 + $0x28] sm:$0xff]  }
  0x2d   : > { %1273 = vrot.lane.b32.xlu1 %v1246_v9, %s3728_s6  ;;  %527 = vrot.lane.b32.xlu0 %v440_v13, %s3728_s6  ;;  %v471_v9 = vrot.slane %v469_v62, 1  ;;  %v467_v13 = vor.u32 %v465_v2, %v463_v56  ;;  %v1635_v55 = vrot.slane %v1633_v36, 1  ;;  %v3624_v56 = vld [vmem:[%s4601_s1 + $0x20] sm:$0xff]   ;;  %v1261_v3 = vrot.slane %v3954_v47, 1 }
  0x2e   : > { %v1628_v57 = vsel %vm404_vm0, %v1623_v44, %v3909_v24  ;;  %v3992_v2 = vrot.slane %v1641_v51, 1  ;;  %v1645_v6 = vshrl.u32 %v3931_v35, 16  ;;  %v1649_v11 = vshll.u32 %v3967_v52, 16 }
  0x2f   : > { %v472_v28 = vsel %vm404_vm0, %v467_v13, %v471_v9  ;;  %v475_v38 = vor.u32 %v473_v15, %v471_v9  ;;  %v1631_v9 = vor.u32 %v1629_v34, %v3909_v24  ;;  %v4012_v13 = vld [vmem:[%s3783_s30 + $0x10] sm:$0xff]   ;;  %v4018_v15 = vld [vmem:[%s3783_s30 + $0x68] sm:$0xff]   ;;  %v682_v16 = vrot.slane %v3630_v7, 1 }
  0x30   : > { %v509_v34 = vshll.u32 %v4018_v15, 16  ;;  %v1653_v44 = vshrl.u32 %v3967_v52, 16  ;;  %v3615_v52 = vld [vmem:[%s3783_s30 + $0x70] sm:$0xff]  }
  0x31   : > { %1675 = vrot.lane.b32.xlu1 %v1588_v17, %s3728_s6  ;;  %844 = vrot.lane.b32.xlu0 %v3570_v20, %s3728_s6  ;;  %v3895_v17 = vld [vmem:[%s3783_s30 + $0x50] sm:$0xff]   ;;  %v1254_v20 = vsel %vm680_vm1, %v1251_v48, %v1253_v5  ;;  %v3957_v48 = vld [vmem:[%s3783_s30 + $0x60] sm:$0xff]  }
  0x32   : > { %v1257_v31 = vrot.slane %v3895_v17, 1  ;;  %v501_v62 = vshll.u32 %v3957_v48, 16  ;;  %v3629_v5 = vld [vmem:[%s4601_s1 + $0x68] sm:$0xff]   ;;  %v3639_v17 = vld [vmem:[%s4601_s1 + $0x30] sm:$0xff]  }
  0x35   : > { %1275 = vrot.lane.b32.xlu1 %v1248_v25, %s3728_s6  ;;  %529 = vrot.lane.b32.xlu0 %v448_v29, %s3728_s6  ;;  %v485_v25 = vshll.u32 %v3890_v12, 16  ;;  %v3920_v29 = vld [vmem:[%s3783_s30 + $0x58] sm:$0xff]  }
  0x36   : > { %v493_v46 = vshll.u32 %v3920_v29, 16  ;;  %v497_v61 = vshrl.u32 %v3920_v29, 16 }
  0x37   : > { %v3938_v39 = vrot.slane %v485_v25, 1  ;;  %v3634_v25 = vld [vmem:[%s4601_s1 + $0xe0] sm:$0xff]  }
  0x39   : > { %1677 = vrot.lane.b32.xlu1 %v1596_v32, %s3728_s6  ;;  %846 = vrot.lane.b32.xlu0 %v3574_v33, %s3728_s6  ;;  %v3616_v32 = vld [vmem:[%s4601_s1 + $0x88] sm:$0xff]   ;;  %v1620_v33 = vsel %vm404_vm0, %v1615_v21, %v1619_v14  ;;  %v4015_v14 = vrot.slane %v501_v62, 1  ;;  %v3632_v21 = vld [vmem:[%s3783_s30] sm:$0xfe]  }
  0x3a   : > { %3384 = vmatpush3.bf16.msra.mxu1 %v3616_v32  ;;  %v681_v27 = vrot.slane %v3632_v21, 1  ;;  %v505_v32 = vshrl.u32 %v3957_v48, 16  ;;  %v3644_v62 = vld [vmem:[%s3783_s30 + $0x10] sm:$0xff]   ;;  %v4139_v21 = vld [vmem:[%s4601_s1 + $0x100] sm:$0xff]   ;;  %v3652_v48 = vld [vmem:[%s4601_s1 + $0xb8] sm:$0xff]  }
  0x3c   : > { %v683_v36 = vsel %vm680_vm1, %v681_v27, %v682_v16 }
  0x3d   : > { %1277 = vrot.lane.b32.xlu1 %v1250_v42, %s3728_s6  ;;  %531 = vrot.lane.b32.xlu0 %v456_v45, %s3728_s6  ;;  %v3620_v42 = vld [vmem:[%s4601_s1 + $0xd0] sm:$0xff]   ;;  %v489_v45 = vshrl.u32 %v3890_v12, 16  ;;  %v1260_v12 = vsel %vm680_vm1, %v1257_v31, %v1259_v41  ;;  %724 = vst.msk [vmem:[#allocation2 + $0x8] sm:$0xff] %vm287_vm2, %v683_v36  ;;  %v3653_v36 = vld [vmem:[%s3783_s30 + $0x18] sm:$0xff]  }
  0x3e   : > { %3385 = vmatprep.subr.bf16.mxu1 %v3620_v42  ;;  %v4065_v42 = vrot.slane %v1649_v11, 1 }
  0x3f   : > { %3386 = vmatpush3.bf16.msra.mxu1 %v3622_v49  ;;  %v4081_v49 = vrot.slane %v509_v34, 1 }
  0x40   : > { %3387 = vmatprep.subr.bf16.mxu1 %v3625_v59  ;;  %v3643_v59 = vld [vmem:[%s3783_s30 + $0x8] sm:$0xff]  }
  0x41   : > { %1679 = vrot.lane.b32.xlu1 %v1604_v50, %s3728_s6  ;;  %848 = vrot.lane.b32.xlu0 %v3578_v53, %s3728_s6  ;;  %v480_v50 = vsel %vm404_vm0, %v475_v38, %v3898_v18  ;;  %v3623_v53 = vld [vmem:[%s4601_s1 + $0x60] sm:$0xff]   ;;  %v1639_v38 = vor.u32 %v1637_v58, %v1635_v55  ;;  %v997_v7 = vshll.u32 %v3643_v59, 16 }
  0x42   : > { %3289 = vmatprep.subr.bf16.mxu0 %v3623_v53 }
  0x43   : > { %3290 = vmatpush3.bf16.msra.mxu0 %v3624_v56  ;;  %3388 = vmatpush3.bf16.msra.mxu1 %v3627_v0  ;;  %v1644_v51 = vsel %vm404_vm0, %v1639_v38, %v3992_v2  ;;  %v4098_v56 = vld [vmem:[%s3783_s30 + $0x70] sm:$0xff]   ;;  %v1262_v0 = vsel %vm680_vm1, %v1259_v41, %v1261_v3  ;;  %v999_v11 = vrot.slane %v997_v7, 1  ;;  %v686_v38 = vrot.slane %v3653_v36, 1 }
  0x44   : > { %3291 = vmatprep.subr.bf16.mxu0 %v3629_v5  ;;  %3389 = vmatprep.subr.bf16.mxu1 %v3634_v25  ;;  %v995_v5 = vshrl.u32 %v3643_v59, 16  ;;  %v507_v25 = vor.u32 %v505_v32, %v4015_v14  ;;  %v3660_v59 = vld [vmem:[%s3783_s30 + $0x28] sm:$0xff]  }
  0x45   : > { %1279 = vrot.lane.b32.xlu1 %v1252_v60, %s3728_s6  ;;  %533 = vrot.lane.b32.xlu0 %v464_v1, %s3728_s6  ;;  %v3984_v60 = vrot.slane %v493_v46, 1  ;;  %v483_v1 = vor.u32 %v481_v22, %v3898_v18  ;;  %v4023_v18 = vld [vmem:[%s3783_s30 + $0x78] sm:$0xff]   ;;  %v1636_v22 = vsel %vm404_vm0, %v1631_v9, %v1635_v55  ;;  %v3598_v46 = vld [vmem:[%s3783_s30 + $0x60] sm:$0xff]   ;;  %1440 = vst.msk [vmem:[#allocation2 + $0x90] sm:$0xff] %vm287_vm2, %v3660_v59 }
  0x46   : > { %v1661_v58 = vshrl.u32 %v4023_v18, 16  ;;  %v4124_v9 = vld [vmem:[%s3783_s30 + $0x78] ss:$0 sps:$4 sm:$0x11]   ;;  %v512_v47 = vsel %vm404_vm0, %v507_v25, %v4081_v49 }
  0x47   : > { %v488_v63 = vsel %vm404_vm0, %v483_v1, %v3938_v39  ;;  %3292 = vmatpush3.bf16.msra.mxu0 %v3633_v19  ;;  %v499_v55 = vor.u32 %v497_v61, %v3984_v60  ;;  %v3645_v61 = vld [vmem:[%s4601_s1 + $0x38] sm:$0xff]   ;;  %v1647_v1 = vor.u32 %v1645_v6, %v3992_v2  ;;  %v3647_v2 = vld [vmem:[%s4601_s1 + $0xb0] sm:$0xff]   ;;  %v3648_v6 = vld [vmem:[%s3783_s30 + $0x8] sm:$0xff]   ;;  %v1265_v19 = vrot.slane %v4098_v56, 1 }
  0x48   : > { %289 = vst.msk [vmem:[#allocation2 + $0x28] sm:$0xff] %vm287_vm2, %v3648_v6  ;;  %v1267_v34 = vrot.slane %v4124_v9, 1  ;;  %v3666_v56 = vld [vmem:[%s3783_s30 + $0x30] sm:$0xff]  }
  0x49   : > { %1681 = vrot.lane.b32.xlu1 %v1612_v8, %s3728_s6  ;;  %850 = vrot.lane.b32.xlu0 %v3582_v4, %s3728_s6  ;;  %v3996_v4 = vld [vmem:[%s3783_s30 + $0x68] sm:$0xff]   ;;  %v1258_v8 = vsel %vm680_vm1, %v1255_v10, %v1257_v31  ;;  %v684_v10 = vrot.slane %v4012_v13, 1  ;;  %v504_v41 = vsel %vm404_vm0, %v499_v55, %v4015_v14  ;;  %v1006_v14 = vshrl.u32 %v3644_v62, 16 }
  0x4a   : > { %v1263_v23 = vrot.slane %v3996_v4, 1  ;;  %v3662_v4 = vld [vmem:[%s3783_s30 + $0x28] sm:$0xff]  }
  0x4b   : > { %v685_v24 = vsel %vm680_vm1, %v682_v16, %v684_v10  ;;  %v3604_v16 = vld [vmem:[%s3783_s30 + $0x68] sm:$0xff]   ;;  %v1026_v7 = vshll.u32 %v3662_v4, 16 }
  0x4c   : > { %725 = vst.msk [vmem:[#allocation2 + $0x30] sm:$0xff] %vm287_vm2, %v685_v24  ;;  %v3650_v24 = vld [vmem:[%s3783_s30 + $0x18] sm:$0xff]   ;;  %v1264_v32 = vsel %vm680_vm1, %v1261_v3, %v1263_v23  ;;  %v3655_v3 = vld [vmem:[%s3783_s30 + $0x10] sm:$0xff]  }
  0x4d   : > { %1281 = vrot.lane.b32.xlu1 %v1254_v20, %s3728_s6  ;;  %535 = vrot.lane.b32.xlu0 %v472_v28, %s3728_s6  ;;  %v3594_v20 = vld [vmem:[%s3783_s30 + $0x58] sm:$0xff]   ;;  %v3635_v28 = vld [vmem:[%s4601_s1 + $0xa0] sm:$0xff]   ;;  %1438 = vst.msk [vmem:[#allocation2 + $0x40] sm:$0xff] %vm287_vm2, %v3650_v24  ;;  %290 = vst.msk [vmem:[#allocation2 + $0x50] sm:$0xff] %vm287_vm2, %v3655_v3  ;;  %v1038_v24 = vshrl.u32 %v3666_v56, 16 }
  0x4e   : > { %3390 = vmatpush3.bf16.msra.mxu1 %v3635_v28 }
  0x51   : > { %1683 = vrot.lane.b32.xlu1 %v1620_v33, %s3728_s6  ;;  %852 = vrot.lane.b32.xlu0 %v3586_v30, %s3728_s6  ;;  %v491_v30 = vor.u32 %v489_v45, %v3938_v39  ;;  %v3636_v33 = vld [vmem:[%s4601_s1 + $0x70] sm:$0xff]   ;;  %v1657_v39 = vshll.u32 %v4023_v18, 16  ;;  %v3640_v45 = vld [vmem:[%s4601_s1 + $0xe8] sm:$0xff]  }
  0x52   : > { %3293 = vmatprep.subr.bf16.mxu0 %v3636_v33  ;;  %3391 = vmatprep.subr.bf16.mxu1 %v3640_v45  ;;  %v1655_v33 = vor.u32 %v1653_v44, %v4065_v42  ;;  %v3665_v18 = vld [vmem:[%s3783_s30 + $0x30] sm:$0xff]  }
  0x53   : > { %v496_v31 = vsel %vm404_vm0, %v491_v30, %v3984_v60  ;;  %3294 = vmatpush3.bf16.msra.mxu0 %v3639_v17  ;;  %v4088_v53 = vrot.slane %v1657_v39, 1  ;;  %v3626_v60 = vld [vmem:[%s3783_s30 + $0x80] ss:$0 sps:$4 sm:$0x11]   ;;  %v3651_v30 = vld [vmem:[%s4601_s1 + $0xf8] sm:$0xff]   ;;  %v687_v17 = vsel %vm680_vm1, %v684_v10, %v686_v38 }
  0x54   : > { %726 = vst.msk [vmem:[#allocation2 + $0x58] sm:$0xff] %vm287_vm2, %v687_v17  ;;  %v3659_v10 = vld [vmem:[%s3783_s30 + $0x18] sm:$0xff]   ;;  %v3677_v17 = vld [vmem:[%s3783_s30 + $0x48] sm:$0xff]  }
  0x55   : > { %1283 = vrot.lane.b32.xlu1 %v1256_v43, %s3728_s6  ;;  %537 = vrot.lane.b32.xlu0 %v480_v50, %s3728_s6  ;;  %v3621_v43 = vld [vmem:[%s3783_s30 + $0x70] ss:$0 sps:$4 sm:$0x11]   ;;  %v3641_v50 = vld [vmem:[%s4601_s1 + $0xa8] sm:$0xff]   ;;  %291 = vst.msk [vmem:[#allocation2 + $0x78] sm:$0xff] %vm287_vm2, %v3659_v10  ;;  %1444 = vst.msk [vmem:[#allocation2 + $0x130] sm:$0xff] %vm287_vm2, %v3677_v17 }
  0x56   : > { %3392 = vmatpush3.bf16.msra.mxu1 %v3641_v50  ;;  %v517_v29 = vshll.u32 %v3621_v43, 16  ;;  %v1660_v43 = vsel %vm404_vm0, %v1655_v33, %v4088_v53 }
  0x57   : > { %3393 = vmatprep.subr.bf16.mxu1 %v3646_v26  ;;  %v1268_v26 = vsel %vm680_vm1, %v1265_v19, %v1267_v34  ;;  %v3673_v34 = vld [vmem:[%s3783_s30 + $0x40] sm:$0xff]  }
  0x58   : > { %v519_v27 = vrot.slane %v517_v29, 1  ;;  %v1663_v29 = vor.u32 %v1661_v58, %v4088_v53  ;;  %v1030_v53 = vshrl.u32 %v3662_v4, 16  ;;  %v1028_v58 = vrot.slane %v1026_v7, 1  ;;  %1443 = vst.msk [vmem:[#allocation2 + $0x108] sm:$0xff] %vm287_vm2, %v3673_v34 }
  0x59   : > { %1685 = vrot.lane.b32.xlu1 %v1628_v57, %s3728_s6  ;;  %854 = vrot.lane.b32.xlu0 %v3590_v54, %s3728_s6  ;;  %v3642_v54 = vld [vmem:[%s4601_s1 + $0x78] sm:$0xff]   ;;  %v513_v57 = vshrl.u32 %v4018_v15, 16 }
  0x5a   : > { %3295 = vmatprep.subr.bf16.mxu0 %v3642_v54  ;;  %3394 = vmatpush3.bf16.msra.mxu1 %v3647_v2  ;;  %v1032_v6 = vor.u32 %v1030_v53, %v1028_v58 }
  0x5b   : > { %3296 = vmatpush3.bf16.msra.mxu0 %v3645_v61  ;;  %3395 = vmatprep.subr.bf16.mxu1 %v3651_v30  ;;  %v515_v13 = vor.u32 %v513_v57, %v4081_v49  ;;  %v3661_v49 = vld [vmem:[%s3783_s30 + $0x28] sm:$0xff]   ;;  %v3663_v61 = vld [vmem:[%s3783_s30 + $0x20] sm:$0xff]  }
  0x5c   : > { %3499 = vmatprep.subr.bf16.mxu0 %v4139_v21  ;;  %292 = vst.msk [vmem:[#allocation2 + $0xa0] sm:$0xff] %vm287_vm2, %v3663_v61 }
  0x5d   : > { %1285 = vrot.lane.b32.xlu1 %v1258_v8, %s3728_s6  ;;  %539 = vrot.lane.b32.xlu0 %v488_v63, %s3728_s6  ;;  %v1002_v8 = vshll.u32 %v3644_v62, 16  ;;  %v1652_v63 = vsel %vm404_vm0, %v1647_v1, %v4065_v42  ;;  %v3656_v42 = vld [vmem:[%s3783_s30 + $0x20] sm:$0xff]   ;;  %v1266_v62 = vsel %vm680_vm1, %v1263_v23, %v1265_v19  ;;  %v520_v23 = vsel %vm404_vm0, %v515_v13, %v519_v27  ;;  %v3670_v27 = vld [vmem:[%s3783_s30 + $0x38] sm:$0xff]  }
  0x5e   : > { %3396 = vmatpush3.bf16.msra.mxu1 %v3652_v48  ;;  %1439 = vst.msk [vmem:[#allocation2 + $0x68] sm:$0xff] %vm287_vm2, %v3656_v42  ;;  %v694_v48 = vrot.slane %v3670_v27, 1 }
  0x5f   : > { %v1004_v35 = vrot.slane %v1002_v8, 1  ;;  %3535 = vmatprep.subr.bf16.mxu1 %v4139_v21  ;;  %v3664_v8 = vld [vmem:[%s3783_s30 + $0x30] sm:$0xff]  }
  0x60   : > { %1441 = vst.msk [vmem:[#allocation2 + $0xb8] sm:$0xff] %vm287_vm2, %v3664_v8  ;;  %v3685_v8 = vld [vmem:[%s3783_s30 + $0x48] sm:$0xff]  }
  0x61   : > { %1687 = vrot.lane.b32.xlu1 %v1636_v22, %s3728_s6  ;;  %856 = vrot.lane.b32.xlu0 %v3594_v20, %s3728_s6  ;;  %v1000_v20 = vor.u32 %v999_v11, %v995_v5  ;;  %v1665_v22 = vshll.u32 %v3626_v60, 16  ;;  %v1008_v39 = vor.u32 %v1006_v14, %v1004_v35  ;;  %v690_v60 = vrot.slane %v3661_v49, 1  ;;  %v3672_v14 = vld [vmem:[%s3783_s30 + $0x30] sm:$0xff]   ;;  %297 = vst.msk [vmem:[#allocation2 + $0x168] sm:$0xff] %vm287_vm2, %v3685_v8 }
  0x62   : > { %v692_v11 = vrot.slane %v3665_v18, 1  ;;  %294 = vst.msk [vmem:[#allocation2 + $0xf0] sm:$0xff] %vm287_vm2, %v3672_v14 }
  0x63   : > { %v1005_v28 = vsel %vm404_vm0, %v1000_v20, %v1004_v35  ;;  %v1667_v37 = vrot.slane %v1665_v22, 1  ;;  %v3669_v22 = vld [vmem:[%s3783_s30 + $0x38] sm:$0xff]  }
  0x64   : > { %1124 = vst.msk [vmem:[#allocation2 + $0x10] sm:$0xff] %vm287_vm2, %v1005_v28  ;;  %v693_v20 = vsel %vm680_vm1, %v690_v60, %v692_v11  ;;  %1442 = vst.msk [vmem:[#allocation2 + $0xe0] sm:$0xff] %vm287_vm2, %v3669_v22  ;;  %v3671_v28 = vld [vmem:[%s3783_s30 + $0x38] sm:$0xff]   ;;  %v695_v36 = vsel %vm680_vm1, %v692_v11, %v694_v48 }
  0x65   : > { %1287 = vrot.lane.b32.xlu1 %v1260_v12, %s3728_s6  ;;  %541 = vrot.lane.b32.xlu0 %v496_v31, %s3728_s6  ;;  %v3654_v12 = vld [vmem:[%s3783_s30 + $0x18] sm:$0xff]   ;;  %v3657_v31 = vld [vmem:[%s3783_s30 + $0x20] sm:$0xff]   ;;  %v1668_v9 = vsel %vm404_vm0, %v1663_v29, %v1667_v37  ;;  %729 = vst.msk [vmem:[#allocation2 + $0xd0] sm:$0xff] %vm287_vm2, %v693_v20  ;;  %v1042_v33 = vshll.u32 %v3671_v28, 16  ;;  %730 = vst.msk [vmem:[#allocation2 + $0xf8] sm:$0xff] %vm287_vm2, %v695_v36 }
  0x66   : > { %v1010_v40 = vshll.u32 %v3654_v12, 16  ;;  %v1014_v44 = vshrl.u32 %v3654_v12, 16  ;;  %v688_v50 = vrot.slane %v3657_v31, 1  ;;  %v3674_v37 = vld [vmem:[%s3783_s30 + $0x40] sm:$0xff]   ;;  %v1046_v12 = vshrl.u32 %v3671_v28, 16 }
  0x67   : > { %v696_v3 = vrot.slane %v3674_v37, 1  ;;  %v3691_v36 = vld [vmem:[%s3783_s30 + $0x60] sm:$0xff]  }
  0x68   : > { %v1012_v45 = vrot.slane %v1010_v40, 1  ;;  %v689_v15 = vsel %vm680_vm1, %v686_v38, %v688_v50  ;;  %v3675_v38 = vld [vmem:[%s3783_s30 + $0x40] sm:$0xff]  }
  0x69   : > { %1689 = vrot.lane.b32.xlu1 %v1644_v51, %s3728_s6  ;;  %858 = vrot.lane.b32.xlu0 %v3598_v46, %s3728_s6  ;;  %v3658_v46 = vld [vmem:[%s3783_s30 + $0x20] sm:$0xff]   ;;  %727 = vst.msk [vmem:[#allocation2 + $0x80] sm:$0xff] %vm287_vm2, %v689_v15  ;;  %v1054_v31 = vshrl.u32 %v3675_v38, 16  ;;  %v3681_v15 = vld [vmem:[%s3783_s30 + $0x50] sm:$0xff]  }
  0x6a   : > { %v1013_v51 = vsel %vm404_vm0, %v1008_v39, %v1012_v45  ;;  %v1016_v54 = vor.u32 %v1014_v44, %v1012_v45  ;;  %v1018_v55 = vshll.u32 %v3658_v46, 16  ;;  %v1022_v57 = vshrl.u32 %v3658_v46, 16  ;;  %v3678_v46 = vld [vmem:[%s3783_s30 + $0x48] sm:$0xff]   ;;  %1445 = vst.msk [vmem:[#allocation2 + $0x158] sm:$0xff] %vm287_vm2, %v3681_v15 }
  0x6b   : > { %1125 = vst.msk [vmem:[#allocation2 + $0x38] sm:$0xff] %vm287_vm2, %v1013_v51  ;;  %v697_v45 = vsel %vm680_vm1, %v694_v48, %v696_v3  ;;  %v698_v51 = vrot.slane %v3678_v46, 1 }
  0x6c   : > { %731 = vst.msk [vmem:[#allocation2 + $0x120] sm:$0xff] %vm287_vm2, %v697_v45 }
  0x6d   : > { %1289 = vrot.lane.b32.xlu1 %v1262_v0, %s3728_s6  ;;  %543 = vrot.lane.b32.xlu0 %v504_v41, %s3728_s6  ;;  %v1020_v0 = vrot.slane %v1018_v55, 1  ;;  %v691_v41 = vsel %vm680_vm1, %v688_v50, %v690_v60  ;;  %v3679_v50 = vld [vmem:[%s3783_s30 + $0x48] sm:$0xff]   ;;  %v3684_v60 = vld [vmem:[%s3783_s30 + $0x50] sm:$0xff]  }
  0x6e   : > { %728 = vst.msk [vmem:[#allocation2 + $0xa8] sm:$0xff] %vm287_vm2, %v691_v41  ;;  %v1066_v53 = vshll.u32 %v3684_v60, 16 }
  0x6f   : > { %v1021_v1 = vsel %vm404_vm0, %v1016_v54, %v1020_v0  ;;  %v1024_v5 = vor.u32 %v1022_v57, %v1020_v0  ;;  %v3680_v54 = vld [vmem:[%s3783_s30 + $0x40] sm:$0xff]   ;;  %v699_v57 = vsel %vm680_vm1, %v696_v3, %v698_v51  ;;  %v1062_v0 = vshrl.u32 %v3679_v50, 16  ;;  %v3693_v3 = vld [vmem:[%s3783_s30 + $0x58] sm:$0xff]  }
  0x70   : > { %1126 = vst.msk [vmem:[#allocation2 + $0x60] sm:$0xff] %vm287_vm2, %v1021_v1  ;;  %296 = vst.msk [vmem:[#allocation2 + $0x140] sm:$0xff] %vm287_vm2, %v3680_v54  ;;  %v3667_v1 = vld [vmem:[%s4601_s1 + $0x108] sm:$0xff]  }
  0x71   : > { %1691 = vrot.lane.b32.xlu1 %v1652_v63, %s3728_s6  ;;  %860 = vrot.lane.b32.xlu0 %v3604_v16, %s3728_s6  ;;  %v1029_v2 = vsel %vm404_vm0, %v1024_v5, %v1028_v58  ;;  %v1034_v16 = vshll.u32 %v3666_v56, 16  ;;  %v3668_v63 = vld [vmem:[%s3783_s30 + $0x28] sm:$0xff]   ;;  %732 = vst.msk [vmem:[#allocation2 + $0x148] sm:$0xff] %vm287_vm2, %v699_v57  ;;  %v3686_v56 = vld [vmem:[%s3783_s30 + $0x58] sm:$0xff]   ;;  %299 = vst.msk [vmem:[#allocation2 + $0x1b8] sm:$0xff] %vm287_vm2, %v3693_v3 }
  0x72   : > { %1127 = vst.msk [vmem:[#allocation2 + $0x88] sm:$0xff] %vm287_vm2, %v1029_v2  ;;  %293 = vst.msk [vmem:[#allocation2 + $0xc8] sm:$0xff] %vm287_vm2, %v3668_v63  ;;  %v1068_v2 = vrot.slane %v1066_v53, 1  ;;  %v3688_v63 = vld [vmem:[%s3783_s30 + $0x58] sm:$0xff]   ;;  %v3698_v57 = vld [vmem:[%s3783_s30 + $0x60] sm:$0xff]  }
  0x73   : > { %v1036_v25 = vrot.slane %v1034_v16, 1  ;;  %v4291_v16 = vld [vmem:[%s4601_s1 + $0x110] sm:$0xff]   ;;  %1446 = vst.msk [vmem:[#allocation2 + $0x180] sm:$0xff] %vm287_vm2, %v3686_v56  ;;  %v1074_v28 = vshll.u32 %v3688_v63, 16  ;;  %300 = vst.msk [vmem:[#allocation2 + $0x1e0] sm:$0xff] %vm287_vm2, %v3698_v57  ;;  %v3702_v53 = vld [vmem:[%s3783_s30 + $0x68] sm:$0xff]  }
  0x74   : > { %301 = vst.msk [vmem:[#allocation2 + $0x208] sm:$0xff] %vm287_vm2, %v3702_v53  ;;  %v3709_v3 = vld [vmem:[%s3783_s30 + $0x58] sm:$0xff]  }
  0x75   : > { %1291 = vrot.lane.b32.xlu1 %v1264_v32, %s3728_s6  ;;  %545 = vrot.lane.b32.xlu0 %v512_v47, %s3728_s6  ;;  %v1037_v30 = vsel %vm404_vm0, %v1032_v6, %v1036_v25  ;;  %v1040_v32 = vor.u32 %v1038_v24, %v1036_v25  ;;  %v1044_v47 = vrot.slane %v1042_v33, 1  ;;  %v3687_v6 = vld [vmem:[%s3783_s30 + $0x58] sm:$0xff]   ;;  %v3689_v25 = vld [vmem:[%s3783_s30 + $0x50] sm:$0xff]   ;;  %v1078_v33 = vshrl.u32 %v3688_v63, 16 }
  0x76   : > { %1128 = vst.msk [vmem:[#allocation2 + $0xb0] sm:$0xff] %vm287_vm2, %v1037_v30  ;;  %v702_v24 = vrot.slane %v3687_v6, 1  ;;  %v3690_v30 = vld [vmem:[%s3783_s30 + $0x60] sm:$0xff]   ;;  %298 = vst.msk [vmem:[#allocation2 + $0x190] sm:$0xff] %vm287_vm2, %v3689_v25  ;;  %v1076_v34 = vrot.slane %v1074_v28, 1  ;;  %v3706_v63 = vld [vmem:[%s3783_s30 + $0x18] sm:$0xff]  }
  0x77   : > { %v1045_v40 = vsel %vm404_vm0, %v1040_v32, %v1044_v47  ;;  %v1048_v42 = vor.u32 %v1046_v12, %v1044_v47  ;;  %1447 = vst.msk [vmem:[#allocation2 + $0x1a8] sm:$0xff] %vm287_vm2, %v3690_v30  ;;  %v3704_v6 = vld [vmem:[%s3783_s30 + $0x78] ss:$0 sps:$4 sm:$0x11]   ;;  %v3705_v30 = vld [vmem:[%s3783_s30 + $0x10] sm:$0xfe]  }
  0x78   : > { %1129 = vst.msk [vmem:[#allocation2 + $0xd8] sm:$0xff] %vm287_vm2, %v1045_v40  ;;  %v1080_v40 = vor.u32 %v1078_v33, %v1076_v34  ;;  %v1106_v25 = vshll.u32 %v3704_v6, 16 }
  0x79   : > { %1693 = vrot.lane.b32.xlu1 %v1660_v43, %s3728_s6  ;;  %862 = vrot.lane.b32.xlu0 %v3615_v52, %s3728_s6  ;;  %v3676_v52 = vld [vmem:[%s3783_s30 + $0x38] sm:$0xff]   ;;  %v1050_v43 = vshll.u32 %v3675_v38, 16  ;;  %v704_v38 = vrot.slane %v3691_v36, 1  ;;  %v1827_v36 = vrot.slane %v3705_v30, 1 }
  0x7a   : > { %295 = vst.msk [vmem:[#allocation2 + $0x118] sm:$0xff] %vm287_vm2, %v3676_v52 }
  0x7b   : > { %v1052_v13 = vrot.slane %v1050_v43, 1  ;;  %v3694_v43 = vld [vmem:[%s3783_s30 + $0x68] sm:$0xff]   ;;  %v705_v17 = vsel %vm680_vm1, %v702_v24, %v704_v38 }
  0x7c   : > { %735 = vst.msk [vmem:[#allocation2 + $0x1c0] sm:$0xff] %vm287_vm2, %v705_v17  ;;  %1448 = vst.msk [vmem:[#allocation2 + $0x1d0] sm:$0xff] %vm287_vm2, %v3694_v43  ;;  %v1844_v17 = vrot.slane %v3709_v3, 1 }
  0x7d   : > { %1293 = vrot.lane.b32.xlu1 %v1266_v62, %s3728_s6  ;;  %547 = vrot.lane.b32.xlu0 %v520_v23, %s3728_s6  ;;  %v1053_v55 = vsel %vm404_vm0, %v1048_v42, %v1052_v13  ;;  %v1056_v59 = vor.u32 %v1054_v31, %v1052_v13  ;;  %v1058_v62 = vshll.u32 %v3679_v50, 16  ;;  %v3683_v23 = vld [vmem:[%s3783_s30 + $0x50] sm:$0xff]   ;;  %v3695_v31 = vld [vmem:[%s3783_s30 + $0x68] sm:$0xff]  }
  0x7e   : > { %1130 = vst.msk [vmem:[#allocation2 + $0x100] sm:$0xff] %vm287_vm2, %v1053_v55  ;;  %v700_v7 = vrot.slane %v3683_v23, 1  ;;  %v706_v50 = vrot.slane %v3695_v31, 1  ;;  %v3699_v23 = vld [vmem:[%s3783_s30 + $0x70] sm:$0xff]  }
  0x7f   : > { %v1060_v4 = vrot.slane %v1058_v62, 1  ;;  %1449 = vst.msk [vmem:[#allocation2 + $0x1f8] sm:$0xff] %vm287_vm2, %v3699_v23 }
  0x80   : > { %v701_v58 = vsel %vm680_vm1, %v698_v51, %v700_v7  ;;  %v703_v32 = vsel %vm680_vm1, %v700_v7, %v702_v24  ;;  %v707_v62 = vsel %vm680_vm1, %v704_v38, %v706_v50 }
  0x81   : > { %1295 = vrot.lane.b32.xlu1 %v1268_v26, %s3728_s6  ;;  %1695 = vrot.lane.b32.xlu0 %v1668_v9, %s3728_s6  ;;  %v1061_v5 = vsel %vm404_vm0, %v1056_v59, %v1060_v4  ;;  %v1064_v18 = vor.u32 %v1062_v0, %v1060_v4  ;;  %v1070_v9 = vshrl.u32 %v3684_v60, 16  ;;  %733 = vst.msk [vmem:[#allocation2 + $0x170] sm:$0xff] %vm287_vm2, %v701_v58  ;;  %734 = vst.msk [vmem:[#allocation2 + $0x198] sm:$0xff] %vm287_vm2, %v703_v32  ;;  %v3697_v59 = vld [vmem:[%s4601_s1 + $0x118] sm:$0xff]  }
  0x82   : > { %1131 = vst.msk [vmem:[#allocation2 + $0x128] sm:$0xff] %vm287_vm2, %v1061_v5  ;;  %736 = vst.msk [vmem:[#allocation2 + $0x1e8] sm:$0xff] %vm287_vm2, %v707_v62 }
  0x83   : > { %v839_v35 = vpop.permute.xlu1 %838  ;;  %v837_v19 = vpop.permute.xlu0 %836  ;;  %v1069_v22 = vsel %vm404_vm0, %v1064_v18, %v1068_v2  ;;  %v1072_v27 = vor.u32 %v1070_v9, %v1068_v2 }
  0x84   : > { %879 = vst.msk [vmem:[#allocation2 + $0x30] sm:$0xff] %vm563_vm3, %v839_v35  ;;  %878 = vst.msk [vmem:[#allocation2 + $0x8] sm:$0xff] %vm563_vm3, %v837_v19 }
  0x85   : > { %1132 = vst.msk [vmem:[#allocation2 + $0x150] sm:$0xff] %vm287_vm2, %v1069_v22  ;;  %v1077_v47 = vsel %vm404_vm0, %v1072_v27, %v1076_v34  ;;  %v1108_v34 = vrot.slane %v1106_v25, 1 }
  0x86   : > { %1133 = vst.msk [vmem:[#allocation2 + $0x178] sm:$0xff] %vm287_vm2, %v1077_v47 }
  0x8b   : > { %v1885_v39 = vld [vmem:[#allocation2 + $0x8] sm:$0xff]  ;;  %v1670_v44 = vpop.permute.xlu1 %1669  ;;  %v522_v10 = vpop.permute.xlu0 %521  ;;  %v1890_v61 = vld [vmem:[#allocation2 + $0x30] sm:$0xff] }
  0x8c   : > { %2323 = vmatprep.mubr.bf16.mxu0 %v1885_v39  ;;  %1711 = vst.msk [vmem:[#allocation2 + $0x18] sm:$0xff] %vm563_vm3, %v1670_v44  ;;  %564 = vst.msk [vmem:[#allocation2] sm:$0xff] %vm563_vm3, %v522_v10  ;;  %v3696_v10 = vld [vmem:[%s3783_s30 + $0x68] sm:$0xff]  }
  0x8f   : > { %v1270_v49 = vpop.permute.xlu1 %1269  ;;  %v524_v29 = vpop.permute.xlu0 %523 }
  0x90   : > { %1311 = vst.msk [vmem:[#allocation2 + $0x10] sm:$0xff] %vm563_vm3, %v1270_v49  ;;  %565 = vst.msk [vmem:[#allocation2 + $0x28] sm:$0xff] %vm563_vm3, %v524_v29  ;;  %v1090_v49 = vshll.u32 %v3696_v10, 16  ;;  %v1094_v29 = vshrl.u32 %v3696_v10, 16 }
  0x92   : > { %v1092_v60 = vrot.slane %v1090_v49, 1 }
  0x93   : > { %v1672_v26 = vpop.permute.xlu1 %1671  ;;  %v1887_v41 = vld [vmem:[#allocation2 + $0x18] sm:$0xff]  ;;  %v1884_v11 = vld [vmem:[#allocation2] sm:$0xff]  ;;  %v841_v35 = vpop.permute.xlu0 %840 }
  0x94   : > { %1712 = vst.msk [vmem:[#allocation2 + $0x40] sm:$0xff] %vm563_vm3, %v1672_v26  ;;  %2468 = vmatprep.mubr.bf16.mxu1 %v1887_v41  ;;  %2324 = vmatmul.mubr.bf16.vlgmr.msra.gmra.mrb[0].mxu0 %v1884_v11  ;;  %880 = vst.msk [vmem:[#allocation2 + $0x58] sm:$0xff] %vm563_vm3, %v841_v35  ;;  %v3701_v26 = vld [vmem:[%s3783_s30 + $0x70] sm:$0xff]   ;;  %v1096_v56 = vor.u32 %v1094_v29, %v1092_v60  ;;  %v3703_v11 = vld [vmem:[%s3783_s30 + $0x78] sm:$0xff]  }
  0x95   : > { %3500 = vmatpush3.bf16.msra.mxu0 %v4139_v21  ;;  %2331 = vmatprep.mubr.bf16.mxu0 %v1890_v61  ;;  %v3700_v61 = vld [vmem:[%s3783_s30 + $0x70] ss:$0 sps:$4 sm:$0x11]   ;;  %v1098_v9 = vshll.u32 %v3701_v26, 16  ;;  %1450 = vst.msk [vmem:[#allocation2 + $0x220] sm:$0xff] %vm287_vm2, %v3703_v11 }
  0x96   : > { %3501 = vmatprep.subr.bf16.mxu0 %v3667_v1  ;;  %v708_v8 = vrot.slane %v3700_v61, 1 }
  0x97   : > { %v1272_v19 = vpop.permute.xlu1 %1271  ;;  %v1886_v20 = vld [vmem:[#allocation2 + $0x10] sm:$0xff]  ;;  %v526_v48 = vpop.permute.xlu0 %525  ;;  %v1889_v14 = vld [vmem:[#allocation2 + $0x28] sm:$0xff] }
  0x98   : > { %1312 = vst.msk [vmem:[#allocation2 + $0x38] sm:$0xff] %vm563_vm3, %v1272_v19  ;;  %2469 = vmatmul.mubr.bf16.vlgmr.msra.gmra.mrb[0].mxu1 %v1886_v20  ;;  %566 = vst.msk [vmem:[#allocation2 + $0x50] sm:$0xff] %vm563_vm3, %v526_v48  ;;  %v709_v58 = vsel %vm680_vm1, %v706_v50, %v708_v8  ;;  %v1100_v19 = vrot.slane %v1098_v9, 1  ;;  %v3707_v20 = vld [vmem:[%s3783_s30 + $0x20] sm:$0xff]   ;;  %v1828_v48 = vrot.slane %v3706_v63, 1  ;;  %v3712_v50 = vld [vmem:[%s3783_s30 + $0x30] sm:$0xff]  }
  0x99   : > { %3539 = vmatpush3.bf16.msra.mxu1 %v4139_v21  ;;  %3502 = vmatpush3.bf16.msra.mxu0 %v3667_v1  ;;  %v3692_v21 = vld [vmem:[%s3783_s30 + $0x60] sm:$0xff]   ;;  %737 = vst.msk [vmem:[#allocation2 + $0x210] sm:$0xff] %vm287_vm2, %v709_v58  ;;  %v1834_v62 = vrot.slane %v3712_v50, 1 }
  0x9a   : > { %3536 = vmatprep.subr.bf16.mxu1 %v3667_v1  ;;  %3503 = vmatprep.subr.bf16.mxu0 %v4291_v16  ;;  %v1082_v42 = vshll.u32 %v3692_v21, 16  ;;  %v1086_v44 = vshrl.u32 %v3692_v21, 16  ;;  %v1101_v27 = vsel %vm404_vm0, %v1096_v56, %v1100_v19  ;;  %v3718_v9 = vld [vmem:[%s3783_s30 + $0x80] ss:$0 sps:$4 sm:$0x11]  }
  0x9b   : > { %v1674_v37 = vpop.permute.xlu1 %1673  ;;  %v1892_v12 = vld [vmem:[#allocation2 + $0x40] sm:$0xff]  ;;  %v843_v52 = vpop.permute.xlu0 %842  ;;  %v1895_v39 = vld [vmem:[#allocation2 + $0x58] sm:$0xff]  ;;  %1136 = vst.msk [vmem:[#allocation2 + $0x1f0] sm:$0xff] %vm287_vm2, %v1101_v27  ;;  %v1854_v63 = vrot.slane %v3718_v9, 1 }
  0x9c   : > { %1713 = vst.msk [vmem:[#allocation2 + $0x68] sm:$0xff] %vm563_vm3, %v1674_v37  ;;  %2476 = vmatprep.mubr.bf16.mxu1 %v1892_v12  ;;  %2332 = vmatmul.mubr.bf16.gmra.mrb[4].mxu0 %v1889_v14  ;;  %881 = vst.msk [vmem:[#allocation2 + $0x80] sm:$0xff] %vm563_vm3, %v843_v52  ;;  %v1084_v13 = vrot.slane %v1082_v42, 1  ;;  %v1830_v14 = vrot.slane %v3707_v20, 1  ;;  %v4362_v12 = vld [vmem:[%s3783_s30 + $0x50] sm:$0xff]   ;;  %v1829_v52 = vsel %vm680_vm1, %v1827_v36, %v1828_v48 }
  0x9d   : > { %3540 = vmatpush3.bf16.msra.mxu1 %v3667_v1  ;;  %2339 = vmatprep.mubr.bf16.mxu0 %v1895_v39  ;;  %v1842_v39 = vrot.slane %v4362_v12, 1  ;;  %1870 = vst.msk [vmem:[#allocation2 + $0x20] sm:$0xff] %vm287_vm2, %v1829_v52 }
  0x9e   : > { %3537 = vmatprep.subr.bf16.mxu1 %v4291_v16  ;;  %3504 = vmatpush3.bf16.msra.mxu0 %v4291_v16  ;;  %v1085_v55 = vsel %vm404_vm0, %v1080_v40, %v1084_v13  ;;  %v1088_v15 = vor.u32 %v1086_v44, %v1084_v13  ;;  %v1831_v37 = vsel %vm680_vm1, %v1828_v48, %v1830_v14  ;;  %v3710_v40 = vld [vmem:[%s3783_s30 + $0x60] sm:$0xff]   ;;  %v3711_v44 = vld [vmem:[%s3783_s30 + $0x28] sm:$0xff]  }
  0x9f   : > { %v1274_v45 = vpop.permute.xlu1 %1273  ;;  %v1891_v46 = vld [vmem:[#allocation2 + $0x38] sm:$0xff]  ;;  %v528_v51 = vpop.permute.xlu0 %527  ;;  %v1894_v54 = vld [vmem:[#allocation2 + $0x50] sm:$0xff]  ;;  %1134 = vst.msk [vmem:[#allocation2 + $0x1a0] sm:$0xff] %vm287_vm2, %v1085_v55  ;;  %3505 = vmatprep.subr.bf16.mxu0 %v3697_v59  ;;  %1871 = vst.msk [vmem:[#allocation2 + $0x48] sm:$0xff] %vm287_vm2, %v1831_v37  ;;  %v1846_v31 = vrot.slane %v3710_v40, 1  ;;  %v1845_v13 = vsel %vm680_vm1, %v1842_v39, %v1844_v17 }
  0xa0   : > { %1313 = vst.msk [vmem:[#allocation2 + $0x60] sm:$0xff] %vm563_vm3, %v1274_v45  ;;  %2477 = vmatmul.mubr.bf16.gmra.mrb[4].mxu1 %v1891_v46  ;;  %567 = vst.msk [vmem:[#allocation2 + $0x78] sm:$0xff] %vm563_vm3, %v528_v51  ;;  %v1093_v7 = vsel %vm404_vm0, %v1088_v15, %v1092_v60  ;;  %v1832_v51 = vrot.slane %v3711_v44, 1  ;;  %v3714_v15 = vld [vmem:[%s3783_s30 + $0x70] sm:$0xff]   ;;  %v3715_v60 = vld [vmem:[%s3783_s30 + $0x38] sm:$0xff]  }
  0xa1   : > { %3541 = vmatpush3.bf16.msra.mxu1 %v4291_v16  ;;  %1135 = vst.msk [vmem:[#allocation2 + $0x1c8] sm:$0xff] %vm287_vm2, %v1093_v7  ;;  %v1102_v16 = vshrl.u32 %v3701_v26, 16  ;;  %1878 = vst.msk [vmem:[#allocation2 + $0x160] sm:$0xff] %vm287_vm2, %v1845_v13  ;;  %v1847_v10 = vsel %vm680_vm1, %v1844_v17, %v1846_v31  ;;  %v1850_v29 = vrot.slane %v3714_v15, 1  ;;  %v1836_v8 = vrot.slane %v3715_v60, 1 }
  0xa2   : > { %3538 = vmatprep.subr.bf16.mxu1 %v3697_v59  ;;  %3506 = vmatpush3.bf16.msra.mxu0 %v3697_v59  ;;  %1879 = vst.msk [vmem:[#allocation2 + $0x188] sm:$0xff] %vm287_vm2, %v1847_v10  ;;  %v1833_v49 = vsel %vm680_vm1, %v1830_v14, %v1832_v51  ;;  %v1835_v23 = vsel %vm680_vm1, %v1832_v51, %v1834_v62 }
  0xa3   : > { %v1676_v0 = vpop.permute.xlu1 %1675  ;;  %v1897_v4 = vld [vmem:[#allocation2 + $0x68] sm:$0xff]  ;;  %v845_v1 = vpop.permute.xlu0 %844  ;;  %v1900_v5 = vld [vmem:[#allocation2 + $0x80] sm:$0xff]  ;;  %v1104_v28 = vor.u32 %v1102_v16, %v1100_v19  ;;  %1872 = vst.msk [vmem:[#allocation2 + $0x70] sm:$0xff] %vm287_vm2, %v1833_v49  ;;  %1873 = vst.msk [vmem:[#allocation2 + $0x98] sm:$0xff] %vm287_vm2, %v1835_v23  ;;  %v1837_v56 = vsel %vm680_vm1, %v1834_v62, %v1836_v8 }
  0xa4   : > { %1714 = vst.msk [vmem:[#allocation2 + $0x90] sm:$0xff] %vm563_vm3, %v1676_v0  ;;  %2484 = vmatprep.mubr.bf16.mxu1 %v1897_v4  ;;  %2340 = vmatmul.mubr.bf16.gmra.mrb[8].mxu0 %v1894_v54  ;;  %882 = vst.msk [vmem:[#allocation2 + $0xa8] sm:$0xff] %vm563_vm3, %v845_v1  ;;  %v3713_v54 = vld [vmem:[%s3783_s30 + $0x68] sm:$0xff]   ;;  %v3716_v1 = vld [vmem:[%s3783_s30 + $0x40] sm:$0xff]  }
  0xa5   : > { %3542 = vmatpush3.bf16.msra.mxu1 %v3697_v59  ;;  %2347 = vmatprep.mubr.bf16.mxu0 %v1900_v5  ;;  %v1109_v38 = vsel %vm404_vm0, %v1104_v28, %v1108_v34  ;;  %v1848_v57 = vrot.slane %v3713_v54, 1  ;;  %v1838_v26 = vrot.slane %v3716_v1, 1  ;;  %1874 = vst.msk [vmem:[#allocation2 + $0xc0] sm:$0xff] %vm287_vm2, %v1837_v56 }
  0xa6   : > { %1137 = vst.msk [vmem:[#allocation2 + $0x218] sm:$0xff] %vm287_vm2, %v1109_v38 }
  0xa7   : > { %v1276_v41 = vpop.permute.xlu1 %1275  ;;  %v1896_v18 = vld [vmem:[#allocation2 + $0x60] sm:$0xff]  ;;  %v530_v35 = vpop.permute.xlu0 %529  ;;  %v1899_v2 = vld [vmem:[#allocation2 + $0x78] sm:$0xff]  ;;  %v1849_v61 = vsel %vm680_vm1, %v1846_v31, %v1848_v57  ;;  %v1851_v7 = vsel %vm680_vm1, %v1848_v57, %v1850_v29  ;;  %v1839_v11 = vsel %vm680_vm1, %v1836_v8, %v1838_v26 }
  0xa8   : > { %1314 = vst.msk [vmem:[#allocation2 + $0x88] sm:$0xff] %vm563_vm3, %v1276_v41  ;;  %2485 = vmatmul.mubr.bf16.gmra.mrb[8].mxu1 %v1896_v18  ;;  %568 = vst.msk [vmem:[#allocation2 + $0xa0] sm:$0xff] %vm563_vm3, %v530_v35  ;;  %v3717_v41 = vld [vmem:[%s3783_s30 + $0x78] sm:$0xff]  }
  0xa9   : > { %1880 = vst.msk [vmem:[#allocation2 + $0x1b0] sm:$0xff] %vm287_vm2, %v1849_v61  ;;  %1881 = vst.msk [vmem:[#allocation2 + $0x1d8] sm:$0xff] %vm287_vm2, %v1851_v7  ;;  %v1852_v35 = vrot.slane %v3717_v41, 1 }
  0xaa   : > { %1875 = vst.msk [vmem:[#allocation2 + $0xe8] sm:$0xff] %vm287_vm2, %v1839_v11 }
  0xab   : > { %v1678_v22 = vpop.permute.xlu1 %1677  ;;  %v1902_v24 = vld [vmem:[#allocation2 + $0x90] sm:$0xff]  ;;  %v847_v32 = vpop.permute.xlu0 %846  ;;  %v1905_v33 = vld [vmem:[#allocation2 + $0xa8] sm:$0xff]  ;;  %v1853_v19 = vsel %vm680_vm1, %v1850_v29, %v1852_v35  ;;  %v1855_v25 = vsel %vm680_vm1, %v1852_v35, %v1854_v63  ;;  %v1888_v63 = vld [vmem:[#allocation2 + $0x20] sm:$0xff] }
  0xac   : > { %1715 = vst.msk [vmem:[#allocation2 + $0xb8] sm:$0xff] %vm563_vm3, %v1678_v22  ;;  %2492 = vmatprep.mubr.bf16.mxu1 %v1902_v24  ;;  %2348 = vmatmul.mubr.bf16.gmra.mrb[12].mxu0 %v1899_v2  ;;  %883 = vst.msk [vmem:[#allocation2 + $0xd0] sm:$0xff] %vm563_vm3, %v847_v32  ;;  %v3719_v2 = vld [vmem:[%s3783_s30 + $0x48] sm:$0xff]  }
  0xad   : > { %2355 = vmatprep.mubr.bf16.mxu0 %v1905_v33  ;;  %v1840_v20 = vrot.slane %v3719_v2, 1  ;;  %1882 = vst.msk [vmem:[#allocation2 + $0x200] sm:$0xff] %vm287_vm2, %v1853_v19  ;;  %1883 = vst.msk [vmem:[#allocation2 + $0x228] sm:$0xff] %vm287_vm2, %v1855_v25  ;;  %v1898_v25 = vld [vmem:[#allocation2 + $0x70] sm:$0xff] }
  0xaf   : > { %v1278_v21 = vpop.permute.xlu1 %1277  ;;  %v1901_v47 = vld [vmem:[#allocation2 + $0x88] sm:$0xff]  ;;  %v532_v42 = vpop.permute.xlu0 %531  ;;  %v1904_v43 = vld [vmem:[#allocation2 + $0xa0] sm:$0xff]  ;;  %v1841_v27 = vsel %vm680_vm1, %v1838_v26, %v1840_v20  ;;  %v1843_v28 = vsel %vm680_vm1, %v1840_v20, %v1842_v39 }
  0xb0   : > { %1315 = vst.msk [vmem:[#allocation2 + $0xb0] sm:$0xff] %vm563_vm3, %v1278_v21  ;;  %2493 = vmatmul.mubr.bf16.gmra.mrb[12].mxu1 %v1901_v47  ;;  %569 = vst.msk [vmem:[#allocation2 + $0xc8] sm:$0xff] %vm563_vm3, %v532_v42 }
  0xb1   : > { %1876 = vst.msk [vmem:[#allocation2 + $0x110] sm:$0xff] %vm287_vm2, %v1841_v27  ;;  %1877 = vst.msk [vmem:[#allocation2 + $0x138] sm:$0xff] %vm287_vm2, %v1843_v28  ;;  %v1933_v27 = vld [vmem:[#allocation2 + $0x188] sm:$0xff]  ;;  %v1938_v28 = vld [vmem:[#allocation2 + $0x1b0] sm:$0xff] }
  0xb3   : > { %v1680_v45 = vpop.permute.xlu1 %1679  ;;  %v1907_v46 = vld [vmem:[#allocation2 + $0xb8] sm:$0xff]  ;;  %v849_v55 = vpop.permute.xlu0 %848  ;;  %v1910_v59 = vld [vmem:[#allocation2 + $0xd0] sm:$0xff] }
  0xb4   : > { %1716 = vst.msk [vmem:[#allocation2 + $0xe0] sm:$0xff] %vm563_vm3, %v1680_v45  ;;  %2500 = vmatprep.mubr.bf16.mxu1 %v1907_v46  ;;  %2356 = vmatmul.mubr.bf16.gmra.mrb[16].mxu0 %v1904_v43  ;;  %884 = vst.msk [vmem:[#allocation2 + $0xf8] sm:$0xff] %vm563_vm3, %v849_v55 }
  0xb5   : > { %2363 = vmatprep.mubr.bf16.mxu0 %v1910_v59 }
  0xb7   : > { %v1280_v0 = vpop.permute.xlu1 %1279  ;;  %v1906_v4 = vld [vmem:[#allocation2 + $0xb0] sm:$0xff]  ;;  %v534_v5 = vpop.permute.xlu0 %533  ;;  %v1909_v53 = vld [vmem:[#allocation2 + $0xc8] sm:$0xff] }
  0xb8   : > { %1316 = vst.msk [vmem:[#allocation2 + $0xd8] sm:$0xff] %vm563_vm3, %v1280_v0  ;;  %2501 = vmatmul.mubr.bf16.gmra.mrb[16].mxu1 %v1906_v4  ;;  %570 = vst.msk [vmem:[#allocation2 + $0xf0] sm:$0xff] %vm563_vm3, %v534_v5 }
  0xbb   : > { %v1682_v18 = vpop.permute.xlu1 %1681  ;;  %v1912_v58 = vld [vmem:[#allocation2 + $0xe0] sm:$0xff]  ;;  %v851_v6 = vpop.permute.xlu0 %850  ;;  %v1915_v16 = vld [vmem:[#allocation2 + $0xf8] sm:$0xff] }
  0xbc   : > { %1717 = vst.msk [vmem:[#allocation2 + $0x108] sm:$0xff] %vm563_vm3, %v1682_v18  ;;  %2508 = vmatprep.mubr.bf16.mxu1 %v1912_v58  ;;  %2364 = vmatmul.mubr.bf16.gmra.mrb[20].mxu0 %v1909_v53  ;;  %885 = vst.msk [vmem:[#allocation2 + $0x120] sm:$0xff] %vm563_vm3, %v851_v6 }
  0xbd   : > { %2371 = vmatprep.mubr.bf16.mxu0 %v1915_v16 }
  0xbf   : > { %v1282_v22 = vpop.permute.xlu1 %1281  ;;  %v1911_v24 = vld [vmem:[#allocation2 + $0xd8] sm:$0xff]  ;;  %v536_v30 = vpop.permute.xlu0 %535  ;;  %v1914_v14 = vld [vmem:[#allocation2 + $0xf0] sm:$0xff] }
  0xc0   : > { %1317 = vst.msk [vmem:[#allocation2 + $0x100] sm:$0xff] %vm563_vm3, %v1282_v22  ;;  %2509 = vmatmul.mubr.bf16.gmra.mrb[20].mxu1 %v1911_v24  ;;  %571 = vst.msk [vmem:[#allocation2 + $0x118] sm:$0xff] %vm563_vm3, %v536_v30  ;;  %v1928_v22 = vld [vmem:[#allocation2 + $0x160] sm:$0xff]  ;;  %v1893_v24 = vld [vmem:[#allocation2 + $0x48] sm:$0xff] }
  0xc1   : > { %v1903_v30 = vld [vmem:[#allocation2 + $0x98] sm:$0xff] }
  0xc3   : > { %v1684_v48 = vpop.permute.xlu1 %1683  ;;  %v1917_v32 = vld [vmem:[#allocation2 + $0x108] sm:$0xff]  ;;  %v853_v33 = vpop.permute.xlu0 %852  ;;  %v1920_v34 = vld [vmem:[#allocation2 + $0x120] sm:$0xff] }
  0xc4   : > { %1718 = vst.msk [vmem:[#allocation2 + $0x130] sm:$0xff] %vm563_vm3, %v1684_v48  ;;  %2516 = vmatprep.mubr.bf16.mxu1 %v1917_v32  ;;  %2372 = vmatmul.mubr.bf16.gmra.mrb[24].mxu0 %v1914_v14  ;;  %886 = vst.msk [vmem:[#allocation2 + $0x148] sm:$0xff] %vm563_vm3, %v853_v33  ;;  %v1908_v48 = vld [vmem:[#allocation2 + $0xc0] sm:$0xff]  ;;  %v1943_v14 = vld [vmem:[#allocation2 + $0x1d8] sm:$0xff] }
  0xc5   : > { %2379 = vmatprep.mubr.bf16.mxu0 %v1920_v34  ;;  %v1948_v32 = vld [vmem:[#allocation2 + $0x200] sm:$0xff]  ;;  %v1913_v33 = vld [vmem:[#allocation2 + $0xe8] sm:$0xff]  ;;  %v1918_v34 = vld [vmem:[#allocation2 + $0x110] sm:$0xff] }
  0xc7   : > { %v1284_v36 = vpop.permute.xlu1 %1283  ;;  %v1916_v37 = vld [vmem:[#allocation2 + $0x100] sm:$0xff]  ;;  %v538_v12 = vpop.permute.xlu0 %537  ;;  %v1919_v47 = vld [vmem:[#allocation2 + $0x118] sm:$0xff] }
  0xc8   : > { %1318 = vst.msk [vmem:[#allocation2 + $0x128] sm:$0xff] %vm563_vm3, %v1284_v36  ;;  %2517 = vmatmul.mubr.bf16.gmra.mrb[24].mxu1 %v1916_v37  ;;  %572 = vst.msk [vmem:[#allocation2 + $0x140] sm:$0xff] %vm563_vm3, %v538_v12  ;;  %v1953_v36 = vld [vmem:[#allocation2 + $0x228] sm:$0xff]  ;;  %v1923_v37 = vld [vmem:[#allocation2 + $0x138] sm:$0xff] }
  0xcb   : > { %v1686_v21 = vpop.permute.xlu1 %1685  ;;  %v1922_v38 = vld [vmem:[#allocation2 + $0x130] sm:$0xff]  ;;  %v855_v3 = vpop.permute.xlu0 %854  ;;  %v1925_v52 = vld [vmem:[#allocation2 + $0x148] sm:$0xff] }
  0xcc   : > { %1719 = vst.msk [vmem:[#allocation2 + $0x158] sm:$0xff] %vm563_vm3, %v1686_v21  ;;  %2524 = vmatprep.mubr.bf16.mxu1 %v1922_v38  ;;  %2380 = vmatmul.mubr.bf16.gmra.mrb[28].mxu0 %v1919_v47  ;;  %887 = vst.msk [vmem:[#allocation2 + $0x170] sm:$0xff] %vm563_vm3, %v855_v3  ;;  %v4462_v21 = vld [vmem:[%s4602_s2] ss:$0 sm:$0xff] }
  0xcd   : > { %2387 = vmatprep.mubr.bf16.mxu0 %v1925_v52 }
  0xcf   : > { %v1286_v39 = vpop.permute.xlu1 %1285  ;;  %v1921_v40 = vld [vmem:[#allocation2 + $0x128] sm:$0xff]  ;;  %v540_v42 = vpop.permute.xlu0 %539  ;;  %v1924_v17 = vld [vmem:[#allocation2 + $0x140] sm:$0xff] }
  0xd0   : > { %1319 = vst.msk [vmem:[#allocation2 + $0x150] sm:$0xff] %vm563_vm3, %v1286_v39  ;;  %2525 = vmatmul.mubr.bf16.gmra.mrb[28].mxu1 %v1921_v40  ;;  %573 = vst.msk [vmem:[#allocation2 + $0x168] sm:$0xff] %vm563_vm3, %v540_v42 }
  0xd3   : > { %v1688_v43 = vpop.permute.xlu1 %1687  ;;  %v1927_v31 = vld [vmem:[#allocation2 + $0x158] sm:$0xff]  ;;  %v857_v44 = vpop.permute.xlu0 %856  ;;  %v1930_v45 = vld [vmem:[#allocation2 + $0x170] sm:$0xff] }
  0xd4   : > { %1720 = vst.msk [vmem:[#allocation2 + $0x180] sm:$0xff] %vm563_vm3, %v1688_v43  ;;  %2532 = vmatprep.mubr.bf16.mxu1 %v1927_v31  ;;  %2388 = vmatmul.mubr.bf16.gmra.mrb[32].mxu0 %v1924_v17  ;;  %888 = vst.msk [vmem:[#allocation2 + $0x198] sm:$0xff] %vm563_vm3, %v857_v44 }
  0xd5   : > { %2395 = vmatprep.mubr.bf16.mxu0 %v1930_v45 }
  0xd7   : > { %v1288_v46 = vpop.permute.xlu1 %1287  ;;  %v1926_v13 = vld [vmem:[#allocation2 + $0x150] sm:$0xff]  ;;  %v542_v50 = vpop.permute.xlu0 %541  ;;  %v1929_v51 = vld [vmem:[#allocation2 + $0x168] sm:$0xff] }
  0xd8   : > { %1320 = vst.msk [vmem:[#allocation2 + $0x178] sm:$0xff] %vm563_vm3, %v1288_v46  ;;  %2533 = vmatmul.mubr.bf16.gmra.mrb[32].mxu1 %v1926_v13  ;;  %574 = vst.msk [vmem:[#allocation2 + $0x190] sm:$0xff] %vm563_vm3, %v542_v50 }
  0xdb   : > { %v1690_v10 = vpop.permute.xlu1 %1689  ;;  %v1932_v54 = vld [vmem:[#allocation2 + $0x180] sm:$0xff]  ;;  %v859_v55 = vpop.permute.xlu0 %858  ;;  %v1935_v59 = vld [vmem:[#allocation2 + $0x198] sm:$0xff] }
  0xdc   : > { %1721 = vst.msk [vmem:[#allocation2 + $0x1a8] sm:$0xff] %vm563_vm3, %v1690_v10  ;;  %2540 = vmatprep.mubr.bf16.mxu1 %v1932_v54  ;;  %2396 = vmatmul.mubr.bf16.gmra.mrb[36].mxu0 %v1929_v51  ;;  %889 = vst.msk [vmem:[#allocation2 + $0x1c0] sm:$0xff] %vm563_vm3, %v859_v55 }
  0xdd   : > { %2403 = vmatprep.mubr.bf16.mxu0 %v1935_v59 }
  0xdf   : > { %v1290_v62 = vpop.permute.xlu1 %1289  ;;  %v1931_v15 = vld [vmem:[#allocation2 + $0x178] sm:$0xff]  ;;  %v544_v49 = vpop.permute.xlu0 %543  ;;  %v1934_v0 = vld [vmem:[#allocation2 + $0x190] sm:$0xff] }
  0xe0   : > { %1321 = vst.msk [vmem:[#allocation2 + $0x1a0] sm:$0xff] %vm563_vm3, %v1290_v62  ;;  %2541 = vmatmul.mubr.bf16.gmra.mrb[36].mxu1 %v1931_v15  ;;  %575 = vst.msk [vmem:[#allocation2 + $0x1b8] sm:$0xff] %vm563_vm3, %v544_v49 }
  0xe3   : > { %v1692_v57 = vpop.permute.xlu1 %1691  ;;  %v1937_v4 = vld [vmem:[#allocation2 + $0x1a8] sm:$0xff]  ;;  %v861_v23 = vpop.permute.xlu0 %860  ;;  %v1940_v29 = vld [vmem:[#allocation2 + $0x1c0] sm:$0xff] }
  0xe4   : > { %1722 = vst.msk [vmem:[#allocation2 + $0x1d0] sm:$0xff] %vm563_vm3, %v1692_v57  ;;  %2548 = vmatprep.mubr.bf16.mxu1 %v1937_v4  ;;  %2404 = vmatmul.mubr.bf16.gmra.mrb[40].mxu0 %v1934_v0  ;;  %890 = vst.msk [vmem:[#allocation2 + $0x1e8] sm:$0xff] %vm563_vm3, %v861_v23 }
  0xe5   : > { %2411 = vmatprep.mubr.bf16.mxu0 %v1940_v29 }
  0xe7   : > { %v1292_v60 = vpop.permute.xlu1 %1291  ;;  %v1936_v61 = vld [vmem:[#allocation2 + $0x1a0] sm:$0xff]  ;;  %v546_v1 = vpop.permute.xlu0 %545  ;;  %v1939_v7 = vld [vmem:[#allocation2 + $0x1b8] sm:$0xff] }
  0xe8   : > { %1322 = vst.msk [vmem:[#allocation2 + $0x1c8] sm:$0xff] %vm563_vm3, %v1292_v60  ;;  %2549 = vmatmul.mubr.bf16.gmra.mrb[40].mxu1 %v1936_v61  ;;  %576 = vst.msk [vmem:[#allocation2 + $0x1e0] sm:$0xff] %vm563_vm3, %v546_v1 }
  0xeb   : > { %v1694_v5 = vpop.permute.xlu1 %1693  ;;  %v1942_v8 = vld [vmem:[#allocation2 + $0x1d0] sm:$0xff]  ;;  %v863_v26 = vpop.permute.xlu0 %862  ;;  %v1945_v41 = vld [vmem:[#allocation2 + $0x1e8] sm:$0xff] }
  0xec   : > { %1723 = vst.msk [vmem:[#allocation2 + $0x1f8] sm:$0xff] %vm563_vm3, %v1694_v5  ;;  %2556 = vmatprep.mubr.bf16.mxu1 %v1942_v8  ;;  %2412 = vmatmul.mubr.bf16.gmra.mrb[44].mxu0 %v1939_v7  ;;  %891 = vst.msk [vmem:[#allocation2 + $0x210] sm:$0xff] %vm563_vm3, %v863_v26 }
  0xed   : > { %2419 = vmatprep.mubr.bf16.mxu0 %v1945_v41 }
  0xef   : > { %v1294_v18 = vpop.permute.xlu1 %1293  ;;  %v1941_v53 = vld [vmem:[#allocation2 + $0x1c8] sm:$0xff]  ;;  %v548_v58 = vpop.permute.xlu0 %547  ;;  %v1944_v56 = vld [vmem:[#allocation2 + $0x1e0] sm:$0xff] }
  0xf0   : > { %1323 = vst.msk [vmem:[#allocation2 + $0x1f0] sm:$0xff] %vm563_vm3, %v1294_v18  ;;  %2557 = vmatmul.mubr.bf16.gmra.mrb[44].mxu1 %v1941_v53  ;;  %577 = vst.msk [vmem:[#allocation2 + $0x208] sm:$0xff] %vm563_vm3, %v548_v58 }
  0xf3   : > { %v1947_v9 = vld [vmem:[#allocation2 + $0x1f8] sm:$0xff]  ;;  %v1296_v11 = vpop.permute.xlu1 %1295  ;;  %v1696_v35 = vpop.permute.xlu0 %1695  ;;  %v1950_v2 = vld [vmem:[#allocation2 + $0x210] sm:$0xff] }
  0xf4   : > { %2564 = vmatprep.mubr.bf16.mxu1 %v1947_v9  ;;  %1324 = vst.msk [vmem:[#allocation2 + $0x218] sm:$0xff] %vm563_vm3, %v1296_v11  ;;  %2420 = vmatmul.mubr.bf16.gmra.mrb[48].mxu0 %v1944_v56  ;;  %1724 = vst.msk [vmem:[#allocation2 + $0x220] sm:$0xff] %vm563_vm3, %v1696_v35 }
  0xf5   : > { %2427 = vmatprep.mubr.bf16.mxu0 %v1950_v2 }
  0xf7   : > { %v1946_v6 = vld [vmem:[#allocation2 + $0x1f0] sm:$0xff]  ;;  %v1949_v16 = vld [vmem:[#allocation2 + $0x208] sm:$0xff] }
  0xf8   : > { %2565 = vmatmul.mubr.bf16.gmra.mrb[48].mxu1 %v1946_v6 }
  0xfb   : > { %v1952_v19 = vld [vmem:[#allocation2 + $0x220] sm:$0xff]  ;;  %v1951_v20 = vld [vmem:[#allocation2 + $0x218] sm:$0xff] }
  0xfc   : > { %2428 = vmatmul.mubr.bf16.gmra.mrb[52].mxu0 %v1949_v16  ;;  %2572 = vmatprep.mubr.bf16.mxu1 %v1952_v19 }
  0xfd   : > { %3507 = vmatprep.mubr.msk.bf16.mxu0 %vm287_vm2, %v1888_v63 }
 0x100   : > { %2573 = vmatmul.mubr.bf16.gmra.mrb[52].mxu1 %v1951_v20 }
 0x101   : > { %3523 = vmatprep.mubr.msk.bf16.mxu1 %vm287_vm2, %v1928_v22 }
 0x104   : > { %3508 = vmatmul.mubr.msk.bf16.vlgmr.msra.gmra.mrb[56].mxu0 %vm287_vm2, %v1893_v24 }
 0x105   : > { %3511 = vmatprep.mubr.msk.bf16.mxu0 %vm287_vm2, %v1898_v25 }
 0x108   : > { %3524 = vmatmul.mubr.msk.bf16.vlgmr.msra.gmra.mrb[56].mxu1 %vm287_vm2, %v1933_v27 }
 0x109   : > { %3527 = vmatprep.mubr.msk.bf16.mxu1 %vm287_vm2, %v1938_v28 }
 0x10c   : > { %3512 = vmatmul.mubr.msk.bf16.gmra.mrb[60].mxu0 %vm287_vm2, %v1903_v30 }
 0x10d   : > { %3515 = vmatprep.mubr.msk.bf16.mxu0 %vm287_vm2, %v1908_v48 }
 0x110   : > { %3528 = vmatmul.mubr.msk.bf16.gmra.mrb[60].mxu1 %vm287_vm2, %v1943_v14 }
 0x111   : > { %3531 = vmatprep.mubr.msk.bf16.mxu1 %vm287_vm2, %v1948_v32 }
 0x114   : > { %3516 = vmatmul.mubr.msk.bf16.gmra.mrb[64].mxu0 %vm287_vm2, %v1913_v33 }
 0x115   : > { %3519 = vmatprep.mubr.msk.bf16.mxu0 %vm287_vm2, %v1918_v34 }
 0x118   : > { %3532 = vmatmul.mubr.msk.bf16.gmra.mrb[64].mxu1 %vm287_vm2, %v1953_v36 }
 0x11c   : > { %3520 = vmatmul.mubr.msk.bf16.gmra.mrb[68].mxu0 %vm287_vm2, %v1923_v37 }
 0x167   : > { %v3297_v12 = vpop.f32.mrb[0].mxu0 }
 0x168   : > { %v3298_v47 = vpop.f32.mrb[1].mxu0 }
 0x169   : > { %v3299_v38 = vadd.f32 %v3298_v47, %v3297_v12  ;;  %v3300_v3 = vpop.f32.mrb[2].mxu0 }
 0x16a   : > { %v3301_v39 = vpop.f32.mrb[3].mxu0 }
 0x16b   : > { %v3397_v52 = vpop.f32.mrb[0].mxu1  ;;  %v2326_v42 = vadd.f32 %v3299_v38, %v4462_v21  ;;  %v3302_v43 = vadd.f32 %v3301_v39, %v3300_v3 }
 0x16c   : > { %v3398_v40 = vpop.f32.mrb[1].mxu1 }
 0x16d   : > { %v3399_v17 = vadd.f32 %v3398_v40, %v3397_v52  ;;  %v3400_v31 = vpop.f32.mrb[2].mxu1  ;;  %v2329_v45 = vadd.f32 %v3302_v43, %v4462_v21 }
 0x16e   : > { %v3401_v44 = vpop.f32.mrb[3].mxu1 }
 0x16f   : > { %v3402_v46 = vadd.f32 %v3401_v44, %v3400_v31  ;;  %v4466_v13 = vadd.f32 %v3399_v17, %v2326_v42  ;;  %v3303_v50 = vpop.f32.mrb[4].mxu0 }
 0x170   : > { %v3304_v51 = vpop.f32.mrb[5].mxu0 }
 0x171   : > { %v4468_v10 = vadd.f32 %v3402_v46, %v2329_v45  ;;  %v3305_v54 = vadd.f32 %v3304_v51, %v3303_v50  ;;  %v3306_v55 = vpop.f32.mrb[6].mxu0 }
 0x172   : > { %v3307_v62 = vpop.f32.mrb[7].mxu0 }
 0x173   : > { %v3403_v59 = vpop.f32.mrb[4].mxu1  ;;  %v2334_v49 = vadd.f32 %v3305_v54, %v4462_v21  ;;  %v3308_v57 = vadd.f32 %v3307_v62, %v3306_v55 }
 0x174   : > { %v3404_v15 = vpop.f32.mrb[5].mxu1 }
 0x175   : > { %v3405_v0 = vadd.f32 %v3404_v15, %v3403_v59  ;;  %v3406_v4 = vpop.f32.mrb[6].mxu1  ;;  %v2337_v29 = vadd.f32 %v3308_v57, %v4462_v21 }
 0x176   : > { %v3407_v23 = vpop.f32.mrb[7].mxu1 }
 0x177   : > { %v3408_v60 = vadd.f32 %v3407_v23, %v3406_v4  ;;  %v4472_v61 = vadd.f32 %v3405_v0, %v2334_v49  ;;  %v3309_v1 = vpop.f32.mrb[8].mxu0 }
 0x178   : > { %v3310_v7 = vpop.f32.mrb[9].mxu0 }
 0x179   : > { %v4474_v5 = vadd.f32 %v3408_v60, %v2337_v29  ;;  %v3311_v8 = vadd.f32 %v3310_v7, %v3309_v1  ;;  %v3312_v26 = vpop.f32.mrb[10].mxu0 }
 0x17a   : > { %v3313_v18 = vpop.f32.mrb[11].mxu0 }
 0x17b   : > { %v3409_v41 = vpop.f32.mrb[8].mxu1  ;;  %v2342_v58 = vadd.f32 %v3311_v8, %v4462_v21  ;;  %v3314_v56 = vadd.f32 %v3313_v18, %v3312_v26 }
 0x17c   : > { %v3410_v53 = vpop.f32.mrb[9].mxu1 }
 0x17d   : > { %v3411_v9 = vadd.f32 %v3410_v53, %v3409_v41  ;;  %v3412_v11 = vpop.f32.mrb[10].mxu1  ;;  %v2345_v2 = vadd.f32 %v3314_v56, %v4462_v21 }
 0x17e   : > { %v3413_v35 = vpop.f32.mrb[11].mxu1 }
 0x17f   : > { %v3414_v6 = vadd.f32 %v3413_v35, %v3412_v11  ;;  %v4478_v16 = vadd.f32 %v3411_v9, %v2342_v58  ;;  %v3315_v63 = vpop.f32.mrb[12].mxu0 }
 0x180   : > { %v3316_v20 = vpop.f32.mrb[13].mxu0 }
 0x181   : > { %v4480_v19 = vadd.f32 %v3414_v6, %v2345_v2  ;;  %v3317_v22 = vadd.f32 %v3316_v20, %v3315_v63  ;;  %v3318_v24 = vpop.f32.mrb[14].mxu0 }
 0x182   : > { %v3319_v27 = vpop.f32.mrb[15].mxu0 }
 0x183   : > { %v3415_v25 = vpop.f32.mrb[12].mxu1  ;;  %v2350_v30 = vadd.f32 %v3317_v22, %v4462_v21  ;;  %v3320_v48 = vadd.f32 %v3319_v27, %v3318_v24 }
 0x184   : > { %v3416_v28 = vpop.f32.mrb[13].mxu1 }
 0x185   : > { %v3417_v14 = vadd.f32 %v3416_v28, %v3415_v25  ;;  %v3418_v32 = vpop.f32.mrb[14].mxu1  ;;  %v2353_v34 = vadd.f32 %v3320_v48, %v4462_v21 }
 0x186   : > { %v3419_v33 = vpop.f32.mrb[15].mxu1 }
 0x187   : > { %v3420_v36 = vadd.f32 %v3419_v33, %v3418_v32  ;;  %v4484_v37 = vadd.f32 %v3417_v14, %v2350_v30  ;;  %v3321_v12 = vpop.f32.mrb[16].mxu0 }
 0x188   : > { %v3322_v38 = vpop.f32.mrb[17].mxu0 }
 0x189   : > { %v4486_v47 = vadd.f32 %v3420_v36, %v2353_v34  ;;  %v3323_v3 = vadd.f32 %v3322_v38, %v3321_v12  ;;  %v3324_v52 = vpop.f32.mrb[18].mxu0 }
 0x18a   : > { %v3325_v40 = vpop.f32.mrb[19].mxu0 }
 0x18b   : > { %v3421_v39 = vpop.f32.mrb[16].mxu1  ;;  %v2358_v43 = vadd.f32 %v3323_v3, %v4462_v21  ;;  %v3326_v17 = vadd.f32 %v3325_v40, %v3324_v52 }
 0x18c   : > { %v3422_v42 = vpop.f32.mrb[17].mxu1 }
 0x18d   : > { %v3423_v31 = vadd.f32 %v3422_v42, %v3421_v39  ;;  %v3424_v44 = vpop.f32.mrb[18].mxu1  ;;  %v2361_v46 = vadd.f32 %v3326_v17, %v4462_v21 }
 0x18e   : > { %v3425_v45 = vpop.f32.mrb[19].mxu1 }
 0x18f   : > { %v3426_v50 = vadd.f32 %v3425_v45, %v3424_v44  ;;  %v4490_v51 = vadd.f32 %v3423_v31, %v2358_v43  ;;  %v3327_v54 = vpop.f32.mrb[20].mxu0 }
 0x190   : > { %v3328_v59 = vpop.f32.mrb[21].mxu0 }
 0x191   : > { %v4492_v55 = vadd.f32 %v3426_v50, %v2361_v46  ;;  %v3329_v62 = vadd.f32 %v3328_v59, %v3327_v54  ;;  %v3330_v15 = vpop.f32.mrb[22].mxu0 }
 0x192   : > { %v3331_v57 = vpop.f32.mrb[23].mxu0 }
 0x193   : > { %v3427_v49 = vpop.f32.mrb[20].mxu1  ;;  %v2366_v4 = vadd.f32 %v3329_v62, %v4462_v21  ;;  %v3332_v23 = vadd.f32 %v3331_v57, %v3330_v15 }
 0x194   : > { %v3428_v0 = vpop.f32.mrb[21].mxu1 }
 0x195   : > { %v3429_v29 = vadd.f32 %v3428_v0, %v3427_v49  ;;  %v3430_v60 = vpop.f32.mrb[22].mxu1  ;;  %v2369_v7 = vadd.f32 %v3332_v23, %v4462_v21 }
 0x196   : > { %v3431_v1 = vpop.f32.mrb[23].mxu1 }
 0x197   : > { %v3432_v8 = vadd.f32 %v3431_v1, %v3430_v60  ;;  %v4496_v26 = vadd.f32 %v3429_v29, %v2366_v4  ;;  %v3333_v41 = vpop.f32.mrb[24].mxu0 }
 0x198   : > { %v3334_v53 = vpop.f32.mrb[25].mxu0 }
 0x199   : > { %v4498_v18 = vadd.f32 %v3432_v8, %v2369_v7  ;;  %v3335_v58 = vadd.f32 %v3334_v53, %v3333_v41  ;;  %v3336_v56 = vpop.f32.mrb[26].mxu0 }
 0x19a   : > { %v3337_v11 = vpop.f32.mrb[27].mxu0 }
 0x19b   : > { %v3433_v9 = vpop.f32.mrb[24].mxu1  ;;  %v2374_v2 = vadd.f32 %v3335_v58, %v4462_v21  ;;  %v3338_v6 = vadd.f32 %v3337_v11, %v3336_v56 }
 0x19c   : > { %v3434_v35 = vpop.f32.mrb[25].mxu1 }
 0x19d   : > { %v3435_v63 = vadd.f32 %v3434_v35, %v3433_v9  ;;  %v3436_v20 = vpop.f32.mrb[26].mxu1  ;;  %v2377_v24 = vadd.f32 %v3338_v6, %v4462_v21 }
 0x19e   : > { %v3437_v22 = vpop.f32.mrb[27].mxu1 }
 0x19f   : > { %v3438_v25 = vadd.f32 %v3437_v22, %v3436_v20  ;;  %v4502_v27 = vadd.f32 %v3435_v63, %v2374_v2  ;;  %v3339_v28 = vpop.f32.mrb[28].mxu0 }
 0x1a0   : > { %v3340_v48 = vpop.f32.mrb[29].mxu0 }
 0x1a1   : > { %v4504_v30 = vadd.f32 %v3438_v25, %v2377_v24  ;;  %v3341_v14 = vadd.f32 %v3340_v48, %v3339_v28  ;;  %v3342_v32 = vpop.f32.mrb[30].mxu0 }
 0x1a2   : > { %v3343_v34 = vpop.f32.mrb[31].mxu0 }
 0x1a3   : > { %v3439_v33 = vpop.f32.mrb[28].mxu1  ;;  %v2382_v12 = vadd.f32 %v3341_v14, %v4462_v21  ;;  %v3344_v38 = vadd.f32 %v3343_v34, %v3342_v32 }
 0x1a4   : > { %v3440_v36 = vpop.f32.mrb[29].mxu1 }
 0x1a5   : > { %v3441_v3 = vadd.f32 %v3440_v36, %v3439_v33  ;;  %v3442_v52 = vpop.f32.mrb[30].mxu1  ;;  %v2385_v40 = vadd.f32 %v3344_v38, %v4462_v21 }
 0x1a6   : > { %v3443_v39 = vpop.f32.mrb[31].mxu1 }
 0x1a7   : > { %v3444_v42 = vadd.f32 %v3443_v39, %v3442_v52  ;;  %v4508_v43 = vadd.f32 %v3441_v3, %v2382_v12  ;;  %v3345_v17 = vpop.f32.mrb[32].mxu0 }
 0x1a8   : > { %v3346_v44 = vpop.f32.mrb[33].mxu0 }
 0x1a9   : > { %v4510_v31 = vadd.f32 %v3444_v42, %v2385_v40  ;;  %v3347_v45 = vadd.f32 %v3346_v44, %v3345_v17  ;;  %v3348_v46 = vpop.f32.mrb[34].mxu0 }
 0x1aa   : > { %v3349_v54 = vpop.f32.mrb[35].mxu0 }
 0x1ab   : > { %v3445_v50 = vpop.f32.mrb[32].mxu1  ;;  %v2390_v62 = vadd.f32 %v3347_v45, %v4462_v21  ;;  %v3350_v15 = vadd.f32 %v3349_v54, %v3348_v46 }
 0x1ac   : > { %v3446_v59 = vpop.f32.mrb[33].mxu1 }
 0x1ad   : > { %v3447_v49 = vadd.f32 %v3446_v59, %v3445_v50  ;;  %v3448_v57 = vpop.f32.mrb[34].mxu1  ;;  %v2393_v4 = vadd.f32 %v3350_v15, %v4462_v21 }
 0x1ae   : > { %v3449_v0 = vpop.f32.mrb[35].mxu1 }
 0x1af   : > { %v3450_v23 = vadd.f32 %v3449_v0, %v3448_v57  ;;  %v4514_v29 = vadd.f32 %v3447_v49, %v2390_v62  ;;  %v3351_v60 = vpop.f32.mrb[36].mxu0 }
 0x1b0   : > { %v3352_v7 = vpop.f32.mrb[37].mxu0 }
 0x1b1   : > { %v4516_v1 = vadd.f32 %v3450_v23, %v2393_v4  ;;  %v3353_v8 = vadd.f32 %v3352_v7, %v3351_v60  ;;  %v3354_v41 = vpop.f32.mrb[38].mxu0 }
 0x1b2   : > { %v3355_v58 = vpop.f32.mrb[39].mxu0 }
 0x1b3   : > { %v3451_v53 = vpop.f32.mrb[36].mxu1  ;;  %v2398_v9 = vadd.f32 %v3353_v8, %v4462_v21  ;;  %v3356_v11 = vadd.f32 %v3355_v58, %v3354_v41 }
 0x1b4   : > { %v3452_v56 = vpop.f32.mrb[37].mxu1 }
 0x1b5   : > { %v3453_v35 = vadd.f32 %v3452_v56, %v3451_v53  ;;  %v3454_v2 = vpop.f32.mrb[38].mxu1  ;;  %v2401_v63 = vadd.f32 %v3356_v11, %v4462_v21 }
 0x1b6   : > { %v3455_v6 = vpop.f32.mrb[39].mxu1 }
 0x1b7   : > { %v3456_v20 = vadd.f32 %v3455_v6, %v3454_v2  ;;  %v4520_v22 = vadd.f32 %v3453_v35, %v2398_v9  ;;  %v3357_v24 = vpop.f32.mrb[40].mxu0 }
 0x1b8   : > { %v3358_v28 = vpop.f32.mrb[41].mxu0 }
 0x1b9   : > { %v4522_v25 = vadd.f32 %v3456_v20, %v2401_v63  ;;  %v3359_v48 = vadd.f32 %v3358_v28, %v3357_v24  ;;  %v3360_v14 = vpop.f32.mrb[42].mxu0 }
 0x1ba   : > { %v3361_v33 = vpop.f32.mrb[43].mxu0 }
 0x1bb   : > { %v3457_v32 = vpop.f32.mrb[40].mxu1  ;;  %v2406_v36 = vadd.f32 %v3359_v48, %v4462_v21  ;;  %v3362_v12 = vadd.f32 %v3361_v33, %v3360_v14 }
 0x1bc   : > { %v3458_v34 = vpop.f32.mrb[41].mxu1 }
 0x1bd   : > { %v3459_v38 = vadd.f32 %v3458_v34, %v3457_v32  ;;  %v3460_v3 = vpop.f32.mrb[42].mxu1  ;;  %v2409_v39 = vadd.f32 %v3362_v12, %v4462_v21 }
 0x1be   : > { %v3461_v52 = vpop.f32.mrb[43].mxu1 }
 0x1bf   : > { %v3462_v40 = vadd.f32 %v3461_v52, %v3460_v3  ;;  %v4526_v42 = vadd.f32 %v3459_v38, %v2406_v36  ;;  %v3363_v17 = vpop.f32.mrb[44].mxu0 }
 0x1c0   : > { %v3364_v45 = vpop.f32.mrb[45].mxu0 }
 0x1c1   : > { %v4528_v44 = vadd.f32 %v3462_v40, %v2409_v39  ;;  %v3365_v46 = vadd.f32 %v3364_v45, %v3363_v17  ;;  %v3366_v50 = vpop.f32.mrb[46].mxu0 }
 0x1c2   : > { %v3367_v59 = vpop.f32.mrb[47].mxu0 }
 0x1c3   : > { %v3463_v54 = vpop.f32.mrb[44].mxu1  ;;  %v2414_v15 = vadd.f32 %v3365_v46, %v4462_v21  ;;  %v3368_v49 = vadd.f32 %v3367_v59, %v3366_v50 }
 0x1c4   : > { %v3464_v62 = vpop.f32.mrb[45].mxu1 }
 0x1c5   : > { %v3465_v57 = vadd.f32 %v3464_v62, %v3463_v54  ;;  %v3466_v0 = vpop.f32.mrb[46].mxu1  ;;  %v2417_v23 = vadd.f32 %v3368_v49, %v4462_v21 }
 0x1c6   : > { %v3467_v4 = vpop.f32.mrb[47].mxu1 }
 0x1c7   : > { %v3468_v60 = vadd.f32 %v3467_v4, %v3466_v0  ;;  %v4532_v7 = vadd.f32 %v3465_v57, %v2414_v15  ;;  %v3369_v8 = vpop.f32.mrb[48].mxu0 }
 0x1c8   : > { %v3370_v53 = vpop.f32.mrb[49].mxu0 }
 0x1c9   : > { %v4534_v41 = vadd.f32 %v3468_v60, %v2417_v23  ;;  %v3371_v58 = vadd.f32 %v3370_v53, %v3369_v8  ;;  %v3372_v56 = vpop.f32.mrb[50].mxu0 }
 0x1ca   : > { %v3373_v11 = vpop.f32.mrb[51].mxu0 }
 0x1cb   : > { %v3469_v9 = vpop.f32.mrb[48].mxu1  ;;  %v2422_v2 = vadd.f32 %v3371_v58, %v4462_v21  ;;  %v3374_v6 = vadd.f32 %v3373_v11, %v3372_v56 }
 0x1cc   : > { %v3470_v35 = vpop.f32.mrb[49].mxu1 }
 0x1cd   : > { %v3471_v63 = vadd.f32 %v3470_v35, %v3469_v9  ;;  %v3472_v20 = vpop.f32.mrb[50].mxu1  ;;  %v2425_v28 = vadd.f32 %v3374_v6, %v4462_v21 }
 0x1ce   : > { %v3473_v24 = vpop.f32.mrb[51].mxu1 }
 0x1cf   : > { %v3474_v48 = vadd.f32 %v3473_v24, %v3472_v20  ;;  %v4538_v14 = vadd.f32 %v3471_v63, %v2422_v2  ;;  %v3375_v32 = vpop.f32.mrb[52].mxu0 }
 0x1d0   : > { %v3376_v34 = vpop.f32.mrb[53].mxu0 }
 0x1d1   : > { %v4540_v33 = vadd.f32 %v3474_v48, %v2425_v28  ;;  %v3377_v36 = vadd.f32 %v3376_v34, %v3375_v32  ;;  %v3378_v12 = vpop.f32.mrb[54].mxu0 }
 0x1d2   : > { %v3379_v3 = vpop.f32.mrb[55].mxu0 }
 0x1d3   : > { %v3475_v38 = vpop.f32.mrb[52].mxu1  ;;  %v2430_v39 = vadd.f32 %v3377_v36, %v4462_v21  ;;  %v3380_v40 = vadd.f32 %v3379_v3, %v3378_v12 }
 0x1d4   : > { %v3476_v52 = vpop.f32.mrb[53].mxu1 }
 0x1d5   : > { %v3477_v17 = vadd.f32 %v3476_v52, %v3475_v38  ;;  %v3478_v45 = vpop.f32.mrb[54].mxu1  ;;  %v2433_v50 = vadd.f32 %v3380_v40, %v4462_v21 }
 0x1d6   : > { %v3479_v46 = vpop.f32.mrb[55].mxu1 }
 0x1d7   : > { %v3480_v54 = vadd.f32 %v3479_v46, %v3478_v45  ;;  %v4544_v59 = vadd.f32 %v3477_v17, %v2430_v39  ;;  %v3509_v62 = vpop.f32.mrb[56].mxu0 }
 0x1d8   : > { %v2624_v49 = vadd.f32 %v3509_v62, %v4472_v61  ;;  %v2615_v57 = vpop.f32.mrb[57].mxu0 }
 0x1d9   : > { %v4546_v15 = vadd.f32 %v3480_v54, %v2433_v50  ;;  %v2616_v0 = vadd.f32 %v2615_v57, %v4466_v13  ;;  %v3510_v4 = vpop.f32.mrb[58].mxu0 }
 0x1da   : > { %v2627_v60 = vadd.f32 %v3510_v4, %v4474_v5  ;;  %v2618_v8 = vpop.f32.mrb[59].mxu0  ;;  %v2728_v11 = vmax.f32 %v2624_v49, 0.0 }
 0x1db   : > { %v3525_v23 = vpop.f32.mrb[56].mxu1  ;;  %v2619_v58 = vadd.f32 %v2618_v8, %v4468_v10  ;;  %v2726_v6 = vmax.f32 %v2616_v0, 0.0 }
 0x1dc   : > { %v2688_v53 = vadd.f32 %v3525_v23, %v4520_v22  ;;  %v2679_v21 = vpop.f32.mrb[57].mxu1  ;;  %v2729_v35 = vmax.f32 %v2627_v60, 0.0 }
 0x1dd   : > { %v2680_v56 = vadd.f32 %v2679_v21, %v4514_v29  ;;  %v3526_v9 = vpop.f32.mrb[58].mxu1  ;;  %v2727_v13 = vmax.f32 %v2619_v58, 0.0 }
 0x1de   : > { %v2691_v61 = vadd.f32 %v3526_v9, %v4522_v25  ;;  %v2682_v2 = vpop.f32.mrb[59].mxu1  ;;  %v3206_v5 = vpack.c.bf16 %v2729_v35, %v2728_v11  ;;  %v2744_v29 = vmax.f32 %v2688_v53, 0.0 }
 0x1df   : > { %v2683_v10 = vadd.f32 %v2682_v2, %v4516_v1  ;;  %v3201_v63 = vpack.c.bf16 %v2727_v13, %v2726_v6  ;;  %v2742_v20 = vmax.f32 %v2680_v56, 0.0  ;;  %v3513_v24 = vpop.f32.mrb[60].mxu0 }
 0x1e0   : > { %v2745_v22 = vmax.f32 %v2691_v61, 0.0  ;;  %3268 = vst [vmem:[%s4560_s26 + $0x8] sm:$0xff] %v3206_v5   ;;  %v2640_v48 = vadd.f32 %v3513_v24, %v4484_v37  ;;  %v2631_v32 = vpop.f32.mrb[61].mxu0 }
 0x1e1   : > { %v2743_v25 = vmax.f32 %v2683_v10, 0.0  ;;  %3202 = vst [vmem:[%s4560_s26] sm:$0xff] %v3201_v63   ;;  %v2632_v36 = vadd.f32 %v2631_v32, %v4478_v16  ;;  %v3514_v12 = vpop.f32.mrb[62].mxu0 }
 0x1e2   : > { %v3246_v28 = vpack.c.bf16 %v2745_v22, %v2744_v29  ;;  %v2643_v38 = vadd.f32 %v3514_v12, %v4486_v47  ;;  %v2634_v3 = vpop.f32.mrb[63].mxu0  ;;  %v2732_v45 = vmax.f32 %v2640_v48, 0.0 }
 0x1e3   : > { %v3241_v34 = vpack.c.bf16 %v2743_v25, %v2742_v20  ;;  %v3529_v1 = vpop.f32.mrb[60].mxu1  ;;  %v2635_v40 = vadd.f32 %v2634_v3, %v4480_v19  ;;  %v2730_v54 = vmax.f32 %v2632_v36, 0.0 }
 0x1e4   : > { %3276 = vst [vmem:[%s4560_s26 + $0x48] sm:$0xff] %v3246_v28   ;;  %v2704_v52 = vadd.f32 %v3529_v1, %v4532_v7  ;;  %v2695_v39 = vpop.f32.mrb[61].mxu1  ;;  %v2733_v46 = vmax.f32 %v2643_v38, 0.0 }
 0x1e5   : > { %3275 = vst [vmem:[%s4560_s26 + $0x40] sm:$0xff] %v3241_v34   ;;  %v2696_v17 = vadd.f32 %v2695_v39, %v4526_v42  ;;  %v3530_v37 = vpop.f32.mrb[62].mxu1  ;;  %v2731_v62 = vmax.f32 %v2635_v40, 0.0 }
 0x1e6   : > { %v2707_v16 = vadd.f32 %v3530_v37, %v4534_v41  ;;  %v2698_v50 = vpop.f32.mrb[63].mxu1  ;;  %v3216_v49 = vpack.c.bf16 %v2733_v46, %v2732_v45  ;;  %v2748_v7 = vmax.f32 %v2704_v52, 0.0 }
 0x1e7   : > { %v2699_v47 = vadd.f32 %v2698_v50, %v4528_v44  ;;  %v3211_v0 = vpack.c.bf16 %v2731_v62, %v2730_v54  ;;  %v2746_v19 = vmax.f32 %v2696_v17, 0.0  ;;  %v3517_v42 = vpop.f32.mrb[64].mxu0 }
 0x1e8   : > { %v2749_v57 = vmax.f32 %v2707_v16, 0.0  ;;  %3270 = vst [vmem:[%s4560_s26 + $0x18] sm:$0xff] %v3216_v49   ;;  %v2656_v60 = vadd.f32 %v3517_v42, %v4496_v26  ;;  %v2647_v41 = vpop.f32.mrb[65].mxu0 }
 0x1e9   : > { %v2747_v4 = vmax.f32 %v2699_v47, 0.0  ;;  %3269 = vst [vmem:[%s4560_s26 + $0x10] sm:$0xff] %v3211_v0   ;;  %v2648_v53 = vadd.f32 %v2647_v41, %v4490_v51  ;;  %v3518_v21 = vpop.f32.mrb[66].mxu0 }
 0x1ea   : > { %v3256_v23 = vpack.c.bf16 %v2749_v57, %v2748_v7  ;;  %v2659_v58 = vadd.f32 %v3518_v21, %v4498_v18  ;;  %v2650_v56 = vpop.f32.mrb[67].mxu0  ;;  %v2736_v2 = vmax.f32 %v2656_v60, 0.0 }
 0x1eb   : > { %v3251_v8 = vpack.c.bf16 %v2747_v4, %v2746_v19  ;;  %v3533_v44 = vpop.f32.mrb[64].mxu1  ;;  %v2651_v35 = vadd.f32 %v2650_v56, %v4492_v55  ;;  %v2734_v10 = vmax.f32 %v2648_v53, 0.0 }
 0x1ec   : > { %3278 = vst [vmem:[%s4560_s26 + $0x58] sm:$0xff] %v3256_v23   ;;  %v2720_v9 = vadd.f32 %v3533_v44, %v4544_v59  ;;  %v2711_v11 = vpop.f32.mrb[65].mxu1  ;;  %v2737_v6 = vmax.f32 %v2659_v58, 0.0 }
 0x1ed   : > { %3277 = vst [vmem:[%s4560_s26 + $0x50] sm:$0xff] %v3251_v8   ;;  %v2712_v61 = vadd.f32 %v2711_v11, %v4538_v14  ;;  %v3534_v26 = vpop.f32.mrb[66].mxu1  ;;  %v2735_v5 = vmax.f32 %v2651_v35, 0.0 }
 0x1ee   : > { %v2723_v51 = vadd.f32 %v3534_v26, %v4546_v15  ;;  %v2714_v13 = vpop.f32.mrb[67].mxu1  ;;  %v3226_v59 = vpack.c.bf16 %v2737_v6, %v2736_v2  ;;  %v2752_v29 = vmax.f32 %v2720_v9, 0.0 }
 0x1ef   : > { %v2715_v18 = vadd.f32 %v2714_v13, %v4540_v33  ;;  %v3221_v55 = vpack.c.bf16 %v2735_v5, %v2734_v10  ;;  %v2750_v63 = vmax.f32 %v2712_v61, 0.0  ;;  %v3521_v20 = vpop.f32.mrb[68].mxu0 }
 0x1f0   : > { %v2753_v22 = vmax.f32 %v2723_v51, 0.0  ;;  %3272 = vst [vmem:[%s4560_s26 + $0x28] sm:$0xff] %v3226_v59   ;;  %v2672_v24 = vadd.f32 %v3521_v20, %v4508_v43  ;;  %v2663_v15 = vpop.f32.mrb[69].mxu0 }
 0x1f1   : > { %v2751_v14 = vmax.f32 %v2715_v18, 0.0  ;;  %3271 = vst [vmem:[%s4560_s26 + $0x20] sm:$0xff] %v3221_v55   ;;  %v2664_v33 = vadd.f32 %v2663_v15, %v4502_v27  ;;  %v3522_v48 = vpop.f32.mrb[70].mxu0 }
 0x1f2   : > { %v3266_v25 = vpack.c.bf16 %v2753_v22, %v2752_v29  ;;  %v2675_v32 = vadd.f32 %v3522_v48, %v4510_v31  ;;  %v2666_v34 = vpop.f32.mrb[71].mxu0  ;;  %v2740_v12 = vmax.f32 %v2672_v24, 0.0 }
 0x1f3   : > { %v3261_v28 = vpack.c.bf16 %v2751_v14, %v2750_v63  ;;  %v2667_v36 = vadd.f32 %v2666_v34, %v4504_v30  ;;  %v2738_v38 = vmax.f32 %v2664_v33, 0.0 }
 0x1f4   : > { %3280 = vst [vmem:[%s4560_s26 + $0x68] sm:$0xff] %v3266_v25   ;;  %v2741_v1 = vmax.f32 %v2675_v32, 0.0 }
 0x1f5   : > { %3279 = vst [vmem:[%s4560_s26 + $0x60] sm:$0xff] %v3261_v28   ;;  %v2739_v3 = vmax.f32 %v2667_v36, 0.0 }
 0x1f6   : > { %v3236_v43 = vpack.c.bf16 %v2741_v1, %v2740_v12 }
 0x1f7   : > { %v3231_v52 = vpack.c.bf16 %v2739_v3, %v2738_v38 }
 0x1f8   : > { %3274 = vst [vmem:[%s4560_s26 + $0x38] sm:$0xff] %v3236_v43  }
 0x1f9   : > { %3273 = vst [vmem:[%s4560_s26 + $0x30] sm:$0xff] %v3231_v52  }
 0x1fa PF: > { %s13_s12 = sadd.s32 1, %s3726_s12  }
 0x1fb   : > { %p10_p4 = scmp.ge.s32.totalorder %s13_s12, 4  }
 0x1fd   :  { %12 = sbr.rel (!%p10_p4) target bundleno = 1 (0x1), region = 62 }

// kernel: alexnet_forward.9
= control target key start
LH: loop header
LB: loop body
LE: loop exit
PB: predicated region body
PF: predicated region fallthrough
CT: control target
= control target key end

     0   :  { %s4211_s12 = smov 0   ;;  %s5403_s0 = inlined_call_operand.vmem [shape: bf16[128,256], index: 0, kind: input, shape index: {}]   ;;  %s5404_s1 = inlined_call_operand.vmem [shape: bf16[2304,256], index: 1, kind: input, shape index: {}]   ;;  %s5405_s2 = inlined_call_operand.vmem [shape: f32[1,256], index: 2, kind: input, shape index: {}]   ;;  %s5406_s3 = inlined_call_operand.vmem [shape: bf16[128,256], index: 3, kind: output, shape index: {}]  }
   0x1 LB: > { %s3221_s13 = sadd.s32 4294967295, %s4189_s12   ;;  %p3225_p0 = scmp.ge.s32.totalorder %s4189_s12, 1  ;;  %s4189_s12 = sphi %s4211_s12, %s13_s12  }
   0x2   : > { %p139_p1 = scmp.lt.s32.totalorder %s4189_s12, 3 }
   0x4   : > { %p140_p2 = pnand %p3225_p0, %p139_p1 }
   0x5   : > { %v3733_v0 = vld [vmem:[%s5404_s1 + $0x4] ss:$8 sps:$4 sm:$0xff] (!%p140_p2)   ;;  %v3737_v2 = vld [vmem:[%s5404_s1] ss:$8 sps:$4 sm:$0xff] (!%p140_p2)   ;;  %v3739_v4 = vld [vmem:[%s5404_s1 + $0x14] ss:$8 sps:$4 sm:$0xff] (!%p140_p2)  }
   0x6   : > { %143 = sbr.rel (%p140_p2) target bundleno = 554 (0x22a), region = 32  ;;  %v3735_v1 = vld [vmem:[%s5404_s1 + $0x404] ss:$8 sps:$4 sm:$0xff] (!%p140_p2)   ;;  %2567 = vmatprep.subr.bf16.mxu1 (!%p140_p2), %v3733_v0  ;;  %v3738_v3 = vld [vmem:[%s5404_s1 + $0x400] ss:$8 sps:$4 sm:$0xff] (!%p140_p2)   ;;  %s3226_s24 = sshll.u32 (!%p140_p2), %s3221_s13, 3 }
   0x7   : > { %2811 = vmatprep.subr.bf16.mxu0 (!%p140_p2), %v3735_v1  ;;  %2568 = vmatpush1.bf16.msra.mxu1 (!%p140_p2), %v3737_v2  ;;  %v3741_v5 = vld [vmem:[%s5404_s1 + $0x414] ss:$8 sps:$4 sm:$0xff] (!%p140_p2)   ;;  %v3743_v6 = vld [vmem:[%s5404_s1 + $0x10] ss:$8 sps:$4 sm:$0xff] (!%p140_p2)   ;;  %v3745_v8 = vld [vmem:[%s5404_s1 + $0x24] ss:$8 sps:$4 sm:$0xff] (!%p140_p2)  }
   0x8   : > { %2812 = vmatpush1.bf16.msra.mxu0 (!%p140_p2), %v3738_v3  ;;  %2569 = vmatprep.subr.bf16.mxu1 (!%p140_p2), %v3739_v4  ;;  %v3744_v7 = vld [vmem:[%s5404_s1 + $0x410] ss:$8 sps:$4 sm:$0xff] (!%p140_p2)   ;;  %v3747_v9 = vld [vmem:[%s5404_s1 + $0x424] ss:$8 sps:$4 sm:$0xff] (!%p140_p2)   ;;  %v3749_v10 = vld [vmem:[%s5404_s1 + $0x20] ss:$8 sps:$4 sm:$0xff] (!%p140_p2)  }
   0x9   : > { %2813 = vmatprep.subr.bf16.mxu0 (!%p140_p2), %v3741_v5  ;;  %v3750_v11 = vld [vmem:[%s5404_s1 + $0x420] ss:$8 sps:$4 sm:$0xff] (!%p140_p2)   ;;  %v3751_v12 = vld [vmem:[%s5404_s1 + $0x34] ss:$8 sps:$4 sm:$0xff] (!%p140_p2)   ;;  %v3755_v14 = vld [vmem:[%s5404_s1 + $0x30] ss:$8 sps:$4 sm:$0xff] (!%p140_p2)  }
   0xa   : > { %v3753_v13 = vld [vmem:[%s5404_s1 + $0x434] ss:$8 sps:$4 sm:$0xff] (!%p140_p2)   ;;  %v3756_v15 = vld [vmem:[%s5404_s1 + $0x430] ss:$8 sps:$4 sm:$0xff] (!%p140_p2)   ;;  %v3757_v16 = vld [vmem:[%s5404_s1 + $0x44] ss:$8 sps:$4 sm:$0xff] (!%p140_p2)  }
   0xb   : > { %2570 = vmatpush1.bf16.msra.mxu1 (!%p140_p2), %v3743_v6  ;;  %v3759_v17 = vld [vmem:[%s5404_s1 + $0x444] ss:$8 sps:$4 sm:$0xff] (!%p140_p2)   ;;  %v3761_v18 = vld [vmem:[%s5404_s1 + $0x40] ss:$8 sps:$4 sm:$0xff] (!%p140_p2)   ;;  %v3763_v20 = vld [vmem:[%s5404_s1 + $0x54] ss:$8 sps:$4 sm:$0xff] (!%p140_p2)  }
   0xc   : > { %2814 = vmatpush1.bf16.msra.mxu0 (!%p140_p2), %v3744_v7  ;;  %2571 = vmatprep.subr.bf16.mxu1 (!%p140_p2), %v3745_v8  ;;  %v3762_v19 = vld [vmem:[%s5404_s1 + $0x440] ss:$8 sps:$4 sm:$0xff] (!%p140_p2)   ;;  %v3765_v21 = vld [vmem:[%s5404_s1 + $0x454] ss:$8 sps:$4 sm:$0xff] (!%p140_p2)   ;;  %v3767_v22 = vld [vmem:[%s5404_s1 + $0x50] ss:$8 sps:$4 sm:$0xff] (!%p140_p2)  }
   0xd   : > { %2815 = vmatprep.subr.bf16.mxu0 %v3747_v9  ;;  %v3768_v23 = vld [vmem:[%s5404_s1 + $0x450] ss:$8 sps:$4 sm:$0xff]   ;;  %v3769_v24 = vld [vmem:[%s5404_s1 + $0x64] ss:$8 sps:$4 sm:$0xff]   ;;  %v3773_v26 = vld [vmem:[%s5404_s1 + $0x60] ss:$8 sps:$4 sm:$0xff]  }
   0xe   : > { %v3771_v25 = vld [vmem:[%s5404_s1 + $0x464] ss:$8 sps:$4 sm:$0xff]   ;;  %v3774_v27 = vld [vmem:[%s5404_s1 + $0x460] ss:$8 sps:$4 sm:$0xff]   ;;  %v3775_v28 = vld [vmem:[%s5404_s1 + $0x74] ss:$8 sps:$4 sm:$0xff]  }
   0xf   : > { %2572 = vmatpush1.bf16.msra.mxu1 %v3749_v10  ;;  %v3777_v29 = vld [vmem:[%s5404_s1 + $0x474] ss:$8 sps:$4 sm:$0xff]   ;;  %v3779_v30 = vld [vmem:[%s5404_s1 + $0x70] ss:$8 sps:$4 sm:$0xff]   ;;  %v3781_v32 = vld [vmem:[%s5404_s1 + $0x84] ss:$8 sps:$4 sm:$0xff]  }
  0x10   : > { %2816 = vmatpush1.bf16.msra.mxu0 %v3750_v11  ;;  %2573 = vmatprep.subr.bf16.mxu1 %v3751_v12  ;;  %v3780_v31 = vld [vmem:[%s5404_s1 + $0x470] ss:$8 sps:$4 sm:$0xff]   ;;  %v3783_v33 = vld [vmem:[%s5404_s1 + $0x484] ss:$8 sps:$4 sm:$0xff]   ;;  %p166_p3 = scmp.lt.s32.totalorder %s3226_s24, 15  ;;  %vm274_vm3 = vcmask 1042432  }
  0x11   : > { %2817 = vmatprep.subr.bf16.mxu0 %v3753_v13  ;;  %v3785_v34 = vld [vmem:[%s5404_s1 + $0x80] ss:$8 sps:$4 sm:$0xff]   ;;  %v3787_v36 = vld [vmem:[%s5404_s1 + $0x94] ss:$8 sps:$4 sm:$0xff]   ;;  %v3791_v38 = vld [vmem:[%s5404_s1 + $0x90] ss:$8 sps:$4 sm:$0xff]  }
  0x12   : > { %v3786_v35 = vld [vmem:[%s5404_s1 + $0x480] ss:$8 sps:$4 sm:$0xff]   ;;  %v3789_v37 = vld [vmem:[%s5404_s1 + $0x494] ss:$8 sps:$4 sm:$0xff]   ;;  %s5412_s24 = smov (!%p166_p3, %s3226_s24), 15  ;;  %vm275_vm4 = vcmask 1046532  }
  0x13   : > { %2574 = vmatpush1.bf16.msra.mxu1 %v3755_v14  ;;  %v3792_v39 = vld [vmem:[%s5404_s1 + $0x490] ss:$8 sps:$4 sm:$0xff]   ;;  %v3793_v40 = vld [vmem:[%s5404_s1 + $0xa4] ss:$8 sps:$4 sm:$0xff]   ;;  %s3584_s23 = sshll.u32 %s5412_s24, 3  ;;  %vm4603_vm5 = vmor %vm274_vm3, %vm275_vm4 }
  0x14   : > { %2818 = vmatpush1.bf16.msra.mxu0 %v3756_v15  ;;  %2575 = vmatprep.subr.bf16.mxu1 %v3757_v16  ;;  %v3795_v41 = vld [vmem:[%s5404_s1 + $0x4a4] ss:$8 sps:$4 sm:$0xff]   ;;  %v3797_v42 = vld [vmem:[%s5404_s1 + $0xa0] ss:$8 sps:$4 sm:$0xff]   ;;  %v3799_v44 = vld [vmem:[%s5404_s1 + $0xb4] ss:$8 sps:$4 sm:$0xff]   ;;  %s4364_s13 = scalar_lea.vmem %s5403_s0, %s3584_s23  ;;  %s177_s14 = scalar_lea.vmem %s5406_s3, %s3584_s23 }
  0x15   : > { %2819 = vmatprep.subr.bf16.mxu0 %v3759_v17  ;;  %v3798_v43 = vld [vmem:[%s5404_s1 + $0x4a0] ss:$8 sps:$4 sm:$0xff]   ;;  %v3801_v45 = vld [vmem:[%s5404_s1 + $0x4b4] ss:$8 sps:$4 sm:$0xff]   ;;  %v3803_v46 = vld [vmem:[%s5404_s1 + $0xb0] ss:$8 sps:$4 sm:$0xff]  }
  0x16   : > { %v3804_v47 = vld [vmem:[%s5404_s1 + $0x4b0] ss:$8 sps:$4 sm:$0xff]   ;;  %v4376_v48 = vld [vmem:[%s4364_s13] sm:$0xff]  ;;  %v4379_v49 = vld [vmem:[%s4364_s13 + $0x8] sm:$0xff]  ;;  %vm195_vm0 = vsmask.f32 3328 }
  0x17   : > { %2576 = vmatpush1.bf16.msra.mxu1 %v3761_v18  ;;  %v3805_v50 = vld [vmem:[%s5404_s1 + $0xc4] ss:$8 sps:$4 sm:$0xff]   ;;  %v3236_v52 = vcombine.high %v4376_v48, %v4379_v49  ;;  %v320_v53 = vshrl.u32 %v4379_v49, 16  ;;  %v323_v54 = vshll.u32 %v4379_v49, 16  ;;  %vm196_vm1 = vsmask.f32 7440 }
  0x18   : > { %2820 = vmatpush1.bf16.msra.mxu0 %v3762_v19  ;;  %2577 = vmatprep.subr.bf16.mxu1 %v3763_v20  ;;  %v3807_v51 = vld [vmem:[%s5404_s1 + $0x4c4] ss:$8 sps:$4 sm:$0xff]   ;;  %v4392_v55 = vld [vmem:[%s4364_s13 + $0x10] sm:$0xff]  ;;  %v4395_v56 = vld [vmem:[%s4364_s13 + $0x18] sm:$0xff] }
  0x19   : > { %2821 = vmatprep.subr.bf16.mxu0 %v3765_v21  ;;  %v3809_v57 = vld [vmem:[%s5404_s1 + $0xc0] ss:$8 sps:$4 sm:$0xff]   ;;  %2599 = vmatprep.mubr.bf16.mxu1 %v3236_v52  ;;  %v322_v58 = vrot.slane %v320_v53, 4  ;;  %v4400_v59 = vrot.slane %v323_v54, 5  ;;  %v329_v60 = vshll.u32 %v4392_v55, 16  ;;  %v333_v61 = vshrl.u32 %v4392_v55, 16  ;;  %vm4417_vm2 = vmor %vm195_vm0, %vm196_vm1 }
  0x1a   : > { %v3810_v62 = vld [vmem:[%s5404_s1 + $0x4c0] ss:$8 sps:$4 sm:$0xff]   ;;  %v3811_v63 = vld [vmem:[%s5404_s1 + $0xd4] ss:$8 sps:$4 sm:$0xff]   ;;  %v339_v0 = vshll.u32 %v4395_v56, 16 }
  0x1b   : > { %2578 = vmatpush1.bf16.msra.mxu1 %v3767_v22  ;;  %v3813_v1 = vld [vmem:[%s5404_s1 + $0x4d4] ss:$8 sps:$4 sm:$0xff]   ;;  %v326_v2 = vor.u32 %v4400_v59, %v322_v58  ;;  %v331_v3 = vrot.slane %v329_v60, 5  ;;  %v335_v4 = vrot.slane %v333_v61, 4  ;;  %v3815_v9 = vld [vmem:[%s5404_s1 + $0xd0] ss:$8 sps:$4 sm:$0xff]  }
  0x1c   : > { %2822 = vmatpush1.bf16.msra.mxu0 %v3768_v23  ;;  %2579 = vmatprep.subr.bf16.mxu1 %v3769_v24  ;;  %v4421_v8 = vrot.slane %v339_v0, 5  ;;  %v3816_v10 = vld [vmem:[%s5404_s1 + $0x4d0] ss:$8 sps:$4 sm:$0xff]   ;;  %v3817_v11 = vld [vmem:[%s5404_s1 + $0xe4] ss:$8 sps:$4 sm:$0xff]  }
  0x1d   : > { %2823 = vmatprep.subr.bf16.mxu0 %v3771_v25  ;;  %v327_v6 = vrot.slane %v326_v2, 4  ;;  %v336_v7 = vor.u32 %v335_v4, %v331_v3  ;;  %v3819_v14 = vld [vmem:[%s5404_s1 + $0x4e4] ss:$8 sps:$4 sm:$0xff]   ;;  %v3821_v16 = vld [vmem:[%s5404_s1 + $0xe0] ss:$8 sps:$4 sm:$0xff]   ;;  %v199_v25 = vshrl.u32 %v4376_v48, 16 }
  0x1e   : > { %v3822_v18 = vld [vmem:[%s5404_s1 + $0x4e0] ss:$8 sps:$4 sm:$0xff]   ;;  %v3823_v19 = vld [vmem:[%s5404_s1 + $0xf4] ss:$8 sps:$4 sm:$0xff]   ;;  %v3827_v21 = vld [vmem:[%s5404_s1 + $0xf0] ss:$8 sps:$4 sm:$0xff]  }
  0x1f   : > { %2580 = vmatpush1.bf16.msra.mxu1 %v3773_v26  ;;  %v4434_v12 = vsel %vm4417_vm2, %v327_v6, %v331_v3  ;;  %v337_v13 = vrot.slane %v336_v7, 4  ;;  %v3825_v20 = vld [vmem:[%s5404_s1 + $0x4f4] ss:$8 sps:$4 sm:$0xff]   ;;  %v3828_v22 = vld [vmem:[%s5404_s1 + $0x4f0] ss:$8 sps:$4 sm:$0xff]   ;;  %v202_v26 = vshll.u32 %v4376_v48, 16 }
  0x20   : > { %2824 = vmatpush1.bf16.msra.mxu0 %v3774_v27  ;;  %2581 = vmatprep.subr.bf16.mxu1 %v3775_v28  ;;  %v3833_v23 = vld [vmem:[%s5404_s1 + $0x104] ss:$8 sps:$4 sm:$0xff]   ;;  %v3235_v27 = vcombine.low %v4376_v48, %v4379_v49  ;;  %v3831_v28 = vld [vmem:[%s5404_s1 + $0x100] ss:$8 sps:$4 sm:$0xff]   ;;  %v3849_v49 = vld [vmem:[%s5404_s1 + $0x130] ss:$8 sps:$4 sm:$0xff]  }
  0x21   : > { %2825 = vmatprep.subr.bf16.mxu0 %v3777_v29  ;;  %v4442_v15 = vsel %vm4417_vm2, %v337_v13, %v4421_v8  ;;  %v3836_v24 = vld [vmem:[%s5404_s1 + $0x504] ss:$8 sps:$4 sm:$0xff]   ;;  %v3855_v54 = vld [vmem:[%s5404_s1 + $0x140] ss:$8 sps:$4 sm:$0xff]   ;;  %v3863_v2 = vld [vmem:[%s5404_s1 + $0x154] ss:$8 sps:$4 sm:$0xff]  }
  0x22   : > { %v3244_v17 = vcombine.high %v4434_v12, %v4442_v15  ;;  %v3243_v29 = vcombine.low %v4434_v12, %v4442_v15  ;;  %v3860_v53 = vld [vmem:[%s5404_s1 + $0x544] ss:$8 sps:$4 sm:$0xff]   ;;  %v3866_v6 = vld [vmem:[%s5404_s1 + $0x554] ss:$8 sps:$4 sm:$0xff]   ;;  %v3861_v13 = vld [vmem:[%s5404_s1 + $0x150] ss:$8 sps:$4 sm:$0xff]  }
  0x23   : > { %2582 = vmatpush1.bf16.msra.mxu1 %v3779_v30  ;;  %v3834_v30 = vld [vmem:[%s5404_s1 + $0x500] ss:$8 sps:$4 sm:$0xff]   ;;  %v4142_v5 = vld [vmem:[%s5404_s1 + $0x830] ss:$8 sps:$4 sm:$0xff]  }
  0x24   : > { %2826 = vmatpush1.bf16.msra.mxu0 %v3780_v31  ;;  %2583 = vmatprep.subr.bf16.mxu1 %v3781_v32  ;;  %v3839_v31 = vld [vmem:[%s5404_s1 + $0x114] ss:$8 sps:$4 sm:$0xff]   ;;  %v4537_v58 = vld [vmem:[%s4364_s13 + $0x28] sm:$0xff] }
  0x25   : > { %2827 = vmatprep.subr.bf16.mxu0 %v3783_v33  ;;  %2843 = vmatprep.mubr.bf16.mxu0 %v3244_v17  ;;  %v3842_v32 = vld [vmem:[%s5404_s1 + $0x514] ss:$8 sps:$4 sm:$0xff]   ;;  %v3254_v33 = vcombine.high %v4392_v55, %v4395_v56  ;;  %v363_v0 = vshrl.u32 %v4537_v58, 16  ;;  %v3869_v17 = vld [vmem:[%s5404_s1 + $0x164] ss:$8 sps:$4 sm:$0xff]  }
  0x27   : > { %2584 = vmatpush1.bf16.msra.mxu1 %v3785_v34  ;;  %v201_v34 = vrot.slane %v199_v25, 4  ;;  %v3867_v25 = vld [vmem:[%s5404_s1 + $0x160] ss:$8 sps:$4 sm:$0xff]  }
  0x28   : > { %2828 = vmatpush1.bf16.msra.mxu0 %v3786_v35  ;;  %2585 = vmatprep.subr.bf16.mxu1 %v3787_v36  ;;  %v204_v35 = vrot.slane %v202_v26, 5  ;;  %v3837_v36 = vld [vmem:[%s5404_s1 + $0x110] ss:$8 sps:$4 sm:$0xff]  }
  0x29   : > { %2829 = vmatprep.subr.bf16.mxu0 %v3789_v37  ;;  %v3840_v37 = vld [vmem:[%s5404_s1 + $0x510] ss:$8 sps:$4 sm:$0xff]  }
  0x2b   : > { %2586 = vmatpush1.bf16.msra.mxu1 %v3791_v38  ;;  %v3845_v38 = vld [vmem:[%s5404_s1 + $0x124] ss:$8 sps:$4 sm:$0xff]  }
  0x2c   : > { %2830 = vmatpush1.bf16.msra.mxu0 %v3792_v39  ;;  %2587 = vmatprep.subr.bf16.mxu1 %v3793_v40  ;;  %v343_v39 = vshrl.u32 %v4395_v56, 16  ;;  %v3848_v40 = vld [vmem:[%s5404_s1 + $0x524] ss:$8 sps:$4 sm:$0xff]  }
  0x2d   : > { %2831 = vmatprep.subr.bf16.mxu0 %v3795_v41  ;;  %v205_v41 = vor.u32 %v204_v35, %v201_v34 }
  0x2f   : > { %2588 = vmatpush1.bf16.msra.mxu1 %v3797_v42  ;;  %v3843_v42 = vld [vmem:[%s5404_s1 + $0x120] ss:$8 sps:$4 sm:$0xff]   ;;  %v206_v48 = vrot.slane %v205_v41, 4 }
  0x30   : > { %2832 = vmatpush1.bf16.msra.mxu0 %v3798_v43  ;;  %2589 = vmatprep.subr.bf16.mxu1 %v3799_v44  ;;  %v3253_v43 = vcombine.low %v4392_v55, %v4395_v56  ;;  %v3846_v44 = vld [vmem:[%s5404_s1 + $0x520] ss:$8 sps:$4 sm:$0xff]  }
  0x31   : > { %2833 = vmatprep.subr.bf16.mxu0 %v3801_v45  ;;  %v3851_v45 = vld [vmem:[%s5404_s1 + $0x134] ss:$8 sps:$4 sm:$0xff]   ;;  %v4542_v60 = vsel %vm4417_vm2, %v206_v48, %v4400_v59  ;;  %v3882_v48 = vld [vmem:[%s5404_s1 + $0x580] ss:$8 sps:$4 sm:$0xff]  }
  0x33   : > { %2590 = vmatpush1.bf16.msra.mxu1 %v3803_v46  ;;  %v345_v46 = vrot.slane %v343_v39, 4  ;;  %v3873_v39 = vld [vmem:[%s5404_s1 + $0x170] ss:$8 sps:$4 sm:$0xff]  }
  0x34   : > { %2834 = vmatpush1.bf16.msra.mxu0 %v3804_v47  ;;  %2591 = vmatprep.subr.bf16.mxu1 %v3805_v50  ;;  %v3854_v47 = vld [vmem:[%s5404_s1 + $0x534] ss:$8 sps:$4 sm:$0xff]   ;;  %v3852_v50 = vld [vmem:[%s5404_s1 + $0x530] ss:$8 sps:$4 sm:$0xff]  }
  0x35   : > { %2835 = vmatprep.subr.bf16.mxu0 %v3807_v51  ;;  %v3857_v51 = vld [vmem:[%s5404_s1 + $0x144] ss:$8 sps:$4 sm:$0xff]   ;;  %v346_v52 = vor.u32 %v345_v46, %v4421_v8 }
  0x37   : > { %2592 = vmatpush1.bf16.msra.mxu1 %v3809_v57  ;;  %v4534_v57 = vld [vmem:[%s4364_s13 + $0x20] sm:$0xff]  ;;  %v347_v4 = vrot.slane %v346_v52, 4  ;;  %v3885_v52 = vld [vmem:[%s5404_s1 + $0x190] ss:$8 sps:$4 sm:$0xff]  }
  0x38   : > { %2836 = vmatpush1.bf16.msra.mxu0 %v3810_v62  ;;  %2593 = vmatprep.subr.bf16.mxu1 %v3811_v63  ;;  %v349_v61 = vshll.u32 %v4534_v57, 16  ;;  %v353_v62 = vshrl.u32 %v4534_v57, 16  ;;  %v359_v63 = vshll.u32 %v4537_v58, 16  ;;  %v3272_v59 = vcombine.high %v4534_v57, %v4534_v57 }
  0x39   : > { %2837 = vmatprep.subr.bf16.mxu0 %v3813_v1  ;;  %v3858_v1 = vld [vmem:[%s5404_s1 + $0x540] ss:$8 sps:$4 sm:$0xff]   ;;  %v3271_v3 = vcombine.low %v4534_v57, %v4534_v57 }
  0x3a   : > { %v351_v7 = vrot.slane %v349_v61, 5  ;;  %v355_v8 = vrot.slane %v353_v62, 4  ;;  %v3896_v61 = vld [vmem:[%s5404_s1 + $0x5a4] ss:$8 sps:$4 sm:$0xff]   ;;  %v3891_v62 = vld [vmem:[%s5404_s1 + $0x1a0] ss:$8 sps:$4 sm:$0xff]  }
  0x3b   : > { %2594 = vmatpush1.bf16.msra.mxu1 %v3815_v9  ;;  %v361_v9 = vrot.slane %v359_v63, 5  ;;  %v3894_v63 = vld [vmem:[%s5404_s1 + $0x5a0] ss:$8 sps:$4 sm:$0xff]  }
  0x3c   : > { %2838 = vmatpush1.bf16.msra.mxu0 %v3816_v10  ;;  %2595 = vmatprep.subr.bf16.mxu1 %v3817_v11  ;;  %v365_v10 = vrot.slane %v363_v0, 4  ;;  %v3238_v11 = vcombine.high %v4542_v60, %v4434_v12  ;;  %v3899_v0 = vld [vmem:[%s5404_s1 + $0x1b4] ss:$8 sps:$4 sm:$0xff]  }
  0x3d   : > { %2839 = vmatprep.subr.bf16.mxu0 %v3819_v14  ;;  %v3864_v14 = vld [vmem:[%s5404_s1 + $0x550] ss:$8 sps:$4 sm:$0xff]  }
  0x3f   : > { %2596 = vmatpush1.bf16.msra.mxu1 %v3821_v16  ;;  %v356_v16 = vor.u32 %v355_v8, %v351_v7  ;;  %v3913_v8 = vld [vmem:[%s5404_s1 + $0x1d4] ss:$8 sps:$4 sm:$0xff]  }
  0x40   : > { %2840 = vmatpush1.bf16.msra.mxu0 %v3822_v18  ;;  %2597 = vmatprep.subr.bf16.mxu1 %v3823_v19  ;;  %v3872_v18 = vld [vmem:[%s5404_s1 + $0x564] ss:$8 sps:$4 sm:$0xff]   ;;  %v366_v19 = vor.u32 %v365_v10, %v361_v9  ;;  %v3911_v10 = vld [vmem:[%s5404_s1 + $0x1d0] ss:$8 sps:$4 sm:$0xff]  }
  0x41   : > { %2841 = vmatprep.subr.bf16.mxu0 %v3825_v20  ;;  %v4577_v20 = vsel %vm4417_vm2, %v347_v4, %v351_v7  ;;  %v3909_v4 = vld [vmem:[%s5404_s1 + $0x5c4] ss:$8 sps:$4 sm:$0xff]   ;;  %v3907_v7 = vld [vmem:[%s5404_s1 + $0x5c0] ss:$8 sps:$4 sm:$0xff]  }
  0x43   : > { %2598 = vmatpush1.bf16.msra.mxu1 %v3827_v21  ;;  %v4579_v21 = vrot.slane %v356_v16, 4  ;;  %v403_v16 = vrot.slane %v4534_v57, 5  ;;  %v3930_v57 = vld [vmem:[%s5404_s1 + $0x5f4] ss:$8 sps:$4 sm:$0xff]  }
  0x44   : > { %2842 = vmatpush1.bf16.msra.mxu0 %v3828_v22  ;;  %2628 = vmatprep.subr.bf16.mxu1 %v3833_v23  ;;  %v318_v22 = vld [vmem:[%s4364_s13 + $0x30] sm:$0x11]  ;;  %v367_v23 = vrot.slane %v366_v19, 4 }
  0x45   : > { %2872 = vmatprep.subr.bf16.mxu0 %v3836_v24  ;;  %v369_v24 = vshll.u32 %v318_v22, 16  ;;  %v362_v26 = vsel %vm4417_vm2, %v4579_v21, %v361_v9  ;;  %v3916_v9 = vld [vmem:[%s5404_s1 + $0x5d4] ss:$8 sps:$4 sm:$0xff]  }
  0x46   : > { %2600 = vmatmul.mubr.bf16.vlgmr.msra.gmra.mrb[0].mxu1 %v3235_v27  ;;  %v397_v27 = vrot.slane %v4392_v55, 5  ;;  %v3878_v55 = vld [vmem:[%s5404_s1 + $0x574] ss:$8 sps:$4 sm:$0xff]  }
  0x47   : > { %2844 = vmatmul.mubr.bf16.vlgmr.msra.gmra.mrb[0].mxu0 %v3243_v29  ;;  %2629 = vmatpush1.bf16.msra.mxu1 %v3831_v28  ;;  %v3870_v28 = vld [vmem:[%s5404_s1 + $0x560] ss:$8 sps:$4 sm:$0xff]   ;;  %v3262_v29 = vcombine.high %v4577_v20, %v362_v26  ;;  %v3927_v19 = vld [vmem:[%s5404_s1 + $0x1f4] ss:$8 sps:$4 sm:$0xff]  }
  0x48   : > { %2873 = vmatpush1.bf16.msra.mxu0 %v3834_v30  ;;  %2630 = vmatprep.subr.bf16.mxu1 %v3839_v31  ;;  %v3261_v30 = vcombine.low %v4577_v20, %v362_v26  ;;  %v371_v31 = vrot.slane %v369_v24, 5  ;;  %v406_v24 = vrot.slane %v4537_v58, 5  ;;  %v3928_v26 = vld [vmem:[%s5404_s1 + $0x5f0] ss:$8 sps:$4 sm:$0xff]   ;;  %v3936_v58 = vld [vmem:[%s5404_s1 + $0x604] ss:$8 sps:$4 sm:$0xff]  }
  0x49   : > { %2874 = vmatprep.subr.bf16.mxu0 %v3842_v32  ;;  %2609 = vmatprep.mubr.bf16.mxu1 %v3254_v33  ;;  %v3875_v32 = vld [vmem:[%s5404_s1 + $0x174] ss:$8 sps:$4 sm:$0xff]  }
  0x4a   : > { %2853 = vmatprep.mubr.bf16.mxu0 %v3262_v29  ;;  %v372_v33 = vsel %vm4417_vm2, %v367_v23, %v371_v31  ;;  %v405_v23 = vrot.slane %v403_v16, 4 }
  0x4b   : > { %2631 = vmatpush1.bf16.msra.mxu1 %v3837_v36  ;;  %v3280_v35 = vcombine.high %v372_v33, %v372_v33  ;;  %v383_v36 = vld [vmem:[%s4364_s13 + $0x8] sm:$0xee] }
  0x4c   : > { %2875 = vmatpush1.bf16.msra.mxu0 %v3840_v37  ;;  %2632 = vmatprep.subr.bf16.mxu1 %v3845_v38  ;;  %v399_v37 = vrot.slane %v397_v27, 4  ;;  %v400_v38 = vrot.slane %v4395_v56, 5  ;;  %v3233_v41 = vrot.slane %v383_v36, 9  ;;  %v3933_v56 = vld [vmem:[%s5404_s1 + $0x204] ss:$8 sps:$4 sm:$0xff]   ;;  %v3256_v36 = vcombine.high %v4442_v15, %v4577_v20 }
  0x4d   : > { %2876 = vmatprep.subr.bf16.mxu0 %v3848_v40  ;;  %v3876_v40 = vld [vmem:[%s5404_s1 + $0x570] ss:$8 sps:$4 sm:$0xff]  }
  0x4e   : > { %2610 = vmatmul.mubr.bf16.gmra.mrb[4].mxu1 %v3253_v43  ;;  %v3884_v43 = vld [vmem:[%s5404_s1 + $0x584] ss:$8 sps:$4 sm:$0xff]   ;;  %v4629_v46 = vsel %vm4603_vm5, %v399_v37, %v400_v38  ;;  %v402_v22 = vrot.slane %v400_v38, 4 }
  0x4f   : > { %2633 = vmatpush1.bf16.msra.mxu1 %v3843_v42  ;;  %2619 = vmatprep.mubr.bf16.mxu1 %v3272_v59  ;;  %v3881_v42 = vld [vmem:[%s5404_s1 + $0x184] ss:$8 sps:$4 sm:$0xff]   ;;  %v3900_v59 = vld [vmem:[%s5404_s1 + $0x5b0] ss:$8 sps:$4 sm:$0xff]  }
  0x50   : > { %2877 = vmatpush1.bf16.msra.mxu0 %v3846_v44  ;;  %2634 = vmatprep.subr.bf16.mxu1 %v3851_v45  ;;  %v3279_v44 = vcombine.low %v372_v33, %v372_v33  ;;  %v4623_v45 = vsel %vm4603_vm5, %v3233_v41, %v397_v27  ;;  %v3931_v27 = vld [vmem:[%s5404_s1 + $0x200] ss:$8 sps:$4 sm:$0xff]   ;;  %v404_v31 = vsel %vm4603_vm5, %v402_v22, %v403_v16  ;;  %v3963_v16 = vld [vmem:[%s5404_s1 + $0x254] ss:$8 sps:$4 sm:$0xff]   ;;  %v3964_v22 = vld [vmem:[%s5404_s1 + $0x650] ss:$8 sps:$4 sm:$0xff]  }
  0x51   : > { %2878 = vmatprep.subr.bf16.mxu0 %v3854_v47  ;;  %2854 = vmatmul.mubr.bf16.gmra.mrb[4].mxu0 %v3261_v30  ;;  %v3879_v47 = vld [vmem:[%s5404_s1 + $0x180] ss:$8 sps:$4 sm:$0xff]   ;;  %v3245_v29 = vcombine.low %v4623_v45, %v4629_v46 }
  0x52   : > { %2863 = vmatprep.mubr.bf16.mxu0 %v3280_v35  ;;  %v3934_v30 = vld [vmem:[%s5404_s1 + $0x600] ss:$8 sps:$4 sm:$0xff]   ;;  %v388_v35 = vld [vmem:[%s4364_s13 + $0x30] sm:$0x11] }
  0x53   : > { %2635 = vmatpush1.bf16.msra.mxu1 %v3849_v49  ;;  %v3887_v49 = vld [vmem:[%s5404_s1 + $0x194] ss:$8 sps:$4 sm:$0xff]   ;;  %v409_v41 = vrot.slane %v388_v35, 5  ;;  %v3993_v35 = vld [vmem:[%s5404_s1 + $0x2a4] ss:$8 sps:$4 sm:$0xff]  }
  0x54   : > { %2879 = vmatpush1.bf16.msra.mxu0 %v3852_v50  ;;  %2636 = vmatprep.subr.bf16.mxu1 %v3857_v51  ;;  %v3890_v50 = vld [vmem:[%s5404_s1 + $0x594] ss:$8 sps:$4 sm:$0xff]   ;;  %v3246_v51 = vcombine.high %v4623_v45, %v4629_v46  ;;  %v3255_v45 = vcombine.low %v4442_v15, %v4577_v20 }
  0x55   : > { %2880 = vmatprep.subr.bf16.mxu0 %v3860_v53  ;;  %v3888_v53 = vld [vmem:[%s5404_s1 + $0x590] ss:$8 sps:$4 sm:$0xff]  }
  0x56   : > { %2620 = vmatmul.mubr.bf16.gmra.mrb[8].mxu1 %v3271_v3  ;;  %v3906_v3 = vld [vmem:[%s5404_s1 + $0x1c4] ss:$8 sps:$4 sm:$0xff]  }
  0x57   : > { %2637 = vmatpush1.bf16.msra.mxu1 %v3855_v54  ;;  %2660 = vmatprep.mubr.bf16.mxu1 %v3238_v11  ;;  %v3893_v54 = vld [vmem:[%s5404_s1 + $0x1a4] ss:$8 sps:$4 sm:$0xff]   ;;  %v3914_v11 = vld [vmem:[%s5404_s1 + $0x5d0] ss:$8 sps:$4 sm:$0xff]  }
  0x58   : > { %2881 = vmatpush1.bf16.msra.mxu0 %v3858_v1  ;;  %2638 = vmatprep.subr.bf16.mxu1 %v3863_v2  ;;  %v3902_v1 = vld [vmem:[%s5404_s1 + $0x5b4] ss:$8 sps:$4 sm:$0xff]   ;;  %v3897_v2 = vld [vmem:[%s5404_s1 + $0x1b0] ss:$8 sps:$4 sm:$0xff]  }
  0x59   : > { %2882 = vmatprep.subr.bf16.mxu0 %v3866_v6  ;;  %2864 = vmatmul.mubr.bf16.gmra.mrb[8].mxu0 %v3279_v44  ;;  %v3904_v6 = vld [vmem:[%s5404_s1 + $0x1c0] ss:$8 sps:$4 sm:$0xff]   ;;  %v3948_v44 = vld [vmem:[%s5404_s1 + $0x624] ss:$8 sps:$4 sm:$0xff]  }
  0x5a   : > { %2904 = vmatprep.mubr.bf16.mxu0 %v3246_v51  ;;  %v3946_v51 = vld [vmem:[%s5404_s1 + $0x620] ss:$8 sps:$4 sm:$0xff]  }
  0x5b   : > { %2639 = vmatpush1.bf16.msra.mxu1 %v3861_v13  ;;  %v3920_v13 = vld [vmem:[%s5404_s1 + $0x1e4] ss:$8 sps:$4 sm:$0xff]  }
  0x5c   : > { %2883 = vmatpush1.bf16.msra.mxu0 %v3864_v14  ;;  %2640 = vmatprep.subr.bf16.mxu1 %v3869_v17  ;;  %v3923_v14 = vld [vmem:[%s5404_s1 + $0x5e4] ss:$8 sps:$4 sm:$0xff]   ;;  %v3918_v17 = vld [vmem:[%s5404_s1 + $0x1e0] ss:$8 sps:$4 sm:$0xff]  }
  0x5d   : > { %2884 = vmatprep.subr.bf16.mxu0 %v3872_v18  ;;  %v3921_v18 = vld [vmem:[%s5404_s1 + $0x5e0] ss:$8 sps:$4 sm:$0xff]  }
  0x5f   : > { %2641 = vmatpush1.bf16.msra.mxu1 %v3867_v25  ;;  %v3925_v25 = vld [vmem:[%s5404_s1 + $0x1f0] ss:$8 sps:$4 sm:$0xff]  }
  0x60   : > { %2885 = vmatpush1.bf16.msra.mxu0 %v3870_v28  ;;  %2642 = vmatprep.subr.bf16.mxu1 %v3875_v32  ;;  %v3237_v28 = vcombine.low %v4542_v60, %v4434_v12  ;;  %v407_v32 = vsel %vm4603_vm5, %v405_v23, %v406_v24  ;;  %v3939_v12 = vld [vmem:[%s5404_s1 + $0x214] ss:$8 sps:$4 sm:$0xff]   ;;  %v3969_v23 = vld [vmem:[%s5404_s1 + $0x264] ss:$8 sps:$4 sm:$0xff]  }
  0x61   : > { %2886 = vmatprep.subr.bf16.mxu0 %v3878_v55  ;;  %v194_v55 = vld [vmem:[%s4364_s13 + $0x28] sm:$0x11]  ;;  %v3942_v60 = vld [vmem:[%s5404_s1 + $0x614] ss:$8 sps:$4 sm:$0xff]   ;;  %v3264_v37 = vcombine.high %v404_v31, %v407_v32  ;;  %v3263_v46 = vcombine.low %v404_v31, %v407_v32 }
  0x62   : > { %v248_v33 = vshll.u32 %v194_v55, 16  ;;  %v3979_v31 = vld [vmem:[%s5404_s1 + $0x280] ss:$8 sps:$4 sm:$0xff]   ;;  %v3987_v55 = vld [vmem:[%s5404_s1 + $0x294] ss:$8 sps:$4 sm:$0xff]  }
  0x63   : > { %2643 = vmatpush1.bf16.msra.mxu1 %v3873_v39  ;;  %v3937_v39 = vld [vmem:[%s5404_s1 + $0x210] ss:$8 sps:$4 sm:$0xff]   ;;  %v3982_v32 = vld [vmem:[%s5404_s1 + $0x680] ss:$8 sps:$4 sm:$0xff]  }
  0x64   : > { %2887 = vmatpush1.bf16.msra.mxu0 %v3876_v40  ;;  %2644 = vmatprep.subr.bf16.mxu1 %v3881_v42  ;;  %v250_v38 = vrot.slane %v248_v33, 5  ;;  %v408_v40 = vrot.slane %v406_v24, 4  ;;  %v3940_v42 = vld [vmem:[%s5404_s1 + $0x610] ss:$8 sps:$4 sm:$0xff]   ;;  %v3972_v24 = vld [vmem:[%s5404_s1 + $0x664] ss:$8 sps:$4 sm:$0xff]  }
  0x65   : > { %2888 = vmatprep.subr.bf16.mxu0 %v3884_v43  ;;  %v3945_v43 = vld [vmem:[%s5404_s1 + $0x224] ss:$8 sps:$4 sm:$0xff]   ;;  %v3988_v33 = vld [vmem:[%s5404_s1 + $0x690] ss:$8 sps:$4 sm:$0xff]  }
  0x66   : > { %v410_v15 = vsel %vm4603_vm5, %v408_v40, %v409_v41  ;;  %v3999_v40 = vld [vmem:[%s5404_s1 + $0x2b4] ss:$8 sps:$4 sm:$0xff]  }
  0x67   : > { %2645 = vmatpush1.bf16.msra.mxu1 %v3879_v47  ;;  %v251_v47 = vsel %vm4417_vm2, %v4579_v21, %v250_v38  ;;  %v4906_v38 = vld [vmem:[%s4364_s13 + $0x20] sm:$0xff] }
  0x68   : > { %2889 = vmatpush1.bf16.msra.mxu0 %v3882_v48  ;;  %2646 = vmatprep.subr.bf16.mxu1 %v3887_v49  ;;  %v4775_v48 = vld [vmem:[%s4364_s13 + $0x8] sm:$0xff]  ;;  %v4778_v49 = vld [vmem:[%s4364_s13 + $0x10] sm:$0xff] }
  0x69   : > { %2890 = vmatprep.subr.bf16.mxu0 %v3890_v50  ;;  %v3943_v50 = vld [vmem:[%s5404_s1 + $0x220] ss:$8 sps:$4 sm:$0xff]   ;;  %v279_v20 = vrot.slane %v4775_v48, 5  ;;  %v3241_v21 = vcombine.low %v4775_v48, %v4778_v49 }
  0x6b   : > { %2647 = vmatpush1.bf16.msra.mxu1 %v3885_v52  ;;  %v3242_v52 = vcombine.high %v4775_v48, %v4778_v49 }
  0x6c   : > { %2891 = vmatpush1.bf16.msra.mxu0 %v3888_v53  ;;  %2648 = vmatprep.subr.bf16.mxu1 %v3893_v54  ;;  %v262_v53 = vld [vmem:[%s4364_s13] sm:$0xee]  ;;  %v3951_v54 = vld [vmem:[%s5404_s1 + $0x234] ss:$8 sps:$4 sm:$0xff]  }
  0x6d   : > { %2892 = vmatprep.subr.bf16.mxu0 %v3896_v61  ;;  %v3954_v61 = vld [vmem:[%s5404_s1 + $0x634] ss:$8 sps:$4 sm:$0xff]  }
  0x6f   : > { %2649 = vmatpush1.bf16.msra.mxu1 %v3891_v62  ;;  %v3949_v62 = vld [vmem:[%s5404_s1 + $0x230] ss:$8 sps:$4 sm:$0xff]  }
  0x70   : > { %2893 = vmatpush1.bf16.msra.mxu0 %v3894_v63  ;;  %2650 = vmatprep.subr.bf16.mxu1 %v3899_v0  ;;  %v3274_v63 = vcombine.high %v251_v47, %v251_v47  ;;  %v3282_v0 = vcombine.high %v410_v15, %v410_v15 }
  0x71   : > { %2894 = vmatprep.subr.bf16.mxu0 %v3902_v1  ;;  %v3232_v1 = vrot.slane %v262_v53, 9  ;;  %v4009_v53 = vld [vmem:[%s5404_s1 + $0x2d0] ss:$8 sps:$4 sm:$0xff]  }
  0x73   : > { %2651 = vmatpush1.bf16.msra.mxu1 %v3897_v2  ;;  %v281_v2 = vrot.slane %v279_v20, 4 }
  0x74   : > { %2895 = vmatpush1.bf16.msra.mxu0 %v3900_v59  ;;  %2652 = vmatprep.subr.bf16.mxu1 %v3906_v3  ;;  %v282_v59 = vrot.slane %v4778_v49, 5  ;;  %v3952_v3 = vld [vmem:[%s5404_s1 + $0x630] ss:$8 sps:$4 sm:$0xff]  }
  0x75   : > { %2896 = vmatprep.subr.bf16.mxu0 %v3909_v4  ;;  %v3957_v4 = vld [vmem:[%s5404_s1 + $0x244] ss:$8 sps:$4 sm:$0xff]  }
  0x77   : > { %2653 = vmatpush1.bf16.msra.mxu1 %v3904_v6  ;;  %v3960_v6 = vld [vmem:[%s5404_s1 + $0x644] ss:$8 sps:$4 sm:$0xff]  }
  0x78   : > { %2897 = vmatpush1.bf16.msra.mxu0 %v3907_v7  ;;  %2654 = vmatprep.subr.bf16.mxu1 %v3913_v8  ;;  %v3955_v7 = vld [vmem:[%s5404_s1 + $0x240] ss:$8 sps:$4 sm:$0xff]   ;;  %v3273_v8 = vcombine.low %v251_v47, %v251_v47  ;;  %v4008_v47 = vld [vmem:[%s5404_s1 + $0x6c4] ss:$8 sps:$4 sm:$0xff]  }
  0x79   : > { %2898 = vmatprep.subr.bf16.mxu0 %v3916_v9  ;;  %v3281_v9 = vcombine.low %v410_v15, %v410_v15  ;;  %v4011_v15 = vld [vmem:[%s5404_s1 + $0x2d4] ss:$8 sps:$4 sm:$0xff]  }
  0x7b   : > { %2655 = vmatpush1.bf16.msra.mxu1 %v3911_v10  ;;  %v4818_v10 = vsel %vm4603_vm5, %v3232_v1, %v279_v20  ;;  %v4014_v20 = vld [vmem:[%s5404_s1 + $0x6d4] ss:$8 sps:$4 sm:$0xff]   ;;  %v4018_v1 = vld [vmem:[%s5404_s1 + $0x6e0] ss:$8 sps:$4 sm:$0xff]  }
  0x7c   : > { %2899 = vmatpush1.bf16.msra.mxu0 %v3914_v11  ;;  %2656 = vmatprep.subr.bf16.mxu1 %v3920_v13  ;;  %v4824_v11 = vsel %vm4603_vm5, %v281_v2, %v282_v59  ;;  %v4827_v13 = vld [vmem:[%s4364_s13 + $0x18] sm:$0xff] }
  0x7d   : > { %2900 = vmatprep.subr.bf16.mxu0 %v3923_v14  ;;  %v3958_v14 = vld [vmem:[%s5404_s1 + $0x640] ss:$8 sps:$4 sm:$0xff]   ;;  %v3260_v41 = vcombine.high %v4827_v13, %v4906_v38  ;;  %v4023_v2 = vld [vmem:[%s5404_s1 + $0x2f4] ss:$8 sps:$4 sm:$0xff]  }
  0x7f   : > { %2657 = vmatpush1.bf16.msra.mxu1 %v3918_v17  ;;  %v3966_v17 = vld [vmem:[%s5404_s1 + $0x654] ss:$8 sps:$4 sm:$0xff]  }
  0x80   : > { %2901 = vmatpush1.bf16.msra.mxu0 %v3921_v18  ;;  %2658 = vmatprep.subr.bf16.mxu1 %v3927_v19  ;;  %v3240_v18 = vcombine.high %v4818_v10, %v4824_v11  ;;  %v3248_v19 = vcombine.high %v4778_v49, %v4827_v13 }
  0x81   : > { %2902 = vmatprep.subr.bf16.mxu0 %v3930_v57  ;;  %v3961_v57 = vld [vmem:[%s5404_s1 + $0x250] ss:$8 sps:$4 sm:$0xff]  }
  0x83   : > { %2659 = vmatpush1.bf16.msra.mxu1 %v3925_v25  ;;  %v3967_v25 = vld [vmem:[%s5404_s1 + $0x260] ss:$8 sps:$4 sm:$0xff]  }
  0x84   : > { %2903 = vmatpush1.bf16.msra.mxu0 %v3928_v26  ;;  %2689 = vmatprep.subr.bf16.mxu1 %v3933_v56  ;;  %v3970_v26 = vld [vmem:[%s5404_s1 + $0x660] ss:$8 sps:$4 sm:$0xff]   ;;  %v3975_v56 = vld [vmem:[%s5404_s1 + $0x274] ss:$8 sps:$4 sm:$0xff]  }
  0x85   : > { %2933 = vmatprep.subr.bf16.mxu0 %v3936_v58  ;;  %v3978_v58 = vld [vmem:[%s5404_s1 + $0x674] ss:$8 sps:$4 sm:$0xff]  }
  0x86   : > { %2661 = vmatmul.mubr.bf16.vlgmr.msra.gmra.mrb[0].mxu1 %v3237_v28  ;;  %v3976_v28 = vld [vmem:[%s5404_s1 + $0x670] ss:$8 sps:$4 sm:$0xff]  }
  0x87   : > { %2905 = vmatmul.mubr.bf16.vlgmr.msra.gmra.mrb[0].mxu0 %v3245_v29  ;;  %2690 = vmatpush1.bf16.msra.mxu1 %v3931_v27  ;;  %v3973_v27 = vld [vmem:[%s5404_s1 + $0x270] ss:$8 sps:$4 sm:$0xff]   ;;  %v3981_v29 = vld [vmem:[%s5404_s1 + $0x284] ss:$8 sps:$4 sm:$0xff]  }
  0x88   : > { %2934 = vmatpush1.bf16.msra.mxu0 %v3934_v30  ;;  %2691 = vmatprep.subr.bf16.mxu1 %v3939_v12  ;;  %v3984_v30 = vld [vmem:[%s5404_s1 + $0x684] ss:$8 sps:$4 sm:$0xff]   ;;  %v3990_v12 = vld [vmem:[%s5404_s1 + $0x694] ss:$8 sps:$4 sm:$0xff]  }
  0x89   : > { %2935 = vmatprep.subr.bf16.mxu0 %v3942_v60  ;;  %2670 = vmatprep.mubr.bf16.mxu1 %v3256_v36  ;;  %v3985_v60 = vld [vmem:[%s5404_s1 + $0x290] ss:$8 sps:$4 sm:$0xff]   ;;  %v3996_v36 = vld [vmem:[%s5404_s1 + $0x6a4] ss:$8 sps:$4 sm:$0xff]  }
  0x8a   : > { %2914 = vmatprep.mubr.bf16.mxu0 %v3264_v37  ;;  %v3991_v37 = vld [vmem:[%s5404_s1 + $0x2a0] ss:$8 sps:$4 sm:$0xff]  }
  0x8b   : > { %2692 = vmatpush1.bf16.msra.mxu1 %v3937_v39  ;;  %v3994_v39 = vld [vmem:[%s5404_s1 + $0x6a0] ss:$8 sps:$4 sm:$0xff]  }
  0x8c   : > { %2936 = vmatpush1.bf16.msra.mxu0 %v3940_v42  ;;  %2693 = vmatprep.subr.bf16.mxu1 %v3945_v43  ;;  %v4002_v42 = vld [vmem:[%s5404_s1 + $0x6b4] ss:$8 sps:$4 sm:$0xff]   ;;  %v3259_v43 = vcombine.low %v4827_v13, %v4906_v38 }
  0x8d   : > { %2937 = vmatprep.subr.bf16.mxu0 %v3948_v44  ;;  %v3997_v44 = vld [vmem:[%s5404_s1 + $0x2b0] ss:$8 sps:$4 sm:$0xff]  }
  0x8e   : > { %2671 = vmatmul.mubr.bf16.gmra.mrb[4].mxu1 %v3255_v45  ;;  %v4000_v45 = vld [vmem:[%s5404_s1 + $0x6b0] ss:$8 sps:$4 sm:$0xff]  }
  0x8f   : > { %2915 = vmatmul.mubr.bf16.gmra.mrb[4].mxu0 %v3263_v46  ;;  %2694 = vmatpush1.bf16.msra.mxu1 %v3943_v50  ;;  %v4005_v46 = vld [vmem:[%s5404_s1 + $0x2c4] ss:$8 sps:$4 sm:$0xff]   ;;  %v4003_v50 = vld [vmem:[%s5404_s1 + $0x2c0] ss:$8 sps:$4 sm:$0xff]  }
  0x90   : > { %2938 = vmatpush1.bf16.msra.mxu0 %v3946_v51  ;;  %2695 = vmatprep.subr.bf16.mxu1 %v3951_v54  ;;  %v4006_v51 = vld [vmem:[%s5404_s1 + $0x6c0] ss:$8 sps:$4 sm:$0xff]   ;;  %v4012_v54 = vld [vmem:[%s5404_s1 + $0x6d0] ss:$8 sps:$4 sm:$0xff]  }
  0x91   : > { %2939 = vmatprep.subr.bf16.mxu0 %v3954_v61  ;;  %2680 = vmatprep.mubr.bf16.mxu1 %v3274_v63  ;;  %v4017_v61 = vld [vmem:[%s5404_s1 + $0x2e4] ss:$8 sps:$4 sm:$0xff]   ;;  %v4958_v63 = vrot.slane %v4827_v13, 5 }
  0x92   : > { %2924 = vmatprep.mubr.bf16.mxu0 %v3282_v0  ;;  %v4015_v0 = vld [vmem:[%s5404_s1 + $0x2e0] ss:$8 sps:$4 sm:$0xff]  }
  0x93   : > { %2696 = vmatpush1.bf16.msra.mxu1 %v3949_v62  ;;  %v4020_v62 = vld [vmem:[%s5404_s1 + $0x6e4] ss:$8 sps:$4 sm:$0xff]  }
  0x94   : > { %2940 = vmatpush1.bf16.msra.mxu0 %v3952_v3  ;;  %2697 = vmatprep.subr.bf16.mxu1 %v3957_v4  ;;  %v4026_v3 = vld [vmem:[%s5404_s1 + $0x6f4] ss:$8 sps:$4 sm:$0xff]   ;;  %v4021_v4 = vld [vmem:[%s5404_s1 + $0x2f0] ss:$8 sps:$4 sm:$0xff]  }
  0x95   : > { %2941 = vmatprep.subr.bf16.mxu0 %v3960_v6  ;;  %v4024_v6 = vld [vmem:[%s5404_s1 + $0x6f0] ss:$8 sps:$4 sm:$0xff]  }
  0x96   : > { %2681 = vmatmul.mubr.bf16.gmra.mrb[8].mxu1 %v3273_v8  ;;  %v284_v8 = vrot.slane %v282_v59, 4  ;;  %v4993_v59 = vld [vmem:[%s4364_s13 + $0x30] sm:$0xff] }
  0x97   : > { %2925 = vmatmul.mubr.bf16.gmra.mrb[8].mxu0 %v3281_v9  ;;  %2698 = vmatpush1.bf16.msra.mxu1 %v3955_v7  ;;  %v4979_v7 = vld [vmem:[%s4364_s13 + $0x28] sm:$0xff]  ;;  %v287_v9 = vrot.slane %v4958_v63, 4 }
  0x98   : > { %2942 = vmatpush1.bf16.msra.mxu0 %v3958_v14  ;;  %2699 = vmatprep.subr.bf16.mxu1 %v3963_v16  ;;  %v288_v14 = vrot.slane %v4906_v38, 5  ;;  %v521_v16 = vrot.slane %v4979_v7, 5 }
  0x99   : > { %2943 = vmatprep.subr.bf16.mxu0 %v3966_v17  ;;  %2721 = vmatprep.mubr.bf16.mxu1 %v3240_v18  ;;  %v4029_v17 = vld [vmem:[%s5404_s1 + $0x304] ss:$8 sps:$4 sm:$0xff]  }
  0x9a   : > { %2965 = vmatprep.mubr.bf16.mxu0 %v3248_v19  ;;  %v4034_v18 = vld [vmem:[%s5404_s1 + $0x704] ss:$8 sps:$4 sm:$0xff]   ;;  %v290_v19 = vrot.slane %v288_v14, 4 }
  0x9b   : > { %2700 = vmatpush1.bf16.msra.mxu1 %v3961_v57  ;;  %v438_v57 = vshrl.u32 %v4778_v49, 16 }
  0x9c   : > { %2944 = vmatpush1.bf16.msra.mxu0 %v3964_v22  ;;  %2701 = vmatprep.subr.bf16.mxu1 %v3969_v23  ;;  %v441_v22 = vshll.u32 %v4778_v49, 16  ;;  %v523_v23 = vrot.slane %v521_v16, 4 }
  0x9d   : > { %2945 = vmatprep.subr.bf16.mxu0 %v3972_v24  ;;  %v4027_v24 = vld [vmem:[%s5404_s1 + $0x300] ss:$8 sps:$4 sm:$0xff]  }
  0x9f   : > { %2702 = vmatpush1.bf16.msra.mxu1 %v3967_v25  ;;  %v3247_v25 = vcombine.low %v4778_v49, %v4827_v13 }
  0xa0   : > { %2946 = vmatpush1.bf16.msra.mxu0 %v3970_v26  ;;  %2703 = vmatprep.subr.bf16.mxu1 %v3975_v56  ;;  %v447_v26 = vshll.u32 %v4827_v13, 16  ;;  %v451_v56 = vshrl.u32 %v4827_v13, 16 }
  0xa1   : > { %2947 = vmatprep.subr.bf16.mxu0 %v3978_v58  ;;  %v524_v58 = vrot.slane %v4993_v59, 5 }
  0xa3   : > { %2704 = vmatpush1.bf16.msra.mxu1 %v3973_v27  ;;  %v3239_v27 = vcombine.low %v4818_v10, %v4824_v11  ;;  %v4037_v10 = vld [vmem:[%s5404_s1 + $0x314] ss:$8 sps:$4 sm:$0xff]   ;;  %v267_v11 = vld [vmem:[%s4364_s13 + $0x28] sm:$0x11] }
  0xa4   : > { %2948 = vmatpush1.bf16.msra.mxu0 %v3976_v28  ;;  %2705 = vmatprep.subr.bf16.mxu1 %v3981_v29  ;;  %v4032_v28 = vld [vmem:[%s5404_s1 + $0x700] ss:$8 sps:$4 sm:$0xff]   ;;  %v286_v29 = vsel %vm4603_vm5, %v284_v8, %v4958_v63 }
  0xa5   : > { %2949 = vmatprep.subr.bf16.mxu0 %v3984_v30  ;;  %v5015_v30 = vsel %vm4603_vm5, %v287_v9, %v288_v14 }
  0xa7   : > { %2706 = vmatpush1.bf16.msra.mxu1 %v3979_v31  ;;  %v5019_v31 = vsel %vm4603_vm5, %v290_v19, %v521_v16 }
  0xa8   : > { %2950 = vmatpush1.bf16.msra.mxu0 %v3982_v32  ;;  %2707 = vmatprep.subr.bf16.mxu1 %v3987_v55  ;;  %v5029_v32 = vsel %vm4603_vm5, %v523_v23, %v524_v58  ;;  %v4040_v55 = vld [vmem:[%s5404_s1 + $0x714] ss:$8 sps:$4 sm:$0xff]  }
  0xa9   : > { %2951 = vmatprep.subr.bf16.mxu0 %v3990_v12  ;;  %v440_v12 = vrot.slane %v438_v57, 4 }
  0xab   : > { %2708 = vmatpush1.bf16.msra.mxu1 %v3985_v60  ;;  %v443_v60 = vrot.slane %v441_v22, 5  ;;  %v4058_v22 = vld [vmem:[%s5404_s1 + $0x744] ss:$8 sps:$4 sm:$0xff]  }
  0xac   : > { %2952 = vmatpush1.bf16.msra.mxu0 %v3988_v33  ;;  %2709 = vmatprep.subr.bf16.mxu1 %v3993_v35  ;;  %v3269_v33 = vcombine.low %v5019_v31, %v5029_v32  ;;  %v3270_v35 = vcombine.high %v5019_v31, %v5029_v32 }
  0xad   : > { %2953 = vmatprep.subr.bf16.mxu0 %v3996_v36  ;;  %v3258_v36 = vcombine.high %v286_v29, %v5015_v30 }
  0xaf   : > { %2710 = vmatpush1.bf16.msra.mxu1 %v3991_v37  ;;  %v3266_v37 = vcombine.high %v4906_v38, %v4979_v7 }
  0xb0   : > { %2954 = vmatpush1.bf16.msra.mxu0 %v3994_v39  ;;  %2711 = vmatprep.subr.bf16.mxu1 %v3999_v40  ;;  %v449_v39 = vrot.slane %v447_v26, 5  ;;  %v453_v40 = vrot.slane %v451_v56, 4  ;;  %v4053_v56 = vld [vmem:[%s5404_s1 + $0x340] ss:$8 sps:$4 sm:$0xff]  }
  0xb1   : > { %2955 = vmatprep.subr.bf16.mxu0 %v4002_v42  ;;  %v291_v42 = vrot.slane %v267_v11, 5  ;;  %v4059_v11 = vld [vmem:[%s5404_s1 + $0x350] ss:$8 sps:$4 sm:$0xff]  }
  0xb3   : > { %2712 = vmatpush1.bf16.msra.mxu1 %v3997_v44  ;;  %v4035_v44 = vld [vmem:[%s5404_s1 + $0x310] ss:$8 sps:$4 sm:$0xff]  }
  0xb4   : > { %2956 = vmatpush1.bf16.msra.mxu0 %v4000_v45  ;;  %2713 = vmatprep.subr.bf16.mxu1 %v4005_v46  ;;  %v4038_v45 = vld [vmem:[%s5404_s1 + $0x710] ss:$8 sps:$4 sm:$0xff]   ;;  %v4043_v46 = vld [vmem:[%s5404_s1 + $0x324] ss:$8 sps:$4 sm:$0xff]  }
  0xb5   : > { %2957 = vmatprep.subr.bf16.mxu0 %v4008_v47  ;;  %v4046_v47 = vld [vmem:[%s5404_s1 + $0x724] ss:$8 sps:$4 sm:$0xff]  }
  0xb7   : > { %2714 = vmatpush1.bf16.msra.mxu1 %v4003_v50  ;;  %v444_v50 = vor.u32 %v443_v60, %v440_v12  ;;  %v4067_v12 = vld [vmem:[%s5404_s1 + $0x364] ss:$8 sps:$4 sm:$0xff]  }
  0xb8   : > { %2958 = vmatpush1.bf16.msra.mxu0 %v4006_v51  ;;  %2715 = vmatprep.subr.bf16.mxu1 %v4011_v15  ;;  %v454_v51 = vor.u32 %v453_v40, %v449_v39  ;;  %v3257_v15 = vcombine.low %v286_v29, %v5015_v30  ;;  %v4064_v29 = vld [vmem:[%s5404_s1 + $0x754] ss:$8 sps:$4 sm:$0xff]   ;;  %v4070_v60 = vld [vmem:[%s5404_s1 + $0x764] ss:$8 sps:$4 sm:$0xff]   ;;  %v4071_v40 = vld [vmem:[%s5404_s1 + $0x370] ss:$8 sps:$4 sm:$0xff]  }
  0xb9   : > { %2959 = vmatprep.subr.bf16.mxu0 %v4014_v20  ;;  %v3265_v20 = vcombine.low %v4906_v38, %v4979_v7  ;;  %v445_v8 = vrot.slane %v444_v50, 4  ;;  %v4085_v50 = vld [vmem:[%s5404_s1 + $0x394] ss:$8 sps:$4 sm:$0xff]  }
  0xba   : > { %v455_v9 = vrot.slane %v454_v51, 4  ;;  %v4088_v51 = vld [vmem:[%s5404_s1 + $0x794] ss:$8 sps:$4 sm:$0xff]  }
  0xbb   : > { %2716 = vmatpush1.bf16.msra.mxu1 %v4009_v53  ;;  %v292_v53 = vsel %vm4603_vm5, %v290_v19, %v291_v42  ;;  %v4074_v42 = vld [vmem:[%s5404_s1 + $0x770] ss:$8 sps:$4 sm:$0xff]  }
  0xbc   : > { %2960 = vmatpush1.bf16.msra.mxu0 %v4012_v54  ;;  %2717 = vmatprep.subr.bf16.mxu1 %v4017_v61  ;;  %v457_v54 = vshll.u32 %v4906_v38, 16  ;;  %v4041_v61 = vld [vmem:[%s5404_s1 + $0x320] ss:$8 sps:$4 sm:$0xff]   ;;  %v3275_v23 = vcombine.low %v292_v53, %v292_v53 }
  0xbd   : > { %2961 = vmatprep.subr.bf16.mxu0 %v4020_v62  ;;  %v4044_v62 = vld [vmem:[%s5404_s1 + $0x720] ss:$8 sps:$4 sm:$0xff]  }
  0xbe   : > { %v5074_v14 = vrot.slane %v457_v54, 5  ;;  %v4094_v54 = vld [vmem:[%s5404_s1 + $0x7a4] ss:$8 sps:$4 sm:$0xff]  }
  0xbf   : > { %2718 = vmatpush1.bf16.msra.mxu1 %v4015_v0  ;;  %v501_v0 = vld [vmem:[%s4364_s13 + $0x10] sm:$0xee] }
  0xc0   : > { %2962 = vmatpush1.bf16.msra.mxu0 %v4018_v1  ;;  %2719 = vmatprep.subr.bf16.mxu1 %v4023_v2  ;;  %v4049_v1 = vld [vmem:[%s5404_s1 + $0x334] ss:$8 sps:$4 sm:$0xff]   ;;  %v5106_v26 = vsel %vm4417_vm2, %v455_v9, %v5074_v14  ;;  %v467_v9 = vshll.u32 %v4979_v7, 16 }
  0xc1   : > { %2963 = vmatprep.subr.bf16.mxu0 %v4026_v3  ;;  %v4052_v2 = vld [vmem:[%s5404_s1 + $0x734] ss:$8 sps:$4 sm:$0xff]   ;;  %v3234_v3 = vrot.slane %v501_v0, 9 }
  0xc2   : > { %v4097_v0 = vld [vmem:[%s5404_s1 + $0x3b4] ss:$8 sps:$4 sm:$0xff]  }
  0xc3   : > { %2720 = vmatpush1.bf16.msra.mxu1 %v4021_v4  ;;  %v3276_v4 = vcombine.high %v292_v53, %v292_v53  ;;  %v5079_v16 = vsel %vm4603_vm5, %v3234_v3, %v4958_v63  ;;  %v4055_v63 = vld [vmem:[%s5404_s1 + $0x344] ss:$8 sps:$4 sm:$0xff]   ;;  %v4098_v3 = vld [vmem:[%s5404_s1 + $0x7b0] ss:$8 sps:$4 sm:$0xff]  }
  0xc4   : > { %2964 = vmatpush1.bf16.msra.mxu0 %v4024_v6  ;;  %2750 = vmatprep.subr.bf16.mxu1 %v4029_v17  ;;  %v3284_v6 = vcombine.high %v4993_v59, %v4993_v59  ;;  %v4047_v17 = vld [vmem:[%s5404_s1 + $0x330] ss:$8 sps:$4 sm:$0xff]   ;;  %v3251_v19 = vcombine.low %v5079_v16, %v5015_v30  ;;  %v3252_v57 = vcombine.high %v5079_v16, %v5015_v30  ;;  %v4091_v53 = vld [vmem:[%s5404_s1 + $0x3a4] ss:$8 sps:$4 sm:$0xff]  }
  0xc5   : > { %2994 = vmatprep.subr.bf16.mxu0 %v4034_v18  ;;  %v4050_v18 = vld [vmem:[%s5404_s1 + $0x730] ss:$8 sps:$4 sm:$0xff]  }
  0xc6   : > { %2722 = vmatmul.mubr.bf16.vlgmr.msra.gmra.mrb[0].mxu1 %v3239_v27  ;;  %v4056_v27 = vld [vmem:[%s5404_s1 + $0x740] ss:$8 sps:$4 sm:$0xff]  }
  0xc7   : > { %2966 = vmatmul.mubr.bf16.vlgmr.msra.gmra.mrb[0].mxu0 %v3247_v25  ;;  %2751 = vmatpush1.bf16.msra.mxu1 %v4027_v24  ;;  %v3283_v24 = vcombine.low %v4993_v59, %v4993_v59  ;;  %v5101_v25 = vsel %vm4417_vm2, %v445_v8, %v449_v39  ;;  %v4073_v39 = vld [vmem:[%s5404_s1 + $0x374] ss:$8 sps:$4 sm:$0xff]   ;;  %v461_v8 = vshrl.u32 %v4906_v38, 16  ;;  %v4147_v38 = vld [vmem:[%s5404_s1 + $0x840] ss:$8 sps:$4 sm:$0xff]  }
  0xc8   : > { %2995 = vmatpush1.bf16.msra.mxu0 %v4032_v28  ;;  %2752 = vmatprep.subr.bf16.mxu1 %v4037_v10  ;;  %v4061_v28 = vld [vmem:[%s5404_s1 + $0x354] ss:$8 sps:$4 sm:$0xff]   ;;  %v3250_v10 = vcombine.high %v5101_v25, %v5106_v26 }
  0xc9   : > { %2996 = vmatprep.subr.bf16.mxu0 %v4040_v55  ;;  %2731 = vmatprep.mubr.bf16.mxu1 %v3258_v36  ;;  %v4062_v55 = vld [vmem:[%s5404_s1 + $0x750] ss:$8 sps:$4 sm:$0xff]   ;;  %v4065_v36 = vld [vmem:[%s5404_s1 + $0x360] ss:$8 sps:$4 sm:$0xff]  }
  0xca   : > { %2975 = vmatprep.mubr.bf16.mxu0 %v3266_v37  ;;  %v4068_v37 = vld [vmem:[%s5404_s1 + $0x760] ss:$8 sps:$4 sm:$0xff]  }
  0xcb   : > { %2753 = vmatpush1.bf16.msra.mxu1 %v4035_v44  ;;  %v4079_v44 = vld [vmem:[%s5404_s1 + $0x384] ss:$8 sps:$4 sm:$0xff]  }
  0xcc   : > { %2997 = vmatpush1.bf16.msra.mxu0 %v4038_v45  ;;  %2754 = vmatprep.subr.bf16.mxu1 %v4043_v46  ;;  %v4082_v45 = vld [vmem:[%s5404_s1 + $0x784] ss:$8 sps:$4 sm:$0xff]   ;;  %v4077_v46 = vld [vmem:[%s5404_s1 + $0x380] ss:$8 sps:$4 sm:$0xff]  }
  0xcd   : > { %2998 = vmatprep.subr.bf16.mxu0 %v4046_v47  ;;  %v4080_v47 = vld [vmem:[%s5404_s1 + $0x780] ss:$8 sps:$4 sm:$0xff]  }
  0xce   : > { %2732 = vmatmul.mubr.bf16.gmra.mrb[4].mxu1 %v3257_v15  ;;  %v4083_v15 = vld [vmem:[%s5404_s1 + $0x390] ss:$8 sps:$4 sm:$0xff]  }
  0xcf   : > { %2976 = vmatmul.mubr.bf16.gmra.mrb[4].mxu0 %v3265_v20  ;;  %2755 = vmatpush1.bf16.msra.mxu1 %v4041_v61  ;;  %v4086_v20 = vld [vmem:[%s5404_s1 + $0x790] ss:$8 sps:$4 sm:$0xff]   ;;  %v4089_v61 = vld [vmem:[%s5404_s1 + $0x3a0] ss:$8 sps:$4 sm:$0xff]  }
  0xd0   : > { %2999 = vmatpush1.bf16.msra.mxu0 %v4044_v62  ;;  %2756 = vmatprep.subr.bf16.mxu1 %v4049_v1  ;;  %v4092_v62 = vld [vmem:[%s5404_s1 + $0x7a0] ss:$8 sps:$4 sm:$0xff]   ;;  %v4100_v1 = vld [vmem:[%s5404_s1 + $0x7b4] ss:$8 sps:$4 sm:$0xff]  }
  0xd1   : > { %3000 = vmatprep.subr.bf16.mxu0 %v4052_v2  ;;  %2741 = vmatprep.mubr.bf16.mxu1 %v3276_v4  ;;  %v4095_v2 = vld [vmem:[%s5404_s1 + $0x3b0] ss:$8 sps:$4 sm:$0xff]   ;;  %v4104_v4 = vld [vmem:[%s5404_s1 + $0x3c4] ss:$8 sps:$4 sm:$0xff]  }
  0xd2   : > { %2985 = vmatprep.mubr.bf16.mxu0 %v3284_v6  ;;  %v4108_v6 = vld [vmem:[%s5404_s1 + $0x7c4] ss:$8 sps:$4 sm:$0xff]  }
  0xd3   : > { %2757 = vmatpush1.bf16.msra.mxu1 %v4047_v17  ;;  %v471_v17 = vshrl.u32 %v4979_v7, 16 }
  0xd4   : > { %3001 = vmatpush1.bf16.msra.mxu0 %v4050_v18  ;;  %2758 = vmatprep.subr.bf16.mxu1 %v4055_v63  ;;  %v4102_v18 = vld [vmem:[%s5404_s1 + $0x3c0] ss:$8 sps:$4 sm:$0xff]  }
  0xd5   : > { %3002 = vmatprep.subr.bf16.mxu0 %v4058_v22  ;;  %v4106_v63 = vld [vmem:[%s5404_s1 + $0x7c0] ss:$8 sps:$4 sm:$0xff]   ;;  %v4111_v22 = vld [vmem:[%s5404_s1 + $0x3d4] ss:$8 sps:$4 sm:$0xff]  }
  0xd6   : > { %2742 = vmatmul.mubr.bf16.gmra.mrb[8].mxu1 %v3275_v23  ;;  %v4114_v23 = vld [vmem:[%s5404_s1 + $0x7d4] ss:$8 sps:$4 sm:$0xff]  }
  0xd7   : > { %2986 = vmatmul.mubr.bf16.gmra.mrb[8].mxu0 %v3283_v24  ;;  %2759 = vmatpush1.bf16.msra.mxu1 %v4053_v56  ;;  %v463_v24 = vrot.slane %v461_v8, 4  ;;  %v469_v56 = vrot.slane %v467_v9, 5  ;;  %v4149_v8 = vld [vmem:[%s5404_s1 + $0x844] ss:$8 sps:$4 sm:$0xff]   ;;  %v3277_v9 = vcombine.low %v4979_v7, %v4979_v7 }
  0xd8   : > { %3003 = vmatpush1.bf16.msra.mxu0 %v4056_v27  ;;  %2760 = vmatprep.subr.bf16.mxu1 %v4061_v28  ;;  %v473_v27 = vrot.slane %v471_v17, 4  ;;  %v4109_v28 = vld [vmem:[%s5404_s1 + $0x3d0] ss:$8 sps:$4 sm:$0xff]   ;;  %v4155_v17 = vld [vmem:[%s5404_s1 + $0x864] ss:$8 sps:$4 sm:$0xff]  }
  0xd9   : > { %3004 = vmatprep.subr.bf16.mxu0 %v4064_v29  ;;  %2782 = vmatprep.mubr.bf16.mxu1 %v3242_v52  ;;  %v4076_v52 = vld [vmem:[%s5404_s1 + $0x774] ss:$8 sps:$4 sm:$0xff]   ;;  %v4112_v29 = vld [vmem:[%s5404_s1 + $0x7d0] ss:$8 sps:$4 sm:$0xff]  }
  0xda   : > { %3026 = vmatprep.mubr.bf16.mxu0 %v3250_v10  ;;  %v4118_v10 = vld [vmem:[%s5404_s1 + $0x3e4] ss:$8 sps:$4 sm:$0xff]  }
  0xdb   : > { %2761 = vmatpush1.bf16.msra.mxu1 %v4059_v11  ;;  %v4122_v11 = vld [vmem:[%s5404_s1 + $0x7e4] ss:$8 sps:$4 sm:$0xff]  }
  0xdc   : > { %3005 = vmatpush1.bf16.msra.mxu0 %v4062_v55  ;;  %2762 = vmatprep.subr.bf16.mxu1 %v4067_v12  ;;  %v464_v55 = vor.u32 %v463_v24, %v5074_v14  ;;  %v474_v12 = vor.u32 %v473_v27, %v469_v56  ;;  %v4125_v14 = vld [vmem:[%s5404_s1 + $0x3f4] ss:$8 sps:$4 sm:$0xff]   ;;  %v4162_v24 = vld [vmem:[%s5404_s1 + $0x890] ss:$8 sps:$4 sm:$0xff]   ;;  %v4165_v27 = vld [vmem:[%s5404_s1 + $0x8a0] ss:$8 sps:$4 sm:$0xff]  }
  0xdd   : > { %3006 = vmatprep.subr.bf16.mxu0 %v4070_v60  ;;  %v477_v60 = vshll.u32 %v4993_v59, 16 }
  0xdf   : > { %2763 = vmatpush1.bf16.msra.mxu1 %v4065_v36  ;;  %v481_v36 = vshrl.u32 %v4993_v59, 16 }
  0xe0   : > { %3007 = vmatpush1.bf16.msra.mxu0 %v4068_v37  ;;  %2764 = vmatprep.subr.bf16.mxu1 %v4073_v39  ;;  %v4116_v37 = vld [vmem:[%s5404_s1 + $0x3e0] ss:$8 sps:$4 sm:$0xff]  }
  0xe1   : > { %3008 = vmatprep.subr.bf16.mxu0 %v4076_v52  ;;  %v4120_v39 = vld [vmem:[%s5404_s1 + $0x7e0] ss:$8 sps:$4 sm:$0xff]   ;;  %v4128_v52 = vld [vmem:[%s5404_s1 + $0x7f4] ss:$8 sps:$4 sm:$0xff]  }
  0xe3   : > { %2765 = vmatpush1.bf16.msra.mxu1 %v4071_v40  ;;  %v465_v40 = vrot.slane %v464_v55, 4  ;;  %v4176_v55 = vld [vmem:[%s5404_s1 + $0x8d4] ss:$8 sps:$4 sm:$0xff]  }
  0xe4   : > { %3009 = vmatpush1.bf16.msra.mxu0 %v4074_v42  ;;  %2766 = vmatprep.subr.bf16.mxu1 %v4079_v44  ;;  %v475_v42 = vrot.slane %v474_v12, 4  ;;  %v479_v44 = vrot.slane %v477_v60, 5  ;;  %v4174_v12 = vld [vmem:[%s5404_s1 + $0x8d0] ss:$8 sps:$4 sm:$0xff]   ;;  %v4179_v60 = vld [vmem:[%s5404_s1 + $0x8e4] ss:$8 sps:$4 sm:$0xff]  }
  0xe5   : > { %3010 = vmatprep.subr.bf16.mxu0 %v4082_v45  ;;  %v483_v45 = vrot.slane %v481_v36, 4  ;;  %v506_v36 = vld [vmem:[%s4364_s13 + $0x38] sm:$0x11] }
  0xe7   : > { %2767 = vmatpush1.bf16.msra.mxu1 %v4077_v46  ;;  %v4123_v46 = vld [vmem:[%s5404_s1 + $0x3f0] ss:$8 sps:$4 sm:$0xff]  }
  0xe8   : > { %3011 = vmatpush1.bf16.msra.mxu0 %v4080_v47  ;;  %2768 = vmatprep.subr.bf16.mxu1 %v4085_v50  ;;  %v4126_v47 = vld [vmem:[%s5404_s1 + $0x7f0] ss:$8 sps:$4 sm:$0xff]  }
  0xe9   : > { %3012 = vmatprep.subr.bf16.mxu0 %v4088_v51  ;;  %v436_v50 = vld [vmem:[%s4364_s13 + $0x38] sm:$0x11]  ;;  %v4133_v51 = vld [vmem:[%s5404_s1 + $0x804] ss:$8 sps:$4 sm:$0xff]  }
  0xeb   : > { %2769 = vmatpush1.bf16.msra.mxu1 %v4083_v15  ;;  %v3249_v15 = vcombine.low %v5101_v25, %v5106_v26  ;;  %v4136_v25 = vld [vmem:[%s5404_s1 + $0x814] ss:$8 sps:$4 sm:$0xff]  }
  0xec   : > { %3013 = vmatpush1.bf16.msra.mxu0 %v4086_v20  ;;  %2770 = vmatprep.subr.bf16.mxu1 %v4091_v53  ;;  %v470_v20 = vsel %vm4417_vm2, %v465_v40, %v469_v56  ;;  %v480_v53 = vsel %vm4417_vm2, %v475_v42, %v479_v44  ;;  %v4167_v56 = vld [vmem:[%s5404_s1 + $0x8a4] ss:$8 sps:$4 sm:$0xff]   ;;  %v4180_v40 = vld [vmem:[%s5404_s1 + $0x8f0] ss:$8 sps:$4 sm:$0xff]  }
  0xed   : > { %3014 = vmatprep.subr.bf16.mxu0 %v4094_v54  ;;  %v484_v54 = vor.u32 %v483_v45, %v479_v44  ;;  %v3268_v26 = vcombine.high %v470_v20, %v480_v53  ;;  %v3267_v48 = vcombine.low %v470_v20, %v480_v53 }
  0xef   : > { %2771 = vmatpush1.bf16.msra.mxu1 %v4089_v61  ;;  %v487_v61 = vshll.u32 %v436_v50, 16 }
  0xf0   : > { %3015 = vmatpush1.bf16.msra.mxu0 %v4092_v62  ;;  %2772 = vmatprep.subr.bf16.mxu1 %v4097_v0  ;;  %v4131_v62 = vld [vmem:[%s5404_s1 + $0x800] ss:$8 sps:$4 sm:$0xff]   ;;  %v485_v0 = vrot.slane %v484_v54, 4 }
  0xf1   : > { %3016 = vmatprep.subr.bf16.mxu0 %v4100_v1  ;;  %v489_v1 = vrot.slane %v487_v61, 5 }
  0xf3   : > { %2773 = vmatpush1.bf16.msra.mxu1 %v4095_v2  ;;  %v4134_v2 = vld [vmem:[%s5404_s1 + $0x810] ss:$8 sps:$4 sm:$0xff]   ;;  %v490_v49 = vsel %vm4417_vm2, %v485_v0, %v489_v1 }
  0xf4   : > { %3017 = vmatpush1.bf16.msra.mxu0 %v4098_v3  ;;  %2774 = vmatprep.subr.bf16.mxu1 %v4104_v4  ;;  %v4141_v3 = vld [vmem:[%s5404_s1 + $0x824] ss:$8 sps:$4 sm:$0xff]   ;;  %v4144_v4 = vld [vmem:[%s5404_s1 + $0x834] ss:$8 sps:$4 sm:$0xff]   ;;  %v3285_v13 = vcombine.low %v490_v49, %v490_v49 }
  0xf5   : > { %3018 = vmatprep.subr.bf16.mxu0 %v4108_v6  ;;  %v3286_v6 = vcombine.high %v490_v49, %v490_v49 }
  0xf7   : > { %2775 = vmatpush1.bf16.msra.mxu1 %v4102_v18  ;;  %v4153_v18 = vld [vmem:[%s5404_s1 + $0x860] ss:$8 sps:$4 sm:$0xff]  }
  0xf8   : > { %3019 = vmatpush1.bf16.msra.mxu0 %v4106_v63  ;;  %2776 = vmatprep.subr.bf16.mxu1 %v4111_v22  ;;  %v4158_v63 = vld [vmem:[%s5404_s1 + $0x874] ss:$8 sps:$4 sm:$0xff]   ;;  %v4159_v22 = vld [vmem:[%s5404_s1 + $0x880] ss:$8 sps:$4 sm:$0xff]  }
  0xf9   : > { %3020 = vmatprep.subr.bf16.mxu0 %v4114_v23  ;;  %v4164_v23 = vld [vmem:[%s5404_s1 + $0x894] ss:$8 sps:$4 sm:$0xff]  }
  0xfb   : > { %2777 = vmatpush1.bf16.msra.mxu1 %v4109_v28  ;;  %v4170_v28 = vld [vmem:[%s5404_s1 + $0x8b4] ss:$8 sps:$4 sm:$0xff]  }
  0xfc   : > { %3021 = vmatpush1.bf16.msra.mxu0 %v4112_v29  ;;  %2778 = vmatprep.subr.bf16.mxu1 %v4118_v10  ;;  %v4168_v29 = vld [vmem:[%s5404_s1 + $0x8b0] ss:$8 sps:$4 sm:$0xff]   ;;  %v4173_v10 = vld [vmem:[%s5404_s1 + $0x8c4] ss:$8 sps:$4 sm:$0xff]  }
  0xfd   : > { %3022 = vmatprep.subr.bf16.mxu0 %v4122_v11  ;;  %v4171_v11 = vld [vmem:[%s5404_s1 + $0x8c0] ss:$8 sps:$4 sm:$0xff]  }
  0xff   : > { %2779 = vmatpush1.bf16.msra.mxu1 %v4116_v37  ;;  %v4177_v37 = vld [vmem:[%s5404_s1 + $0x8e0] ss:$8 sps:$4 sm:$0xff]  }
 0x100   : > { %3023 = vmatpush1.bf16.msra.mxu0 %v4120_v39  ;;  %2780 = vmatprep.subr.bf16.mxu1 %v4125_v14  ;;  %v4182_v39 = vld [vmem:[%s5404_s1 + $0x8f4] ss:$8 sps:$4 sm:$0xff]   ;;  %v526_v14 = vrot.slane %v524_v58, 4  ;;  %v874_v58 = vlaneseq }
 0x101   : > { %3024 = vmatprep.subr.bf16.mxu0 %v4128_v52  ;;  %v527_v52 = vrot.slane %v506_v36, 5 }
 0x102   : > { %v875_v45 = vshrl.u32 %v874_v58, 7 }
 0x103   : > { %2781 = vmatpush1.bf16.msra.mxu1 %v4123_v46  ;;  %v528_v42 = vsel %vm4603_vm5, %v526_v14, %v527_v52 }
 0x104   : > { %3025 = vmatpush1.bf16.msra.mxu0 %v4126_v47  ;;  %3591 = vmatprep.subr.bf16.mxu1 %v4133_v51  ;;  %v3288_v44 = vcombine.high %v528_v42, %v528_v42  ;;  %v3287_v59 = vcombine.low %v528_v42, %v528_v42  ;;  %v876_v50 = vsub.s32 0, %v875_v45  ;;  %v880_v30 = vsub.s32 1, %v875_v45 }
 0x105   : > { %3055 = vmatprep.subr.bf16.mxu0 %v4133_v51 }
 0x106   : > { %2783 = vmatmul.mubr.bf16.vlgmr.msra.gmra.mrb[0].mxu1 %v3241_v21  ;;  %v4139_v21 = vld [vmem:[%s5404_s1 + $0x820] ss:$8 sps:$4 sm:$0xff]  }
 0x107   : > { %3027 = vmatmul.mubr.bf16.vlgmr.msra.gmra.mrb[0].mxu0 %v3249_v15  ;;  %3607 = vmatpush1.bf16.msra.mxu1 %v4131_v62  ;;  %v872_v15 = vld [vmem:[%s5405_s2] sm:$0x3] }
 0x108   : > { %3056 = vmatpush1.bf16.msra.mxu0 %v4131_v62  ;;  %3592 = vmatprep.subr.bf16.mxu1 %v4136_v25  ;;  %v877_v16 = vrot.slane %v872_v15, %v876_v50 }
 0x109   : > { %3057 = vmatprep.subr.bf16.mxu0 %v4136_v25  ;;  %2792 = vmatprep.mubr.bf16.mxu1 %v3260_v41  ;;  %v3278_v41 = vcombine.high %v4979_v7, %v4979_v7  ;;  %v4150_v7 = vld [vmem:[%s5404_s1 + $0x850] ss:$8 sps:$4 sm:$0xff]  }
 0x10a   : > { %3036 = vmatprep.mubr.bf16.mxu0 %v3268_v26 }
 0x10b   : > { %3608 = vmatpush1.bf16.msra.mxu1 %v4134_v2 }
 0x10c   : > { %3058 = vmatpush1.bf16.msra.mxu0 %v4134_v2  ;;  %3593 = vmatprep.subr.bf16.mxu1 %v4141_v3 }
 0x10d   : > { %3059 = vmatprep.subr.bf16.mxu0 %v4141_v3 }
 0x10e   : > { %2793 = vmatmul.mubr.bf16.gmra.mrb[4].mxu1 %v3259_v43  ;;  %v4152_v43 = vld [vmem:[%s5404_s1 + $0x854] ss:$8 sps:$4 sm:$0xff]  }
 0x10f   : > { %3037 = vmatmul.mubr.bf16.gmra.mrb[4].mxu0 %v3267_v48  ;;  %3609 = vmatpush1.bf16.msra.mxu1 %v4139_v21 }
 0x110   : > { %3060 = vmatpush1.bf16.msra.mxu0 %v4139_v21  ;;  %3594 = vmatprep.subr.bf16.mxu1 %v4144_v4 }
 0x111   : > { %3061 = vmatprep.subr.bf16.mxu0 %v4144_v4  ;;  %2802 = vmatprep.mubr.bf16.mxu1 %v3278_v41 }
 0x112   : > { %3046 = vmatprep.mubr.bf16.mxu0 %v3286_v6 }
 0x113   : > { %3610 = vmatpush1.bf16.msra.mxu1 %v4142_v5 }
 0x114   : > { %3062 = vmatpush1.bf16.msra.mxu0 %v4142_v5  ;;  %3595 = vmatprep.subr.bf16.mxu1 %v4149_v8 }
 0x115   : > { %3063 = vmatprep.subr.bf16.mxu0 %v4149_v8 }
 0x116   : > { %2803 = vmatmul.mubr.bf16.gmra.mrb[8].mxu1 %v3277_v9 }
 0x117   : > { %3047 = vmatmul.mubr.bf16.gmra.mrb[8].mxu0 %v3285_v13  ;;  %3611 = vmatpush1.bf16.msra.mxu1 %v4147_v38 }
 0x118   : > { %3064 = vmatpush1.bf16.msra.mxu0 %v4147_v38  ;;  %3596 = vmatprep.subr.bf16.mxu1 %v4152_v43 }
 0x119   : > { %3065 = vmatprep.subr.bf16.mxu0 %v4152_v43  ;;  %3087 = vmatprep.mubr.bf16.mxu0 %v3252_v57  ;;  %v4156_v57 = vld [vmem:[%s5404_s1 + $0x870] ss:$8 sps:$4 sm:$0xff]  }
 0x11a   : > { %3097 = vmatprep.mubr.bf16.mxu1 %v3270_v35  ;;  %v4161_v35 = vld [vmem:[%s5404_s1 + $0x884] ss:$8 sps:$4 sm:$0xff]  }
 0x11b   : > { %3612 = vmatpush1.bf16.msra.mxu1 %v4150_v7 }
 0x11c   : > { %3066 = vmatpush1.bf16.msra.mxu0 %v4150_v7  ;;  %3597 = vmatprep.subr.bf16.mxu1 %v4155_v17 }
 0x11d   : > { %3067 = vmatprep.subr.bf16.mxu0 %v4155_v17 }
 0x11f   : > { %3613 = vmatpush1.bf16.msra.mxu1 %v4153_v18 }
 0x120   : > { %3068 = vmatpush1.bf16.msra.mxu0 %v4153_v18  ;;  %3598 = vmatprep.subr.bf16.mxu1 %v4158_v63 }
 0x121   : > { %3069 = vmatprep.subr.bf16.mxu0 %v4158_v63 }
 0x123   : > { %3614 = vmatpush1.bf16.msra.mxu1 %v4156_v57 }
 0x124   : > { %3070 = vmatpush1.bf16.msra.mxu0 %v4156_v57  ;;  %3599 = vmatprep.subr.bf16.mxu1 %v4161_v35 }
 0x125   : > { %3071 = vmatprep.subr.bf16.mxu0 %v4161_v35 }
 0x127   : > { %3615 = vmatpush1.bf16.msra.mxu1 %v4159_v22 }
 0x128   : > { %3072 = vmatpush1.bf16.msra.mxu0 %v4159_v22  ;;  %3600 = vmatprep.subr.bf16.mxu1 %v4164_v23 }
 0x129   : > { %3073 = vmatprep.subr.bf16.mxu0 %v4164_v23 }
 0x12b   : > { %3616 = vmatpush1.bf16.msra.mxu1 %v4162_v24 }
 0x12c   : > { %3074 = vmatpush1.bf16.msra.mxu0 %v4162_v24  ;;  %3601 = vmatprep.subr.bf16.mxu1 %v4167_v56 }
 0x12d   : > { %3075 = vmatprep.subr.bf16.mxu0 %v4167_v56 }
 0x12f   : > { %3617 = vmatpush1.bf16.msra.mxu1 %v4165_v27 }
 0x130   : > { %3076 = vmatpush1.bf16.msra.mxu0 %v4165_v27  ;;  %3602 = vmatprep.subr.bf16.mxu1 %v4170_v28 }
 0x131   : > { %3077 = vmatprep.subr.bf16.mxu0 %v4170_v28 }
 0x133   : > { %3618 = vmatpush1.bf16.msra.mxu1 %v4168_v29 }
 0x134   : > { %3078 = vmatpush1.bf16.msra.mxu0 %v4168_v29  ;;  %3603 = vmatprep.subr.bf16.mxu1 %v4173_v10 }
 0x135   : > { %3079 = vmatprep.subr.bf16.mxu0 %v4173_v10 }
 0x137   : > { %3619 = vmatpush1.bf16.msra.mxu1 %v4171_v11 }
 0x138   : > { %3080 = vmatpush1.bf16.msra.mxu0 %v4171_v11  ;;  %3604 = vmatprep.subr.bf16.mxu1 %v4176_v55 }
 0x139   : > { %3081 = vmatprep.subr.bf16.mxu0 %v4176_v55 }
 0x13b   : > { %3620 = vmatpush1.bf16.msra.mxu1 %v4174_v12 }
 0x13c   : > { %3082 = vmatpush1.bf16.msra.mxu0 %v4174_v12  ;;  %3605 = vmatprep.subr.bf16.mxu1 %v4179_v60 }
 0x13d   : > { %3083 = vmatprep.subr.bf16.mxu0 %v4179_v60 }
 0x13f   : > { %3621 = vmatpush1.bf16.msra.mxu1 %v4177_v37 }
 0x140   : > { %3084 = vmatpush1.bf16.msra.mxu0 %v4177_v37  ;;  %3606 = vmatprep.subr.bf16.mxu1 %v4182_v39 }
 0x141   : > { %3085 = vmatprep.subr.bf16.mxu0 %v4182_v39 }
 0x143   : > { %3622 = vmatpush1.bf16.msra.mxu1 %v4180_v40 }
 0x144   : > { %3086 = vmatpush1.bf16.msra.mxu0 %v4180_v40 }
 0x146   : > { %3098 = vmatmul.mubr.bf16.vlgmr.msra.gmra.mrb[12].mxu1 %v3269_v33 }
 0x147   : > { %3088 = vmatmul.mubr.bf16.vlgmr.msra.gmra.mrb[0].mxu0 %v3251_v19  ;;  %3107 = vmatprep.mubr.bf16.mxu1 %v3288_v44  ;;  %v881_v19 = vrot.slane %v872_v15, %v880_v30 }
 0x14e   : > { %3108 = vmatmul.mubr.bf16.gmra.mrb[16].mxu1 %v3287_v59 }
 0x1d9   : > { %v2784_v46 = vpop.f32.mrb[0].mxu1 }
 0x1da   : > { %v2786_v47 = vpop.f32.mrb[1].mxu1  ;;  %v3623_v18 = vadd.f32 %v2784_v46, %v877_v16 }
 0x1db   : > { %v2788_v34 = vpop.f32.mrb[2].mxu1  ;;  %v3625_v63 = vadd.f32 %v2786_v47, %v881_v19 }
 0x1dc   : > { %v2790_v51 = vpop.f32.mrb[3].mxu1  ;;  %v3627_v22 = vadd.f32 %v2788_v34, %v877_v16 }
 0x1dd   : > { %v3629_v28 = vadd.f32 %v2790_v51, %v881_v19 }
 0x1e1   : > { %v2794_v20 = vpop.f32.mrb[4].mxu1 }
 0x1e2   : > { %v3038_v31 = vpop.f32.mrb[4].mxu0  ;;  %v3631_v32 = vadd.f32 %v2794_v20, %v877_v16  ;;  %v2796_v33 = vpop.f32.mrb[5].mxu1 }
 0x1e3   : > { %v3040_v53 = vpop.f32.mrb[5].mxu0  ;;  %v3634_v54 = vadd.f32 %v2796_v33, %v881_v19  ;;  %v2798_v61 = vpop.f32.mrb[6].mxu1 }
 0x1e4   : > { %v3042_v62 = vpop.f32.mrb[6].mxu0  ;;  %v3632_v25 = vadd.f32 %v3631_v32, %v3038_v31  ;;  %v3637_v26 = vadd.f32 %v2798_v61, %v877_v16  ;;  %v2800_v0 = vpop.f32.mrb[7].mxu1 }
 0x1e5   : > { %v3044_v1 = vpop.f32.mrb[7].mxu0  ;;  %v3635_v2 = vadd.f32 %v3634_v54, %v3040_v53  ;;  %v3640_v3 = vadd.f32 %v2800_v0, %v881_v19 }
 0x1e6   : > { %v3638_v48 = vadd.f32 %v3637_v26, %v3042_v62 }
 0x1e7   : > { %v3641_v49 = vadd.f32 %v3640_v3, %v3044_v1 }
 0x1e9   : > { %v2804_v21 = vpop.f32.mrb[8].mxu1 }
 0x1ea   : > { %v3048_v4 = vpop.f32.mrb[8].mxu0  ;;  %v3643_v41 = vadd.f32 %v2804_v21, %v877_v16  ;;  %v2806_v6 = vpop.f32.mrb[9].mxu1 }
 0x1eb   : > { %v3050_v5 = vpop.f32.mrb[9].mxu0  ;;  %v3646_v8 = vadd.f32 %v2806_v6, %v881_v19  ;;  %v2808_v9 = vpop.f32.mrb[10].mxu1 }
 0x1ec   : > { %v3052_v13 = vpop.f32.mrb[10].mxu0  ;;  %v3644_v38 = vadd.f32 %v3643_v41, %v3048_v4  ;;  %v2809_v43 = vpop.f32.mrb[11].mxu1 }
 0x1ed   : > { %v3053_v7 = vpop.f32.mrb[11].mxu0  ;;  %v3647_v17 = vadd.f32 %v3646_v8, %v3050_v5 }
 0x219   : > { %v3099_v35 = vpop.f32.mrb[12].mxu1 }
 0x21a   : > { %v3089_v57 = vpop.f32.mrb[0].mxu0  ;;  %v3633_v24 = vadd.f32 %v3632_v25, %v3099_v35  ;;  %v3101_v27 = vpop.f32.mrb[13].mxu1 }
 0x21b   : > { %v3624_v23 = vadd.f32 %v3623_v18, %v3089_v57  ;;  %v3091_v56 = vpop.f32.mrb[1].mxu0  ;;  %v3636_v10 = vadd.f32 %v3635_v2, %v3101_v27  ;;  %v3103_v55 = vpop.f32.mrb[14].mxu1 }
 0x21c   : > { %v3626_v29 = vadd.f32 %v3625_v63, %v3091_v56  ;;  %v3093_v11 = vpop.f32.mrb[2].mxu0  ;;  %v3120_v60 = vmax.f32 %v3633_v24, 0.0  ;;  %v3639_v37 = vadd.f32 %v3638_v48, %v3103_v55  ;;  %v3105_v14 = vpop.f32.mrb[15].mxu1 }
 0x21d   : > { %v3116_v12 = vmax.f32 %v3624_v23, 0.0  ;;  %v3628_v36 = vadd.f32 %v3627_v22, %v3093_v11  ;;  %v3095_v39 = vpop.f32.mrb[3].mxu0  ;;  %v3121_v40 = vmax.f32 %v3636_v10, 0.0  ;;  %v3642_v44 = vadd.f32 %v3641_v49, %v3105_v14 }
 0x21e   : > { %v3117_v52 = vmax.f32 %v3626_v29, 0.0  ;;  %v3630_v42 = vadd.f32 %v3629_v28, %v3095_v39  ;;  %v3122_v58 = vmax.f32 %v3639_v37, 0.0 }
 0x21f   : > { %v3118_v59 = vmax.f32 %v3628_v36, 0.0  ;;  %v3588_v46 = vpack.c.bf16 %v3121_v40, %v3120_v60  ;;  %v3123_v34 = vmax.f32 %v3642_v44, 0.0 }
 0x220   : > { %v3586_v45 = vpack.c.bf16 %v3117_v52, %v3116_v12  ;;  %v3119_v47 = vmax.f32 %v3630_v42, 0.0 }
 0x221   : > { %3160 = vst [vmem:[%s177_s14 + $0x10] sm:$0xff] %v3588_v46  ;;  %v3589_v51 = vpack.c.bf16 %v3123_v34, %v3122_v58  ;;  %v3109_v15 = vpop.f32.mrb[16].mxu1 }
 0x222   : > { %3158 = vst [vmem:[%s177_s14] sm:$0xff] %v3586_v45  ;;  %v3587_v50 = vpack.c.bf16 %v3119_v47, %v3118_v59  ;;  %v3645_v30 = vadd.f32 %v3644_v38, %v3109_v15  ;;  %v3111_v16 = vpop.f32.mrb[17].mxu1 }
 0x223   : > { %3161 = vst [vmem:[%s177_s14 + $0x18] sm:$0xff] %v3589_v51  ;;  %v3648_v19 = vadd.f32 %v3647_v17, %v3111_v16  ;;  %v3113_v20 = vpop.f32.mrb[18].mxu1 }
 0x224   : > { %3159 = vst [vmem:[%s177_s14 + $0x8] sm:$0xff] %v3587_v50  ;;  %v3124_v31 = vmax.f32 %v3645_v30, 0.0  ;;  %v3114_v32 = vpop.f32.mrb[19].mxu1 }
 0x225   : > { %v3125_v33 = vmax.f32 %v3648_v19, 0.0 }
 0x227   : > { %v3590_v53 = vpack.c.bf16 %v3125_v33, %v3124_v31 }
 0x229   : > { %3162 = vst [vmem:[%s177_s14 + $0x20] sm:$0xff] %v3590_v53 }
 0x22a PF: > { %s13_s12 = sadd.s32 1, %s4189_s12  }
 0x22b   : > { %p10_p4 = scmp.ge.s32.totalorder %s13_s12, 4  }
 0x22d   :  { %12 = sbr.rel (!%p10_p4) target bundleno = 1 (0x1), region = 62 }

// kernel: alexnet_forward.8
= control target key start
LH: loop header
LB: loop body
LE: loop exit
PB: predicated region body
PF: predicated region fallthrough
CT: control target
= control target key end

     0   :  { %s3777_s12 = smov 0   ;;  %s4814_s0 = inlined_call_operand.vmem [shape: bf16[320,128], index: 0, kind: input, shape index: {}]   ;;  %s4815_s1 = inlined_call_operand.vmem [shape: bf16[1152,256], index: 1, kind: input, shape index: {}]   ;;  %s4816_s2 = inlined_call_operand.vmem [shape: f32[1,256], index: 2, kind: input, shape index: {}]   ;;  %s4817_s3 = inlined_call_operand.vmem [shape: bf16[320,256], index: 3, kind: output, shape index: {}]  }
   0x1 LB: > { %s2996_s13 = sadd.s32 4294967295, %s3754_s12   ;;  %p3000_p0 = scmp.ge.s32.totalorder %s3754_s12, 1  ;;  %s3754_s12 = sphi %s3777_s12, %s13_s12  }
   0x2   : > { %p138_p1 = scmp.lt.s32.totalorder %s3754_s12, 3 }
   0x4   : > { %p139_p2 = pnand %p3000_p0, %p138_p1 }
   0x5   : > { %v3416_v0 = vld [vmem:[%s4815_s1 + $0x4] ss:$8 sps:$4 sm:$0xff] (!%p139_p2)   ;;  %v3420_v2 = vld [vmem:[%s4815_s1] ss:$8 sps:$4 sm:$0xff] (!%p139_p2)   ;;  %v3422_v4 = vld [vmem:[%s4815_s1 + $0x14] ss:$8 sps:$4 sm:$0xff] (!%p139_p2)  }
   0x6   : > { %142 = sbr.rel (%p139_p2) target bundleno = 470 (0x1d6), region = 32  ;;  %v3418_v1 = vld [vmem:[%s4815_s1 + $0x204] ss:$8 sps:$4 sm:$0xff] (!%p139_p2)   ;;  %2314 = vmatprep.subr.bf16.mxu1 (!%p139_p2), %v3416_v0  ;;  %v3421_v3 = vld [vmem:[%s4815_s1 + $0x200] ss:$8 sps:$4 sm:$0xff] (!%p139_p2)   ;;  %vm408_vm2 = vcmask (!%p139_p2), 1042432  }
   0x7   : > { %2516 = vmatprep.subr.bf16.mxu0 (!%p139_p2), %v3418_v1  ;;  %2315 = vmatpush1.bf16.msra.mxu1 (!%p139_p2), %v3420_v2  ;;  %v3424_v5 = vld [vmem:[%s4815_s1 + $0x214] ss:$8 sps:$4 sm:$0xff] (!%p139_p2)   ;;  %v3426_v6 = vld [vmem:[%s4815_s1 + $0x10] ss:$8 sps:$4 sm:$0xff] (!%p139_p2)   ;;  %v3428_v8 = vld [vmem:[%s4815_s1 + $0x24] ss:$8 sps:$4 sm:$0xff] (!%p139_p2)  }
   0x8   : > { %2517 = vmatpush1.bf16.msra.mxu0 (!%p139_p2), %v3421_v3  ;;  %2316 = vmatprep.subr.bf16.mxu1 (!%p139_p2), %v3422_v4  ;;  %v3427_v7 = vld [vmem:[%s4815_s1 + $0x210] ss:$8 sps:$4 sm:$0xff] (!%p139_p2)   ;;  %v3430_v9 = vld [vmem:[%s4815_s1 + $0x224] ss:$8 sps:$4 sm:$0xff] (!%p139_p2)   ;;  %v3432_v10 = vld [vmem:[%s4815_s1 + $0x20] ss:$8 sps:$4 sm:$0xff] (!%p139_p2)  }
   0x9   : > { %2518 = vmatprep.subr.bf16.mxu0 (!%p139_p2), %v3424_v5  ;;  %v3433_v11 = vld [vmem:[%s4815_s1 + $0x220] ss:$8 sps:$4 sm:$0xff] (!%p139_p2)   ;;  %v3434_v12 = vld [vmem:[%s4815_s1 + $0x34] ss:$8 sps:$4 sm:$0xff] (!%p139_p2)   ;;  %v3438_v14 = vld [vmem:[%s4815_s1 + $0x30] ss:$8 sps:$4 sm:$0xff] (!%p139_p2)  }
   0xa   : > { %v3436_v13 = vld [vmem:[%s4815_s1 + $0x234] ss:$8 sps:$4 sm:$0xff] (!%p139_p2)   ;;  %v3439_v15 = vld [vmem:[%s4815_s1 + $0x230] ss:$8 sps:$4 sm:$0xff] (!%p139_p2)   ;;  %v3440_v16 = vld [vmem:[%s4815_s1 + $0x44] ss:$8 sps:$4 sm:$0xff] (!%p139_p2)  }
   0xb   : > { %2317 = vmatpush1.bf16.msra.mxu1 (!%p139_p2), %v3426_v6  ;;  %v3442_v17 = vld [vmem:[%s4815_s1 + $0x244] ss:$8 sps:$4 sm:$0xff] (!%p139_p2)   ;;  %v3444_v18 = vld [vmem:[%s4815_s1 + $0x40] ss:$8 sps:$4 sm:$0xff] (!%p139_p2)   ;;  %v3446_v20 = vld [vmem:[%s4815_s1 + $0x54] ss:$8 sps:$4 sm:$0xff] (!%p139_p2)  }
   0xc   : > { %2519 = vmatpush1.bf16.msra.mxu0 (!%p139_p2), %v3427_v7  ;;  %2318 = vmatprep.subr.bf16.mxu1 (!%p139_p2), %v3428_v8  ;;  %v3445_v19 = vld [vmem:[%s4815_s1 + $0x240] ss:$8 sps:$4 sm:$0xff] (!%p139_p2)   ;;  %v3448_v21 = vld [vmem:[%s4815_s1 + $0x254] ss:$8 sps:$4 sm:$0xff] (!%p139_p2)   ;;  %v3450_v22 = vld [vmem:[%s4815_s1 + $0x50] ss:$8 sps:$4 sm:$0xff] (!%p139_p2)  }
   0xd   : > { %2520 = vmatprep.subr.bf16.mxu0 %v3430_v9  ;;  %v3451_v23 = vld [vmem:[%s4815_s1 + $0x250] ss:$8 sps:$4 sm:$0xff]   ;;  %v3452_v24 = vld [vmem:[%s4815_s1 + $0x64] ss:$8 sps:$4 sm:$0xff]   ;;  %v3456_v26 = vld [vmem:[%s4815_s1 + $0x60] ss:$8 sps:$4 sm:$0xff]  }
   0xe   : > { %v3454_v25 = vld [vmem:[%s4815_s1 + $0x264] ss:$8 sps:$4 sm:$0xff]   ;;  %v3457_v27 = vld [vmem:[%s4815_s1 + $0x260] ss:$8 sps:$4 sm:$0xff]   ;;  %v3458_v28 = vld [vmem:[%s4815_s1 + $0x74] ss:$8 sps:$4 sm:$0xff]  }
   0xf   : > { %2319 = vmatpush1.bf16.msra.mxu1 %v3432_v10  ;;  %v3460_v29 = vld [vmem:[%s4815_s1 + $0x274] ss:$8 sps:$4 sm:$0xff]   ;;  %s163_s24 = smul.u32 20, %s2996_s13  ;;  %v3462_v30 = vld [vmem:[%s4815_s1 + $0x70] ss:$8 sps:$4 sm:$0xff]   ;;  %vm409_vm3 = vcmask 1046532  }
  0x10   : > { %2521 = vmatpush1.bf16.msra.mxu0 %v3433_v11  ;;  %2320 = vmatprep.subr.bf16.mxu1 %v3434_v12  ;;  %v3463_v31 = vld [vmem:[%s4815_s1 + $0x270] ss:$8 sps:$4 sm:$0xff]   ;;  %v3464_v32 = vld [vmem:[%s4815_s1 + $0x84] ss:$8 sps:$4 sm:$0xff]   ;;  %v3468_v34 = vld [vmem:[%s4815_s1 + $0x80] ss:$8 sps:$4 sm:$0xff]  }
  0x11   : > { %2522 = vmatprep.subr.bf16.mxu0 %v3436_v13  ;;  %v3466_v33 = vld [vmem:[%s4815_s1 + $0x284] ss:$8 sps:$4 sm:$0xff]   ;;  %p164_p3 = scmp.lt.s32.totalorder %s163_s24, 39  ;;  %v3469_v35 = vld [vmem:[%s4815_s1 + $0x280] ss:$8 sps:$4 sm:$0xff]   ;;  %vm3992_vm5 = vmor %vm408_vm2, %vm409_vm3 }
  0x12   : > { %v3470_v36 = vld [vmem:[%s4815_s1 + $0x94] ss:$8 sps:$4 sm:$0xff]   ;;  %v3474_v38 = vld [vmem:[%s4815_s1 + $0x90] ss:$8 sps:$4 sm:$0xff]   ;;  %v3476_v40 = vld [vmem:[%s4815_s1 + $0xa4] ss:$8 sps:$4 sm:$0xff]  }
  0x13   : > { %2321 = vmatpush1.bf16.msra.mxu1 %v3438_v14  ;;  %v3472_v37 = vld [vmem:[%s4815_s1 + $0x294] ss:$8 sps:$4 sm:$0xff]   ;;  %s4823_s24 = smov (!%p164_p3, %s163_s24), 39  ;;  %v3475_v39 = vld [vmem:[%s4815_s1 + $0x290] ss:$8 sps:$4 sm:$0xff]  }
  0x14   : > { %2523 = vmatpush1.bf16.msra.mxu0 %v3439_v15  ;;  %2322 = vmatprep.subr.bf16.mxu1 %v3440_v16  ;;  %v3478_v41 = vld [vmem:[%s4815_s1 + $0x2a4] ss:$8 sps:$4 sm:$0xff]   ;;  %s3001_s23 = sshll.u32 %s4823_s24, 2  ;;  %v3480_v42 = vld [vmem:[%s4815_s1 + $0xa0] ss:$8 sps:$4 sm:$0xff]   ;;  %s3229_s26 = sshll.u32 %s4823_s24, 3 }
  0x15   : > { %2524 = vmatprep.subr.bf16.mxu0 %v3442_v17  ;;  %v3481_v43 = vld [vmem:[%s4815_s1 + $0x2a0] ss:$8 sps:$4 sm:$0xff]   ;;  %v3482_v44 = vld [vmem:[%s4815_s1 + $0xb4] ss:$8 sps:$4 sm:$0xff]   ;;  %s3928_s13 = scalar_lea.vmem %s4814_s0, %s3001_s23  ;;  %vm217_vm0 = vsmask.f32 3328  ;;  %s4742_s29 = scalar_lea.vmem %s4817_s3, %s3229_s26 }
  0x16   : > { %v3484_v45 = vld [vmem:[%s4815_s1 + $0x2b4] ss:$8 sps:$4 sm:$0xff]   ;;  %vm218_vm1 = vsmask.f32 7440  ;;  %v3486_v46 = vld [vmem:[%s4815_s1 + $0xb0] ss:$8 sps:$4 sm:$0xff]  }
  0x17   : > { %2323 = vmatpush1.bf16.msra.mxu1 %v3444_v18  ;;  %v3487_v47 = vld [vmem:[%s4815_s1 + $0x2b0] ss:$8 sps:$4 sm:$0xff]   ;;  %v177_v48 = vld [vmem:[%s3928_s13] sm:$0xf]  ;;  %v3488_v49 = vld [vmem:[%s4815_s1 + $0xc4] ss:$8 sps:$4 sm:$0xff]  }
  0x18   : > { %2525 = vmatpush1.bf16.msra.mxu0 %v3445_v19  ;;  %2324 = vmatprep.subr.bf16.mxu1 %v3446_v20  ;;  %v178_v50 = vld [vmem:[%s3928_s13 + $0x4] sm:$0xf]  ;;  %190 = vst [vmem:[#allocation2] sm:$0xf] %v177_v48  ;;  %v203_v51 = vld [vmem:[%s3928_s13] sm:$0xf]  ;;  %vm3970_vm4 = vmor %vm217_vm0, %vm218_vm1 }
  0x19   : > { %2526 = vmatprep.subr.bf16.mxu0 %v3448_v21  ;;  %v204_v52 = vld [vmem:[%s3928_s13 + $0x4] sm:$0xf]  ;;  %191 = vst [vmem:[#allocation2 + $0x24] sm:$0xf] %v178_v50  ;;  %v205_v53 = vld [vmem:[%s3928_s13 + $0x8] sm:$0xf] }
  0x1a   : > { %v221_v54 = vshrl.u32 %v203_v51, 16  ;;  %v224_v55 = vshll.u32 %v203_v51, 16  ;;  %v230_v56 = vshll.u32 %v204_v52, 16  ;;  %v234_v57 = vshrl.u32 %v204_v52, 16  ;;  %v3490_v58 = vld [vmem:[%s4815_s1 + $0x2c4] ss:$8 sps:$4 sm:$0xff]  }
  0x1b   : > { %2325 = vmatpush1.bf16.msra.mxu1 %v3450_v22  ;;  %v240_v59 = vshll.u32 %v205_v53, 16  ;;  %v3492_v60 = vld [vmem:[%s4815_s1 + $0xc0] ss:$8 sps:$4 sm:$0xff]   ;;  %v3494_v2 = vld [vmem:[%s4815_s1 + $0xd4] ss:$8 sps:$4 sm:$0xff]   ;;  %v244_v5 = vshrl.u32 %v205_v53, 16 }
  0x1c   : > { %2527 = vmatpush1.bf16.msra.mxu0 %v3451_v23  ;;  %2326 = vmatprep.subr.bf16.mxu1 %v3452_v24  ;;  %v3493_v61 = vld [vmem:[%s4815_s1 + $0x2c0] ss:$8 sps:$4 sm:$0xff]   ;;  %v223_v62 = vrot.slane %v221_v54, 4  ;;  %v226_v63 = vrot.slane %v224_v55, 5  ;;  %v232_v0 = vrot.slane %v230_v56, 5  ;;  %v236_v1 = vrot.slane %v234_v57, 4 }
  0x1d   : > { %2528 = vmatprep.subr.bf16.mxu0 %v3454_v25  ;;  %v3496_v3 = vld [vmem:[%s4815_s1 + $0x2d4] ss:$8 sps:$4 sm:$0xff]   ;;  %v3962_v4 = vrot.slane %v240_v59, 5  ;;  %v503_v6 = vld [vmem:[%s3928_s13 + $0x8] sm:$0xf] }
  0x1e   : > { %v504_v7 = vld [vmem:[%s3928_s13 + $0xc] sm:$0xf]  ;;  %v227_v8 = vor.u32 %v226_v63, %v223_v62  ;;  %v237_v9 = vor.u32 %v236_v1, %v232_v0  ;;  %v505_v10 = vld [vmem:[%s3928_s13 + $0x10] sm:$0xf]  ;;  %v518_v11 = vshrl.u32 %v503_v6, 16  ;;  %v521_v12 = vshll.u32 %v503_v6, 16 }
  0x1f   : > { %2327 = vmatpush1.bf16.msra.mxu1 %v3456_v26  ;;  %v677_v13 = vld [vmem:[%s3928_s13 + $0x8] sm:$0xe]  ;;  %v527_v15 = vshll.u32 %v504_v7, 16  ;;  %v531_v16 = vshrl.u32 %v504_v7, 16  ;;  %v537_v17 = vshll.u32 %v505_v10, 16  ;;  %v246_v26 = vrot.slane %v244_v5, 4 }
  0x20   : > { %2529 = vmatpush1.bf16.msra.mxu0 %v3457_v27  ;;  %2328 = vmatprep.subr.bf16.mxu1 %v3458_v28  ;;  %v678_v18 = vld [vmem:[%s3928_s13 + $0xc] sm:$0xf]  ;;  %v3498_v19 = vld [vmem:[%s4815_s1 + $0xd0] ss:$8 sps:$4 sm:$0xff]   ;;  %v228_v21 = vrot.slane %v227_v8, 4  ;;  %v238_v22 = vrot.slane %v237_v9, 4 }
  0x21   : > { %2530 = vmatprep.subr.bf16.mxu0 %v3460_v29  ;;  %v3499_v20 = vld [vmem:[%s4815_s1 + $0x2d0] ss:$8 sps:$4 sm:$0xff]   ;;  %v520_v23 = vrot.slane %v518_v11, 4  ;;  %v523_v24 = vrot.slane %v521_v12, 5  ;;  %v529_v27 = vrot.slane %v527_v15, 5  ;;  %v533_v28 = vrot.slane %v531_v16, 4 }
  0x22   : > { %v679_v25 = vld [vmem:[%s3928_s13 + $0x10] sm:$0xf]  ;;  %v539_v29 = vrot.slane %v537_v17, 5  ;;  %v3506_v48 = vld [vmem:[%s4815_s1 + $0xf4] ss:$8 sps:$4 sm:$0xff]  }
  0x23   : > { %2329 = vmatpush1.bf16.msra.mxu1 %v3462_v30  ;;  %v3500_v30 = vld [vmem:[%s4815_s1 + $0xe4] ss:$8 sps:$4 sm:$0xff]   ;;  %v3508_v51 = vld [vmem:[%s4815_s1 + $0x2f4] ss:$8 sps:$4 sm:$0xff]   ;;  %v3510_v55 = vld [vmem:[%s4815_s1 + $0xf0] ss:$8 sps:$4 sm:$0xff]  }
  0x24   : > { %2531 = vmatpush1.bf16.msra.mxu0 %v3463_v31  ;;  %2330 = vmatprep.subr.bf16.mxu1 %v3464_v32  ;;  %v233_v31 = vsel %vm3970_vm4, %v228_v21, %v232_v0  ;;  %v243_v32 = vsel %vm3970_vm4, %v238_v22, %v3962_v4  ;;  %v3511_v56 = vld [vmem:[%s4815_s1 + $0x2f0] ss:$8 sps:$4 sm:$0xff]   ;;  %v3517_v57 = vld [vmem:[%s4815_s1 + $0x104] ss:$8 sps:$4 sm:$0xff]   ;;  %v3515_v0 = vld [vmem:[%s4815_s1 + $0x100] ss:$8 sps:$4 sm:$0xff]  }
  0x25   : > { %2532 = vmatprep.subr.bf16.mxu0 %v3466_v33  ;;  %367 = vst [vmem:[#allocation2 + $0x4] sm:$0xf] %v233_v31  ;;  %368 = vst [vmem:[#allocation2 + $0x28] sm:$0xf] %v243_v32  ;;  %v3512_v63 = vld [vmem:[#allocation2] ss:$36 sps:$4 sm:$0xff]  }
  0x26   : > { %v506_v1 = vld [vmem:[%s3928_s13 + $0x14] sm:$0xf]  ;;  %v681_v11 = vld [vmem:[%s3928_s13 + $0x18] sm:$0xf]  ;;  %v180_v22 = vld [vmem:[%s3928_s13 + $0xc] sm:$0xf] }
  0x27   : > { %2331 = vmatpush1.bf16.msra.mxu1 %v3468_v34  ;;  %v524_v34 = vor.u32 %v523_v24, %v520_v23  ;;  %v547_v5 = vshll.u32 %v506_v1, 16  ;;  %v551_v6 = vshrl.u32 %v506_v1, 16  ;;  %v680_v9 = vld [vmem:[%s3928_s13 + $0x14] sm:$0xf]  ;;  %v716_v24 = vrot.slane %v681_v11, 5 }
  0x28   : > { %2533 = vmatpush1.bf16.msra.mxu0 %v3469_v35  ;;  %2332 = vmatprep.subr.bf16.mxu1 %v3470_v36  ;;  %v541_v35 = vshrl.u32 %v505_v10, 16  ;;  %v3502_v36 = vld [vmem:[%s4815_s1 + $0x2e4] ss:$8 sps:$4 sm:$0xff]   ;;  %v3529_v10 = vld [vmem:[%s4815_s1 + $0x314] ss:$8 sps:$4 sm:$0xff]   ;;  %v713_v12 = vrot.slane %v680_v9, 5 }
  0x29   : > { %2534 = vmatprep.subr.bf16.mxu0 %v3472_v37  ;;  %v534_v37 = vor.u32 %v533_v28, %v529_v27  ;;  %v549_v17 = vrot.slane %v547_v5, 5  ;;  %193 = vst [vmem:[#allocation2 + $0x6c] sm:$0xf] %v180_v22  ;;  %v3527_v32 = vld [vmem:[%s4815_s1 + $0x310] ss:$8 sps:$4 sm:$0xff]  }
  0x2a   : > { %v715_v21 = vrot.slane %v713_v12, 4  ;;  %v182_v11 = vld [vmem:[%s3928_s13 + $0x14] sm:$0xf]  ;;  %v3747_v14 = vld [vmem:[%s4815_s1 + $0x3e0] ss:$8 sps:$4 sm:$0xff]  }
  0x2b   : > { %2333 = vmatpush1.bf16.msra.mxu1 %v3474_v38  ;;  %v3005_v38 = vrot.slane %v677_v13, 9  ;;  %v179_v13 = vld [vmem:[%s3928_s13 + $0x8] sm:$0xf]  ;;  %195 = vst [vmem:[#allocation2 + $0xb4] sm:$0xf] %v182_v11 }
  0x2c   : > { %2535 = vmatpush1.bf16.msra.mxu0 %v3475_v39  ;;  %2334 = vmatprep.subr.bf16.mxu1 %v3476_v40  ;;  %v707_v39 = vrot.slane %v678_v18, 5  ;;  %v710_v40 = vrot.slane %v679_v25, 5  ;;  %192 = vst [vmem:[#allocation2 + $0x48] sm:$0xf] %v179_v13  ;;  %v553_v18 = vrot.slane %v551_v6, 4 }
  0x2d   : > { %2536 = vmatprep.subr.bf16.mxu0 %v3478_v41  ;;  %v525_v41 = vrot.slane %v524_v34, 4  ;;  %v206_v25 = vld [vmem:[%s3928_s13 + $0xc] sm:$0xf]  ;;  %v4111_v6 = vld [vmem:[%s3928_s13 + $0x20] sm:$0xf] }
  0x2e   : > { %v712_v62 = vrot.slane %v710_v40, 4  ;;  %v554_v28 = vor.u32 %v553_v18, %v549_v17  ;;  %v3532_v34 = vld [vmem:[%s4815_s1 + $0x124] ss:$8 sps:$4 sm:$0xff]   ;;  %v722_v9 = vrot.slane %v4111_v6, 5  ;;  %v208_v18 = vld [vmem:[%s3928_s13 + $0x14] sm:$0xf] }
  0x2f   : > { %2335 = vmatpush1.bf16.msra.mxu1 %v3480_v42  ;;  %v543_v42 = vrot.slane %v541_v35, 4  ;;  %v530_v50 = vsel %vm3970_vm4, %v525_v41, %v529_v27  ;;  %v3524_v27 = vld [vmem:[%s4815_s1 + $0x110] ss:$8 sps:$4 sm:$0xff]   ;;  %v717_v35 = vsel %vm3992_vm5, %v715_v21, %v716_v24  ;;  %v3556_v21 = vld [vmem:[%s4815_s1 + $0x154] ss:$8 sps:$4 sm:$0xff]  }
  0x30   : > { %2537 = vmatpush1.bf16.msra.mxu0 %v3481_v43  ;;  %2336 = vmatprep.subr.bf16.mxu1 %v3482_v44  ;;  %v535_v43 = vrot.slane %v534_v37, 4  ;;  %v708_v44 = vsel %vm3992_vm5, %v3005_v38, %v707_v39  ;;  %664 = vst [vmem:[#allocation2 + $0x10] sm:$0xf] %v530_v50  ;;  %v3530_v37 = vld [vmem:[%s4815_s1 + $0x120] ss:$8 sps:$4 sm:$0xff]  }
  0x31   : > { %2538 = vmatprep.subr.bf16.mxu0 %v3484_v45  ;;  %v709_v45 = vrot.slane %v707_v39, 4  ;;  %758 = vst [vmem:[#allocation2 + $0x14] sm:$0xf] %v708_v44  ;;  %v544_v53 = vor.u32 %v543_v42, %v539_v29  ;;  %v3535_v38 = vld [vmem:[%s4815_s1 + $0x324] ss:$8 sps:$4 sm:$0xff]   ;;  %v555_v39 = vrot.slane %v554_v28, 4 }
  0x32   : > { %v540_v52 = vsel %vm3970_vm4, %v535_v43, %v539_v29  ;;  %v250_v29 = vshll.u32 %v206_v25, 16  ;;  %761 = vst [vmem:[#allocation2 + $0x80] sm:$0xf] %v717_v35  ;;  %v3533_v42 = vld [vmem:[%s4815_s1 + $0x320] ss:$8 sps:$4 sm:$0xff]  }
  0x33   : > { %2337 = vmatpush1.bf16.msra.mxu1 %v3486_v46  ;;  %v3504_v46 = vld [vmem:[%s4815_s1 + $0xe0] ss:$8 sps:$4 sm:$0xff]   ;;  %v711_v54 = vsel %vm3992_vm5, %v709_v45, %v710_v40  ;;  %665 = vst [vmem:[#allocation2 + $0x34] sm:$0xf] %v540_v52  ;;  %v3538_v45 = vld [vmem:[%s4815_s1 + $0x134] ss:$8 sps:$4 sm:$0xff]  }
  0x34   : > { %2539 = vmatpush1.bf16.msra.mxu0 %v3487_v47  ;;  %2338 = vmatprep.subr.bf16.mxu1 %v3488_v49  ;;  %v3505_v47 = vld [vmem:[%s4815_s1 + $0x2e0] ss:$8 sps:$4 sm:$0xff]   ;;  %v247_v49 = vor.u32 %v246_v26, %v3962_v4  ;;  %759 = vst [vmem:[#allocation2 + $0x38] sm:$0xf] %v711_v54  ;;  %v3526_v4 = vld [vmem:[%s4815_s1 + $0x114] ss:$8 sps:$4 sm:$0xff]  }
  0x35   : > { %2540 = vmatprep.subr.bf16.mxu0 %v3490_v58  ;;  %v3523_v58 = vld [vmem:[%s4815_s1 + $0x304] ss:$8 sps:$4 sm:$0xff]   ;;  %v207_v26 = vld [vmem:[%s3928_s13 + $0x10] sm:$0xf]  ;;  %v252_v40 = vrot.slane %v250_v29, 5 }
  0x36   : > { %v4032_v59 = vrot.slane %v247_v49, 4  ;;  %v260_v31 = vshll.u32 %v207_v26, 16  ;;  %v3541_v50 = vld [vmem:[%s4815_s1 + $0x334] ss:$8 sps:$4 sm:$0xff]   ;;  %v3536_v54 = vld [vmem:[%s4815_s1 + $0x130] ss:$8 sps:$4 sm:$0xff]  }
  0x37   : > { %2339 = vmatpush1.bf16.msra.mxu1 %v3492_v60  ;;  %v3514_v60 = vld [vmem:[#allocation2 + $0x4] ss:$36 sps:$4 sm:$0xff]   ;;  %v3559_v35 = vld [vmem:[%s4815_s1 + $0x354] ss:$8 sps:$4 sm:$0xff]   ;;  %v3572_v6 = vld [vmem:[%s4815_s1 + $0x170] ss:$8 sps:$4 sm:$0xff]  }
  0x38   : > { %2541 = vmatpush1.bf16.msra.mxu0 %v3493_v61  ;;  %2340 = vmatprep.subr.bf16.mxu1 %v3494_v2  ;;  %v545_v61 = vrot.slane %v544_v53, 4  ;;  %v507_v2 = vld [vmem:[%s3928_s13 + $0x18] sm:$0xf]  ;;  %v262_v43 = vrot.slane %v260_v31, 5  ;;  %v718_v53 = vrot.slane %v716_v24, 4  ;;  %v274_v24 = vshrl.u32 %v208_v18, 16 }
  0x39   : > { %2542 = vmatprep.subr.bf16.mxu0 %v3496_v3  ;;  %2346 = vmatprep.mubr.bf16.mxu1 %v3514_v60  ;;  %v3521_v3 = vld [vmem:[%s4815_s1 + $0x300] ss:$8 sps:$4 sm:$0xff]   ;;  %v557_v7 = vshll.u32 %v507_v2, 16  ;;  %v561_v8 = vshrl.u32 %v507_v2, 16  ;;  %v3550_v60 = vld [vmem:[%s4815_s1 + $0x144] ss:$8 sps:$4 sm:$0xff]  }
  0x3a   : > { %v3518_v15 = vld [vmem:[#allocation2 + $0x10] ss:$36 sps:$4 sm:$0xff]   ;;  %v550_v23 = vsel %vm3970_vm4, %v545_v61, %v549_v17 }
  0x3b   : > { %2341 = vmatpush1.bf16.msra.mxu1 %v3498_v19  ;;  %v3520_v16 = vld [vmem:[#allocation2 + $0x14] ss:$36 sps:$4 sm:$0xff]   ;;  %v559_v19 = vrot.slane %v557_v7, 5  ;;  %666 = vst [vmem:[#allocation2 + $0x58] sm:$0xf] %v550_v23  ;;  %v563_v44 = vrot.slane %v561_v8, 4 }
  0x3c   : > { %2543 = vmatpush1.bf16.msra.mxu0 %v3499_v20  ;;  %2342 = vmatprep.subr.bf16.mxu1 %v3500_v30  ;;  %v714_v20 = vsel %vm3992_vm5, %v712_v62, %v713_v12  ;;  %v254_v30 = vshrl.u32 %v206_v25, 16  ;;  %v3548_v12 = vld [vmem:[%s4815_s1 + $0x140] ss:$8 sps:$4 sm:$0xff]   ;;  %v270_v23 = vshll.u32 %v208_v18, 16  ;;  %v3575_v18 = vld [vmem:[%s4815_s1 + $0x370] ss:$8 sps:$4 sm:$0xff]  }
  0x3d   : > { %2544 = vmatprep.subr.bf16.mxu0 %v3502_v36  ;;  %2548 = vmatprep.mubr.bf16.mxu0 %v3520_v16  ;;  %760 = vst [vmem:[#allocation2 + $0x5c] sm:$0xf] %v714_v20  ;;  %v264_v36 = vshrl.u32 %v207_v26, 16  ;;  %v564_v52 = vor.u32 %v563_v44, %v559_v19  ;;  %v3551_v20 = vld [vmem:[%s4815_s1 + $0x340] ss:$8 sps:$4 sm:$0xff]  }
  0x3e   : > { %v256_v41 = vrot.slane %v254_v30, 4  ;;  %v272_v31 = vrot.slane %v270_v23, 5  ;;  %v3745_v33 = vld [vmem:[%s4815_s1 + $0x3d4] ss:$8 sps:$4 sm:$0xff]  }
  0x3f   : > { %2343 = vmatpush1.bf16.msra.mxu1 %v3504_v46  ;;  %v560_v46 = vsel %vm3970_vm4, %v555_v39, %v559_v19  ;;  %v266_v49 = vrot.slane %v264_v36, 4  ;;  %v565_v61 = vrot.slane %v564_v52, 4  ;;  %v209_v19 = vld [vmem:[%s3928_s13 + $0x18] sm:$0xf] }
  0x40   : > { %2545 = vmatpush1.bf16.msra.mxu0 %v3505_v47  ;;  %2344 = vmatprep.subr.bf16.mxu1 %v3506_v48  ;;  %v253_v47 = vsel %vm3970_vm4, %v4032_v59, %v252_v40  ;;  %v257_v48 = vor.u32 %v256_v41, %v252_v40  ;;  %667 = vst [vmem:[#allocation2 + $0x7c] sm:$0xf] %v560_v46  ;;  %v3539_v59 = vld [vmem:[%s4815_s1 + $0x330] ss:$8 sps:$4 sm:$0xff]   ;;  %v280_v25 = vshll.u32 %v209_v19, 16  ;;  %v284_v29 = vshrl.u32 %v209_v19, 16 }
  0x41   : > { %2546 = vmatprep.subr.bf16.mxu0 %v3508_v51  ;;  %369 = vst [vmem:[#allocation2 + $0x4c] sm:$0xf] %v253_v47  ;;  %v508_v51 = vld [vmem:[%s3928_s13 + $0x1c] sm:$0xf]  ;;  %v267_v1 = vor.u32 %v266_v49, %v262_v43  ;;  %v3568_v46 = vld [vmem:[%s4815_s1 + $0x164] ss:$8 sps:$4 sm:$0xff]  }
  0x42   : > { %v282_v40 = vrot.slane %v280_v25, 5  ;;  %v286_v44 = vrot.slane %v284_v29, 4  ;;  %v3571_v49 = vld [vmem:[%s4815_s1 + $0x364] ss:$8 sps:$4 sm:$0xff]   ;;  %v3584_v25 = vld [vmem:[%s4815_s1 + $0x180] ss:$8 sps:$4 sm:$0xff]  }
  0x43   : > { %2345 = vmatpush1.bf16.msra.mxu1 %v3510_v55  ;;  %v258_v55 = vrot.slane %v257_v48, 4  ;;  %v268_v22 = vrot.slane %v267_v1, 4  ;;  %v3566_v48 = vld [vmem:[%s4815_s1 + $0x160] ss:$8 sps:$4 sm:$0xff]  }
  0x44   : > { %2547 = vmatpush1.bf16.msra.mxu0 %v3511_v56  ;;  %2415 = vmatprep.subr.bf16.mxu1 %v3517_v57  ;;  %v4094_v56 = vld [vmem:[%s3928_s13 + $0x20] sm:$0xf]  ;;  %v567_v57 = vshll.u32 %v508_v51, 16 }
  0x45   : > { %2617 = vmatprep.subr.bf16.mxu0 %v3523_v58  ;;  %v571_v58 = vshrl.u32 %v508_v51, 16  ;;  %v577_v62 = vshll.u32 %v4094_v56, 16  ;;  %v263_v2 = vsel %vm3970_vm4, %v258_v55, %v262_v43  ;;  %v3542_v26 = vld [vmem:[#allocation2 + $0x5c] ss:$36 sps:$4 sm:$0xff]   ;;  %v3547_v43 = vld [vmem:[#allocation2 + $0x48] ss:$36 sps:$4 sm:$0xff]   ;;  %v287_v51 = vor.u32 %v286_v44, %v282_v40 }
  0x46   : > { %2347 = vmatmul.mubr.bf16.vlgmr.msra.gmra.mrb[0].mxu1 %v3512_v63  ;;  %v581_v63 = vshrl.u32 %v4094_v56, 16  ;;  %370 = vst [vmem:[#allocation2 + $0x70] sm:$0xf] %v263_v2  ;;  %v4166_v55 = vld [vmem:[%s3928_s13 + $0x28] sm:$0xf] }
  0x47   : > { %2416 = vmatpush1.bf16.msra.mxu1 %v3515_v0  ;;  %2549 = vmatmul.mubr.bf16.vlgmr.msra.gmra.mrb[0].mxu0 %v3518_v15  ;;  %v682_v0 = vld [vmem:[%s3928_s13 + $0x1c] sm:$0xf]  ;;  %v573_v5 = vrot.slane %v571_v58, 4  ;;  %v4113_v8 = vrot.slane %v577_v62, 5  ;;  %v684_v62 = vld [vmem:[%s3928_s13 + $0x24] sm:$0xf] }
  0x48   : > { %2618 = vmatpush1.bf16.msra.mxu0 %v3521_v3  ;;  %2417 = vmatprep.subr.bf16.mxu1 %v3526_v4  ;;  %v3553_v3 = vld [vmem:[%s4815_s1 + $0x344] ss:$8 sps:$4 sm:$0xff]   ;;  %v569_v4 = vrot.slane %v567_v57, 5  ;;  %v719_v7 = vrot.slane %v682_v0, 5  ;;  %v3546_v30 = vld [vmem:[#allocation2 + $0x58] ss:$36 sps:$4 sm:$0xff]  }
  0x49   : > { %2619 = vmatprep.subr.bf16.mxu0 %v3529_v10  ;;  %v181_v10 = vld [vmem:[%s3928_s13 + $0x10] sm:$0xf]  ;;  %2558 = vmatprep.mubr.bf16.mxu0 %v3542_v26  ;;  %v583_v41 = vrot.slane %v581_v63, 4  ;;  %v3569_v57 = vld [vmem:[%s4815_s1 + $0x360] ss:$8 sps:$4 sm:$0xff]   ;;  %v725_v1 = vrot.slane %v684_v62, 5 }
  0x4a   : > { %v570_v13 = vsel %vm3970_vm4, %v565_v61, %v569_v4  ;;  %v574_v15 = vor.u32 %v573_v5, %v569_v4  ;;  %v720_v16 = vsel %vm3992_vm5, %v718_v53, %v719_v7  ;;  %v721_v17 = vrot.slane %v719_v7, 4  ;;  %194 = vst [vmem:[#allocation2 + $0x90] sm:$0xf] %v181_v10  ;;  %v3574_v53 = vld [vmem:[%s4815_s1 + $0x174] ss:$8 sps:$4 sm:$0xff]  }
  0x4b   : > { %2418 = vmatpush1.bf16.msra.mxu1 %v3524_v27  ;;  %668 = vst [vmem:[#allocation2 + $0xa0] sm:$0xf] %v570_v13  ;;  %762 = vst [vmem:[#allocation2 + $0xa4] sm:$0xf] %v720_v16  ;;  %v584_v47 = vor.u32 %v583_v41, %v4113_v8  ;;  %v601_v61 = vshrl.u32 %v4166_v55, 16  ;;  %v727_v11 = vrot.slane %v725_v1, 4 }
  0x4c   : > { %2620 = vmatpush1.bf16.msra.mxu0 %v3527_v32  ;;  %2419 = vmatprep.subr.bf16.mxu1 %v3532_v34  ;;  %v575_v27 = vrot.slane %v574_v15, 4  ;;  %v723_v28 = vsel %vm3992_vm5, %v721_v17, %v722_v9  ;;  %v276_v32 = vrot.slane %v274_v24, 4  ;;  %v3554_v34 = vld [vmem:[%s4815_s1 + $0x150] ss:$8 sps:$4 sm:$0xff]   ;;  %v3577_v63 = vld [vmem:[%s4815_s1 + $0x374] ss:$8 sps:$4 sm:$0xff]  }
  0x4d   : > { %2621 = vmatprep.subr.bf16.mxu0 %v3535_v38  ;;  %763 = vst [vmem:[#allocation2 + $0xc8] sm:$0xf] %v723_v28  ;;  %v273_v38 = vsel %vm3970_vm4, %v268_v22, %v272_v31  ;;  %v585_v56 = vrot.slane %v584_v47, 4  ;;  %v685_v0 = vld [vmem:[%s3928_s13 + $0x28] sm:$0xf] }
  0x4e   : > { %v580_v36 = vsel %vm3970_vm4, %v575_v27, %v4113_v8  ;;  %v277_v39 = vor.u32 %v276_v32, %v272_v31  ;;  %371 = vst [vmem:[#allocation2 + $0x94] sm:$0xf] %v273_v38  ;;  %v183_v2 = vld [vmem:[%s3928_s13 + $0x18] sm:$0xf]  ;;  %v728_v15 = vrot.slane %v685_v0, 5  ;;  %v603_v38 = vrot.slane %v601_v61, 4 }
  0x4f   : > { %2420 = vmatpush1.bf16.msra.mxu1 %v3530_v37  ;;  %2559 = vmatmul.mubr.bf16.gmra.mrb[4].mxu0 %v3546_v30  ;;  %v3557_v37 = vld [vmem:[%s4815_s1 + $0x350] ss:$8 sps:$4 sm:$0xff]   ;;  %669 = vst [vmem:[#allocation2 + $0xc4] sm:$0xf] %v580_v36  ;;  %196 = vst [vmem:[#allocation2 + $0xd8] sm:$0xf] %v183_v2 }
  0x50   : > { %2622 = vmatpush1.bf16.msra.mxu0 %v3533_v42  ;;  %2421 = vmatprep.subr.bf16.mxu1 %v3538_v45  ;;  %v3544_v42 = vld [vmem:[#allocation2 + $0x4c] ss:$36 sps:$4 sm:$0xff]   ;;  %v278_v45 = vrot.slane %v277_v39, 4  ;;  %v210_v16 = vld [vmem:[%s3928_s13 + $0x1c] sm:$0xf]  ;;  %v729_v23 = vsel %vm3992_vm5, %v727_v11, %v728_v15 }
  0x51   : > { %2623 = vmatprep.subr.bf16.mxu0 %v3541_v50  ;;  %2356 = vmatprep.mubr.bf16.mxu1 %v3544_v42  ;;  %v724_v50 = vrot.slane %v722_v9, 4  ;;  %v211_v17 = vld [vmem:[%s3928_s13 + $0x20] sm:$0xf]  ;;  %v3586_v26 = vld [vmem:[%s4815_s1 + $0x184] ss:$8 sps:$4 sm:$0xff]   ;;  %v730_v42 = vrot.slane %v728_v15, 4 }
  0x52   : > { %2357 = vmatmul.mubr.bf16.gmra.mrb[4].mxu1 %v3547_v43  ;;  %v283_v52 = vsel %vm3970_vm4, %v278_v45, %v282_v40  ;;  %v300_v22 = vshll.u32 %v211_v17, 16  ;;  %v304_v24 = vshrl.u32 %v211_v17, 16  ;;  %v3565_v28 = vld [vmem:[#allocation2 + $0x90] ss:$36 sps:$4 sm:$0xff]   ;;  %765 = vst [vmem:[#allocation2 + $0x110] sm:$0xf] %v729_v23 }
  0x53   : > { %2422 = vmatpush1.bf16.msra.mxu1 %v3536_v54  ;;  %v510_v54 = vld [vmem:[%s3928_s13 + $0x24] sm:$0xf]  ;;  %372 = vst [vmem:[#allocation2 + $0xb8] sm:$0xf] %v283_v52  ;;  %v726_v10 = vsel %vm3992_vm5, %v724_v50, %v725_v1  ;;  %v3587_v32 = vld [vmem:[%s4815_s1 + $0x380] ss:$8 sps:$4 sm:$0xff]  }
  0x54   : > { %2624 = vmatpush1.bf16.msra.mxu0 %v3539_v59  ;;  %2423 = vmatprep.subr.bf16.mxu1 %v3550_v60  ;;  %v587_v58 = vshll.u32 %v510_v54, 16  ;;  %v591_v59 = vshrl.u32 %v510_v54, 16  ;;  %v597_v60 = vshll.u32 %v4166_v55, 16  ;;  %v3560_v4 = vld [vmem:[#allocation2 + $0xa4] ss:$36 sps:$4 sm:$0xff]   ;;  %v302_v36 = vrot.slane %v300_v22, 5 }
  0x55   : > { %2625 = vmatprep.subr.bf16.mxu0 %v3553_v3  ;;  %v288_v3 = vrot.slane %v287_v51, 4  ;;  %2568 = vmatprep.mubr.bf16.mxu0 %v3560_v4  ;;  %764 = vst [vmem:[#allocation2 + $0xec] sm:$0xf] %v726_v10  ;;  %v3590_v41 = vld [vmem:[%s4815_s1 + $0x190] ss:$8 sps:$4 sm:$0xff]   ;;  %v306_v43 = vrot.slane %v304_v24, 4 }
  0x56   : > { %v3564_v5 = vld [vmem:[#allocation2 + $0xa0] ss:$36 sps:$4 sm:$0xff]   ;;  %v589_v7 = vrot.slane %v587_v58, 5  ;;  %v593_v8 = vrot.slane %v591_v59, 4  ;;  %v599_v9 = vrot.slane %v597_v60, 5 }
  0x57   : > { %2424 = vmatpush1.bf16.msra.mxu1 %v3548_v12  ;;  %v184_v12 = vld [vmem:[%s3928_s13 + $0x1c] sm:$0xf]  ;;  %2569 = vmatmul.mubr.bf16.gmra.mrb[8].mxu0 %v3564_v5  ;;  %v512_v45 = vld [vmem:[%s3928_s13 + $0x2c] sm:$0xf]  ;;  %v185_v62 = vld [vmem:[%s3928_s13 + $0x20] sm:$0xf] }
  0x58   : > { %2626 = vmatpush1.bf16.msra.mxu0 %v3551_v20  ;;  %2425 = vmatprep.subr.bf16.mxu1 %v3556_v21  ;;  %v590_v13 = vsel %vm3970_vm4, %v585_v56, %v589_v7  ;;  %197 = vst [vmem:[#allocation2 + $0xfc] sm:$0xf] %v184_v12  ;;  %v594_v19 = vor.u32 %v593_v8, %v589_v7  ;;  %v290_v20 = vshll.u32 %v210_v16, 16  ;;  %v294_v21 = vshrl.u32 %v210_v16, 16  ;;  %v3595_v44 = vld [vmem:[%s4815_s1 + $0x394] ss:$8 sps:$4 sm:$0xff]  }
  0x59   : > { %2627 = vmatprep.subr.bf16.mxu0 %v3559_v35  ;;  %670 = vst [vmem:[#allocation2 + $0xe8] sm:$0xf] %v590_v13  ;;  %v604_v47 = vor.u32 %v603_v38, %v599_v9  ;;  %v607_v50 = vshll.u32 %v512_v45, 16  ;;  %v611_v51 = vshrl.u32 %v512_v45, 16  ;;  %v686_v55 = vld [vmem:[%s3928_s13 + $0x2c] sm:$0xf] }
  0x5a   : > { %v3562_v27 = vld [vmem:[#allocation2 + $0x94] ss:$36 sps:$4 sm:$0xff]   ;;  %v595_v29 = vrot.slane %v594_v19, 4  ;;  %v292_v30 = vrot.slane %v290_v20, 5  ;;  %v296_v31 = vrot.slane %v294_v21, 4 }
  0x5b   : > { %2426 = vmatpush1.bf16.msra.mxu1 %v3554_v34  ;;  %v3589_v34 = vld [vmem:[%s4815_s1 + $0x384] ss:$8 sps:$4 sm:$0xff]   ;;  %2366 = vmatprep.mubr.bf16.mxu1 %v3562_v27  ;;  %v687_v56 = vld [vmem:[%s3928_s13 + $0x30] sm:$0xf]  ;;  %v609_v59 = vrot.slane %v607_v50, 5  ;;  %v613_v60 = vrot.slane %v611_v51, 4 }
  0x5c   : > { %2628 = vmatpush1.bf16.msra.mxu0 %v3557_v37  ;;  %2427 = vmatprep.subr.bf16.mxu1 %v3568_v46  ;;  %v600_v35 = vsel %vm3970_vm4, %v595_v29, %v599_v9  ;;  %v3592_v37 = vld [vmem:[%s4815_s1 + $0x194] ss:$8 sps:$4 sm:$0xff]   ;;  %v293_v39 = vsel %vm3970_vm4, %v288_v3, %v292_v30  ;;  %v297_v40 = vor.u32 %v296_v31, %v292_v30  ;;  %v4221_v46 = vld [vmem:[%s3928_s13 + $0x30] sm:$0xf]  ;;  %v734_v0 = vrot.slane %v687_v56, 5 }
  0x5d   : > { %2629 = vmatprep.subr.bf16.mxu0 %v3571_v49  ;;  %2367 = vmatmul.mubr.bf16.gmra.mrb[8].mxu1 %v3565_v28  ;;  %671 = vst [vmem:[#allocation2 + $0x10c] sm:$0xf] %v600_v35  ;;  %373 = vst [vmem:[#allocation2 + $0xdc] sm:$0xf] %v293_v39  ;;  %v3593_v49 = vld [vmem:[%s4815_s1 + $0x390] ss:$8 sps:$4 sm:$0xff]   ;;  %v614_v4 = vor.u32 %v613_v60, %v609_v59 }
  0x5e   : > { %v617_v52 = vshll.u32 %v4221_v46, 16  ;;  %v621_v54 = vshrl.u32 %v4221_v46, 16  ;;  %v186_v1 = vld [vmem:[%s3928_s13 + $0x24] sm:$0xf]  ;;  %198 = vst [vmem:[#allocation2 + $0x120] sm:$0xf] %v185_v62 }
  0x5f   : > { %2428 = vmatpush1.bf16.msra.mxu1 %v3566_v48  ;;  %v298_v48 = vrot.slane %v297_v40, 4  ;;  %v212_v2 = vld [vmem:[%s3928_s13 + $0x24] sm:$0xf]  ;;  %199 = vst [vmem:[#allocation2 + $0x144] sm:$0xf] %v186_v1  ;;  %v615_v13 = vrot.slane %v614_v4, 4 }
  0x60   : > { %2429 = vmatprep.subr.bf16.mxu1 %v3574_v53  ;;  %2630 = vmatpush1.bf16.msra.mxu0 %v3569_v57  ;;  %v605_v53 = vrot.slane %v604_v47, 4  ;;  %v307_v57 = vor.u32 %v306_v43, %v302_v36  ;;  %v4232_v61 = vrot.slane %v617_v52, 5  ;;  %v213_v5 = vld [vmem:[%s3928_s13 + $0x28] sm:$0xf]  ;;  %v310_v7 = vshll.u32 %v212_v2, 16 }
  0x61   : > { %2631 = vmatprep.subr.bf16.mxu0 %v3577_v63  ;;  %v303_v58 = vsel %vm3970_vm4, %v298_v48, %v302_v36  ;;  %v731_v63 = vrot.slane %v686_v55, 5  ;;  %v3602_v8 = vld [vmem:[%s4815_s1 + $0x1a0] ss:$8 sps:$4 sm:$0xff]   ;;  %v3578_v9 = vld [vmem:[#allocation2 + $0xec] ss:$36 sps:$4 sm:$0xff]   ;;  %v314_v16 = vshrl.u32 %v212_v2, 16 }
  0x62   : > { %374 = vst [vmem:[#allocation2 + $0x100] sm:$0xf] %v303_v58  ;;  %v610_v3 = vsel %vm3970_vm4, %v605_v53, %v609_v59  ;;  %v312_v15 = vrot.slane %v310_v7, 5  ;;  %v320_v17 = vshll.u32 %v213_v5, 16  ;;  %2578 = vmatprep.mubr.bf16.mxu0 %v3578_v9  ;;  %v324_v19 = vshrl.u32 %v213_v5, 16 }
  0x63   : > { %2430 = vmatpush1.bf16.msra.mxu1 %v3572_v6  ;;  %v308_v6 = vrot.slane %v307_v57, 4  ;;  %672 = vst [vmem:[#allocation2 + $0x130] sm:$0xf] %v610_v3  ;;  %v732_v11 = vsel %vm3992_vm5, %v730_v42, %v731_v63  ;;  %v733_v12 = vrot.slane %v731_v63, 4  ;;  %v3604_v20 = vld [vmem:[%s4815_s1 + $0x1a4] ss:$8 sps:$4 sm:$0xff]   ;;  %v620_v22 = vsel %vm3970_vm4, %v615_v13, %v4232_v61 }
  0x64   : > { %2431 = vmatprep.subr.bf16.mxu1 %v3586_v26  ;;  %2632 = vmatpush1.bf16.msra.mxu0 %v3575_v18  ;;  %v3582_v10 = vld [vmem:[#allocation2 + $0xe8] ss:$36 sps:$4 sm:$0xff]   ;;  %766 = vst [vmem:[#allocation2 + $0x134] sm:$0xf] %v732_v11  ;;  %v316_v24 = vrot.slane %v314_v16, 4  ;;  %v623_v29 = vrot.slane %v621_v54, 4 }
  0x65   : > { %2633 = vmatprep.subr.bf16.mxu0 %v3589_v34  ;;  %v735_v18 = vsel %vm3992_vm5, %v733_v12, %v734_v0  ;;  %v3605_v21 = vld [vmem:[%s4815_s1 + $0x3a0] ss:$8 sps:$4 sm:$0xff]   ;;  %2579 = vmatmul.mubr.bf16.gmra.mrb[12].mxu0 %v3582_v10  ;;  %v313_v23 = vsel %vm3970_vm4, %v308_v6, %v312_v15  ;;  %v3607_v26 = vld [vmem:[%s4815_s1 + $0x3a4] ss:$8 sps:$4 sm:$0xff]   ;;  %673 = vst [vmem:[#allocation2 + $0x154] sm:$0xf] %v620_v22 }
  0x66   : > { %767 = vst [vmem:[#allocation2 + $0x158] sm:$0xf] %v735_v18  ;;  %375 = vst [vmem:[#allocation2 + $0x124] sm:$0xf] %v313_v23  ;;  %v3608_v27 = vld [vmem:[%s4815_s1 + $0x1b0] ss:$8 sps:$4 sm:$0xff]  }
  0x67   : > { %2432 = vmatpush1.bf16.msra.mxu1 %v3584_v25  ;;  %v322_v25 = vrot.slane %v320_v17, 5  ;;  %v3610_v28 = vld [vmem:[%s4815_s1 + $0x1b4] ss:$8 sps:$4 sm:$0xff]   ;;  %v736_v34 = vrot.slane %v734_v0, 4  ;;  %v3611_v35 = vld [vmem:[%s4815_s1 + $0x3b0] ss:$8 sps:$4 sm:$0xff]  }
  0x68   : > { %2433 = vmatprep.subr.bf16.mxu1 %v3592_v37  ;;  %2634 = vmatpush1.bf16.msra.mxu0 %v3587_v32  ;;  %v3583_v31 = vld [vmem:[#allocation2 + $0xd8] ss:$36 sps:$4 sm:$0xff]   ;;  %v317_v32 = vor.u32 %v316_v24, %v312_v15  ;;  %v624_v37 = vor.u32 %v623_v29, %v4232_v61  ;;  %v326_v38 = vrot.slane %v324_v19, 4  ;;  %v514_v40 = vld [vmem:[%s3928_s13 + $0x34] sm:$0xf] }
  0x69   : > { %2635 = vmatprep.subr.bf16.mxu0 %v3595_v44  ;;  %v3580_v30 = vld [vmem:[#allocation2 + $0xdc] ss:$36 sps:$4 sm:$0xff]   ;;  %v627_v43 = vshll.u32 %v514_v40, 16  ;;  %v631_v44 = vshrl.u32 %v514_v40, 16  ;;  %v688_v48 = vld [vmem:[%s3928_s13 + $0x34] sm:$0xf] }
  0x6a   : > { %v3613_v36 = vld [vmem:[%s4815_s1 + $0x3b4] ss:$8 sps:$4 sm:$0xff]   ;;  %2376 = vmatprep.mubr.bf16.mxu1 %v3580_v30  ;;  %v318_v39 = vrot.slane %v317_v32, 4  ;;  %v625_v42 = vrot.slane %v624_v37, 4  ;;  %v327_v50 = vor.u32 %v326_v38, %v322_v25  ;;  %v737_v54 = vrot.slane %v688_v48, 5 }
  0x6b   : > { %2434 = vmatpush1.bf16.msra.mxu1 %v3590_v41  ;;  %v4276_v41 = vld [vmem:[%s3928_s13 + $0x38] sm:$0xf]  ;;  %v629_v51 = vrot.slane %v627_v43, 5  ;;  %v633_v52 = vrot.slane %v631_v44, 4  ;;  %v187_v55 = vld [vmem:[%s3928_s13 + $0x28] sm:$0xf] }
  0x6c   : > { %2636 = vmatpush1.bf16.msra.mxu0 %v3593_v49  ;;  %2435 = vmatprep.subr.bf16.mxu1 %v3604_v20  ;;  %v637_v45 = vshll.u32 %v4276_v41, 16  ;;  %v323_v46 = vsel %vm3970_vm4, %v318_v39, %v322_v25  ;;  %v641_v47 = vshrl.u32 %v4276_v41, 16  ;;  %v4284_v49 = vld [vmem:[%s3928_s13 + $0x38] sm:$0xf]  ;;  %200 = vst [vmem:[#allocation2 + $0x168] sm:$0xf] %v187_v55  ;;  %v738_v62 = vsel %vm3992_vm5, %v736_v34, %v737_v54 }
  0x6d   : > { %2637 = vmatprep.subr.bf16.mxu0 %v3607_v26  ;;  %2377 = vmatmul.mubr.bf16.gmra.mrb[12].mxu1 %v3583_v31  ;;  %376 = vst [vmem:[#allocation2 + $0x148] sm:$0xf] %v323_v46  ;;  %v3596_v56 = vld [vmem:[#allocation2 + $0x134] ss:$36 sps:$4 sm:$0xff]   ;;  %v740_v57 = vrot.slane %v4284_v49, 5  ;;  %v328_v58 = vrot.slane %v327_v50, 4  ;;  %v630_v60 = vsel %vm3970_vm4, %v625_v42, %v629_v51  ;;  %v634_v61 = vor.u32 %v633_v52, %v629_v51 }
  0x6e   : > { %v4286_v53 = vrot.slane %v637_v45, 5  ;;  %v3600_v59 = vld [vmem:[#allocation2 + $0x130] ss:$36 sps:$4 sm:$0xff]   ;;  %v739_v63 = vrot.slane %v737_v54, 4  ;;  %v188_v0 = vld [vmem:[%s3928_s13 + $0x2c] sm:$0xf]  ;;  %2588 = vmatprep.mubr.bf16.mxu0 %v3596_v56 }
  0x6f   : > { %2436 = vmatpush1.bf16.msra.mxu1 %v3602_v8  ;;  %674 = vst [vmem:[#allocation2 + $0x178] sm:$0xf] %v630_v60  ;;  %768 = vst [vmem:[#allocation2 + $0x17c] sm:$0xf] %v738_v62  ;;  %v214_v1 = vld [vmem:[%s3928_s13 + $0x2c] sm:$0xf]  ;;  %2589 = vmatmul.mubr.bf16.gmra.mrb[16].mxu0 %v3600_v59 }
  0x70   : > { %2638 = vmatpush1.bf16.msra.mxu0 %v3605_v21  ;;  %2437 = vmatprep.subr.bf16.mxu1 %v3610_v28  ;;  %201 = vst [vmem:[#allocation2 + $0x18c] sm:$0xf] %v188_v0  ;;  %v215_v2 = vld [vmem:[%s3928_s13 + $0x30] sm:$0xf]  ;;  %v3620_v3 = vld [vmem:[%s4815_s1 + $0x1c0] ss:$8 sps:$4 sm:$0xff]   ;;  %v741_v5 = vsel %vm3992_vm5, %v739_v63, %v740_v57 }
  0x71   : > { %2639 = vmatprep.subr.bf16.mxu0 %v3613_v36  ;;  %v635_v4 = vrot.slane %v634_v61, 4  ;;  %v330_v6 = vshll.u32 %v214_v1, 16  ;;  %v334_v7 = vshrl.u32 %v214_v1, 16  ;;  %v3622_v8 = vld [vmem:[%s4815_s1 + $0x1c4] ss:$8 sps:$4 sm:$0xff]   ;;  %v340_v9 = vshll.u32 %v215_v2, 16 }
  0x72   : > { %769 = vst [vmem:[#allocation2 + $0x1a0] sm:$0xf] %v741_v5  ;;  %v344_v10 = vshrl.u32 %v215_v2, 16  ;;  %v3623_v11 = vld [vmem:[%s4815_s1 + $0x3c0] ss:$8 sps:$4 sm:$0xff]   ;;  %v643_v25 = vrot.slane %v641_v47, 4 }
  0x73   : > { %2438 = vmatpush1.bf16.msra.mxu1 %v3608_v27  ;;  %v3625_v12 = vld [vmem:[%s4815_s1 + $0x3c4] ss:$8 sps:$4 sm:$0xff]   ;;  %v640_v13 = vsel %vm3970_vm4, %v635_v4, %v4286_v53  ;;  %v332_v15 = vrot.slane %v330_v6, 5  ;;  %v336_v16 = vrot.slane %v334_v7, 4  ;;  %v3626_v17 = vld [vmem:[%s4815_s1 + $0x1d0] ss:$8 sps:$4 sm:$0xff]  }
  0x74   : > { %2640 = vmatpush1.bf16.msra.mxu0 %v3611_v35  ;;  %2439 = vmatprep.subr.bf16.mxu1 %v3622_v8  ;;  %v3598_v18 = vld [vmem:[#allocation2 + $0x124] ss:$36 sps:$4 sm:$0xff]   ;;  %675 = vst [vmem:[#allocation2 + $0x19c] sm:$0xf] %v640_v13  ;;  %v342_v20 = vrot.slane %v340_v9, 5  ;;  %v644_v30 = vor.u32 %v643_v25, %v4286_v53  ;;  %v742_v32 = vrot.slane %v740_v57, 4 }
  0x75   : > { %v3601_v19 = vld [vmem:[#allocation2 + $0x120] ss:$36 sps:$4 sm:$0xff]   ;;  %2641 = vmatprep.subr.bf16.mxu0 %v3625_v12  ;;  %v333_v21 = vsel %vm3970_vm4, %v328_v58, %v332_v15  ;;  %v337_v22 = vor.u32 %v336_v16, %v332_v15  ;;  %v3628_v23 = vld [vmem:[%s4815_s1 + $0x1d4] ss:$8 sps:$4 sm:$0xff]   ;;  %v3629_v24 = vld [vmem:[%s4815_s1 + $0x3d0] ss:$8 sps:$4 sm:$0xff]   ;;  %2386 = vmatprep.mubr.bf16.mxu1 %v3598_v18 }
  0x76   : > { %377 = vst [vmem:[#allocation2 + $0x16c] sm:$0xf] %v333_v21  ;;  %v3631_v26 = vld [vmem:[%s4815_s1 + $0x3d4] ss:$8 sps:$4 sm:$0xff]   ;;  %2387 = vmatmul.mubr.bf16.gmra.mrb[16].mxu1 %v3601_v19  ;;  %v189_v34 = vld [vmem:[%s3928_s13 + $0x30] sm:$0xf] }
  0x77   : > { %2440 = vmatpush1.bf16.msra.mxu1 %v3620_v3  ;;  %v516_v27 = vld [vmem:[%s3928_s13 + $0x3c] sm:$0x1]  ;;  %v338_v29 = vrot.slane %v337_v22, 4  ;;  %202 = vst [vmem:[#allocation2 + $0x1b0] sm:$0xf] %v189_v34  ;;  %v346_v37 = vrot.slane %v344_v10, 4 }
  0x78   : > { %2642 = vmatpush1.bf16.msra.mxu0 %v3623_v11  ;;  %v690_v28 = vld [vmem:[%s3928_s13 + $0x3c] sm:$0x1]  ;;  %2441 = vmatprep.subr.bf16.mxu1 %v3628_v23  ;;  %v647_v31 = vshll.u32 %v516_v27, 16  ;;  %v216_v36 = vld [vmem:[%s3928_s13 + $0x34] sm:$0x1]  ;;  %v645_v39 = vrot.slane %v644_v30, 4 }
  0x79   : > { %2643 = vmatprep.subr.bf16.mxu0 %v3631_v26  ;;  %v743_v35 = vrot.slane %v690_v28, 5  ;;  %v343_v38 = vsel %vm3970_vm4, %v338_v29, %v342_v20  ;;  %v350_v41 = vshll.u32 %v216_v36, 16  ;;  %v3636_v42 = vld [vmem:[%s4815_s1 + $0x1e0] ss:$8 sps:$4 sm:$0xff]   ;;  %v347_v44 = vor.u32 %v346_v37, %v342_v20  ;;  %v3638_v45 = vld [vmem:[%s4815_s1 + $0x1e4] ss:$8 sps:$4 sm:$0xff]  }
  0x7a   : > { %v649_v40 = vrot.slane %v647_v31, 5  ;;  %378 = vst [vmem:[#allocation2 + $0x190] sm:$0xf] %v343_v38  ;;  %v3639_v46 = vld [vmem:[%s4815_s1 + $0x3e0] ss:$8 sps:$4 sm:$0xff]  }
  0x7b   : > { %2442 = vmatpush1.bf16.msra.mxu1 %v3626_v17  ;;  %v744_v43 = vsel %vm3992_vm5, %v742_v32, %v743_v35  ;;  %v3614_v47 = vld [vmem:[#allocation2 + $0x17c] ss:$36 sps:$4 sm:$0xff]   ;;  %v352_v50 = vrot.slane %v350_v41, 5  ;;  %v348_v51 = vrot.slane %v347_v44, 4  ;;  %v4351_v52 = vld [vmem:[%s4815_s1 + $0x3e4] ss:$8 sps:$4 sm:$0xff]  }
  0x7c   : > { %2644 = vmatpush1.bf16.msra.mxu0 %v3629_v24  ;;  %v3618_v48 = vld [vmem:[#allocation2 + $0x178] ss:$36 sps:$4 sm:$0xff]   ;;  %v650_v49 = vsel %vm3970_vm4, %v645_v39, %v649_v40  ;;  %770 = vst [vmem:[#allocation2 + $0x1c4] sm:$0xf] %v744_v43  ;;  %2443 = vmatprep.subr.bf16.mxu1 %v3638_v45  ;;  %v380_v58 = vld [vmem:[%s3928_s13] sm:$0xe] }
  0x7d   : > { %676 = vst [vmem:[#allocation2 + $0x1c0] sm:$0xf] %v650_v49  ;;  %2598 = vmatprep.mubr.bf16.mxu0 %v3614_v47  ;;  %v3642_v53 = vld [vmem:[%s4815_s1 + $0x1f0] ss:$8 sps:$4 sm:$0xff]   ;;  %v3644_v54 = vld [vmem:[%s4815_s1 + $0x1f4] ss:$8 sps:$4 sm:$0xff]   ;;  %v353_v55 = vsel %vm3970_vm4, %v348_v51, %v352_v50  ;;  %2645 = vmatprep.subr.bf16.mxu0 %v4351_v52 }
  0x7e   : > { %2599 = vmatmul.mubr.bf16.gmra.mrb[20].mxu0 %v3618_v48  ;;  %v4365_v56 = vld [vmem:[%s4815_s1 + $0x3f0] ss:$8 sps:$4 sm:$0xff]   ;;  %379 = vst [vmem:[#allocation2 + $0x1b4] sm:$0xf] %v353_v55  ;;  %v4370_v57 = vld [vmem:[%s4815_s1 + $0x3f4] ss:$8 sps:$4 sm:$0xff]  }
  0x7f   : > { %2444 = vmatpush1.bf16.msra.mxu1 %v3636_v42  ;;  %v381_v59 = vld [vmem:[%s3928_s13 + $0x4] sm:$0xf]  ;;  %v382_v60 = vld [vmem:[%s3928_s13 + $0x8] sm:$0xf]  ;;  %v3004_v61 = vrot.slane %v380_v58, 9 }
  0x80   : > { %2646 = vmatpush1.bf16.msra.mxu0 %v3639_v46  ;;  %2445 = vmatprep.subr.bf16.mxu1 %v3644_v54  ;;  %v413_v62 = vrot.slane %v381_v59, 5  ;;  %v477_v63 = vld [vmem:[%s3928_s13 + $0x8] sm:$0xf]  ;;  %v416_v2 = vrot.slane %v382_v60, 5  ;;  %v478_v5 = vld [vmem:[%s3928_s13 + $0xc] sm:$0xf] }
  0x81   : > { %v3616_v0 = vld [vmem:[#allocation2 + $0x16c] ss:$36 sps:$4 sm:$0xff]   ;;  %2647 = vmatprep.subr.bf16.mxu0 %v4370_v57  ;;  %490 = vst [vmem:[#allocation2 + $0xc] sm:$0xf] %v477_v63  ;;  %491 = vst [vmem:[#allocation2 + $0x30] sm:$0xf] %v478_v5 }
  0x82   : > { %v3619_v1 = vld [vmem:[#allocation2 + $0x168] ss:$36 sps:$4 sm:$0xff]   ;;  %v414_v3 = vsel %vm3992_vm5, %v3004_v61, %v413_v62  ;;  %v415_v4 = vrot.slane %v413_v62, 4  ;;  %v771_v6 = vld [vmem:[%s3928_s13 + $0x10] sm:$0xf]  ;;  %2396 = vmatprep.mubr.bf16.mxu1 %v3616_v0  ;;  %v418_v29 = vrot.slane %v416_v2, 4 }
  0x83   : > { %2446 = vmatpush1.bf16.msra.mxu1 %v3642_v53  ;;  %v3719_v7 = vld [vmem:[%s4815_s1 + $0x304] ss:$8 sps:$4 sm:$0xff]   ;;  %464 = vst [vmem:[#allocation2 + $0x8] sm:$0xf] %v414_v3  ;;  %v772_v9 = vld [vmem:[%s3928_s13 + $0x14] sm:$0xf] }
  0x84   : > { %3243 = vmatprep.subr.bf16.mxu1 %v3719_v7  ;;  %v1127_v8 = vld [vmem:[#allocation2 + $0x1c0] sm:$0xff]  ;;  %2648 = vmatpush1.bf16.msra.mxu0 %v4365_v56  ;;  %784 = vst [vmem:[#allocation2 + $0x18] sm:$0xf] %v771_v6  ;;  %v797_v10 = vld [vmem:[%s3928_s13 + $0x10] sm:$0xf]  ;;  %v417_v13 = vsel %vm3992_vm5, %v415_v4, %v416_v2 }
  0x85   : > { %2397 = vmatmul.mubr.bf16.gmra.mrb[20].mxu1 %v3619_v1  ;;  %v3066_v11 = vcombine.high %v1127_v8, %v1127_v8  ;;  %v3065_v12 = vcombine.low %v1127_v8, %v1127_v8  ;;  %785 = vst [vmem:[#allocation2 + $0x3c] sm:$0xf] %v772_v9  ;;  %v798_v15 = vld [vmem:[%s3928_s13 + $0x14] sm:$0xf]  ;;  %v799_v16 = vld [vmem:[%s3928_s13 + $0x18] sm:$0xf] }
  0x86   : > { %v812_v17 = vshrl.u32 %v797_v10, 16  ;;  %465 = vst [vmem:[#allocation2 + $0x2c] sm:$0xf] %v417_v13  ;;  %v815_v18 = vshll.u32 %v797_v10, 16  ;;  %v821_v19 = vshll.u32 %v798_v15, 16  ;;  %v825_v20 = vshrl.u32 %v798_v15, 16 }
  0x87   : > { %v831_v21 = vshll.u32 %v799_v16, 16  ;;  %2608 = vmatprep.mubr.bf16.mxu0 %v3066_v11  ;;  %v1125_v22 = vld [vmem:[#allocation2 + $0x1b0] sm:$0xff]  ;;  %v835_v24 = vshrl.u32 %v799_v16, 16  ;;  %v3656_v25 = vld [vmem:[%s4815_s1 + $0x404] ss:$8 sps:$4 sm:$0xff]  }
  0x88   : > { %v814_v23 = vrot.slane %v812_v17, 4  ;;  %v3062_v26 = vcombine.high %v1125_v22, %v1125_v22  ;;  %2609 = vmatmul.mubr.bf16.gmra.mrb[24].mxu0 %v3065_v12  ;;  %v817_v27 = vrot.slane %v815_v18, 5  ;;  %v823_v28 = vrot.slane %v821_v19, 5  ;;  %2718 = vmatprep.subr.bf16.mxu0 %v3656_v25  ;;  %v383_v34 = vld [vmem:[%s3928_s13 + $0xc] sm:$0xf] }
  0x89   : > { %v3061_v30 = vcombine.low %v1125_v22, %v1125_v22  ;;  %v827_v31 = vrot.slane %v825_v20, 4  ;;  %v833_v32 = vrot.slane %v831_v21, 5  ;;  %v384_v36 = vld [vmem:[%s3928_s13 + $0x10] sm:$0xf]  ;;  %v419_v37 = vrot.slane %v383_v34, 5 }
  0x8a   : > { %2406 = vmatprep.mubr.bf16.mxu1 %v3062_v26  ;;  %v818_v35 = vor.u32 %v817_v27, %v814_v23  ;;  %v479_v38 = vld [vmem:[%s3928_s13 + $0x10] sm:$0xf]  ;;  %v837_v39 = vrot.slane %v835_v24, 4  ;;  %v422_v41 = vrot.slane %v384_v36, 5  ;;  %v480_v42 = vld [vmem:[%s3928_s13 + $0x14] sm:$0xf] }
  0x8b   : > { %v828_v40 = vor.u32 %v827_v31, %v823_v28  ;;  %492 = vst [vmem:[#allocation2 + $0x54] sm:$0xf] %v479_v38  ;;  %v773_v43 = vld [vmem:[%s3928_s13 + $0x18] sm:$0xf]  ;;  %v420_v45 = vsel %vm3992_vm5, %v418_v29, %v419_v37  ;;  %v421_v46 = vrot.slane %v419_v37, 4 }
  0x8c   : > { %v819_v44 = vrot.slane %v818_v35, 4  ;;  %493 = vst [vmem:[#allocation2 + $0x78] sm:$0xf] %v480_v42  ;;  %v774_v47 = vld [vmem:[%s3928_s13 + $0x1c] sm:$0xf]  ;;  %v838_v49 = vor.u32 %v837_v39, %v833_v32  ;;  %v424_v1 = vrot.slane %v422_v41, 4 }
  0x8d   : > { %786 = vst [vmem:[#allocation2 + $0x60] sm:$0xf] %v773_v43  ;;  %v800_v48 = vld [vmem:[%s3928_s13 + $0x1c] sm:$0xf]  ;;  %2407 = vmatmul.mubr.bf16.gmra.mrb[24].mxu1 %v3061_v30  ;;  %v3650_v50 = vld [vmem:[#allocation2 + $0xc] ss:$36 sps:$4 sm:$0xff]   ;;  %v423_v54 = vsel %vm3992_vm5, %v421_v46, %v422_v41 }
  0x8e   : > { %v829_v51 = vrot.slane %v828_v40, 4  ;;  %466 = vst [vmem:[#allocation2 + $0x50] sm:$0xf] %v420_v45  ;;  %787 = vst [vmem:[#allocation2 + $0x84] sm:$0xf] %v774_v47  ;;  %v824_v53 = vsel %vm3970_vm4, %v819_v44, %v823_v28  ;;  %v839_v58 = vrot.slane %v838_v49, 4  ;;  %2447 = vmatprep.mubr.bf16.mxu1 %v3650_v50 }
  0x8f   : > { %v801_v55 = vld [vmem:[%s3928_s13 + $0x20] sm:$0xf]  ;;  %v841_v59 = vshll.u32 %v800_v48, 16  ;;  %958 = vst [vmem:[#allocation2 + $0x1c] sm:$0xf] %v824_v53  ;;  %v845_v61 = vshrl.u32 %v800_v48, 16 }
  0x90   : > { %v834_v60 = vsel %vm3970_vm4, %v829_v51, %v833_v32  ;;  %467 = vst [vmem:[#allocation2 + $0x74] sm:$0xf] %v423_v54  ;;  %v851_v62 = vshll.u32 %v801_v55, 16  ;;  %v855_v63 = vshrl.u32 %v801_v55, 16  ;;  %v3648_v2 = vld [vmem:[#allocation2 + $0x8] ss:$36 sps:$4 sm:$0xff]  }
  0x91   : > { %959 = vst [vmem:[#allocation2 + $0x40] sm:$0xf] %v834_v60  ;;  %v843_v0 = vrot.slane %v841_v59, 5  ;;  %v847_v3 = vrot.slane %v845_v61, 4  ;;  %v385_v5 = vld [vmem:[%s3928_s13 + $0x14] sm:$0xf] }
  0x92   : > { %v853_v4 = vrot.slane %v851_v62, 5  ;;  %v386_v7 = vld [vmem:[%s3928_s13 + $0x18] sm:$0xf]  ;;  %v425_v8 = vrot.slane %v385_v5, 5  ;;  %v857_v10 = vrot.slane %v855_v63, 4 }
  0x93   : > { %v844_v6 = vsel %vm3970_vm4, %v839_v58, %v843_v0  ;;  %v481_v9 = vld [vmem:[%s3928_s13 + $0x18] sm:$0xf]  ;;  %v848_v11 = vor.u32 %v847_v3, %v843_v0  ;;  %v428_v12 = vrot.slane %v386_v7, 5  ;;  %v482_v13 = vld [vmem:[%s3928_s13 + $0x1c] sm:$0xf] }
  0x94   : > { %960 = vst [vmem:[#allocation2 + $0x64] sm:$0xf] %v844_v6  ;;  %494 = vst [vmem:[#allocation2 + $0x9c] sm:$0xf] %v481_v9  ;;  %v775_v15 = vld [vmem:[%s3928_s13 + $0x20] sm:$0xf]  ;;  %v426_v16 = vsel %vm3992_vm5, %v424_v1, %v425_v8  ;;  %v858_v20 = vor.u32 %v857_v10, %v853_v4 }
  0x95   : > { %v427_v17 = vrot.slane %v425_v8, 4  ;;  %495 = vst [vmem:[#allocation2 + $0xc0] sm:$0xf] %v482_v13  ;;  %v776_v18 = vld [vmem:[%s3928_s13 + $0x24] sm:$0xf]  ;;  %2448 = vmatmul.mubr.bf16.vlgmr.msra.gmra.mrb[0].mxu1 %v3648_v2  ;;  %v849_v22 = vrot.slane %v848_v11, 4 }
  0x96   : > { %788 = vst [vmem:[#allocation2 + $0xa8] sm:$0xf] %v775_v15  ;;  %v802_v19 = vld [vmem:[%s3928_s13 + $0x24] sm:$0xf]  ;;  %v3654_v21 = vld [vmem:[%s4815_s1 + $0x400] ss:$8 sps:$4 sm:$0xff]  }
  0x97   : > { %468 = vst [vmem:[#allocation2 + $0x98] sm:$0xf] %v426_v16  ;;  %789 = vst [vmem:[#allocation2 + $0xcc] sm:$0xf] %v776_v18  ;;  %v803_v23 = vld [vmem:[%s3928_s13 + $0x28] sm:$0xf]  ;;  %v429_v28 = vsel %vm3992_vm5, %v427_v17, %v428_v12  ;;  %v854_v35 = vsel %vm3970_vm4, %v849_v22, %v853_v4 }
  0x98   : > { %v861_v24 = vshll.u32 %v802_v19, 16  ;;  %v865_v25 = vshrl.u32 %v802_v19, 16  ;;  %v3720_v26 = vld [vmem:[%s4815_s1 + $0x300] ss:$8 sps:$4 sm:$0xff]   ;;  %v3660_v27 = vld [vmem:[#allocation2 + $0x54] ss:$36 sps:$4 sm:$0xff]  }
  0x99   : > { %3259 = vmatpush1.bf16.msra.mxu1 %v3720_v26  ;;  %v859_v29 = vrot.slane %v858_v20, 4  ;;  %v871_v30 = vshll.u32 %v803_v23, 16  ;;  %v3651_v31 = vld [vmem:[#allocation2 + $0x18] ss:$36 sps:$4 sm:$0xff]   ;;  %469 = vst [vmem:[#allocation2 + $0xbc] sm:$0xf] %v429_v28  ;;  %2457 = vmatprep.mubr.bf16.mxu1 %v3660_v27 }
  0x9a   : > { %v3653_v32 = vld [vmem:[#allocation2 + $0x1c] ss:$36 sps:$4 sm:$0xff]   ;;  %v863_v36 = vrot.slane %v861_v24, 5  ;;  %961 = vst [vmem:[#allocation2 + $0x88] sm:$0xf] %v854_v35  ;;  %v867_v38 = vrot.slane %v865_v25, 4 }
  0x9b   : > { %v3721_v34 = vld [vmem:[%s4815_s1 + $0x314] ss:$8 sps:$4 sm:$0xff]   ;;  %v875_v39 = vshrl.u32 %v803_v23, 16  ;;  %2649 = vmatprep.mubr.bf16.mxu0 %v3653_v32  ;;  %v3657_v40 = vld [vmem:[%s4815_s1 + $0x410] ss:$8 sps:$4 sm:$0xff]   ;;  %v873_v46 = vrot.slane %v871_v30, 5 }
  0x9c   : > { %3244 = vmatprep.subr.bf16.mxu1 %v3721_v34  ;;  %v3659_v37 = vld [vmem:[%s4815_s1 + $0x414] ss:$8 sps:$4 sm:$0xff]   ;;  %v864_v42 = vsel %vm3970_vm4, %v859_v29, %v863_v36  ;;  %2650 = vmatmul.mubr.bf16.vlgmr.msra.gmra.mrb[0].mxu0 %v3651_v31  ;;  %v3722_v43 = vld [vmem:[%s4815_s1 + $0x310] ss:$8 sps:$4 sm:$0xff]   ;;  %v3668_v44 = vld [vmem:[%s4815_s1 + $0x424] ss:$8 sps:$4 sm:$0xff]   ;;  %v868_v45 = vor.u32 %v867_v38, %v863_v36 }
  0x9d   : > { %v3664_v41 = vld [vmem:[#allocation2 + $0x50] ss:$36 sps:$4 sm:$0xff]   ;;  %3260 = vmatpush1.bf16.msra.mxu1 %v3722_v43  ;;  %962 = vst [vmem:[#allocation2 + $0xac] sm:$0xf] %v864_v42  ;;  %v430_v47 = vrot.slane %v428_v12, 4  ;;  %v877_v48 = vrot.slane %v875_v39, 4  ;;  %2719 = vmatpush1.bf16.msra.mxu0 %v3654_v21 }
  0x9e   : > { %v3723_v49 = vld [vmem:[%s4815_s1 + $0x324] ss:$8 sps:$4 sm:$0xff]   ;;  %v387_v50 = vld [vmem:[%s3928_s13 + $0x1c] sm:$0xf]  ;;  %v388_v51 = vld [vmem:[%s3928_s13 + $0x20] sm:$0xf]  ;;  %2720 = vmatprep.subr.bf16.mxu0 %v3659_v37  ;;  %2458 = vmatmul.mubr.bf16.gmra.mrb[4].mxu1 %v3664_v41 }
  0x9f   : > { %3245 = vmatprep.subr.bf16.mxu1 %v3723_v49  ;;  %v483_v53 = vld [vmem:[%s3928_s13 + $0x20] sm:$0xf]  ;;  %v869_v54 = vrot.slane %v868_v45, 4  ;;  %v431_v55 = vrot.slane %v387_v50, 5  ;;  %v434_v58 = vrot.slane %v388_v51, 5  ;;  %v878_v60 = vor.u32 %v877_v48, %v873_v46 }
  0xa0   : > { %v484_v59 = vld [vmem:[%s3928_s13 + $0x24] sm:$0xf]  ;;  %496 = vst [vmem:[#allocation2 + $0xe4] sm:$0xf] %v483_v53  ;;  %v3666_v61 = vld [vmem:[%s4815_s1 + $0x420] ss:$8 sps:$4 sm:$0xff]  }
  0xa1   : > { %497 = vst [vmem:[#allocation2 + $0x108] sm:$0xf] %v484_v59  ;;  %v777_v62 = vld [vmem:[%s3928_s13 + $0x28] sm:$0xf]  ;;  %v778_v63 = vld [vmem:[%s3928_s13 + $0x2c] sm:$0xf]  ;;  %v874_v4 = vsel %vm3970_vm4, %v869_v54, %v873_v46  ;;  %v432_v5 = vsel %vm3992_vm5, %v430_v47, %v431_v55  ;;  %2721 = vmatpush1.bf16.msra.mxu0 %v3657_v40 }
  0xa2   : > { %v804_v0 = vld [vmem:[%s3928_s13 + $0x2c] sm:$0xf]  ;;  %v3724_v1 = vld [vmem:[%s4815_s1 + $0x320] ss:$8 sps:$4 sm:$0xff]   ;;  %v3671_v2 = vld [vmem:[%s4815_s1 + $0x434] ss:$8 sps:$4 sm:$0xff]   ;;  %2722 = vmatprep.subr.bf16.mxu0 %v3668_v44 }
  0xa3   : > { %3261 = vmatpush1.bf16.msra.mxu1 %v3724_v1  ;;  %v3672_v3 = vld [vmem:[#allocation2 + $0x9c] ss:$36 sps:$4 sm:$0xff]   ;;  %v433_v6 = vrot.slane %v431_v55, 4  ;;  %790 = vst [vmem:[#allocation2 + $0xf0] sm:$0xf] %v777_v62  ;;  %v879_v10 = vrot.slane %v878_v60, 4 }
  0xa4   : > { %791 = vst [vmem:[#allocation2 + $0x114] sm:$0xf] %v778_v63  ;;  %v3662_v7 = vld [vmem:[#allocation2 + $0x64] ss:$36 sps:$4 sm:$0xff]   ;;  %v3725_v9 = vld [vmem:[%s4815_s1 + $0x334] ss:$8 sps:$4 sm:$0xff]   ;;  %2467 = vmatprep.mubr.bf16.mxu1 %v3672_v3 }
  0xa5   : > { %v3665_v8 = vld [vmem:[#allocation2 + $0x60] ss:$36 sps:$4 sm:$0xff]   ;;  %3246 = vmatprep.subr.bf16.mxu1 %v3725_v9  ;;  %963 = vst [vmem:[#allocation2 + $0xd0] sm:$0xf] %v874_v4  ;;  %470 = vst [vmem:[#allocation2 + $0xe0] sm:$0xf] %v432_v5  ;;  %v435_v11 = vsel %vm3992_vm5, %v433_v6, %v434_v58  ;;  %2659 = vmatprep.mubr.bf16.mxu0 %v3662_v7 }
  0xa6   : > { %v4478_v12 = vld [vmem:[%s3928_s13 + $0x30] sm:$0xf]  ;;  %v881_v13 = vshll.u32 %v804_v0, 16  ;;  %v885_v15 = vshrl.u32 %v804_v0, 16  ;;  %v3676_v16 = vld [vmem:[#allocation2 + $0x98] ss:$36 sps:$4 sm:$0xff]   ;;  %2660 = vmatmul.mubr.bf16.gmra.mrb[4].mxu0 %v3665_v8 }
  0xa7   : > { %471 = vst [vmem:[#allocation2 + $0x104] sm:$0xf] %v435_v11  ;;  %v891_v17 = vshll.u32 %v4478_v12, 16  ;;  %v3669_v18 = vld [vmem:[%s4815_s1 + $0x430] ss:$8 sps:$4 sm:$0xff]   ;;  %2723 = vmatpush1.bf16.msra.mxu0 %v3666_v61  ;;  %v895_v25 = vshrl.u32 %v4478_v12, 16  ;;  %2468 = vmatmul.mubr.bf16.gmra.mrb[8].mxu1 %v3676_v16 }
  0xa8   : > { %v3726_v19 = vld [vmem:[%s4815_s1 + $0x330] ss:$8 sps:$4 sm:$0xff]   ;;  %v883_v20 = vrot.slane %v881_v13, 5  ;;  %v887_v21 = vrot.slane %v885_v15, 4  ;;  %v3727_v22 = vld [vmem:[%s4815_s1 + $0x344] ss:$8 sps:$4 sm:$0xff]   ;;  %2724 = vmatprep.subr.bf16.mxu0 %v3671_v2 }
  0xa9   : > { %3262 = vmatpush1.bf16.msra.mxu1 %v3726_v19  ;;  %v3680_v23 = vld [vmem:[%s4815_s1 + $0x444] ss:$8 sps:$4 sm:$0xff]   ;;  %v4493_v24 = vrot.slane %v891_v17, 5  ;;  %v436_v26 = vrot.slane %v434_v58, 4  ;;  %v390_v30 = vld [vmem:[%s3928_s13 + $0x28] sm:$0xf] }
  0xaa   : > { %3247 = vmatprep.subr.bf16.mxu1 %v3727_v22  ;;  %v884_v27 = vsel %vm3970_vm4, %v879_v10, %v883_v20  ;;  %v888_v28 = vor.u32 %v887_v21, %v883_v20  ;;  %v389_v29 = vld [vmem:[%s3928_s13 + $0x24] sm:$0xf]  ;;  %v485_v31 = vld [vmem:[%s3928_s13 + $0x28] sm:$0xf]  ;;  %v440_v35 = vrot.slane %v390_v30, 5  ;;  %v897_v20 = vrot.slane %v895_v25, 4 }
  0xab   : > { %v3678_v32 = vld [vmem:[%s4815_s1 + $0x440] ss:$8 sps:$4 sm:$0xff]   ;;  %964 = vst [vmem:[#allocation2 + $0xf4] sm:$0xf] %v884_v27  ;;  %v437_v34 = vrot.slane %v389_v29, 5  ;;  %2725 = vmatpush1.bf16.msra.mxu0 %v3669_v18 }
  0xac   : > { %v486_v36 = vld [vmem:[%s3928_s13 + $0x2c] sm:$0xf]  ;;  %498 = vst [vmem:[#allocation2 + $0x12c] sm:$0xf] %v485_v31  ;;  %v971_v37 = vld [vmem:[%s3928_s13 + $0x10] sm:$0xe]  ;;  %2726 = vmatprep.subr.bf16.mxu0 %v3680_v23 }
  0xad   : > { %v3674_v38 = vld [vmem:[#allocation2 + $0xac] ss:$36 sps:$4 sm:$0xff]   ;;  %v3728_v40 = vld [vmem:[%s4815_s1 + $0x340] ss:$8 sps:$4 sm:$0xff]   ;;  %v3683_v41 = vld [vmem:[%s4815_s1 + $0x454] ss:$8 sps:$4 sm:$0xff]   ;;  %v438_v44 = vsel %vm3992_vm5, %v436_v26, %v437_v34 }
  0xae   : > { %v3677_v39 = vld [vmem:[#allocation2 + $0xa8] ss:$36 sps:$4 sm:$0xff]   ;;  %3263 = vmatpush1.bf16.msra.mxu1 %v3728_v40  ;;  %v889_v42 = vrot.slane %v888_v28, 4  ;;  %499 = vst [vmem:[#allocation2 + $0x150] sm:$0xf] %v486_v36  ;;  %v439_v45 = vrot.slane %v437_v34, 4  ;;  %2669 = vmatprep.mubr.bf16.mxu0 %v3674_v38 }
  0xaf   : > { %v3729_v43 = vld [vmem:[%s4815_s1 + $0x354] ss:$8 sps:$4 sm:$0xff]   ;;  %v973_v47 = vld [vmem:[%s3928_s13 + $0x18] sm:$0xf]  ;;  %v3684_v48 = vld [vmem:[#allocation2 + $0xe4] ss:$36 sps:$4 sm:$0xff]   ;;  %2670 = vmatmul.mubr.bf16.gmra.mrb[8].mxu0 %v3677_v39 }
  0xb0   : > { %3248 = vmatprep.subr.bf16.mxu1 %v3729_v43  ;;  %v972_v46 = vld [vmem:[%s3928_s13 + $0x14] sm:$0xf]  ;;  %v894_v49 = vsel %vm3970_vm4, %v889_v42, %v4493_v24  ;;  %v3688_v50 = vld [vmem:[#allocation2 + $0xe0] ss:$36 sps:$4 sm:$0xff]   ;;  %472 = vst [vmem:[#allocation2 + $0x128] sm:$0xf] %v438_v44  ;;  %v441_v54 = vsel %vm3992_vm5, %v439_v45, %v440_v35  ;;  %2727 = vmatpush1.bf16.msra.mxu0 %v3678_v32 }
  0xb1   : > { %v3006_v51 = vrot.slane %v971_v37, 9  ;;  %v3681_v53 = vld [vmem:[%s4815_s1 + $0x450] ss:$8 sps:$4 sm:$0xff]   ;;  %965 = vst [vmem:[#allocation2 + $0x118] sm:$0xf] %v894_v49  ;;  %v1001_v55 = vrot.slane %v972_v46, 5  ;;  %2477 = vmatprep.mubr.bf16.mxu1 %v3684_v48  ;;  %2728 = vmatprep.subr.bf16.mxu0 %v3683_v41  ;;  %v898_v45 = vor.u32 %v897_v20, %v4493_v24 }
  0xb2   : > { %v1004_v58 = vrot.slane %v973_v47, 5  ;;  %v391_v59 = vld [vmem:[%s3928_s13 + $0x2c] sm:$0xf]  ;;  %v392_v60 = vld [vmem:[%s3928_s13 + $0x30] sm:$0xf]  ;;  %v442_v63 = vrot.slane %v440_v35, 4  ;;  %2478 = vmatmul.mubr.bf16.gmra.mrb[12].mxu1 %v3688_v50 }
  0xb3   : > { %v3730_v61 = vld [vmem:[%s4815_s1 + $0x350] ss:$8 sps:$4 sm:$0xff]   ;;  %v3692_v62 = vld [vmem:[%s4815_s1 + $0x464] ss:$8 sps:$4 sm:$0xff]   ;;  %473 = vst [vmem:[#allocation2 + $0x14c] sm:$0xf] %v441_v54  ;;  %v1002_v3 = vsel %vm3992_vm5, %v3006_v51, %v1001_v55 }
  0xb4   : > { %3264 = vmatpush1.bf16.msra.mxu1 %v3730_v61  ;;  %v443_v0 = vrot.slane %v391_v59, 5  ;;  %v446_v1 = vrot.slane %v392_v60, 5  ;;  %v487_v2 = vld [vmem:[%s3928_s13 + $0x30] sm:$0xf]  ;;  %v1003_v4 = vrot.slane %v1001_v55, 4  ;;  %v1006_v7 = vrot.slane %v1004_v58, 4  ;;  %2729 = vmatpush1.bf16.msra.mxu0 %v3681_v53 }
  0xb5   : > { %v488_v5 = vld [vmem:[%s3928_s13 + $0x34] sm:$0xf]  ;;  %500 = vst [vmem:[#allocation2 + $0x174] sm:$0xf] %v487_v2  ;;  %v974_v6 = vld [vmem:[%s3928_s13 + $0x1c] sm:$0xf]  ;;  %2730 = vmatprep.subr.bf16.mxu0 %v3692_v62 }
  0xb6   : > { %v3731_v8 = vld [vmem:[%s4815_s1 + $0x364] ss:$8 sps:$4 sm:$0xff]   ;;  %1052 = vst [vmem:[#allocation2 + $0x20] sm:$0xf] %v1002_v3  ;;  %v444_v9 = vsel %vm3992_vm5, %v442_v63, %v443_v0  ;;  %v445_v10 = vrot.slane %v443_v0, 4  ;;  %v1007_v13 = vrot.slane %v974_v6, 5  ;;  %v1005_v16 = vsel %vm3992_vm5, %v1003_v4, %v1004_v58 }
  0xb7   : > { %3249 = vmatprep.subr.bf16.mxu1 %v3731_v8  ;;  %501 = vst [vmem:[#allocation2 + $0x198] sm:$0xf] %v488_v5  ;;  %v975_v11 = vld [vmem:[%s3928_s13 + $0x20] sm:$0xf]  ;;  %v448_v15 = vrot.slane %v446_v1, 4  ;;  %v3756_v55 = vmov 0  }
  0xb8   : > { %474 = vst [vmem:[#allocation2 + $0x170] sm:$0xf] %v444_v9  ;;  %v1010_v17 = vrot.slane %v975_v11, 5  ;;  %v393_v18 = vld [vmem:[%s3928_s13 + $0x34] sm:$0x1]  ;;  %v447_v23 = vsel %vm3992_vm5, %v445_v10, %v446_v1  ;;  %v1008_v26 = vsel %vm3992_vm5, %v1006_v7, %v1007_v13  ;;  %v1009_v27 = vrot.slane %v1007_v13, 4 }
  0xb9   : > { %v489_v19 = vld [vmem:[%s3928_s13 + $0x38] sm:$0xf]  ;;  %v3690_v21 = vld [vmem:[%s4815_s1 + $0x460] ss:$8 sps:$4 sm:$0xff]   ;;  %1053 = vst [vmem:[#allocation2 + $0x44] sm:$0xf] %v1005_v16 }
  0xba   : > { %v3732_v22 = vld [vmem:[%s4815_s1 + $0x360] ss:$8 sps:$4 sm:$0xff]   ;;  %v449_v12 = vrot.slane %v393_v18, 5  ;;  %502 = vst [vmem:[#allocation2 + $0x1bc] sm:$0xf] %v489_v19  ;;  %v1012_v31 = vrot.slane %v1010_v17, 4  ;;  %v1011_v38 = vsel %vm3992_vm5, %v1009_v27, %v1010_v17  ;;  %2731 = vmatpush1.bf16.msra.mxu0 %v3690_v21 }
  0xbb   : > { %3265 = vmatpush1.bf16.msra.mxu1 %v3732_v22  ;;  %v976_v25 = vld [vmem:[%s3928_s13 + $0x24] sm:$0xf]  ;;  %v977_v28 = vld [vmem:[%s3928_s13 + $0x28] sm:$0xf]  ;;  %v3733_v29 = vld [vmem:[%s4815_s1 + $0x374] ss:$8 sps:$4 sm:$0xff]  }
  0xbc   : > { %3250 = vmatprep.subr.bf16.mxu1 %v3733_v29  ;;  %v3695_v30 = vld [vmem:[%s4815_s1 + $0x474] ss:$8 sps:$4 sm:$0xff]   ;;  %475 = vst [vmem:[#allocation2 + $0x194] sm:$0xf] %v447_v23  ;;  %1054 = vst [vmem:[#allocation2 + $0x68] sm:$0xf] %v1008_v26  ;;  %v450_v39 = vsel %vm3992_vm5, %v448_v15, %v449_v12 }
  0xbd   : > { %v1013_v32 = vrot.slane %v976_v25, 5  ;;  %v1016_v34 = vrot.slane %v977_v28, 5  ;;  %v978_v35 = vld [vmem:[%s3928_s13 + $0x2c] sm:$0xf]  ;;  %v3686_v36 = vld [vmem:[#allocation2 + $0xf4] ss:$36 sps:$4 sm:$0xff]   ;;  %2732 = vmatprep.subr.bf16.mxu0 %v3695_v30 }
  0xbe   : > { %v3689_v37 = vld [vmem:[#allocation2 + $0xf0] ss:$36 sps:$4 sm:$0xff]   ;;  %v1019_v40 = vrot.slane %v978_v35, 5  ;;  %v3698_v42 = vld [vmem:[#allocation2 + $0x128] ss:$36 sps:$4 sm:$0xff]   ;;  %2679 = vmatprep.mubr.bf16.mxu0 %v3686_v36  ;;  %v899_v62 = vrot.slane %v898_v45, 4 }
  0xbf   : > { %v3696_v41 = vld [vmem:[#allocation2 + $0x12c] ss:$36 sps:$4 sm:$0xff]   ;;  %1055 = vst [vmem:[#allocation2 + $0x8c] sm:$0xf] %v1011_v38  ;;  %476 = vst [vmem:[#allocation2 + $0x1b8] sm:$0xf] %v450_v39  ;;  %v1014_v43 = vsel %vm3992_vm5, %v1012_v31, %v1013_v32  ;;  %2680 = vmatmul.mubr.bf16.gmra.mrb[12].mxu0 %v3689_v37 }
  0xc0   : > { %v1015_v44 = vrot.slane %v1013_v32, 4  ;;  %v3693_v46 = vld [vmem:[%s4815_s1 + $0x470] ss:$8 sps:$4 sm:$0xff]   ;;  %1056 = vst [vmem:[#allocation2 + $0xb0] sm:$0xf] %v1014_v43  ;;  %v1018_v49 = vrot.slane %v1016_v34, 4  ;;  %2487 = vmatprep.mubr.bf16.mxu1 %v3696_v41  ;;  %2750 = vmatprep.mubr.bf16.mxu0 %v3756_v55 }
  0xc1   : > { %v3734_v47 = vld [vmem:[%s4815_s1 + $0x370] ss:$8 sps:$4 sm:$0xff]   ;;  %v1021_v50 = vrot.slane %v1019_v40, 4  ;;  %v780_v54 = vld [vmem:[%s3928_s13 + $0x34] sm:$0xf]  ;;  %2488 = vmatmul.mubr.bf16.gmra.mrb[16].mxu1 %v3698_v42  ;;  %2733 = vmatpush1.bf16.msra.mxu0 %v3693_v46 }
  0xc2   : > { %3266 = vmatpush1.bf16.msra.mxu1 %v3734_v47  ;;  %v979_v48 = vld [vmem:[%s3928_s13 + $0x30] sm:$0xf]  ;;  %v1017_v24 = vsel %vm3992_vm5, %v1015_v44, %v1016_v34  ;;  %v1020_v58 = vsel %vm3992_vm5, %v1018_v49, %v1019_v40  ;;  %793 = vst [vmem:[#allocation2 + $0x15c] sm:$0xf] %v780_v54  ;;  %v806_v59 = vld [vmem:[%s3928_s13 + $0x34] sm:$0xf] }
  0xc3   : > { %v779_v51 = vld [vmem:[%s3928_s13 + $0x30] sm:$0xf]  ;;  %v1022_v53 = vrot.slane %v979_v48, 5  ;;  %1057 = vst [vmem:[#allocation2 + $0xd4] sm:$0xf] %v1017_v24  ;;  %v901_v63 = vshll.u32 %v806_v59, 16 }
  0xc4   : > { %792 = vst [vmem:[#allocation2 + $0x138] sm:$0xf] %v779_v51  ;;  %v807_v60 = vld [vmem:[%s3928_s13 + $0x38] sm:$0xf]  ;;  %1058 = vst [vmem:[#allocation2 + $0xf8] sm:$0xf] %v1020_v58 }
  0xc5   : > { %v1023_v61 = vsel %vm3992_vm5, %v1021_v50, %v1022_v53  ;;  %v905_v0 = vshrl.u32 %v806_v59, 16  ;;  %v3735_v1 = vld [vmem:[%s4815_s1 + $0x384] ss:$8 sps:$4 sm:$0xff]   ;;  %v3700_v3 = vld [vmem:[#allocation2 + $0x174] ss:$36 sps:$4 sm:$0xff]   ;;  %v911_v4 = vshll.u32 %v807_v60, 16 }
  0xc6   : > { %3251 = vmatprep.subr.bf16.mxu1 %v3735_v1  ;;  %v3699_v2 = vld [vmem:[#allocation2 + $0x20] ss:$36 sps:$4 sm:$0xff]   ;;  %1059 = vst [vmem:[#allocation2 + $0x11c] sm:$0xf] %v1023_v61  ;;  %v3702_v6 = vld [vmem:[#allocation2 + $0x170] ss:$36 sps:$4 sm:$0xff]   ;;  %2497 = vmatprep.mubr.bf16.mxu1 %v3700_v3 }
  0xc7   : > { %v3736_v5 = vld [vmem:[%s4815_s1 + $0x380] ss:$8 sps:$4 sm:$0xff]   ;;  %v903_v7 = vrot.slane %v901_v63, 5  ;;  %v907_v8 = vrot.slane %v905_v0, 4  ;;  %v915_v9 = vshrl.u32 %v807_v60, 16  ;;  %v4605_v11 = vld [vmem:[#allocation2 + $0x1b8] sm:$0xff]  ;;  %2751 = vmatmul.mubr.bf16.vlgmr.msra.gmra.mrb[0].mxu0 %v3699_v2 }
  0xc8   : > { %3267 = vmatpush1.bf16.msra.mxu1 %v3736_v5  ;;  %v3737_v10 = vld [vmem:[%s4815_s1 + $0x394] ss:$8 sps:$4 sm:$0xff]   ;;  %v913_v13 = vrot.slane %v911_v4, 5  ;;  %v1024_v15 = vrot.slane %v1022_v53, 4  ;;  %v981_v19 = vld [vmem:[%s3928_s13 + $0x38] sm:$0xf]  ;;  %v3064_v20 = vcombine.high %v4605_v11, %v4605_v11  ;;  %2760 = vmatprep.mubr.bf16.mxu0 %v3756_v55  ;;  %v3063_v49 = vcombine.low %v4605_v11, %v4605_v11 }
  0xc9   : > { %3252 = vmatprep.subr.bf16.mxu1 %v3737_v10  ;;  %v904_v16 = vsel %vm3970_vm4, %v899_v62, %v903_v7  ;;  %v908_v17 = vor.u32 %v907_v8, %v903_v7  ;;  %v980_v18 = vld [vmem:[%s3928_s13 + $0x34] sm:$0xf]  ;;  %v1028_v22 = vrot.slane %v981_v19, 5  ;;  %v781_v23 = vld [vmem:[%s3928_s13 + $0x38] sm:$0xf]  ;;  %v917_v25 = vrot.slane %v915_v9, 4  ;;  %2498 = vmatmul.mubr.bf16.gmra.mrb[20].mxu1 %v3702_v6 }
  0xca   : > { %966 = vst [vmem:[#allocation2 + $0x13c] sm:$0xf] %v904_v16  ;;  %v1025_v21 = vrot.slane %v980_v18, 5  ;;  %v782_v26 = vld [vmem:[%s3928_s13 + $0x3c] sm:$0xf]  ;;  %2507 = vmatprep.mubr.bf16.mxu1 %v3064_v20 }
  0xcb   : > { %v3738_v27 = vld [vmem:[%s4815_s1 + $0x390] ss:$8 sps:$4 sm:$0xff]   ;;  %v909_v12 = vrot.slane %v908_v17, 4  ;;  %794 = vst [vmem:[#allocation2 + $0x180] sm:$0xf] %v781_v23  ;;  %v918_v36 = vor.u32 %v917_v25, %v913_v13  ;;  %v1030_v37 = vrot.slane %v1028_v22, 4 }
  0xcc   : > { %3268 = vmatpush1.bf16.msra.mxu1 %v3738_v27  ;;  %795 = vst [vmem:[#allocation2 + $0x1a4] sm:$0xf] %v782_v26  ;;  %v3739_v28 = vld [vmem:[%s4815_s1 + $0x3a4] ss:$8 sps:$4 sm:$0xff]   ;;  %v1026_v29 = vsel %vm3992_vm5, %v1024_v15, %v1025_v21  ;;  %v1027_v30 = vrot.slane %v1025_v21, 4 }
  0xcd   : > { %3253 = vmatprep.subr.bf16.mxu1 %v3739_v28  ;;  %v808_v31 = vld [vmem:[%s3928_s13 + $0x3c] sm:$0xf]  ;;  %v3703_v32 = vld [vmem:[#allocation2 + $0x68] ss:$36 sps:$4 sm:$0xff]   ;;  %v914_v34 = vsel %vm3970_vm4, %v909_v12, %v913_v13  ;;  %1060 = vst [vmem:[#allocation2 + $0x140] sm:$0xf] %v1026_v29 }
  0xce   : > { %v809_v35 = vld [vmem:[%s3928_s13 + $0x40] sm:$0xf]  ;;  %967 = vst [vmem:[#allocation2 + $0x160] sm:$0xf] %v914_v34  ;;  %v1029_v38 = vsel %vm3992_vm5, %v1027_v30, %v1028_v22  ;;  %v921_v39 = vshll.u32 %v808_v31, 16  ;;  %v925_v40 = vshrl.u32 %v808_v31, 16 }
  0xcf   : > { %v931_v41 = vshll.u32 %v809_v35, 16  ;;  %v982_v42 = vld [vmem:[%s3928_s13 + $0x3c] sm:$0xf]  ;;  %v3740_v43 = vld [vmem:[%s4815_s1 + $0x3a0] ss:$8 sps:$4 sm:$0xff]   ;;  %v919_v44 = vrot.slane %v918_v36, 4  ;;  %2761 = vmatmul.mubr.bf16.gmra.mrb[4].mxu0 %v3703_v32 }
  0xd0   : > { %3269 = vmatpush1.bf16.msra.mxu1 %v3740_v43  ;;  %1061 = vst [vmem:[#allocation2 + $0x164] sm:$0xf] %v1029_v38  ;;  %v935_v45 = vshrl.u32 %v809_v35, 16  ;;  %v983_v46 = vld [vmem:[%s3928_s13 + $0x40] sm:$0xf]  ;;  %v1031_v47 = vrot.slane %v982_v42, 5  ;;  %2770 = vmatprep.mubr.bf16.mxu0 %v3756_v55 }
  0xd1   : > { %v3741_v48 = vld [vmem:[%s4815_s1 + $0x3b4] ss:$8 sps:$4 sm:$0xff]   ;;  %v923_v50 = vrot.slane %v921_v39, 5  ;;  %v927_v51 = vrot.slane %v925_v40, 4  ;;  %v1034_v24 = vrot.slane %v983_v46, 5  ;;  %v933_v54 = vrot.slane %v931_v41, 5  ;;  %2508 = vmatmul.mubr.bf16.gmra.mrb[24].mxu1 %v3063_v49 }
  0xd2   : > { %3254 = vmatprep.subr.bf16.mxu1 %v3741_v48  ;;  %v783_v53 = vld [vmem:[%s3928_s13 + $0x40] sm:$0xf]  ;;  %v1032_v58 = vsel %vm3992_vm5, %v1030_v37, %v1031_v47  ;;  %v1033_v59 = vrot.slane %v1031_v47, 4  ;;  %v810_v60 = vld [vmem:[%s3928_s13 + $0x44] sm:$0x1]  ;;  %v937_v61 = vrot.slane %v935_v45, 4 }
  0xd3   : > { %796 = vst [vmem:[#allocation2 + $0x1c8] sm:$0xf] %v783_v53  ;;  %v924_v62 = vsel %vm3970_vm4, %v919_v44, %v923_v50  ;;  %v928_v63 = vor.u32 %v927_v51, %v923_v50  ;;  %1062 = vst [vmem:[#allocation2 + $0x188] sm:$0xf] %v1032_v58  ;;  %v941_v0 = vshll.u32 %v810_v60, 16  ;;  %v1036_v2 = vrot.slane %v1034_v24, 4 }
  0xd4   : > { %v984_v1 = vld [vmem:[%s3928_s13 + $0x44] sm:$0x1]  ;;  %v3742_v3 = vld [vmem:[%s4815_s1 + $0x3b0] ss:$8 sps:$4 sm:$0xff]   ;;  %968 = vst [vmem:[#allocation2 + $0x184] sm:$0xf] %v924_v62  ;;  %v1035_v4 = vsel %vm3992_vm5, %v1033_v59, %v1034_v24  ;;  %v938_v5 = vor.u32 %v937_v61, %v933_v54  ;;  %v1276_v50 = vlaneseq }
  0xd5   : > { %3270 = vmatpush1.bf16.msra.mxu1 %v3742_v3  ;;  %v1037_v6 = vrot.slane %v984_v1, 5  ;;  %v3743_v7 = vld [vmem:[%s4815_s1 + $0x3c4] ss:$8 sps:$4 sm:$0xff]   ;;  %v929_v8 = vrot.slane %v928_v63, 4  ;;  %1063 = vst [vmem:[#allocation2 + $0x1ac] sm:$0xf] %v1035_v4 }
  0xd6   : > { %3255 = vmatprep.subr.bf16.mxu1 %v3743_v7  ;;  %v943_v9 = vrot.slane %v941_v0, 5  ;;  %v3710_v10 = vld [vmem:[#allocation2 + $0x13c] ss:$36 sps:$4 sm:$0xff]   ;;  %v939_v11 = vrot.slane %v938_v5, 4  ;;  %v3706_v16 = vld [vmem:[#allocation2 + $0xb0] ss:$36 sps:$4 sm:$0xff]  }
  0xd7   : > { %v1038_v13 = vsel %vm3992_vm5, %v1036_v2, %v1037_v6  ;;  %v934_v15 = vsel %vm3970_vm4, %v929_v8, %v933_v54  ;;  %v3744_v17 = vld [vmem:[%s4815_s1 + $0x3c0] ss:$8 sps:$4 sm:$0xff]   ;;  %2689 = vmatprep.mubr.bf16.mxu1 %v3710_v10  ;;  %2771 = vmatmul.mubr.bf16.gmra.mrb[8].mxu0 %v3706_v16  ;;  %v3746_v19 = vld [vmem:[%s4815_s1 + $0x3d0] ss:$8 sps:$4 sm:$0xff]   ;;  %v1277_v24 = vshrl.u32 %v1276_v50, 7 }
  0xd8   : > { %1064 = vst [vmem:[#allocation2 + $0x1d0] sm:$0xf] %v1038_v13  ;;  %969 = vst [vmem:[#allocation2 + $0x1a8] sm:$0xf] %v934_v15  ;;  %v944_v18 = vsel %vm3970_vm4, %v939_v11, %v943_v9  ;;  %2780 = vmatprep.mubr.bf16.mxu0 %v3756_v55  ;;  %v3707_v20 = vld [vmem:[#allocation2 + $0xf8] ss:$36 sps:$4 sm:$0xff]  }
  0xd9   : > { %3271 = vmatpush1.bf16.msra.mxu1 %v3744_v17  ;;  %970 = vst [vmem:[#allocation2 + $0x1cc] sm:$0xf] %v944_v18  ;;  %v3708_v21 = vld [vmem:[#allocation2 + $0x138] ss:$36 sps:$4 sm:$0xff]   ;;  %v3711_v23 = vld [vmem:[#allocation2 + $0x140] ss:$36 sps:$4 sm:$0xff]  }
  0xda   : > { %3256 = vmatprep.subr.bf16.mxu1 %v3745_v33  ;;  %v1278_v59 = vsub.s32 0, %v1277_v24  ;;  %v1274_v61 = vld [vmem:[%s4816_s2] sm:$0x3]  ;;  %v1282_v62 = vsub.s32 1, %v1277_v24 }
  0xdc   : > { %v3715_v12 = vld [vmem:[#allocation2 + $0x188] ss:$36 sps:$4 sm:$0xff]   ;;  %v4716_v63 = vrot.slane %v1274_v61, %v1278_v59  ;;  %v4718_v0 = vrot.slane %v1274_v61, %v1282_v62 }
  0xdd   : > { %3272 = vmatpush1.bf16.msra.mxu1 %v3746_v19 }
  0xde   : > { %3257 = vmatprep.subr.bf16.mxu1 %v4351_v52  ;;  %v3714_v52 = vld [vmem:[#allocation2 + $0x180] ss:$36 sps:$4 sm:$0xff]  }
  0xdf   : > { %2781 = vmatmul.mubr.bf16.gmra.mrb[12].mxu0 %v3707_v20  ;;  %v3712_v22 = vld [vmem:[#allocation2 + $0x184] ss:$36 sps:$4 sm:$0xff]  }
  0xe0   : > { %2790 = vmatprep.mubr.bf16.mxu0 %v3756_v55  ;;  %v1128_v26 = vld [vmem:[#allocation2 + $0x1c8] sm:$0xff] }
  0xe1   : > { %3273 = vmatpush1.bf16.msra.mxu1 %v3747_v14  ;;  %v3068_v27 = vcombine.high %v1128_v26, %v1128_v26 }
  0xe2   : > { %3258 = vmatprep.subr.bf16.mxu1 %v4370_v57  ;;  %v3067_v57 = vcombine.low %v1128_v26, %v1128_v26 }
  0xe5   : > { %3274 = vmatpush1.bf16.msra.mxu1 %v4365_v56  ;;  %v3718_v56 = vld [vmem:[#allocation2 + $0x1d0] ss:$0 sps:$4 sm:$0xff]  }
  0xe7   : > { %2791 = vmatmul.mubr.bf16.gmra.mrb[28].mxu0 %v3711_v23 }
  0xe8   : > { %2690 = vmatmul.mubr.bf16.vlgmr.msra.gmra.mrb[28].mxu1 %v3708_v21  ;;  %2800 = vmatprep.mubr.bf16.mxu0 %v3756_v55 }
  0xe9   : > { %2699 = vmatprep.mubr.bf16.mxu1 %v3712_v22 }
  0xef   : > { %2801 = vmatmul.mubr.bf16.gmra.mrb[32].mxu0 %v3715_v12 }
  0xf0   : > { %2700 = vmatmul.mubr.bf16.gmra.mrb[32].mxu1 %v3714_v52  ;;  %2810 = vmatprep.mubr.bf16.mxu0 %v3756_v55 }
  0xf1   : > { %2709 = vmatprep.mubr.bf16.mxu1 %v3068_v27 }
  0xf7   : > { %2811 = vmatmul.mubr.bf16.gmra.mrb[36].mxu0 %v3718_v56 }
  0xf8   : > { %2710 = vmatmul.mubr.bf16.gmra.mrb[36].mxu1 %v3067_v57 }
 0x142   : > { %v2590_v25 = vpop.f32.mrb[16].mxu0 }
 0x143   : > { %v2592_v28 = vpop.f32.mrb[17].mxu0 }
 0x144   : > { %v2594_v29 = vpop.f32.mrb[18].mxu0 }
 0x145   : > { %v2596_v30 = vpop.f32.mrb[19].mxu0 }
 0x151   : > { %v4681_v31 = vpop.f32.mrb[20].mxu0 }
 0x152   : > { %v4683_v32 = vpop.f32.mrb[21].mxu0 }
 0x153   : > { %v4685_v34 = vpop.f32.mrb[22].mxu0 }
 0x154   : > { %v4687_v35 = vpop.f32.mrb[23].mxu0 }
 0x15b   : > { %v4689_v36 = vpop.f32.mrb[24].mxu0 }
 0x15c   : > { %v4691_v37 = vpop.f32.mrb[25].mxu0 }
 0x15d   : > { %v2614_v55 = vpop.f32.mrb[26].mxu0 }
 0x15e   : > { %v2615_v38 = vpop.f32.mrb[27].mxu0 }
 0x168   : > { %v2449_v39 = vpop.f32.mrb[0].mxu1 }
 0x169   : > { %v2451_v40 = vpop.f32.mrb[1].mxu1  ;;  %v3275_v11 = vadd.f32 %v2449_v39, %v4716_v63 }
 0x16a   : > { %v2453_v41 = vpop.f32.mrb[2].mxu1  ;;  %v3277_v15 = vadd.f32 %v2451_v40, %v4718_v0 }
 0x16b   : > { %v2455_v42 = vpop.f32.mrb[3].mxu1  ;;  %v3279_v18 = vadd.f32 %v2453_v41, %v4716_v63 }
 0x16c   : > { %v3281_v20 = vadd.f32 %v2455_v42, %v4718_v0 }
 0x171   : > { %v2459_v43 = vpop.f32.mrb[4].mxu1 }
 0x172   : > { %v2461_v44 = vpop.f32.mrb[5].mxu1  ;;  %v3283_v50 = vadd.f32 %v2459_v43, %v4716_v63 }
 0x173   : > { %v4693_v45 = vpop.f32.mrb[6].mxu1  ;;  %v3285_v59 = vadd.f32 %v2461_v44, %v4718_v0 }
 0x174   : > { %v4695_v46 = vpop.f32.mrb[7].mxu1 }
 0x17a   : > { %v4697_v47 = vpop.f32.mrb[8].mxu1 }
 0x17b   : > { %v4699_v48 = vpop.f32.mrb[9].mxu1 }
 0x17c   : > { %v4701_v49 = vpop.f32.mrb[10].mxu1 }
 0x17d   : > { %v4703_v51 = vpop.f32.mrb[11].mxu1 }
 0x185   : > { %v4705_v53 = vpop.f32.mrb[12].mxu1 }
 0x186   : > { %v4707_v54 = vpop.f32.mrb[13].mxu1 }
 0x187   : > { %v4709_v58 = vpop.f32.mrb[14].mxu1 }
 0x188   : > { %v4711_v60 = vpop.f32.mrb[15].mxu1 }
 0x194   : > { %v2489_v1 = vpop.f32.mrb[16].mxu1 }
 0x195   : > { %v3307_v2 = vadd.f32 %v2489_v1, %v4716_v63  ;;  %v2491_v3 = vpop.f32.mrb[17].mxu1  ;;  %v3287_v1 = vadd.f32 %v4693_v45, %v4716_v63 }
 0x196   : > { %v3311_v4 = vadd.f32 %v2491_v3, %v4718_v0  ;;  %v2493_v5 = vpop.f32.mrb[18].mxu1 }
 0x197   : > { %v3315_v6 = vadd.f32 %v2493_v5, %v4716_v63  ;;  %v2495_v7 = vpop.f32.mrb[19].mxu1  ;;  %v4723_v8 = vadd.f32 %v3307_v2, %v2590_v25 }
 0x198   : > { %v3319_v9 = vadd.f32 %v2495_v7, %v4718_v0  ;;  %v4726_v10 = vadd.f32 %v3311_v4, %v2592_v28 }
 0x199   : > { %v4729_v13 = vadd.f32 %v3315_v6, %v2594_v29 }
 0x19a   : > { %v2752_v16 = vpop.f32.mrb[0].mxu0  ;;  %v4732_v17 = vadd.f32 %v3319_v9, %v2596_v30 }
 0x19b   : > { %v3276_v33 = vadd.f32 %v3275_v11, %v2752_v16  ;;  %v2754_v19 = vpop.f32.mrb[1].mxu0 }
 0x19c   : > { %v3278_v14 = vadd.f32 %v3277_v15, %v2754_v19  ;;  %v2756_v21 = vpop.f32.mrb[2].mxu0  ;;  %v2499_v22 = vpop.f32.mrb[20].mxu1 }
 0x19d   : > { %v2819_v23 = vmax.f32 %v3276_v33, 0.0  ;;  %v3280_v26 = vadd.f32 %v3279_v18, %v2756_v21  ;;  %v2758_v52 = vpop.f32.mrb[3].mxu0  ;;  %v3323_v27 = vadd.f32 %v2499_v22, %v4716_v63  ;;  %v2501_v12 = vpop.f32.mrb[21].mxu1  ;;  %v3293_v21 = vadd.f32 %v4699_v48, %v4718_v0 }
 0x19e   : > { %v2820_v57 = vmax.f32 %v3278_v14, 0.0  ;;  %v3282_v56 = vadd.f32 %v3281_v20, %v2758_v52  ;;  %v3327_v25 = vadd.f32 %v2501_v12, %v4718_v0  ;;  %v2503_v28 = vpop.f32.mrb[22].mxu1  ;;  %v3291_v14 = vadd.f32 %v4697_v47, %v4716_v63 }
 0x19f   : > { %v2821_v29 = vmax.f32 %v3280_v26, 0.0  ;;  %v3331_v30 = vadd.f32 %v2503_v28, %v4716_v63  ;;  %v2505_v55 = vpop.f32.mrb[23].mxu1  ;;  %v4746_v38 = vadd.f32 %v3323_v27, %v4681_v31  ;;  %v3295_v26 = vadd.f32 %v4701_v49, %v4716_v63 }
 0x1a0   : > { %v3230_v39 = vpack.c.bf16 %v2820_v57, %v2819_v23  ;;  %v2822_v40 = vmax.f32 %v3282_v56, 0.0  ;;  %v3335_v41 = vadd.f32 %v2505_v55, %v4718_v0  ;;  %v4750_v42 = vadd.f32 %v3327_v25, %v4683_v32 }
 0x1a1   : > { %v4754_v24 = vadd.f32 %v3331_v30, %v4685_v34  ;;  %v3289_v32 = vadd.f32 %v4695_v46, %v4718_v0  ;;  %v3297_v27 = vadd.f32 %v4703_v51, %v4718_v0  ;;  %v3299_v49 = vadd.f32 %v4705_v53, %v4716_v63 }
 0x1a2   : > { %2925 = vst [vmem:[%s4742_s29] sm:$0xff] %v3230_v39  ;;  %v3231_v61 = vpack.c.bf16 %v2822_v40, %v2821_v29  ;;  %v2762_v62 = vpop.f32.mrb[4].mxu0  ;;  %v4759_v31 = vadd.f32 %v3335_v41, %v4687_v35  ;;  %v3301_v55 = vadd.f32 %v4707_v54, %v4718_v0  ;;  %v3303_v40 = vadd.f32 %v4709_v58, %v4716_v63 }
 0x1a3   : > { %v3284_v2 = vadd.f32 %v3283_v50, %v2762_v62  ;;  %v2764_v3 = vpop.f32.mrb[5].mxu0 }
 0x1a4   : > { %2926 = vst [vmem:[%s4742_s29 + $0x8] sm:$0xff] %v3231_v61  ;;  %v3286_v43 = vadd.f32 %v3285_v59, %v2764_v3  ;;  %v2766_v34 = vpop.f32.mrb[6].mxu0  ;;  %v2509_v4 = vpop.f32.mrb[24].mxu1  ;;  %v3305_v59 = vadd.f32 %v4711_v60, %v4718_v0 }
 0x1a5   : > { %v2823_v5 = vmax.f32 %v3284_v2, 0.0  ;;  %v3288_v44 = vadd.f32 %v3287_v1, %v2766_v34  ;;  %v2768_v6 = vpop.f32.mrb[7].mxu0  ;;  %v3339_v7 = vadd.f32 %v2509_v4, %v4716_v63  ;;  %v2511_v35 = vpop.f32.mrb[25].mxu1 }
 0x1a6   : > { %v2824_v9 = vmax.f32 %v3286_v43, 0.0  ;;  %v3290_v11 = vadd.f32 %v3289_v32, %v2768_v6  ;;  %v3343_v45 = vadd.f32 %v2511_v35, %v4718_v0  ;;  %v2513_v15 = vpop.f32.mrb[26].mxu1 }
 0x1a7   : > { %v2825_v16 = vmax.f32 %v3288_v44, 0.0  ;;  %v2514_v18 = vpop.f32.mrb[27].mxu1  ;;  %v4769_v46 = vadd.f32 %v3339_v7, %v4689_v36 }
 0x1a8   : > { %v3232_v33 = vpack.c.bf16 %v2824_v9, %v2823_v5  ;;  %v2826_v19 = vmax.f32 %v3290_v11, 0.0  ;;  %v4772_v20 = vadd.f32 %v3343_v45, %v4691_v37 }
 0x1aa   : > { %2927 = vst [vmem:[%s4742_s29 + $0x10] sm:$0xff] %v3232_v33  ;;  %v3233_v22 = vpack.c.bf16 %v2826_v19, %v2825_v16  ;;  %v2772_v23 = vpop.f32.mrb[8].mxu0 }
 0x1ab   : > { %v3292_v52 = vadd.f32 %v3291_v14, %v2772_v23  ;;  %v2774_v36 = vpop.f32.mrb[9].mxu0 }
 0x1ac   : > { %2928 = vst [vmem:[%s4742_s29 + $0x18] sm:$0xff] %v3233_v22  ;;  %v3294_v37 = vadd.f32 %v3293_v21, %v2774_v36  ;;  %v2776_v12 = vpop.f32.mrb[10].mxu0 }
 0x1ad   : > { %v2827_v57 = vmax.f32 %v3292_v52, 0.0  ;;  %v3296_v47 = vadd.f32 %v3295_v26, %v2776_v12  ;;  %v2778_v56 = vpop.f32.mrb[11].mxu0 }
 0x1ae   : > { %v2828_v48 = vmax.f32 %v3294_v37, 0.0  ;;  %v3298_v25 = vadd.f32 %v3297_v27, %v2778_v56 }
 0x1af   : > { %v2829_v28 = vmax.f32 %v3296_v47, 0.0 }
 0x1b0   : > { %v3234_v29 = vpack.c.bf16 %v2828_v48, %v2827_v57  ;;  %v2830_v30 = vmax.f32 %v3298_v25, 0.0 }
 0x1b2   : > { %2929 = vst [vmem:[%s4742_s29 + $0x20] sm:$0xff] %v3234_v29  ;;  %v3235_v51 = vpack.c.bf16 %v2830_v30, %v2829_v28  ;;  %v2782_v39 = vpop.f32.mrb[12].mxu0 }
 0x1b3   : > { %v3300_v41 = vadd.f32 %v3299_v49, %v2782_v39  ;;  %v2784_v50 = vpop.f32.mrb[13].mxu0 }
 0x1b4   : > { %2930 = vst [vmem:[%s4742_s29 + $0x28] sm:$0xff] %v3235_v51  ;;  %v3302_v61 = vadd.f32 %v3301_v55, %v2784_v50  ;;  %v2786_v62 = vpop.f32.mrb[14].mxu0 }
 0x1b5   : > { %v2831_v1 = vmax.f32 %v3300_v41, 0.0  ;;  %v3304_v53 = vadd.f32 %v3303_v40, %v2786_v62  ;;  %v2788_v2 = vpop.f32.mrb[15].mxu0 }
 0x1b6   : > { %v2832_v54 = vmax.f32 %v3302_v61, 0.0  ;;  %v3306_v32 = vadd.f32 %v3305_v59, %v2788_v2 }
 0x1b7   : > { %v2833_v58 = vmax.f32 %v3304_v53, 0.0 }
 0x1b8   : > { %v3236_v5 = vpack.c.bf16 %v2832_v54, %v2831_v1  ;;  %v2834_v60 = vmax.f32 %v3306_v32, 0.0 }
 0x1ba   : > { %2931 = vst [vmem:[%s4742_s29 + $0x30] sm:$0xff] %v3236_v5  ;;  %v3237_v7 = vpack.c.bf16 %v2834_v60, %v2833_v58  ;;  %v2792_v35 = vpop.f32.mrb[28].mxu0 }
 0x1bb   : > { %v2691_v3 = vpop.f32.mrb[28].mxu1  ;;  %v2794_v11 = vpop.f32.mrb[29].mxu0 }
 0x1bc   : > { %v3309_v43 = vadd.f32 %v4723_v8, %v2691_v3  ;;  %v2693_v34 = vpop.f32.mrb[29].mxu1  ;;  %2932 = vst [vmem:[%s4742_s29 + $0x38] sm:$0xff] %v3237_v7  ;;  %v2796_v8 = vpop.f32.mrb[30].mxu0 }
 0x1bd   : > { %v3313_v63 = vadd.f32 %v4726_v10, %v2693_v34  ;;  %v2695_v4 = vpop.f32.mrb[30].mxu1  ;;  %v2798_v10 = vpop.f32.mrb[31].mxu0 }
 0x1be   : > { %v3317_v0 = vadd.f32 %v4729_v13, %v2695_v4  ;;  %v2697_v44 = vpop.f32.mrb[31].mxu1  ;;  %v3310_v9 = vadd.f32 %v3309_v43, %v2792_v35 }
 0x1bf   : > { %v3321_v6 = vadd.f32 %v4732_v17, %v2697_v44  ;;  %v3314_v45 = vadd.f32 %v3313_v63, %v2794_v11 }
 0x1c0   : > { %v2835_v15 = vmax.f32 %v3310_v9, 0.0  ;;  %v3318_v16 = vadd.f32 %v3317_v0, %v2796_v8 }
 0x1c1   : > { %v2836_v33 = vmax.f32 %v3314_v45, 0.0  ;;  %v3322_v19 = vadd.f32 %v3321_v6, %v2798_v10 }
 0x1c2   : > { %v2837_v17 = vmax.f32 %v3318_v16, 0.0  ;;  %v2802_v12 = vpop.f32.mrb[32].mxu0 }
 0x1c3   : > { %v2701_v18 = vpop.f32.mrb[32].mxu1  ;;  %v3238_v23 = vpack.c.bf16 %v2836_v33, %v2835_v15  ;;  %v2838_v26 = vmax.f32 %v3322_v19, 0.0  ;;  %v2804_v47 = vpop.f32.mrb[33].mxu0 }
 0x1c4   : > { %v3325_v13 = vadd.f32 %v4746_v38, %v2701_v18  ;;  %v2703_v14 = vpop.f32.mrb[33].mxu1  ;;  %v2806_v38 = vpop.f32.mrb[34].mxu0 }
 0x1c5   : > { %v3329_v21 = vadd.f32 %v4750_v42, %v2703_v14  ;;  %v2705_v22 = vpop.f32.mrb[34].mxu1  ;;  %2933 = vst [vmem:[%s4742_s29 + $0x40] sm:$0xff] %v3238_v23  ;;  %v3239_v37 = vpack.c.bf16 %v2838_v26, %v2837_v17  ;;  %v2808_v42 = vpop.f32.mrb[35].mxu0 }
 0x1c6   : > { %v3333_v52 = vadd.f32 %v4754_v24, %v2705_v22  ;;  %v2707_v36 = vpop.f32.mrb[35].mxu1  ;;  %v3326_v57 = vadd.f32 %v3325_v13, %v2802_v12 }
 0x1c7   : > { %v3337_v27 = vadd.f32 %v4759_v31, %v2707_v36  ;;  %2934 = vst [vmem:[%s4742_s29 + $0x48] sm:$0xff] %v3239_v37  ;;  %v3330_v56 = vadd.f32 %v3329_v21, %v2804_v47 }
 0x1c8   : > { %v2839_v48 = vmax.f32 %v3326_v57, 0.0  ;;  %v3334_v25 = vadd.f32 %v3333_v52, %v2806_v38 }
 0x1c9   : > { %v2840_v29 = vmax.f32 %v3330_v56, 0.0  ;;  %v3338_v30 = vadd.f32 %v3337_v27, %v2808_v42 }
 0x1ca   : > { %v2841_v31 = vmax.f32 %v3334_v25, 0.0  ;;  %v2812_v59 = vpop.f32.mrb[36].mxu0 }
 0x1cb   : > { %v2711_v28 = vpop.f32.mrb[36].mxu1  ;;  %v3240_v39 = vpack.c.bf16 %v2840_v29, %v2839_v48  ;;  %v2842_v40 = vmax.f32 %v3338_v30, 0.0  ;;  %v2814_v62 = vpop.f32.mrb[37].mxu0 }
 0x1cc   : > { %v3341_v24 = vadd.f32 %v4769_v46, %v2711_v28  ;;  %v2713_v49 = vpop.f32.mrb[37].mxu1  ;;  %v2816_v53 = vpop.f32.mrb[38].mxu0 }
 0x1cd   : > { %v3345_v55 = vadd.f32 %v4772_v20, %v2713_v49  ;;  %v2715_v51 = vpop.f32.mrb[38].mxu1  ;;  %2935 = vst [vmem:[%s4742_s29 + $0x50] sm:$0xff] %v3240_v39  ;;  %v3241_v50 = vpack.c.bf16 %v2842_v40, %v2841_v31  ;;  %v2817_v3 = vpop.f32.mrb[39].mxu0 }
 0x1ce   : > { %v2716_v41 = vpop.f32.mrb[39].mxu1  ;;  %v3342_v61 = vadd.f32 %v3341_v24, %v2812_v59 }
 0x1cf   : > { %2936 = vst [vmem:[%s4742_s29 + $0x58] sm:$0xff] %v3241_v50  ;;  %v3346_v1 = vadd.f32 %v3345_v55, %v2814_v62 }
 0x1d0   : > { %v2843_v2 = vmax.f32 %v3342_v61, 0.0 }
 0x1d1   : > { %v2844_v46 = vmax.f32 %v3346_v1, 0.0 }
 0x1d3   : > { %v3242_v54 = vpack.c.bf16 %v2844_v46, %v2843_v2 }
 0x1d5   : > { %2937 = vst [vmem:[%s4742_s29 + $0x60] sm:$0xff] %v3242_v54 }
 0x1d6 PF: > { %s13_s12 = sadd.s32 1, %s3754_s12  }
 0x1d7   : > { %p10_p4 = scmp.ge.s32.totalorder %s13_s12, 4  }
 0x1d9   :  { %12 = sbr.rel (!%p10_p4) target bundleno = 1 (0x1), region = 62 }

// kernel: alexnet_forward.10
= control target key start
LH: loop header
LB: loop body
LE: loop exit
PB: predicated region body
PF: predicated region fallthrough
CT: control target
= control target key end

     0   :  { %s3797_s12 = smov 0   ;;  %s4906_s0 = inlined_call_operand.vmem [shape: bf16[96,256], index: 0, kind: input, shape index: {}]   ;;  %s4907_s1 = inlined_call_operand.vmem [shape: bf16[2304,256], index: 1, kind: input, shape index: {}]   ;;  %s4908_s2 = inlined_call_operand.vmem [shape: f32[1,256], index: 2, kind: input, shape index: {}]   ;;  %s4909_s3 = inlined_call_operand.vmem [shape: bf16[96,256], index: 3, kind: output, shape index: {}]  }
   0x1 LB: > { %s2873_s13 = sadd.s32 4294967295, %s3775_s12   ;;  %p2877_p0 = scmp.ge.s32.totalorder %s3775_s12, 1  ;;  %s3775_s12 = sphi %s3797_s12, %s13_s12  }
   0x2   : > { %p139_p1 = scmp.lt.s32.totalorder %s3775_s12, 3 }
   0x4   : > { %p140_p2 = pnand %p2877_p0, %p139_p1 }
   0x5   : > { %v3325_v0 = vld [vmem:[%s4907_s1 + $0x4] ss:$8 sps:$4 sm:$0xff] (!%p140_p2)   ;;  %v3329_v2 = vld [vmem:[%s4907_s1] ss:$8 sps:$4 sm:$0xff] (!%p140_p2)   ;;  %v3331_v4 = vld [vmem:[%s4907_s1 + $0x14] ss:$8 sps:$4 sm:$0xff] (!%p140_p2)  }
   0x6   : > { %143 = sbr.rel (%p140_p2) target bundleno = 549 (0x225), region = 32  ;;  %v3327_v1 = vld [vmem:[%s4907_s1 + $0x404] ss:$8 sps:$4 sm:$0xff] (!%p140_p2)   ;;  %2327 = vmatprep.subr.bf16.mxu1 (!%p140_p2), %v3325_v0  ;;  %v3330_v3 = vld [vmem:[%s4907_s1 + $0x400] ss:$8 sps:$4 sm:$0xff] (!%p140_p2)   ;;  %vm240_vm3 = vcmask (!%p140_p2), 1042432  }
   0x7   : > { %2531 = vmatprep.subr.bf16.mxu0 (!%p140_p2), %v3327_v1  ;;  %2328 = vmatpush1.bf16.msra.mxu1 (!%p140_p2), %v3329_v2  ;;  %v3333_v5 = vld [vmem:[%s4907_s1 + $0x414] ss:$8 sps:$4 sm:$0xff] (!%p140_p2)   ;;  %v3335_v6 = vld [vmem:[%s4907_s1 + $0x10] ss:$8 sps:$4 sm:$0xff] (!%p140_p2)   ;;  %v3337_v8 = vld [vmem:[%s4907_s1 + $0x24] ss:$8 sps:$4 sm:$0xff] (!%p140_p2)  }
   0x8   : > { %2532 = vmatpush1.bf16.msra.mxu0 (!%p140_p2), %v3330_v3  ;;  %2329 = vmatprep.subr.bf16.mxu1 (!%p140_p2), %v3331_v4  ;;  %v3336_v7 = vld [vmem:[%s4907_s1 + $0x410] ss:$8 sps:$4 sm:$0xff] (!%p140_p2)   ;;  %v3339_v9 = vld [vmem:[%s4907_s1 + $0x424] ss:$8 sps:$4 sm:$0xff] (!%p140_p2)   ;;  %v3341_v10 = vld [vmem:[%s4907_s1 + $0x20] ss:$8 sps:$4 sm:$0xff] (!%p140_p2)  }
   0x9   : > { %2533 = vmatprep.subr.bf16.mxu0 (!%p140_p2), %v3333_v5  ;;  %v3342_v11 = vld [vmem:[%s4907_s1 + $0x420] ss:$8 sps:$4 sm:$0xff] (!%p140_p2)   ;;  %v3343_v12 = vld [vmem:[%s4907_s1 + $0x34] ss:$8 sps:$4 sm:$0xff] (!%p140_p2)   ;;  %v3347_v14 = vld [vmem:[%s4907_s1 + $0x30] ss:$8 sps:$4 sm:$0xff] (!%p140_p2)  }
   0xa   : > { %v3345_v13 = vld [vmem:[%s4907_s1 + $0x434] ss:$8 sps:$4 sm:$0xff] (!%p140_p2)   ;;  %v3348_v15 = vld [vmem:[%s4907_s1 + $0x430] ss:$8 sps:$4 sm:$0xff] (!%p140_p2)   ;;  %v3349_v16 = vld [vmem:[%s4907_s1 + $0x44] ss:$8 sps:$4 sm:$0xff] (!%p140_p2)  }
   0xb   : > { %2330 = vmatpush1.bf16.msra.mxu1 (!%p140_p2), %v3335_v6  ;;  %v3351_v17 = vld [vmem:[%s4907_s1 + $0x444] ss:$8 sps:$4 sm:$0xff] (!%p140_p2)   ;;  %v3353_v18 = vld [vmem:[%s4907_s1 + $0x40] ss:$8 sps:$4 sm:$0xff] (!%p140_p2)   ;;  %v3355_v20 = vld [vmem:[%s4907_s1 + $0x54] ss:$8 sps:$4 sm:$0xff] (!%p140_p2)  }
   0xc   : > { %2534 = vmatpush1.bf16.msra.mxu0 (!%p140_p2), %v3336_v7  ;;  %2331 = vmatprep.subr.bf16.mxu1 (!%p140_p2), %v3337_v8  ;;  %v3354_v19 = vld [vmem:[%s4907_s1 + $0x440] ss:$8 sps:$4 sm:$0xff] (!%p140_p2)   ;;  %v3357_v21 = vld [vmem:[%s4907_s1 + $0x454] ss:$8 sps:$4 sm:$0xff] (!%p140_p2)   ;;  %v3359_v22 = vld [vmem:[%s4907_s1 + $0x50] ss:$8 sps:$4 sm:$0xff] (!%p140_p2)  }
   0xd   : > { %2535 = vmatprep.subr.bf16.mxu0 %v3339_v9  ;;  %v3360_v23 = vld [vmem:[%s4907_s1 + $0x450] ss:$8 sps:$4 sm:$0xff]   ;;  %v3361_v24 = vld [vmem:[%s4907_s1 + $0x64] ss:$8 sps:$4 sm:$0xff]   ;;  %v3365_v26 = vld [vmem:[%s4907_s1 + $0x60] ss:$8 sps:$4 sm:$0xff]  }
   0xe   : > { %v3363_v25 = vld [vmem:[%s4907_s1 + $0x464] ss:$8 sps:$4 sm:$0xff]   ;;  %v3366_v27 = vld [vmem:[%s4907_s1 + $0x460] ss:$8 sps:$4 sm:$0xff]   ;;  %v3367_v28 = vld [vmem:[%s4907_s1 + $0x74] ss:$8 sps:$4 sm:$0xff]  }
   0xf   : > { %2332 = vmatpush1.bf16.msra.mxu1 %v3341_v10  ;;  %v3369_v29 = vld [vmem:[%s4907_s1 + $0x474] ss:$8 sps:$4 sm:$0xff]   ;;  %s165_s24 = smul.u32 6, %s2873_s13  ;;  %v3371_v30 = vld [vmem:[%s4907_s1 + $0x70] ss:$8 sps:$4 sm:$0xff]   ;;  %vm241_vm4 = vcmask 1046532  }
  0x10   : > { %2536 = vmatpush1.bf16.msra.mxu0 %v3342_v11  ;;  %2333 = vmatprep.subr.bf16.mxu1 %v3343_v12  ;;  %v3372_v31 = vld [vmem:[%s4907_s1 + $0x470] ss:$8 sps:$4 sm:$0xff]   ;;  %v3373_v32 = vld [vmem:[%s4907_s1 + $0x84] ss:$8 sps:$4 sm:$0xff]   ;;  %v3377_v34 = vld [vmem:[%s4907_s1 + $0x80] ss:$8 sps:$4 sm:$0xff]  }
  0x11   : > { %2537 = vmatprep.subr.bf16.mxu0 %v3345_v13  ;;  %v3375_v33 = vld [vmem:[%s4907_s1 + $0x484] ss:$8 sps:$4 sm:$0xff]   ;;  %p166_p3 = scmp.lt.s32.totalorder %s165_s24, 11  ;;  %v3378_v35 = vld [vmem:[%s4907_s1 + $0x480] ss:$8 sps:$4 sm:$0xff]   ;;  %vm4155_vm5 = vmor %vm240_vm3, %vm241_vm4 }
  0x12   : > { %v3379_v36 = vld [vmem:[%s4907_s1 + $0x94] ss:$8 sps:$4 sm:$0xff]   ;;  %v3383_v38 = vld [vmem:[%s4907_s1 + $0x90] ss:$8 sps:$4 sm:$0xff]   ;;  %v3385_v40 = vld [vmem:[%s4907_s1 + $0xa4] ss:$8 sps:$4 sm:$0xff]  }
  0x13   : > { %2334 = vmatpush1.bf16.msra.mxu1 %v3347_v14  ;;  %v3381_v37 = vld [vmem:[%s4907_s1 + $0x494] ss:$8 sps:$4 sm:$0xff]   ;;  %s4915_s24 = smov (!%p166_p3, %s165_s24), 11  ;;  %v3384_v39 = vld [vmem:[%s4907_s1 + $0x490] ss:$8 sps:$4 sm:$0xff]  }
  0x14   : > { %2538 = vmatpush1.bf16.msra.mxu0 %v3348_v15  ;;  %2335 = vmatprep.subr.bf16.mxu1 %v3349_v16  ;;  %v3387_v41 = vld [vmem:[%s4907_s1 + $0x4a4] ss:$8 sps:$4 sm:$0xff]   ;;  %s3214_s23 = sshll.u32 %s4915_s24, 3  ;;  %v3389_v42 = vld [vmem:[%s4907_s1 + $0xa0] ss:$8 sps:$4 sm:$0xff]  }
  0x15   : > { %2539 = vmatprep.subr.bf16.mxu0 %v3351_v17  ;;  %v3390_v43 = vld [vmem:[%s4907_s1 + $0x4a0] ss:$8 sps:$4 sm:$0xff]   ;;  %v3391_v44 = vld [vmem:[%s4907_s1 + $0xb4] ss:$8 sps:$4 sm:$0xff]   ;;  %s3950_s13 = scalar_lea.vmem %s4906_s0, %s3214_s23  ;;  %v3395_v46 = vld [vmem:[%s4907_s1 + $0xb0] ss:$8 sps:$4 sm:$0xff]   ;;  %s177_s10 = scalar_lea.vmem %s4909_s3, %s3214_s23 }
  0x16   : > { %v3393_v45 = vld [vmem:[%s4907_s1 + $0x4b4] ss:$8 sps:$4 sm:$0xff]   ;;  %v3396_v47 = vld [vmem:[%s4907_s1 + $0x4b0] ss:$8 sps:$4 sm:$0xff]   ;;  %v3962_v48 = vld [vmem:[%s3950_s13] sm:$0xff] }
  0x17   : > { %2336 = vmatpush1.bf16.msra.mxu1 %v3353_v18  ;;  %v3965_v49 = vld [vmem:[%s3950_s13 + $0x8] sm:$0xff]  ;;  %vm189_vm0 = vsmask.f32 3328  ;;  %vm190_vm1 = vsmask.f32 7440  ;;  %v3978_v55 = vld [vmem:[%s3950_s13 + $0x10] sm:$0xff] }
  0x18   : > { %2540 = vmatpush1.bf16.msra.mxu0 %v3354_v19  ;;  %2337 = vmatprep.subr.bf16.mxu1 %v3355_v20  ;;  %v3397_v50 = vld [vmem:[%s4907_s1 + $0xc4] ss:$8 sps:$4 sm:$0xff]   ;;  %v2886_v52 = vcombine.high %v3962_v48, %v3965_v49  ;;  %v270_v53 = vshrl.u32 %v3965_v49, 16  ;;  %v273_v54 = vshll.u32 %v3965_v49, 16  ;;  %v3981_v56 = vld [vmem:[%s3950_s13 + $0x18] sm:$0xff]  ;;  %v279_v60 = vshll.u32 %v3978_v55, 16  ;;  %vm4003_vm2 = vmor %vm189_vm0, %vm190_vm1 }
  0x19   : > { %2541 = vmatprep.subr.bf16.mxu0 %v3357_v21  ;;  %v3399_v51 = vld [vmem:[%s4907_s1 + $0x4c4] ss:$8 sps:$4 sm:$0xff]   ;;  %v3401_v57 = vld [vmem:[%s4907_s1 + $0xc0] ss:$8 sps:$4 sm:$0xff]   ;;  %v283_v61 = vshrl.u32 %v3978_v55, 16  ;;  %v289_v0 = vshll.u32 %v3981_v56, 16 }
  0x1a   : > { %2359 = vmatprep.mubr.bf16.mxu1 %v2886_v52  ;;  %v272_v58 = vrot.slane %v270_v53, 4  ;;  %v3986_v59 = vrot.slane %v273_v54, 5  ;;  %v3402_v62 = vld [vmem:[%s4907_s1 + $0x4c0] ss:$8 sps:$4 sm:$0xff]   ;;  %v3403_v63 = vld [vmem:[%s4907_s1 + $0xd4] ss:$8 sps:$4 sm:$0xff]  }
  0x1b   : > { %2338 = vmatpush1.bf16.msra.mxu1 %v3359_v22  ;;  %v3405_v1 = vld [vmem:[%s4907_s1 + $0x4d4] ss:$8 sps:$4 sm:$0xff]   ;;  %v281_v3 = vrot.slane %v279_v60, 5  ;;  %v285_v4 = vrot.slane %v283_v61, 4  ;;  %v4007_v8 = vrot.slane %v289_v0, 5  ;;  %v193_v18 = vshrl.u32 %v3962_v48, 16 }
  0x1c   : > { %2542 = vmatpush1.bf16.msra.mxu0 %v3360_v23  ;;  %2339 = vmatprep.subr.bf16.mxu1 %v3361_v24  ;;  %v276_v2 = vor.u32 %v3986_v59, %v272_v58  ;;  %v3407_v9 = vld [vmem:[%s4907_s1 + $0xd0] ss:$8 sps:$4 sm:$0xff]   ;;  %v3409_v11 = vld [vmem:[%s4907_s1 + $0xe4] ss:$8 sps:$4 sm:$0xff]   ;;  %v3413_v16 = vld [vmem:[%s4907_s1 + $0xe0] ss:$8 sps:$4 sm:$0xff]  }
  0x1d   : > { %2543 = vmatprep.subr.bf16.mxu0 %v3363_v25  ;;  %v286_v7 = vor.u32 %v285_v4, %v281_v3  ;;  %v3408_v10 = vld [vmem:[%s4907_s1 + $0x4d0] ss:$8 sps:$4 sm:$0xff]   ;;  %v3411_v14 = vld [vmem:[%s4907_s1 + $0x4e4] ss:$8 sps:$4 sm:$0xff]   ;;  %v196_v19 = vshll.u32 %v3962_v48, 16  ;;  %v195_v24 = vrot.slane %v193_v18, 4 }
  0x1e   : > { %v277_v6 = vrot.slane %v276_v2, 4  ;;  %v3414_v20 = vld [vmem:[%s4907_s1 + $0x4e0] ss:$8 sps:$4 sm:$0xff]   ;;  %v3415_v21 = vld [vmem:[%s4907_s1 + $0xf4] ss:$8 sps:$4 sm:$0xff]  }
  0x1f   : > { %2340 = vmatpush1.bf16.msra.mxu1 %v3365_v26  ;;  %v4022_v13 = vrot.slane %v286_v7, 4  ;;  %v3417_v22 = vld [vmem:[%s4907_s1 + $0x4f4] ss:$8 sps:$4 sm:$0xff]   ;;  %v3419_v23 = vld [vmem:[%s4907_s1 + $0xf0] ss:$8 sps:$4 sm:$0xff]   ;;  %v198_v25 = vrot.slane %v196_v19, 5 }
  0x20   : > { %2544 = vmatpush1.bf16.msra.mxu0 %v3366_v27  ;;  %2341 = vmatprep.subr.bf16.mxu1 %v3367_v28  ;;  %v4020_v12 = vsel %vm4003_vm2, %v277_v6, %v281_v3  ;;  %v3420_v26 = vld [vmem:[%s4907_s1 + $0x4f0] ss:$8 sps:$4 sm:$0xff]   ;;  %v3425_v27 = vld [vmem:[%s4907_s1 + $0x104] ss:$8 sps:$4 sm:$0xff]   ;;  %v3447_v60 = vld [vmem:[%s4907_s1 + $0x140] ss:$8 sps:$4 sm:$0xff]  }
  0x21   : > { %2545 = vmatprep.subr.bf16.mxu0 %v3369_v29  ;;  %v292_v15 = vsel %vm4003_vm2, %v4022_v13, %v4007_v8  ;;  %v3428_v28 = vld [vmem:[%s4907_s1 + $0x504] ss:$8 sps:$4 sm:$0xff]   ;;  %v2885_v29 = vcombine.low %v3962_v48, %v3965_v49  ;;  %v3438_v48 = vld [vmem:[%s4907_s1 + $0x520] ss:$8 sps:$4 sm:$0xff]   ;;  %v3441_v53 = vld [vmem:[%s4907_s1 + $0x130] ss:$8 sps:$4 sm:$0xff]  }
  0x22   : > { %v2894_v17 = vcombine.high %v4020_v12, %v292_v15  ;;  %v3449_v58 = vld [vmem:[%s4907_s1 + $0x144] ss:$8 sps:$4 sm:$0xff]   ;;  %v3458_v0 = vld [vmem:[%s4907_s1 + $0x554] ss:$8 sps:$4 sm:$0xff]   ;;  %v3453_v2 = vld [vmem:[%s4907_s1 + $0x150] ss:$8 sps:$4 sm:$0xff]  }
  0x23   : > { %2342 = vmatpush1.bf16.msra.mxu1 %v3371_v30  ;;  %v3423_v30 = vld [vmem:[%s4907_s1 + $0x100] ss:$8 sps:$4 sm:$0xff]   ;;  %v3456_v3 = vld [vmem:[%s4907_s1 + $0x550] ss:$8 sps:$4 sm:$0xff]   ;;  %v3461_v7 = vld [vmem:[%s4907_s1 + $0x164] ss:$8 sps:$4 sm:$0xff]  }
  0x24   : > { %2546 = vmatpush1.bf16.msra.mxu0 %v3372_v31  ;;  %2343 = vmatprep.subr.bf16.mxu1 %v3373_v32  ;;  %v2893_v31 = vcombine.low %v4020_v12, %v292_v15  ;;  %v199_v32 = vor.u32 %v198_v25, %v195_v24  ;;  %v268_v4 = vld [vmem:[%s3950_s13 + $0x20] sm:$0x11]  ;;  %v322_v15 = vrot.slane %v3981_v56, 5  ;;  %v3467_v18 = vld [vmem:[%s4907_s1 + $0x174] ss:$8 sps:$4 sm:$0xff]  }
  0x25   : > { %2547 = vmatprep.subr.bf16.mxu0 %v3375_v33  ;;  %2563 = vmatprep.mubr.bf16.mxu0 %v2894_v17  ;;  %v3426_v33 = vld [vmem:[%s4907_s1 + $0x500] ss:$8 sps:$4 sm:$0xff]  }
  0x26   : > { %v3462_v17 = vld [vmem:[%s4907_s1 + $0x560] ss:$8 sps:$4 sm:$0xff]  }
  0x27   : > { %2344 = vmatpush1.bf16.msra.mxu1 %v3377_v34  ;;  %v3431_v34 = vld [vmem:[%s4907_s1 + $0x114] ss:$8 sps:$4 sm:$0xff]  }
  0x28   : > { %2548 = vmatpush1.bf16.msra.mxu0 %v3378_v35  ;;  %2345 = vmatprep.subr.bf16.mxu1 %v3379_v36  ;;  %v3434_v35 = vld [vmem:[%s4907_s1 + $0x514] ss:$8 sps:$4 sm:$0xff]   ;;  %v2897_v36 = vcombine.low %v3978_v55, %v3981_v56 }
  0x29   : > { %2549 = vmatprep.subr.bf16.mxu0 %v3381_v37  ;;  %v2898_v37 = vcombine.high %v3978_v55, %v3981_v56 }
  0x2b   : > { %2346 = vmatpush1.bf16.msra.mxu1 %v3383_v38  ;;  %v2904_v38 = vcombine.high %v3978_v55, %v3978_v55 }
  0x2c   : > { %2550 = vmatpush1.bf16.msra.mxu0 %v3384_v39  ;;  %2347 = vmatprep.subr.bf16.mxu1 %v3385_v40  ;;  %v3429_v39 = vld [vmem:[%s4907_s1 + $0x110] ss:$8 sps:$4 sm:$0xff]   ;;  %v200_v40 = vrot.slane %v199_v32, 4  ;;  %v3471_v32 = vld [vmem:[%s4907_s1 + $0x180] ss:$8 sps:$4 sm:$0xff]  }
  0x2d   : > { %2551 = vmatprep.subr.bf16.mxu0 %v3387_v41  ;;  %v3432_v41 = vld [vmem:[%s4907_s1 + $0x510] ss:$8 sps:$4 sm:$0xff]  }
  0x2f   : > { %2348 = vmatpush1.bf16.msra.mxu1 %v3389_v42  ;;  %v3437_v42 = vld [vmem:[%s4907_s1 + $0x124] ss:$8 sps:$4 sm:$0xff]  }
  0x30   : > { %2552 = vmatpush1.bf16.msra.mxu0 %v3390_v43  ;;  %2349 = vmatprep.subr.bf16.mxu1 %v3391_v44  ;;  %v3440_v43 = vld [vmem:[%s4907_s1 + $0x524] ss:$8 sps:$4 sm:$0xff]   ;;  %v3435_v44 = vld [vmem:[%s4907_s1 + $0x120] ss:$8 sps:$4 sm:$0xff]  }
  0x31   : > { %2553 = vmatprep.subr.bf16.mxu0 %v3393_v45  ;;  %v2903_v45 = vcombine.low %v3978_v55, %v3978_v55 }
  0x33   : > { %2350 = vmatpush1.bf16.msra.mxu1 %v3395_v46  ;;  %v4099_v46 = vsel %vm4003_vm2, %v200_v40, %v3986_v59  ;;  %v3452_v59 = vld [vmem:[%s4907_s1 + $0x544] ss:$8 sps:$4 sm:$0xff]  }
  0x34   : > { %2554 = vmatpush1.bf16.msra.mxu0 %v3396_v47  ;;  %2351 = vmatprep.subr.bf16.mxu1 %v3397_v50  ;;  %v293_v47 = vshrl.u32 %v3981_v56, 16  ;;  %v3443_v50 = vld [vmem:[%s4907_s1 + $0x134] ss:$8 sps:$4 sm:$0xff]   ;;  %v2888_v52 = vcombine.high %v4099_v46, %v4020_v12  ;;  %v3485_v40 = vld [vmem:[%s4907_s1 + $0x1a4] ss:$8 sps:$4 sm:$0xff]  }
  0x35   : > { %2555 = vmatprep.subr.bf16.mxu0 %v3399_v51  ;;  %v3446_v51 = vld [vmem:[%s4907_s1 + $0x534] ss:$8 sps:$4 sm:$0xff]  }
  0x36   : > { %v295_v54 = vrot.slane %v293_v47, 4  ;;  %v3489_v47 = vld [vmem:[%s4907_s1 + $0x1b0] ss:$8 sps:$4 sm:$0xff]  }
  0x37   : > { %2352 = vmatpush1.bf16.msra.mxu1 %v3401_v57  ;;  %v3444_v57 = vld [vmem:[%s4907_s1 + $0x530] ss:$8 sps:$4 sm:$0xff]  }
  0x38   : > { %2556 = vmatpush1.bf16.msra.mxu0 %v3402_v62  ;;  %2353 = vmatprep.subr.bf16.mxu1 %v3403_v63  ;;  %v296_v61 = vor.u32 %v295_v54, %v4007_v8  ;;  %v3450_v62 = vld [vmem:[%s4907_s1 + $0x540] ss:$8 sps:$4 sm:$0xff]   ;;  %v3455_v63 = vld [vmem:[%s4907_s1 + $0x154] ss:$8 sps:$4 sm:$0xff]   ;;  %v299_v8 = vshll.u32 %v268_v4, 16 }
  0x39   : > { %2557 = vmatprep.subr.bf16.mxu0 %v3405_v1  ;;  %v4139_v1 = vrot.slane %v3978_v55, 5  ;;  %v3503_v54 = vld [vmem:[%s4907_s1 + $0x1d4] ss:$8 sps:$4 sm:$0xff]   ;;  %v3518_v4 = vld [vmem:[%s4907_s1 + $0x5f0] ss:$8 sps:$4 sm:$0xff]  }
  0x3a   : > { %v297_v6 = vrot.slane %v296_v61, 4  ;;  %v3513_v61 = vld [vmem:[%s4907_s1 + $0x5e4] ss:$8 sps:$4 sm:$0xff]  }
  0x3b   : > { %2354 = vmatpush1.bf16.msra.mxu1 %v3407_v9  ;;  %v3464_v9 = vld [vmem:[%s4907_s1 + $0x564] ss:$8 sps:$4 sm:$0xff]  }
  0x3c   : > { %2558 = vmatpush1.bf16.msra.mxu0 %v3408_v10  ;;  %2355 = vmatprep.subr.bf16.mxu1 %v3409_v11  ;;  %v301_v10 = vrot.slane %v299_v8, 5  ;;  %v188_v8 = vld [vmem:[%s3950_s13 + $0x18] sm:$0x11]  ;;  %v3636_v55 = vld [vmem:[%s4907_s1 + $0x724] ss:$8 sps:$4 sm:$0xff]  }
  0x3d   : > { %2559 = vmatprep.subr.bf16.mxu0 %v3411_v14  ;;  %v321_v14 = vrot.slane %v4139_v1, 4  ;;  %v3730_v11 = vld [vmem:[%s4907_s1 + $0x830] ss:$8 sps:$4 sm:$0xff]  }
  0x3e   : > { %v302_v19 = vsel %vm4003_vm2, %v297_v6, %v301_v10  ;;  %v3523_v6 = vld [vmem:[%s4907_s1 + $0x204] ss:$8 sps:$4 sm:$0xff]   ;;  %v324_v10 = vrot.slane %v322_v15, 4 }
  0x3f   : > { %2356 = vmatpush1.bf16.msra.mxu1 %v3413_v16  ;;  %v3459_v16 = vld [vmem:[%s4907_s1 + $0x160] ss:$8 sps:$4 sm:$0xff]   ;;  %v4182_v25 = vsel %vm4155_vm5, %v321_v14, %v322_v15 }
  0x40   : > { %2560 = vmatpush1.bf16.msra.mxu0 %v3414_v20  ;;  %2357 = vmatprep.subr.bf16.mxu1 %v3415_v21  ;;  %v3470_v20 = vld [vmem:[%s4907_s1 + $0x574] ss:$8 sps:$4 sm:$0xff]   ;;  %v2912_v21 = vcombine.high %v302_v19, %v302_v19 }
  0x41   : > { %2561 = vmatprep.subr.bf16.mxu0 %v3417_v22  ;;  %v309_v22 = vld [vmem:[%s3950_s13 + $0x8] sm:$0xee] }
  0x42   : > { %v2883_v24 = vrot.slane %v309_v22, 9 }
  0x43   : > { %2358 = vmatpush1.bf16.msra.mxu1 %v3419_v23  ;;  %v2911_v23 = vcombine.low %v302_v19, %v302_v19 }
  0x44   : > { %2562 = vmatpush1.bf16.msra.mxu0 %v3420_v26  ;;  %2378 = vmatprep.subr.bf16.mxu1 %v3425_v27  ;;  %v3465_v26 = vld [vmem:[%s4907_s1 + $0x170] ss:$8 sps:$4 sm:$0xff]  }
  0x45   : > { %2582 = vmatprep.subr.bf16.mxu0 %v3428_v28  ;;  %v3468_v27 = vld [vmem:[%s4907_s1 + $0x570] ss:$8 sps:$4 sm:$0xff]   ;;  %v4193_v28 = vsel %vm4155_vm5, %v2883_v24, %v4139_v1 }
  0x46   : > { %2360 = vmatmul.mubr.bf16.vlgmr.msra.gmra.mrb[0].mxu1 %v2885_v29  ;;  %v3473_v29 = vld [vmem:[%s4907_s1 + $0x184] ss:$8 sps:$4 sm:$0xff]   ;;  %v2895_v19 = vcombine.low %v4193_v28, %v4182_v25 }
  0x47   : > { %2564 = vmatmul.mubr.bf16.vlgmr.msra.gmra.mrb[0].mxu0 %v2893_v31  ;;  %2379 = vmatpush1.bf16.msra.mxu1 %v3423_v30  ;;  %v3476_v30 = vld [vmem:[%s4907_s1 + $0x584] ss:$8 sps:$4 sm:$0xff]   ;;  %v2896_v31 = vcombine.high %v4193_v28, %v4182_v25  ;;  %v3527_v25 = vld [vmem:[%s4907_s1 + $0x210] ss:$8 sps:$4 sm:$0xff]  }
  0x48   : > { %2583 = vmatpush1.bf16.msra.mxu0 %v3426_v33  ;;  %2380 = vmatprep.subr.bf16.mxu1 %v3431_v34  ;;  %v3474_v33 = vld [vmem:[%s4907_s1 + $0x580] ss:$8 sps:$4 sm:$0xff]   ;;  %v3479_v34 = vld [vmem:[%s4907_s1 + $0x194] ss:$8 sps:$4 sm:$0xff]  }
  0x49   : > { %2584 = vmatprep.subr.bf16.mxu0 %v3434_v35  ;;  %2369 = vmatprep.mubr.bf16.mxu1 %v2904_v38  ;;  %v3482_v35 = vld [vmem:[%s4907_s1 + $0x594] ss:$8 sps:$4 sm:$0xff]   ;;  %v3477_v38 = vld [vmem:[%s4907_s1 + $0x190] ss:$8 sps:$4 sm:$0xff]  }
  0x4a   : > { %2573 = vmatprep.mubr.bf16.mxu0 %v2912_v21  ;;  %v3524_v21 = vld [vmem:[%s4907_s1 + $0x600] ss:$8 sps:$4 sm:$0xff]  }
  0x4b   : > { %2381 = vmatpush1.bf16.msra.mxu1 %v3429_v39  ;;  %v3480_v39 = vld [vmem:[%s4907_s1 + $0x590] ss:$8 sps:$4 sm:$0xff]  }
  0x4c   : > { %2585 = vmatpush1.bf16.msra.mxu0 %v3432_v41  ;;  %2382 = vmatprep.subr.bf16.mxu1 %v3437_v42  ;;  %v3488_v41 = vld [vmem:[%s4907_s1 + $0x5a4] ss:$8 sps:$4 sm:$0xff]   ;;  %v3483_v42 = vld [vmem:[%s4907_s1 + $0x1a0] ss:$8 sps:$4 sm:$0xff]  }
  0x4d   : > { %2586 = vmatprep.subr.bf16.mxu0 %v3440_v43  ;;  %v3486_v43 = vld [vmem:[%s4907_s1 + $0x5a0] ss:$8 sps:$4 sm:$0xff]  }
  0x4e   : > { %2370 = vmatmul.mubr.bf16.gmra.mrb[4].mxu1 %v2903_v45  ;;  %v3494_v45 = vld [vmem:[%s4907_s1 + $0x5b4] ss:$8 sps:$4 sm:$0xff]  }
  0x4f   : > { %2383 = vmatpush1.bf16.msra.mxu1 %v3435_v44  ;;  %2410 = vmatprep.mubr.bf16.mxu1 %v2888_v52  ;;  %v3491_v44 = vld [vmem:[%s4907_s1 + $0x1b4] ss:$8 sps:$4 sm:$0xff]   ;;  %v3495_v52 = vld [vmem:[%s4907_s1 + $0x1c0] ss:$8 sps:$4 sm:$0xff]  }
  0x50   : > { %2587 = vmatpush1.bf16.msra.mxu0 %v3438_v48  ;;  %2384 = vmatprep.subr.bf16.mxu1 %v3443_v50  ;;  %v3492_v48 = vld [vmem:[%s4907_s1 + $0x5b0] ss:$8 sps:$4 sm:$0xff]   ;;  %v3497_v50 = vld [vmem:[%s4907_s1 + $0x1c4] ss:$8 sps:$4 sm:$0xff]  }
  0x51   : > { %2588 = vmatprep.subr.bf16.mxu0 %v3446_v51  ;;  %2574 = vmatmul.mubr.bf16.gmra.mrb[4].mxu0 %v2911_v23  ;;  %v3500_v51 = vld [vmem:[%s4907_s1 + $0x5c4] ss:$8 sps:$4 sm:$0xff]  }
  0x52   : > { %2614 = vmatprep.mubr.bf16.mxu0 %v2896_v31  ;;  %v3538_v31 = vld [vmem:[%s4907_s1 + $0x624] ss:$8 sps:$4 sm:$0xff]  }
  0x53   : > { %2385 = vmatpush1.bf16.msra.mxu1 %v3441_v53  ;;  %v3498_v53 = vld [vmem:[%s4907_s1 + $0x5c0] ss:$8 sps:$4 sm:$0xff]  }
  0x54   : > { %2589 = vmatpush1.bf16.msra.mxu0 %v3444_v57  ;;  %2386 = vmatprep.subr.bf16.mxu1 %v3449_v58  ;;  %v3506_v57 = vld [vmem:[%s4907_s1 + $0x5d4] ss:$8 sps:$4 sm:$0xff]   ;;  %v3501_v58 = vld [vmem:[%s4907_s1 + $0x1d0] ss:$8 sps:$4 sm:$0xff]  }
  0x55   : > { %2590 = vmatprep.subr.bf16.mxu0 %v3452_v59  ;;  %v3504_v59 = vld [vmem:[%s4907_s1 + $0x5d0] ss:$8 sps:$4 sm:$0xff]  }
  0x57   : > { %2387 = vmatpush1.bf16.msra.mxu1 %v3447_v60  ;;  %v3510_v60 = vld [vmem:[%s4907_s1 + $0x1e4] ss:$8 sps:$4 sm:$0xff]  }
  0x58   : > { %2591 = vmatpush1.bf16.msra.mxu0 %v3450_v62  ;;  %2388 = vmatprep.subr.bf16.mxu1 %v3455_v63  ;;  %v3508_v62 = vld [vmem:[%s4907_s1 + $0x1e0] ss:$8 sps:$4 sm:$0xff]  }
  0x59   : > { %2592 = vmatprep.subr.bf16.mxu0 %v3458_v0  ;;  %v3511_v63 = vld [vmem:[%s4907_s1 + $0x5e0] ss:$8 sps:$4 sm:$0xff]   ;;  %v3517_v0 = vld [vmem:[%s4907_s1 + $0x1f4] ss:$8 sps:$4 sm:$0xff]  }
  0x5b   : > { %2389 = vmatpush1.bf16.msra.mxu1 %v3453_v2  ;;  %v3520_v2 = vld [vmem:[%s4907_s1 + $0x5f4] ss:$8 sps:$4 sm:$0xff]  }
  0x5c   : > { %2593 = vmatpush1.bf16.msra.mxu0 %v3456_v3  ;;  %2390 = vmatprep.subr.bf16.mxu1 %v3461_v7  ;;  %v3515_v3 = vld [vmem:[%s4907_s1 + $0x1f0] ss:$8 sps:$4 sm:$0xff]   ;;  %v3526_v7 = vld [vmem:[%s4907_s1 + $0x604] ss:$8 sps:$4 sm:$0xff]  }
  0x5d   : > { %2594 = vmatprep.subr.bf16.mxu0 %v3464_v9  ;;  %v222_v9 = vshll.u32 %v188_v8, 16  ;;  %v3575_v8 = vld [vmem:[%s4907_s1 + $0x290] ss:$8 sps:$4 sm:$0xff]  }
  0x5f   : > { %2391 = vmatpush1.bf16.msra.mxu1 %v3459_v16  ;;  %v245_v16 = vrot.slane %v3965_v49, 5  ;;  %v224_v15 = vrot.slane %v222_v9, 5  ;;  %v3578_v9 = vld [vmem:[%s4907_s1 + $0x690] ss:$8 sps:$4 sm:$0xff]  }
  0x60   : > { %2595 = vmatpush1.bf16.msra.mxu0 %v3462_v17  ;;  %2392 = vmatprep.subr.bf16.mxu1 %v3467_v18  ;;  %v2887_v17 = vcombine.low %v4099_v46, %v4020_v12  ;;  %v3521_v18 = vld [vmem:[%s4907_s1 + $0x200] ss:$8 sps:$4 sm:$0xff]   ;;  %v3529_v12 = vld [vmem:[%s4907_s1 + $0x214] ss:$8 sps:$4 sm:$0xff]  }
  0x61   : > { %2596 = vmatprep.subr.bf16.mxu0 %v3470_v20  ;;  %v312_v20 = vld [vmem:[%s3950_s13 + $0x20] sm:$0x11]  ;;  %v3532_v46 = vld [vmem:[%s4907_s1 + $0x614] ss:$8 sps:$4 sm:$0xff]   ;;  %v225_v22 = vsel %vm4003_vm2, %v4022_v13, %v224_v15  ;;  %v247_v24 = vrot.slane %v245_v16, 4 }
  0x62   : > { %v325_v49 = vrot.slane %v312_v20, 5  ;;  %v3535_v13 = vld [vmem:[%s4907_s1 + $0x224] ss:$8 sps:$4 sm:$0xff]   ;;  %v3592_v20 = vld [vmem:[%s4907_s1 + $0x6b4] ss:$8 sps:$4 sm:$0xff]  }
  0x63   : > { %2393 = vmatpush1.bf16.msra.mxu1 %v3465_v26  ;;  %v3530_v26 = vld [vmem:[%s4907_s1 + $0x610] ss:$8 sps:$4 sm:$0xff]  }
  0x64   : > { %2597 = vmatpush1.bf16.msra.mxu0 %v3468_v27  ;;  %2394 = vmatprep.subr.bf16.mxu1 %v3473_v29  ;;  %v326_v23 = vsel %vm4155_vm5, %v324_v10, %v325_v49  ;;  %v2906_v27 = vcombine.high %v225_v22, %v225_v22  ;;  %v232_v29 = vld [vmem:[%s3950_s13] sm:$0xee]  ;;  %v3590_v15 = vld [vmem:[%s4907_s1 + $0x6b0] ss:$8 sps:$4 sm:$0xff]  }
  0x65   : > { %2598 = vmatprep.subr.bf16.mxu0 %v3476_v30  ;;  %v2914_v28 = vcombine.high %v326_v23, %v326_v23  ;;  %v2882_v30 = vrot.slane %v232_v29, 9  ;;  %v3583_v10 = vld [vmem:[%s4907_s1 + $0x2a4] ss:$8 sps:$4 sm:$0xff]   ;;  %v4497_v29 = vld [vmem:[%s3950_s13 + $0x18] sm:$0xff] }
  0x66   : > { %v3595_v49 = vld [vmem:[%s4907_s1 + $0x2c4] ss:$8 sps:$4 sm:$0xff]  }
  0x67   : > { %2395 = vmatpush1.bf16.msra.mxu1 %v3471_v32  ;;  %v3533_v32 = vld [vmem:[%s4907_s1 + $0x220] ss:$8 sps:$4 sm:$0xff]  }
  0x68   : > { %2599 = vmatpush1.bf16.msra.mxu0 %v3474_v33  ;;  %2396 = vmatprep.subr.bf16.mxu1 %v3479_v34  ;;  %v3536_v33 = vld [vmem:[%s4907_s1 + $0x620] ss:$8 sps:$4 sm:$0xff]   ;;  %v2905_v34 = vcombine.low %v225_v22, %v225_v22 }
  0x69   : > { %2600 = vmatprep.subr.bf16.mxu0 %v3482_v35  ;;  %v2913_v35 = vcombine.low %v326_v23, %v326_v23  ;;  %v3596_v22 = vld [vmem:[%s4907_s1 + $0x6c0] ss:$8 sps:$4 sm:$0xff]   ;;  %v3601_v23 = vld [vmem:[%s4907_s1 + $0x2d4] ss:$8 sps:$4 sm:$0xff]  }
  0x6b   : > { %2397 = vmatpush1.bf16.msra.mxu1 %v3477_v38  ;;  %v4346_v38 = vsel %vm4155_vm5, %v2882_v30, %v245_v16  ;;  %v3586_v16 = vld [vmem:[%s4907_s1 + $0x6a4] ss:$8 sps:$4 sm:$0xff]   ;;  %v3605_v30 = vld [vmem:[%s4907_s1 + $0x2e0] ss:$8 sps:$4 sm:$0xff]  }
  0x6c   : > { %2601 = vmatpush1.bf16.msra.mxu0 %v3480_v39  ;;  %2398 = vmatprep.subr.bf16.mxu1 %v3485_v40  ;;  %v4351_v39 = vsel %vm4155_vm5, %v247_v24, %v4139_v1  ;;  %v3541_v40 = vld [vmem:[%s4907_s1 + $0x234] ss:$8 sps:$4 sm:$0xff]  }
  0x6d   : > { %2602 = vmatprep.subr.bf16.mxu0 %v3488_v41  ;;  %v3544_v41 = vld [vmem:[%s4907_s1 + $0x634] ss:$8 sps:$4 sm:$0xff]  }
  0x6e   : > { %v3604_v24 = vld [vmem:[%s4907_s1 + $0x6d4] ss:$8 sps:$4 sm:$0xff]  }
  0x6f   : > { %2399 = vmatpush1.bf16.msra.mxu1 %v3483_v42  ;;  %v2890_v42 = vcombine.high %v4346_v38, %v4351_v39  ;;  %v3627_v1 = vld [vmem:[%s4907_s1 + $0x314] ss:$8 sps:$4 sm:$0xff]  }
  0x70   : > { %2603 = vmatpush1.bf16.msra.mxu0 %v3486_v43  ;;  %2400 = vmatprep.subr.bf16.mxu1 %v3491_v44  ;;  %v3539_v43 = vld [vmem:[%s4907_s1 + $0x230] ss:$8 sps:$4 sm:$0xff]  }
  0x71   : > { %2604 = vmatprep.subr.bf16.mxu0 %v3494_v45  ;;  %v3542_v44 = vld [vmem:[%s4907_s1 + $0x630] ss:$8 sps:$4 sm:$0xff]   ;;  %v3547_v45 = vld [vmem:[%s4907_s1 + $0x244] ss:$8 sps:$4 sm:$0xff]  }
  0x73   : > { %2401 = vmatpush1.bf16.msra.mxu1 %v3489_v47  ;;  %v3550_v47 = vld [vmem:[%s4907_s1 + $0x644] ss:$8 sps:$4 sm:$0xff]  }
  0x74   : > { %2605 = vmatpush1.bf16.msra.mxu0 %v3492_v48  ;;  %2402 = vmatprep.subr.bf16.mxu1 %v3497_v50  ;;  %v3545_v48 = vld [vmem:[%s4907_s1 + $0x240] ss:$8 sps:$4 sm:$0xff]  }
  0x75   : > { %2606 = vmatprep.subr.bf16.mxu0 %v3500_v51  ;;  %v3548_v50 = vld [vmem:[%s4907_s1 + $0x640] ss:$8 sps:$4 sm:$0xff]   ;;  %v3553_v51 = vld [vmem:[%s4907_s1 + $0x254] ss:$8 sps:$4 sm:$0xff]  }
  0x77   : > { %2403 = vmatpush1.bf16.msra.mxu1 %v3495_v52  ;;  %v3551_v52 = vld [vmem:[%s4907_s1 + $0x250] ss:$8 sps:$4 sm:$0xff]  }
  0x78   : > { %2607 = vmatpush1.bf16.msra.mxu0 %v3498_v53  ;;  %2404 = vmatprep.subr.bf16.mxu1 %v3503_v54  ;;  %v3554_v53 = vld [vmem:[%s4907_s1 + $0x650] ss:$8 sps:$4 sm:$0xff]   ;;  %v3559_v54 = vld [vmem:[%s4907_s1 + $0x264] ss:$8 sps:$4 sm:$0xff]  }
  0x79   : > { %2608 = vmatprep.subr.bf16.mxu0 %v3506_v57  ;;  %v3562_v57 = vld [vmem:[%s4907_s1 + $0x664] ss:$8 sps:$4 sm:$0xff]  }
  0x7b   : > { %2405 = vmatpush1.bf16.msra.mxu1 %v3501_v58  ;;  %v3557_v58 = vld [vmem:[%s4907_s1 + $0x260] ss:$8 sps:$4 sm:$0xff]  }
  0x7c   : > { %2609 = vmatpush1.bf16.msra.mxu0 %v3504_v59  ;;  %2406 = vmatprep.subr.bf16.mxu1 %v3510_v60  ;;  %v3560_v59 = vld [vmem:[%s4907_s1 + $0x660] ss:$8 sps:$4 sm:$0xff]   ;;  %v3565_v60 = vld [vmem:[%s4907_s1 + $0x274] ss:$8 sps:$4 sm:$0xff]  }
  0x7d   : > { %2610 = vmatprep.subr.bf16.mxu0 %v3513_v61  ;;  %v3568_v61 = vld [vmem:[%s4907_s1 + $0x674] ss:$8 sps:$4 sm:$0xff]  }
  0x7f   : > { %2407 = vmatpush1.bf16.msra.mxu1 %v3508_v62  ;;  %v3563_v62 = vld [vmem:[%s4907_s1 + $0x270] ss:$8 sps:$4 sm:$0xff]  }
  0x80   : > { %2611 = vmatpush1.bf16.msra.mxu0 %v3511_v63  ;;  %2408 = vmatprep.subr.bf16.mxu1 %v3517_v0  ;;  %v3566_v63 = vld [vmem:[%s4907_s1 + $0x670] ss:$8 sps:$4 sm:$0xff]   ;;  %v3571_v0 = vld [vmem:[%s4907_s1 + $0x284] ss:$8 sps:$4 sm:$0xff]  }
  0x81   : > { %2612 = vmatprep.subr.bf16.mxu0 %v3520_v2  ;;  %v3574_v2 = vld [vmem:[%s4907_s1 + $0x684] ss:$8 sps:$4 sm:$0xff]  }
  0x83   : > { %2409 = vmatpush1.bf16.msra.mxu1 %v3515_v3  ;;  %v3569_v3 = vld [vmem:[%s4907_s1 + $0x280] ss:$8 sps:$4 sm:$0xff]  }
  0x84   : > { %2613 = vmatpush1.bf16.msra.mxu0 %v3518_v4  ;;  %2429 = vmatprep.subr.bf16.mxu1 %v3523_v6  ;;  %v3572_v4 = vld [vmem:[%s4907_s1 + $0x680] ss:$8 sps:$4 sm:$0xff]   ;;  %v3577_v6 = vld [vmem:[%s4907_s1 + $0x294] ss:$8 sps:$4 sm:$0xff]  }
  0x85   : > { %2633 = vmatprep.subr.bf16.mxu0 %v3526_v7  ;;  %v3580_v7 = vld [vmem:[%s4907_s1 + $0x694] ss:$8 sps:$4 sm:$0xff]  }
  0x86   : > { %2411 = vmatmul.mubr.bf16.vlgmr.msra.gmra.mrb[0].mxu1 %v2887_v17  ;;  %v3581_v17 = vld [vmem:[%s4907_s1 + $0x2a0] ss:$8 sps:$4 sm:$0xff]  }
  0x87   : > { %2615 = vmatmul.mubr.bf16.vlgmr.msra.gmra.mrb[0].mxu0 %v2895_v19  ;;  %2430 = vmatpush1.bf16.msra.mxu1 %v3521_v18  ;;  %v3584_v18 = vld [vmem:[%s4907_s1 + $0x6a0] ss:$8 sps:$4 sm:$0xff]   ;;  %v3589_v19 = vld [vmem:[%s4907_s1 + $0x2b4] ss:$8 sps:$4 sm:$0xff]  }
  0x88   : > { %2634 = vmatpush1.bf16.msra.mxu0 %v3524_v21  ;;  %2431 = vmatprep.subr.bf16.mxu1 %v3529_v12  ;;  %v3587_v21 = vld [vmem:[%s4907_s1 + $0x2b0] ss:$8 sps:$4 sm:$0xff]   ;;  %v3598_v12 = vld [vmem:[%s4907_s1 + $0x6c4] ss:$8 sps:$4 sm:$0xff]  }
  0x89   : > { %2635 = vmatprep.subr.bf16.mxu0 %v3532_v46  ;;  %2420 = vmatprep.mubr.bf16.mxu1 %v2906_v27  ;;  %v3593_v46 = vld [vmem:[%s4907_s1 + $0x2c0] ss:$8 sps:$4 sm:$0xff]   ;;  %v3607_v27 = vld [vmem:[%s4907_s1 + $0x2e4] ss:$8 sps:$4 sm:$0xff]  }
  0x8a   : > { %2624 = vmatprep.mubr.bf16.mxu0 %v2914_v28  ;;  %v4494_v28 = vld [vmem:[%s3950_s13 + $0x10] sm:$0xff] }
  0x8b   : > { %2432 = vmatpush1.bf16.msra.mxu1 %v3527_v25  ;;  %v3599_v25 = vld [vmem:[%s4907_s1 + $0x2d0] ss:$8 sps:$4 sm:$0xff]  }
  0x8c   : > { %2636 = vmatpush1.bf16.msra.mxu0 %v3530_v26  ;;  %2433 = vmatprep.subr.bf16.mxu1 %v3535_v13  ;;  %v3602_v26 = vld [vmem:[%s4907_s1 + $0x6d0] ss:$8 sps:$4 sm:$0xff]   ;;  %v3610_v13 = vld [vmem:[%s4907_s1 + $0x6e4] ss:$8 sps:$4 sm:$0xff]  }
  0x8d   : > { %2637 = vmatprep.subr.bf16.mxu0 %v3538_v31  ;;  %v235_v31 = vld [vmem:[%s3950_s13 + $0x18] sm:$0x11] }
  0x8e   : > { %2421 = vmatmul.mubr.bf16.gmra.mrb[4].mxu1 %v2905_v34  ;;  %v353_v34 = vshll.u32 %v4497_v29, 16 }
  0x8f   : > { %2625 = vmatmul.mubr.bf16.gmra.mrb[4].mxu0 %v2913_v35  ;;  %2434 = vmatpush1.bf16.msra.mxu1 %v3533_v32  ;;  %v344_v32 = vshrl.u32 %v4494_v28, 16  ;;  %v357_v35 = vshrl.u32 %v4497_v29, 16 }
  0x90   : > { %2638 = vmatpush1.bf16.msra.mxu0 %v3536_v33  ;;  %2435 = vmatprep.subr.bf16.mxu1 %v3541_v40  ;;  %v347_v33 = vshll.u32 %v4494_v28, 16  ;;  %v3608_v40 = vld [vmem:[%s4907_s1 + $0x6e0] ss:$8 sps:$4 sm:$0xff]  }
  0x91   : > { %2639 = vmatprep.subr.bf16.mxu0 %v3544_v41  ;;  %2461 = vmatprep.mubr.bf16.mxu1 %v2890_v42  ;;  %v3613_v41 = vld [vmem:[%s4907_s1 + $0x2f4] ss:$8 sps:$4 sm:$0xff]  }
  0x92   : > { %2665 = vmatprep.mubr.bf16.mxu0 %v2898_v37  ;;  %v3556_v37 = vld [vmem:[%s4907_s1 + $0x654] ss:$8 sps:$4 sm:$0xff]  }
  0x93   : > { %2436 = vmatpush1.bf16.msra.mxu1 %v3539_v43  ;;  %v3616_v42 = vld [vmem:[%s4907_s1 + $0x6f4] ss:$8 sps:$4 sm:$0xff]   ;;  %v3611_v43 = vld [vmem:[%s4907_s1 + $0x2f0] ss:$8 sps:$4 sm:$0xff]  }
  0x94   : > { %2640 = vmatpush1.bf16.msra.mxu0 %v3542_v44  ;;  %2437 = vmatprep.subr.bf16.mxu1 %v3547_v45  ;;  %v3614_v44 = vld [vmem:[%s4907_s1 + $0x6f0] ss:$8 sps:$4 sm:$0xff]   ;;  %v251_v45 = vrot.slane %v235_v31, 5  ;;  %v3643_v31 = vld [vmem:[%s4907_s1 + $0x340] ss:$8 sps:$4 sm:$0xff]  }
  0x95   : > { %2641 = vmatprep.subr.bf16.mxu0 %v3550_v47  ;;  %v346_v47 = vrot.slane %v344_v32, 4  ;;  %v3646_v32 = vld [vmem:[%s4907_s1 + $0x740] ss:$8 sps:$4 sm:$0xff]  }
  0x97   : > { %2438 = vmatpush1.bf16.msra.mxu1 %v3545_v48  ;;  %v3619_v48 = vld [vmem:[%s4907_s1 + $0x304] ss:$8 sps:$4 sm:$0xff]  }
  0x98   : > { %2642 = vmatpush1.bf16.msra.mxu0 %v3548_v50  ;;  %2439 = vmatprep.subr.bf16.mxu1 %v3553_v51  ;;  %v349_v50 = vrot.slane %v347_v33, 5  ;;  %v355_v51 = vrot.slane %v353_v34, 5  ;;  %v3651_v33 = vld [vmem:[%s4907_s1 + $0x354] ss:$8 sps:$4 sm:$0xff]  }
  0x99   : > { %2643 = vmatprep.subr.bf16.mxu0 %v3556_v37  ;;  %v359_v37 = vrot.slane %v357_v35, 4  ;;  %v3654_v34 = vld [vmem:[%s4907_s1 + $0x754] ss:$8 sps:$4 sm:$0xff]   ;;  %v3649_v35 = vld [vmem:[%s4907_s1 + $0x350] ss:$8 sps:$4 sm:$0xff]  }
  0x9b   : > { %2440 = vmatpush1.bf16.msra.mxu1 %v3551_v52  ;;  %v393_v52 = vrot.slane %v4497_v29, 5 }
  0x9c   : > { %2644 = vmatpush1.bf16.msra.mxu0 %v3554_v53  ;;  %2441 = vmatprep.subr.bf16.mxu1 %v3559_v54  ;;  %v4530_v53 = vld [vmem:[%s3950_s13 + $0x20] sm:$0xff] }
  0x9d   : > { %2645 = vmatprep.subr.bf16.mxu0 %v3562_v57  ;;  %v3624_v54 = vld [vmem:[%s4907_s1 + $0x704] ss:$8 sps:$4 sm:$0xff]   ;;  %v395_v57 = vrot.slane %v393_v52, 4 }
  0x9f   : > { %2442 = vmatpush1.bf16.msra.mxu1 %v3557_v58  ;;  %v396_v58 = vrot.slane %v4530_v53, 5 }
  0xa0   : > { %2646 = vmatpush1.bf16.msra.mxu0 %v3560_v59  ;;  %2443 = vmatprep.subr.bf16.mxu1 %v3565_v60  ;;  %v2889_v59 = vcombine.low %v4346_v38, %v4351_v39  ;;  %v363_v60 = vshll.u32 %v4530_v53, 16  ;;  %v3622_v38 = vld [vmem:[%s4907_s1 + $0x700] ss:$8 sps:$4 sm:$0xff]   ;;  %v3625_v39 = vld [vmem:[%s4907_s1 + $0x310] ss:$8 sps:$4 sm:$0xff]  }
  0xa1   : > { %2647 = vmatprep.subr.bf16.mxu0 %v3568_v61  ;;  %v3617_v61 = vld [vmem:[%s4907_s1 + $0x300] ss:$8 sps:$4 sm:$0xff]   ;;  %v398_v5 = vrot.slane %v396_v58, 4 }
  0xa3   : > { %2444 = vmatpush1.bf16.msra.mxu1 %v3563_v62  ;;  %v252_v62 = vsel %vm4155_vm5, %v321_v14, %v251_v45  ;;  %v3630_v14 = vld [vmem:[%s4907_s1 + $0x714] ss:$8 sps:$4 sm:$0xff]  }
  0xa4   : > { %2648 = vmatpush1.bf16.msra.mxu0 %v3566_v63  ;;  %2445 = vmatprep.subr.bf16.mxu1 %v3571_v0  ;;  %v350_v63 = vor.u32 %v349_v50, %v346_v47  ;;  %v360_v0 = vor.u32 %v359_v37, %v355_v51  ;;  %v2907_v56 = vcombine.low %v252_v62, %v252_v62  ;;  %v3663_v45 = vld [vmem:[%s4907_s1 + $0x374] ss:$8 sps:$4 sm:$0xff]   ;;  %v3664_v50 = vld [vmem:[%s4907_s1 + $0x770] ss:$8 sps:$4 sm:$0xff]   ;;  %v3672_v37 = vld [vmem:[%s4907_s1 + $0x784] ss:$8 sps:$4 sm:$0xff]  }
  0xa5   : > { %2649 = vmatprep.subr.bf16.mxu0 %v3574_v2  ;;  %v4550_v2 = vsel %vm4155_vm5, %v395_v57, %v396_v58  ;;  %v3666_v47 = vld [vmem:[%s4907_s1 + $0x774] ss:$8 sps:$4 sm:$0xff]  }
  0xa6   : > { %v3675_v57 = vld [vmem:[%s4907_s1 + $0x394] ss:$8 sps:$4 sm:$0xff]  }
  0xa7   : > { %2446 = vmatpush1.bf16.msra.mxu1 %v3569_v3  ;;  %v2908_v3 = vcombine.high %v252_v62, %v252_v62  ;;  %v3681_v62 = vld [vmem:[%s4907_s1 + $0x3a4] ss:$8 sps:$4 sm:$0xff]  }
  0xa8   : > { %2650 = vmatpush1.bf16.msra.mxu0 %v3572_v4  ;;  %2447 = vmatprep.subr.bf16.mxu1 %v3577_v6  ;;  %v2916_v4 = vcombine.high %v4530_v53, %v4530_v53  ;;  %v351_v6 = vrot.slane %v350_v63, 4  ;;  %v3684_v63 = vld [vmem:[%s4907_s1 + $0x7a4] ss:$8 sps:$4 sm:$0xff]  }
  0xa9   : > { %2651 = vmatprep.subr.bf16.mxu0 %v3580_v7  ;;  %v361_v7 = vrot.slane %v360_v0, 4  ;;  %v3679_v0 = vld [vmem:[%s4907_s1 + $0x3a0] ss:$8 sps:$4 sm:$0xff]  }
  0xab   : > { %2448 = vmatpush1.bf16.msra.mxu1 %v3575_v8  ;;  %v4569_v8 = vrot.slane %v363_v60, 5  ;;  %v3673_v60 = vld [vmem:[%s4907_s1 + $0x390] ss:$8 sps:$4 sm:$0xff]  }
  0xac   : > { %2652 = vmatpush1.bf16.msra.mxu0 %v3578_v9  ;;  %2449 = vmatprep.subr.bf16.mxu1 %v3583_v10  ;;  %v3628_v9 = vld [vmem:[%s4907_s1 + $0x710] ss:$8 sps:$4 sm:$0xff]   ;;  %v3633_v10 = vld [vmem:[%s4907_s1 + $0x324] ss:$8 sps:$4 sm:$0xff]  }
  0xad   : > { %2653 = vmatprep.subr.bf16.mxu0 %v3586_v16  ;;  %v4583_v16 = vld [vmem:[%s3950_s13 + $0x8] sm:$0xff] }
  0xaf   : > { %2450 = vmatpush1.bf16.msra.mxu1 %v3581_v17  ;;  %v4587_v17 = vsel %vm4003_vm2, %v351_v6, %v355_v51  ;;  %v3669_v51 = vld [vmem:[%s4907_s1 + $0x384] ss:$8 sps:$4 sm:$0xff]  }
  0xb0   : > { %2654 = vmatpush1.bf16.msra.mxu0 %v3584_v18  ;;  %2451 = vmatprep.subr.bf16.mxu1 %v3589_v19  ;;  %v4592_v18 = vsel %vm4003_vm2, %v361_v7, %v4569_v8  ;;  %v383_v19 = vld [vmem:[%s3950_s13 + $0x10] sm:$0xee]  ;;  %v3696_v6 = vld [vmem:[%s4907_s1 + $0x7c4] ss:$8 sps:$4 sm:$0xff]   ;;  %v367_v7 = vshrl.u32 %v4530_v53, 16 }
  0xb1   : > { %2655 = vmatprep.subr.bf16.mxu0 %v3592_v20  ;;  %v3631_v20 = vld [vmem:[%s4907_s1 + $0x320] ss:$8 sps:$4 sm:$0xff]  }
  0xb3   : > { %2452 = vmatpush1.bf16.msra.mxu1 %v3587_v21  ;;  %v3634_v21 = vld [vmem:[%s4907_s1 + $0x720] ss:$8 sps:$4 sm:$0xff]  }
  0xb4   : > { %2656 = vmatpush1.bf16.msra.mxu0 %v3590_v15  ;;  %2453 = vmatprep.subr.bf16.mxu1 %v3595_v49  ;;  %v2884_v15 = vrot.slane %v383_v19, 9  ;;  %v3639_v49 = vld [vmem:[%s4907_s1 + $0x334] ss:$8 sps:$4 sm:$0xff]   ;;  %v3697_v19 = vld [vmem:[%s4907_s1 + $0x3d0] ss:$8 sps:$4 sm:$0xff]  }
  0xb5   : > { %2657 = vmatprep.subr.bf16.mxu0 %v3598_v12  ;;  %v3642_v12 = vld [vmem:[%s4907_s1 + $0x734] ss:$8 sps:$4 sm:$0xff]  }
  0xb7   : > { %2454 = vmatpush1.bf16.msra.mxu1 %v3593_v46  ;;  %v2892_v46 = vcombine.high %v4583_v16, %v4494_v28 }
  0xb8   : > { %2658 = vmatpush1.bf16.msra.mxu0 %v3596_v22  ;;  %2455 = vmatprep.subr.bf16.mxu1 %v3601_v23  ;;  %v2900_v22 = vcombine.high %v4587_v17, %v4592_v18  ;;  %v4613_v23 = vsel %vm4155_vm5, %v2884_v15, %v393_v52  ;;  %v3667_v52 = vld [vmem:[%s4907_s1 + $0x380] ss:$8 sps:$4 sm:$0xff]   ;;  %v3706_v15 = vld [vmem:[%s4907_s1 + $0x3e4] ss:$8 sps:$4 sm:$0xff]  }
  0xb9   : > { %2659 = vmatprep.subr.bf16.mxu0 %v3604_v24  ;;  %v2901_v24 = vcombine.low %v4613_v23, %v4550_v2 }
  0xbb   : > { %2456 = vmatpush1.bf16.msra.mxu1 %v3599_v25  ;;  %v2902_v25 = vcombine.high %v4613_v23, %v4550_v2 }
  0xbc   : > { %2660 = vmatpush1.bf16.msra.mxu0 %v3602_v26  ;;  %2457 = vmatprep.subr.bf16.mxu1 %v3607_v27  ;;  %v3637_v26 = vld [vmem:[%s4907_s1 + $0x330] ss:$8 sps:$4 sm:$0xff]  }
  0xbd   : > { %2661 = vmatprep.subr.bf16.mxu0 %v3610_v13  ;;  %v3640_v27 = vld [vmem:[%s4907_s1 + $0x730] ss:$8 sps:$4 sm:$0xff]   ;;  %v3645_v13 = vld [vmem:[%s4907_s1 + $0x344] ss:$8 sps:$4 sm:$0xff]  }
  0xbf   : > { %2458 = vmatpush1.bf16.msra.mxu1 %v3605_v30  ;;  %v3648_v30 = vld [vmem:[%s4907_s1 + $0x744] ss:$8 sps:$4 sm:$0xff]  }
  0xc0   : > { %2662 = vmatpush1.bf16.msra.mxu0 %v3608_v40  ;;  %2459 = vmatprep.subr.bf16.mxu1 %v3613_v41  ;;  %v3652_v40 = vld [vmem:[%s4907_s1 + $0x750] ss:$8 sps:$4 sm:$0xff]   ;;  %v3657_v41 = vld [vmem:[%s4907_s1 + $0x364] ss:$8 sps:$4 sm:$0xff]  }
  0xc1   : > { %2663 = vmatprep.subr.bf16.mxu0 %v3616_v42  ;;  %v3660_v42 = vld [vmem:[%s4907_s1 + $0x764] ss:$8 sps:$4 sm:$0xff]  }
  0xc3   : > { %2460 = vmatpush1.bf16.msra.mxu1 %v3611_v43  ;;  %v3655_v43 = vld [vmem:[%s4907_s1 + $0x360] ss:$8 sps:$4 sm:$0xff]  }
  0xc4   : > { %2664 = vmatpush1.bf16.msra.mxu0 %v3614_v44  ;;  %2480 = vmatprep.subr.bf16.mxu1 %v3619_v48  ;;  %v3658_v44 = vld [vmem:[%s4907_s1 + $0x760] ss:$8 sps:$4 sm:$0xff]   ;;  %v3661_v48 = vld [vmem:[%s4907_s1 + $0x370] ss:$8 sps:$4 sm:$0xff]  }
  0xc5   : > { %2684 = vmatprep.subr.bf16.mxu0 %v3624_v54  ;;  %v3670_v54 = vld [vmem:[%s4907_s1 + $0x780] ss:$8 sps:$4 sm:$0xff]  }
  0xc6   : > { %2462 = vmatmul.mubr.bf16.vlgmr.msra.gmra.mrb[0].mxu1 %v2889_v59  ;;  %v3678_v59 = vld [vmem:[%s4907_s1 + $0x794] ss:$8 sps:$4 sm:$0xff]  }
  0xc7   : > { %2666 = vmatmul.mubr.bf16.vlgmr.msra.gmra.mrb[0].mxu0 %v2897_v36  ;;  %2481 = vmatpush1.bf16.msra.mxu1 %v3617_v61  ;;  %v2915_v36 = vcombine.low %v4530_v53, %v4530_v53  ;;  %v3676_v61 = vld [vmem:[%s4907_s1 + $0x790] ss:$8 sps:$4 sm:$0xff]  }
  0xc8   : > { %2685 = vmatpush1.bf16.msra.mxu0 %v3622_v38  ;;  %2482 = vmatprep.subr.bf16.mxu1 %v3627_v1  ;;  %v3682_v38 = vld [vmem:[%s4907_s1 + $0x7a0] ss:$8 sps:$4 sm:$0xff]   ;;  %v3687_v1 = vld [vmem:[%s4907_s1 + $0x3b4] ss:$8 sps:$4 sm:$0xff]  }
  0xc9   : > { %2686 = vmatprep.subr.bf16.mxu0 %v3630_v14  ;;  %2471 = vmatprep.mubr.bf16.mxu1 %v2908_v3  ;;  %v3690_v14 = vld [vmem:[%s4907_s1 + $0x7b4] ss:$8 sps:$4 sm:$0xff]   ;;  %v3688_v3 = vld [vmem:[%s4907_s1 + $0x7b0] ss:$8 sps:$4 sm:$0xff]  }
  0xca   : > { %2675 = vmatprep.mubr.bf16.mxu0 %v2916_v4  ;;  %v3693_v4 = vld [vmem:[%s4907_s1 + $0x3c4] ss:$8 sps:$4 sm:$0xff]  }
  0xcb   : > { %2483 = vmatpush1.bf16.msra.mxu1 %v3625_v39  ;;  %v3685_v39 = vld [vmem:[%s4907_s1 + $0x3b0] ss:$8 sps:$4 sm:$0xff]  }
  0xcc   : > { %2687 = vmatpush1.bf16.msra.mxu0 %v3628_v9  ;;  %2484 = vmatprep.subr.bf16.mxu1 %v3633_v10  ;;  %v3691_v9 = vld [vmem:[%s4907_s1 + $0x3c0] ss:$8 sps:$4 sm:$0xff]  }
  0xcd   : > { %2688 = vmatprep.subr.bf16.mxu0 %v3636_v55  ;;  %v3694_v10 = vld [vmem:[%s4907_s1 + $0x7c0] ss:$8 sps:$4 sm:$0xff]   ;;  %v3699_v55 = vld [vmem:[%s4907_s1 + $0x3d4] ss:$8 sps:$4 sm:$0xff]  }
  0xce   : > { %2472 = vmatmul.mubr.bf16.gmra.mrb[4].mxu1 %v2907_v56  ;;  %v3702_v56 = vld [vmem:[%s4907_s1 + $0x7d4] ss:$8 sps:$4 sm:$0xff]  }
  0xcf   : > { %2676 = vmatmul.mubr.bf16.gmra.mrb[4].mxu0 %v2915_v36  ;;  %2485 = vmatpush1.bf16.msra.mxu1 %v3631_v20  ;;  %v369_v36 = vrot.slane %v367_v7, 4  ;;  %v3700_v20 = vld [vmem:[%s4907_s1 + $0x7d0] ss:$8 sps:$4 sm:$0xff]   ;;  %v3765_v7 = vld [vmem:[%s4907_s1 + $0x8e4] ss:$8 sps:$4 sm:$0xff]  }
  0xd0   : > { %2689 = vmatpush1.bf16.msra.mxu0 %v3634_v21  ;;  %2486 = vmatprep.subr.bf16.mxu1 %v3639_v49  ;;  %v342_v21 = vld [vmem:[%s3950_s13 + $0x28] sm:$0x11] }
  0xd1   : > { %2690 = vmatprep.subr.bf16.mxu0 %v3642_v12  ;;  %2512 = vmatprep.mubr.bf16.mxu1 %v2892_v46  ;;  %v3710_v49 = vld [vmem:[%s4907_s1 + $0x7e4] ss:$8 sps:$4 sm:$0xff]   ;;  %v370_v12 = vor.u32 %v369_v36, %v4569_v8  ;;  %v373_v46 = vshll.u32 %v342_v21, 16  ;;  %v3716_v8 = vld [vmem:[%s4907_s1 + $0x7f4] ss:$8 sps:$4 sm:$0xff]   ;;  %v724_v36 = vlaneseq }
  0xd2   : > { %2716 = vmatprep.mubr.bf16.mxu0 %v2900_v22  ;;  %v3704_v22 = vld [vmem:[%s4907_s1 + $0x3e0] ss:$8 sps:$4 sm:$0xff]  }
  0xd3   : > { %2487 = vmatpush1.bf16.msra.mxu1 %v3637_v26  ;;  %v3708_v26 = vld [vmem:[%s4907_s1 + $0x7e0] ss:$8 sps:$4 sm:$0xff]  }
  0xd4   : > { %2691 = vmatpush1.bf16.msra.mxu0 %v3640_v27  ;;  %2488 = vmatprep.subr.bf16.mxu1 %v3645_v13  ;;  %v3713_v27 = vld [vmem:[%s4907_s1 + $0x3f4] ss:$8 sps:$4 sm:$0xff]   ;;  %v371_v13 = vrot.slane %v370_v12, 4 }
  0xd5   : > { %2692 = vmatprep.subr.bf16.mxu0 %v3648_v30  ;;  %v375_v30 = vrot.slane %v373_v46, 5  ;;  %v722_v46 = vld [vmem:[%s4908_s2] sm:$0x3] }
  0xd7   : > { %2489 = vmatpush1.bf16.msra.mxu1 %v3643_v31  ;;  %v3711_v31 = vld [vmem:[%s4907_s1 + $0x3f0] ss:$8 sps:$4 sm:$0xff]  }
  0xd8   : > { %2693 = vmatpush1.bf16.msra.mxu0 %v3646_v32  ;;  %2490 = vmatprep.subr.bf16.mxu1 %v3651_v33  ;;  %v3714_v32 = vld [vmem:[%s4907_s1 + $0x7f0] ss:$8 sps:$4 sm:$0xff]   ;;  %v3721_v33 = vld [vmem:[%s4907_s1 + $0x804] ss:$8 sps:$4 sm:$0xff]  }
  0xd9   : > { %2694 = vmatprep.subr.bf16.mxu0 %v3654_v34  ;;  %v2891_v34 = vcombine.low %v4583_v16, %v4494_v28  ;;  %v2910_v28 = vcombine.high %v4497_v29, %v4497_v29 }
  0xdb   : > { %2491 = vmatpush1.bf16.msra.mxu1 %v3649_v35  ;;  %v2899_v35 = vcombine.low %v4587_v17, %v4592_v18  ;;  %v3722_v18 = vld [vmem:[%s4907_s1 + $0x810] ss:$8 sps:$4 sm:$0xff]  }
  0xdc   : > { %2695 = vmatpush1.bf16.msra.mxu0 %v3652_v40  ;;  %2492 = vmatprep.subr.bf16.mxu1 %v3657_v41  ;;  %v376_v40 = vsel %vm4003_vm2, %v371_v13, %v375_v30  ;;  %v3719_v41 = vld [vmem:[%s4907_s1 + $0x800] ss:$8 sps:$4 sm:$0xff]  }
  0xdd   : > { %2696 = vmatprep.subr.bf16.mxu0 %v3660_v42  ;;  %v386_v42 = vld [vmem:[%s3950_s13 + $0x28] sm:$0x11]  ;;  %v2918_v16 = vcombine.high %v376_v40, %v376_v40  ;;  %v2917_v53 = vcombine.low %v376_v40, %v376_v40 }
  0xde   : > { %v399_v17 = vrot.slane %v386_v42, 5 }
  0xdf   : > { %2493 = vmatpush1.bf16.msra.mxu1 %v3655_v43  ;;  %v3724_v43 = vld [vmem:[%s4907_s1 + $0x814] ss:$8 sps:$4 sm:$0xff]  }
  0xe0   : > { %2697 = vmatpush1.bf16.msra.mxu0 %v3658_v44  ;;  %2494 = vmatprep.subr.bf16.mxu1 %v3663_v45  ;;  %v3729_v44 = vld [vmem:[%s4907_s1 + $0x824] ss:$8 sps:$4 sm:$0xff]   ;;  %v2909_v45 = vcombine.low %v4497_v29, %v4497_v29  ;;  %v4802_v58 = vsel %vm4155_vm5, %v398_v5, %v399_v17 }
  0xe1   : > { %2698 = vmatprep.subr.bf16.mxu0 %v3666_v47  ;;  %v3727_v47 = vld [vmem:[%s4907_s1 + $0x820] ss:$8 sps:$4 sm:$0xff]   ;;  %v2920_v29 = vcombine.high %v4802_v58, %v4802_v58 }
  0xe3   : > { %2495 = vmatpush1.bf16.msra.mxu1 %v3661_v48  ;;  %v3732_v48 = vld [vmem:[%s4907_s1 + $0x834] ss:$8 sps:$4 sm:$0xff]  }
  0xe4   : > { %2699 = vmatpush1.bf16.msra.mxu0 %v3664_v50  ;;  %2496 = vmatprep.subr.bf16.mxu1 %v3669_v51  ;;  %v3735_v50 = vld [vmem:[%s4907_s1 + $0x844] ss:$8 sps:$4 sm:$0xff]   ;;  %v3733_v51 = vld [vmem:[%s4907_s1 + $0x840] ss:$8 sps:$4 sm:$0xff]  }
  0xe5   : > { %2700 = vmatprep.subr.bf16.mxu0 %v3672_v37  ;;  %v3738_v37 = vld [vmem:[%s4907_s1 + $0x854] ss:$8 sps:$4 sm:$0xff]  }
  0xe7   : > { %2497 = vmatpush1.bf16.msra.mxu1 %v3667_v52  ;;  %v3736_v52 = vld [vmem:[%s4907_s1 + $0x850] ss:$8 sps:$4 sm:$0xff]  }
  0xe8   : > { %2701 = vmatpush1.bf16.msra.mxu0 %v3670_v54  ;;  %2498 = vmatprep.subr.bf16.mxu1 %v3675_v57  ;;  %v3739_v54 = vld [vmem:[%s4907_s1 + $0x860] ss:$8 sps:$4 sm:$0xff]   ;;  %v3744_v57 = vld [vmem:[%s4907_s1 + $0x874] ss:$8 sps:$4 sm:$0xff]  }
  0xe9   : > { %2702 = vmatprep.subr.bf16.mxu0 %v3678_v59  ;;  %v3742_v59 = vld [vmem:[%s4907_s1 + $0x870] ss:$8 sps:$4 sm:$0xff]  }
  0xeb   : > { %2499 = vmatpush1.bf16.msra.mxu1 %v3673_v60  ;;  %v3747_v60 = vld [vmem:[%s4907_s1 + $0x884] ss:$8 sps:$4 sm:$0xff]  }
  0xec   : > { %2703 = vmatpush1.bf16.msra.mxu0 %v3676_v61  ;;  %2500 = vmatprep.subr.bf16.mxu1 %v3681_v62  ;;  %v3745_v61 = vld [vmem:[%s4907_s1 + $0x880] ss:$8 sps:$4 sm:$0xff]   ;;  %v3750_v62 = vld [vmem:[%s4907_s1 + $0x894] ss:$8 sps:$4 sm:$0xff]  }
  0xed   : > { %2704 = vmatprep.subr.bf16.mxu0 %v3684_v63  ;;  %v3748_v63 = vld [vmem:[%s4907_s1 + $0x890] ss:$8 sps:$4 sm:$0xff]  }
  0xef   : > { %2501 = vmatpush1.bf16.msra.mxu1 %v3679_v0  ;;  %v3753_v0 = vld [vmem:[%s4907_s1 + $0x8a4] ss:$8 sps:$4 sm:$0xff]  }
  0xf0   : > { %2705 = vmatpush1.bf16.msra.mxu0 %v3682_v38  ;;  %2502 = vmatprep.subr.bf16.mxu1 %v3687_v1  ;;  %v3751_v38 = vld [vmem:[%s4907_s1 + $0x8a0] ss:$8 sps:$4 sm:$0xff]   ;;  %v3756_v1 = vld [vmem:[%s4907_s1 + $0x8b4] ss:$8 sps:$4 sm:$0xff]  }
  0xf1   : > { %2706 = vmatprep.subr.bf16.mxu0 %v3690_v14  ;;  %v3754_v14 = vld [vmem:[%s4907_s1 + $0x8b0] ss:$8 sps:$4 sm:$0xff]  }
  0xf3   : > { %2503 = vmatpush1.bf16.msra.mxu1 %v3685_v39  ;;  %v3759_v39 = vld [vmem:[%s4907_s1 + $0x8c4] ss:$8 sps:$4 sm:$0xff]  }
  0xf4   : > { %2707 = vmatpush1.bf16.msra.mxu0 %v3688_v3  ;;  %2504 = vmatprep.subr.bf16.mxu1 %v3693_v4  ;;  %v3757_v3 = vld [vmem:[%s4907_s1 + $0x8c0] ss:$8 sps:$4 sm:$0xff]   ;;  %v3762_v4 = vld [vmem:[%s4907_s1 + $0x8d4] ss:$8 sps:$4 sm:$0xff]  }
  0xf5   : > { %2708 = vmatprep.subr.bf16.mxu0 %v3696_v6  ;;  %v3760_v6 = vld [vmem:[%s4907_s1 + $0x8d0] ss:$8 sps:$4 sm:$0xff]  }
  0xf7   : > { %2505 = vmatpush1.bf16.msra.mxu1 %v3691_v9  ;;  %v3763_v9 = vld [vmem:[%s4907_s1 + $0x8e0] ss:$8 sps:$4 sm:$0xff]  }
  0xf8   : > { %2709 = vmatpush1.bf16.msra.mxu0 %v3694_v10  ;;  %2506 = vmatprep.subr.bf16.mxu1 %v3699_v55  ;;  %v3768_v10 = vld [vmem:[%s4907_s1 + $0x8f4] ss:$8 sps:$4 sm:$0xff]   ;;  %v3766_v55 = vld [vmem:[%s4907_s1 + $0x8f0] ss:$8 sps:$4 sm:$0xff]  }
  0xf9   : > { %2710 = vmatprep.subr.bf16.mxu0 %v3702_v56  ;;  %v2919_v56 = vcombine.low %v4802_v58, %v4802_v58 }
  0xfb   : > { %2507 = vmatpush1.bf16.msra.mxu1 %v3697_v19  ;;  %v725_v19 = vshrl.u32 %v724_v36, 7 }
  0xfc   : > { %2711 = vmatpush1.bf16.msra.mxu0 %v3700_v20  ;;  %2508 = vmatprep.subr.bf16.mxu1 %v3706_v15 }
  0xfd   : > { %2712 = vmatprep.subr.bf16.mxu0 %v3710_v49  ;;  %v726_v49 = vsub.s32 0, %v725_v19 }
  0xff   : > { %2509 = vmatpush1.bf16.msra.mxu1 %v3704_v22  ;;  %v730_v22 = vsub.s32 1, %v725_v19 }
 0x100   : > { %2713 = vmatpush1.bf16.msra.mxu0 %v3708_v26  ;;  %2510 = vmatprep.subr.bf16.mxu1 %v3713_v27  ;;  %v727_v26 = vrot.slane %v722_v46, %v726_v49 }
 0x101   : > { %2714 = vmatprep.subr.bf16.mxu0 %v3716_v8  ;;  %v731_v27 = vrot.slane %v722_v46, %v730_v22 }
 0x103   : > { %2511 = vmatpush1.bf16.msra.mxu1 %v3711_v31 }
 0x104   : > { %2715 = vmatpush1.bf16.msra.mxu0 %v3714_v32  ;;  %3219 = vmatprep.subr.bf16.mxu1 %v3721_v33 }
 0x105   : > { %2735 = vmatprep.subr.bf16.mxu0 %v3721_v33 }
 0x106   : > { %2513 = vmatmul.mubr.bf16.vlgmr.msra.gmra.mrb[0].mxu1 %v2891_v34 }
 0x107   : > { %2717 = vmatmul.mubr.bf16.vlgmr.msra.gmra.mrb[0].mxu0 %v2899_v35  ;;  %3235 = vmatpush1.bf16.msra.mxu1 %v3719_v41 }
 0x108   : > { %2736 = vmatpush1.bf16.msra.mxu0 %v3719_v41  ;;  %3220 = vmatprep.subr.bf16.mxu1 %v3724_v43 }
 0x109   : > { %2737 = vmatprep.subr.bf16.mxu0 %v3724_v43  ;;  %2522 = vmatprep.mubr.bf16.mxu1 %v2910_v28 }
 0x10a   : > { %2726 = vmatprep.mubr.bf16.mxu0 %v2918_v16 }
 0x10b   : > { %3236 = vmatpush1.bf16.msra.mxu1 %v3722_v18 }
 0x10c   : > { %2738 = vmatpush1.bf16.msra.mxu0 %v3722_v18  ;;  %3221 = vmatprep.subr.bf16.mxu1 %v3729_v44 }
 0x10d   : > { %2739 = vmatprep.subr.bf16.mxu0 %v3729_v44 }
 0x10e   : > { %2523 = vmatmul.mubr.bf16.gmra.mrb[4].mxu1 %v2909_v45 }
 0x10f   : > { %2727 = vmatmul.mubr.bf16.gmra.mrb[4].mxu0 %v2917_v53  ;;  %3237 = vmatpush1.bf16.msra.mxu1 %v3727_v47 }
 0x110   : > { %2740 = vmatpush1.bf16.msra.mxu0 %v3727_v47  ;;  %3222 = vmatprep.subr.bf16.mxu1 %v3732_v48 }
 0x111   : > { %2741 = vmatprep.subr.bf16.mxu0 %v3732_v48  ;;  %2767 = vmatprep.mubr.bf16.mxu0 %v2902_v25  ;;  %v3741_v25 = vld [vmem:[%s4907_s1 + $0x864] ss:$8 sps:$4 sm:$0xff]  }
 0x112   : > { %2777 = vmatprep.mubr.bf16.mxu1 %v2920_v29 }
 0x113   : > { %3238 = vmatpush1.bf16.msra.mxu1 %v3730_v11 }
 0x114   : > { %2742 = vmatpush1.bf16.msra.mxu0 %v3730_v11  ;;  %3223 = vmatprep.subr.bf16.mxu1 %v3735_v50 }
 0x115   : > { %2743 = vmatprep.subr.bf16.mxu0 %v3735_v50 }
 0x117   : > { %3239 = vmatpush1.bf16.msra.mxu1 %v3733_v51 }
 0x118   : > { %2744 = vmatpush1.bf16.msra.mxu0 %v3733_v51  ;;  %3224 = vmatprep.subr.bf16.mxu1 %v3738_v37 }
 0x119   : > { %2745 = vmatprep.subr.bf16.mxu0 %v3738_v37 }
 0x11b   : > { %3240 = vmatpush1.bf16.msra.mxu1 %v3736_v52 }
 0x11c   : > { %2746 = vmatpush1.bf16.msra.mxu0 %v3736_v52  ;;  %3225 = vmatprep.subr.bf16.mxu1 %v3741_v25 }
 0x11d   : > { %2747 = vmatprep.subr.bf16.mxu0 %v3741_v25 }
 0x11f   : > { %3241 = vmatpush1.bf16.msra.mxu1 %v3739_v54 }
 0x120   : > { %2748 = vmatpush1.bf16.msra.mxu0 %v3739_v54  ;;  %3226 = vmatprep.subr.bf16.mxu1 %v3744_v57 }
 0x121   : > { %2749 = vmatprep.subr.bf16.mxu0 %v3744_v57 }
 0x123   : > { %3242 = vmatpush1.bf16.msra.mxu1 %v3742_v59 }
 0x124   : > { %2750 = vmatpush1.bf16.msra.mxu0 %v3742_v59  ;;  %3227 = vmatprep.subr.bf16.mxu1 %v3747_v60 }
 0x125   : > { %2751 = vmatprep.subr.bf16.mxu0 %v3747_v60 }
 0x127   : > { %3243 = vmatpush1.bf16.msra.mxu1 %v3745_v61 }
 0x128   : > { %2752 = vmatpush1.bf16.msra.mxu0 %v3745_v61  ;;  %3228 = vmatprep.subr.bf16.mxu1 %v3750_v62 }
 0x129   : > { %2753 = vmatprep.subr.bf16.mxu0 %v3750_v62 }
 0x12b   : > { %3244 = vmatpush1.bf16.msra.mxu1 %v3748_v63 }
 0x12c   : > { %2754 = vmatpush1.bf16.msra.mxu0 %v3748_v63  ;;  %3229 = vmatprep.subr.bf16.mxu1 %v3753_v0 }
 0x12d   : > { %2755 = vmatprep.subr.bf16.mxu0 %v3753_v0 }
 0x12f   : > { %3245 = vmatpush1.bf16.msra.mxu1 %v3751_v38 }
 0x130   : > { %2756 = vmatpush1.bf16.msra.mxu0 %v3751_v38  ;;  %3230 = vmatprep.subr.bf16.mxu1 %v3756_v1 }
 0x131   : > { %2757 = vmatprep.subr.bf16.mxu0 %v3756_v1 }
 0x133   : > { %3246 = vmatpush1.bf16.msra.mxu1 %v3754_v14 }
 0x134   : > { %2758 = vmatpush1.bf16.msra.mxu0 %v3754_v14  ;;  %3231 = vmatprep.subr.bf16.mxu1 %v3759_v39 }
 0x135   : > { %2759 = vmatprep.subr.bf16.mxu0 %v3759_v39 }
 0x137   : > { %3247 = vmatpush1.bf16.msra.mxu1 %v3757_v3 }
 0x138   : > { %2760 = vmatpush1.bf16.msra.mxu0 %v3757_v3  ;;  %3232 = vmatprep.subr.bf16.mxu1 %v3762_v4 }
 0x139   : > { %2761 = vmatprep.subr.bf16.mxu0 %v3762_v4 }
 0x13b   : > { %3248 = vmatpush1.bf16.msra.mxu1 %v3760_v6 }
 0x13c   : > { %2762 = vmatpush1.bf16.msra.mxu0 %v3760_v6  ;;  %3233 = vmatprep.subr.bf16.mxu1 %v3765_v7 }
 0x13d   : > { %2763 = vmatprep.subr.bf16.mxu0 %v3765_v7 }
 0x13f   : > { %3249 = vmatpush1.bf16.msra.mxu1 %v3763_v9 }
 0x140   : > { %2764 = vmatpush1.bf16.msra.mxu0 %v3763_v9  ;;  %3234 = vmatprep.subr.bf16.mxu1 %v3768_v10 }
 0x141   : > { %2765 = vmatprep.subr.bf16.mxu0 %v3768_v10 }
 0x143   : > { %3250 = vmatpush1.bf16.msra.mxu1 %v3766_v55 }
 0x144   : > { %2766 = vmatpush1.bf16.msra.mxu0 %v3766_v55 }
 0x146   : > { %2778 = vmatmul.mubr.bf16.vlgmr.msra.gmra.mrb[8].mxu1 %v2919_v56 }
 0x147   : > { %2768 = vmatmul.mubr.bf16.vlgmr.msra.gmra.mrb[0].mxu0 %v2901_v24 }
 0x1d9   : > { %v2514_v20 = vpop.f32.mrb[0].mxu1 }
 0x1da   : > { %v2516_v21 = vpop.f32.mrb[1].mxu1  ;;  %v3251_v41 = vadd.f32 %v2514_v20, %v727_v26 }
 0x1db   : > { %v2518_v15 = vpop.f32.mrb[2].mxu1  ;;  %v3253_v42 = vadd.f32 %v2516_v21, %v731_v27 }
 0x1dc   : > { %v2520_v12 = vpop.f32.mrb[3].mxu1  ;;  %v3255_v16 = vadd.f32 %v2518_v15, %v727_v26 }
 0x1dd   : > { %v3257_v45 = vadd.f32 %v2520_v12, %v731_v27 }
 0x1e1   : > { %v2524_v8 = vpop.f32.mrb[4].mxu1 }
 0x1e2   : > { %v2728_v13 = vpop.f32.mrb[4].mxu0  ;;  %v3259_v30 = vadd.f32 %v2524_v8, %v727_v26  ;;  %v2526_v2 = vpop.f32.mrb[5].mxu1 }
 0x1e3   : > { %v2730_v23 = vpop.f32.mrb[5].mxu0  ;;  %v3262_v24 = vadd.f32 %v2526_v2, %v731_v27  ;;  %v2528_v31 = vpop.f32.mrb[6].mxu1 }
 0x1e4   : > { %v2732_v32 = vpop.f32.mrb[6].mxu0  ;;  %v3260_v33 = vadd.f32 %v3259_v30, %v2728_v13  ;;  %v2529_v34 = vpop.f32.mrb[7].mxu1 }
 0x1e5   : > { %v2733_v35 = vpop.f32.mrb[7].mxu0  ;;  %v3263_v40 = vadd.f32 %v3262_v24, %v2730_v23 }
 0x219   : > { %v2779_v28 = vpop.f32.mrb[8].mxu1 }
 0x21a   : > { %v2769_v43 = vpop.f32.mrb[0].mxu0  ;;  %v3261_v17 = vadd.f32 %v3260_v33, %v2779_v28  ;;  %v2781_v44 = vpop.f32.mrb[9].mxu1 }
 0x21b   : > { %v3252_v5 = vadd.f32 %v3251_v41, %v2769_v43  ;;  %v2771_v18 = vpop.f32.mrb[1].mxu0  ;;  %v3264_v58 = vadd.f32 %v3263_v40, %v2781_v44  ;;  %v2783_v48 = vpop.f32.mrb[10].mxu1 }
 0x21c   : > { %v3254_v53 = vadd.f32 %v3253_v42, %v2771_v18  ;;  %v2773_v47 = vpop.f32.mrb[2].mxu0  ;;  %v2790_v11 = vmax.f32 %v3261_v17, 0.0  ;;  %v2784_v37 = vpop.f32.mrb[11].mxu1 }
 0x21d   : > { %v2786_v29 = vmax.f32 %v3252_v5, 0.0  ;;  %v3256_v50 = vadd.f32 %v3255_v16, %v2773_v47  ;;  %v2775_v51 = vpop.f32.mrb[3].mxu0  ;;  %v2791_v25 = vmax.f32 %v3264_v58, 0.0 }
 0x21e   : > { %v2787_v52 = vmax.f32 %v3254_v53, 0.0  ;;  %v3258_v54 = vadd.f32 %v3257_v45, %v2775_v51 }
 0x21f   : > { %v2788_v57 = vmax.f32 %v3256_v50, 0.0  ;;  %v3218_v60 = vpack.c.bf16 %v2791_v25, %v2790_v11 }
 0x220   : > { %v3216_v59 = vpack.c.bf16 %v2787_v52, %v2786_v29  ;;  %v2789_v61 = vmax.f32 %v3258_v54, 0.0 }
 0x221   : > { %2814 = vst [vmem:[%s177_s10 + $0x10] sm:$0xff] %v3218_v60 }
 0x222   : > { %2812 = vst [vmem:[%s177_s10] sm:$0xff] %v3216_v59  ;;  %v3217_v62 = vpack.c.bf16 %v2789_v61, %v2788_v57 }
 0x224   : > { %2813 = vst [vmem:[%s177_s10 + $0x8] sm:$0xff] %v3217_v62 }
 0x225 PF: > { %s13_s12 = sadd.s32 1, %s3775_s12  }
 0x226   : > { %p10_p4 = scmp.ge.s32.totalorder %s13_s12, 4  }
 0x228   :  { %12 = sbr.rel (!%p10_p4) target bundleno = 1 (0x1), region = 62 }

// kernel: alexnet_forward.11
= control target key start
LH: loop header
LB: loop body
LE: loop exit
PB: predicated region body
PF: predicated region fallthrough
CT: control target
= control target key end

     0   :  { %s5565_s1 = inlined_call_operand.vmem [shape: bf16[256,1024], index: 1, kind: input, shape index: {}]   ;;  %s5566_s0 = inlined_call_operand.vmem [shape: bf16[8,256], index: 0, kind: input, shape index: {}]   ;;  %s5567_s3 = inlined_call_operand.vmem [shape: bf16[1024,512], index: 3, kind: input, shape index: {}]   ;;  %s5568_s2 = inlined_call_operand.vmem [shape: f32[1,1024], index: 2, kind: input, shape index: {}]   ;;  %s5569_s5 = inlined_call_operand.vmem [shape: bf16[512,128], index: 5, kind: input, shape index: {}]   ;;  %s5570_s4 = inlined_call_operand.vmem [shape: f32[1,512], index: 4, kind: input, shape index: {}]   ;;  %s5571_s6 = inlined_call_operand.vmem [shape: f32[1,128], index: 6, kind: input, shape index: {}]   ;;  %s5572_s7 = inlined_call_operand.vmem [shape: f32[8,128], index: 7, kind: output, shape index: {}]  }
   0x1   :  { %v28_v0 = vld [vmem:[%s5565_s1] sm:$0xff]  ;;  %v29_v17 = vld [vmem:[%s5565_s1 + $0x8] sm:$0xff] }
   0x2   :  { %v32_v1 = vld [vmem:[%s5565_s1 + $0x20] sm:$0xff]  ;;  %v33_v18 = vld [vmem:[%s5565_s1 + $0x28] sm:$0xff] }
   0x3   :  { %v36_v2 = vld [vmem:[%s5565_s1 + $0x40] sm:$0xff]  ;;  %v3284_v3 = vcombine.high %v28_v0, %v32_v1  ;;  %v3283_v4 = vcombine.low %v28_v0, %v32_v1  ;;  %v37_v20 = vld [vmem:[%s5565_s1 + $0x48] sm:$0xff]  ;;  %v3286_v22 = vcombine.high %v29_v17, %v33_v18  ;;  %v3285_v23 = vcombine.low %v29_v17, %v33_v18 }
   0x4   :  { %v40_v5 = vld [vmem:[%s5565_s1 + $0x60] sm:$0xff]  ;;  %v41_v25 = vld [vmem:[%s5565_s1 + $0x68] sm:$0xff] }
   0x5   :  { %v3292_v6 = vcombine.high %v36_v2, %v40_v5  ;;  %v44_v7 = vld [vmem:[%s5565_s1 + $0x80] sm:$0xff]  ;;  %845 = vmatprep.subr.bf16.mxu0 %v3284_v3  ;;  %v3291_v9 = vcombine.low %v36_v2, %v40_v5  ;;  %v3294_v27 = vcombine.high %v37_v20, %v41_v25  ;;  %v45_v28 = vld [vmem:[%s5565_s1 + $0x88] sm:$0xff]  ;;  %886 = vmatprep.subr.bf16.mxu1 %v3286_v22 }
   0x6   :  { %v48_v8 = vld [vmem:[%s5565_s1 + $0xa0] sm:$0xff]  ;;  %846 = vmatpush1.bf16.msra.mxu0 %v3283_v4  ;;  %v49_v29 = vld [vmem:[%s5565_s1 + $0xa8] sm:$0xff]  ;;  %887 = vmatpush1.bf16.msra.mxu1 %v3285_v23  ;;  %v3293_v32 = vcombine.low %v37_v20, %v41_v25 }
   0x7   :  { %847 = vmatprep.subr.bf16.mxu0 %v3292_v6  ;;  %v3300_v10 = vcombine.high %v44_v7, %v48_v8  ;;  %v52_v11 = vld [vmem:[%s5565_s1 + $0xc0] sm:$0xff]  ;;  %v3299_v13 = vcombine.low %v44_v7, %v48_v8  ;;  %888 = vmatprep.subr.bf16.mxu1 %v3294_v27  ;;  %v3302_v34 = vcombine.high %v45_v28, %v49_v29  ;;  %v53_v36 = vld [vmem:[%s5565_s1 + $0xc8] sm:$0xff] }
   0x8   :  { %v56_v12 = vld [vmem:[%s5565_s1 + $0xe0] sm:$0xff]  ;;  %v57_v37 = vld [vmem:[%s5565_s1 + $0xe8] sm:$0xff]  ;;  %v3301_v40 = vcombine.low %v45_v28, %v49_v29 }
   0x9   :  { %v3308_v14 = vcombine.high %v52_v11, %v56_v12  ;;  %v60_v15 = vld [vmem:[%s5565_s1 + $0x100] sm:$0xff]  ;;  %v3307_v21 = vcombine.low %v52_v11, %v56_v12  ;;  %v3310_v42 = vcombine.high %v53_v36, %v57_v37  ;;  %v61_v44 = vld [vmem:[%s5565_s1 + $0x108] sm:$0xff]  ;;  %v3309_v48 = vcombine.low %v53_v36, %v57_v37 }
   0xa   :  { %848 = vmatpush1.bf16.msra.mxu0 %v3291_v9  ;;  %v64_v16 = vld [vmem:[%s5565_s1 + $0x120] sm:$0xff]  ;;  %889 = vmatpush1.bf16.msra.mxu1 %v3293_v32  ;;  %v65_v45 = vld [vmem:[%s5565_s1 + $0x128] sm:$0xff] }
   0xb   :  { %849 = vmatprep.subr.bf16.mxu0 %v3300_v10  ;;  %v4273_v19 = vld [vmem:[%s5566_s0] sm:$0xff]  ;;  %v3316_v26 = vcombine.high %v60_v15, %v64_v16  ;;  %v3315_v33 = vcombine.low %v60_v15, %v64_v16  ;;  %890 = vmatprep.subr.bf16.mxu1 %v3302_v34  ;;  %v3318_v50 = vcombine.high %v61_v44, %v65_v45  ;;  %v69_v52 = vld [vmem:[%s5565_s1 + $0x148] sm:$0xff] }
   0xc   :  { %v4280_v24 = vcombine.high %v4273_v19, %v4273_v19  ;;  %v68_v30 = vld [vmem:[%s5565_s1 + $0x140] sm:$0xff]  ;;  %v73_v53 = vld [vmem:[%s5565_s1 + $0x168] sm:$0xff]  ;;  %v3317_v56 = vcombine.low %v61_v44, %v65_v45 }
   0xd   :  { %v72_v31 = vld [vmem:[%s5565_s1 + $0x160] sm:$0xff]  ;;  %v3326_v58 = vcombine.high %v69_v52, %v73_v53  ;;  %v77_v60 = vld [vmem:[%s5565_s1 + $0x188] sm:$0xff]  ;;  %v3325_v0 = vcombine.low %v69_v52, %v73_v53 }
   0xe   :  { %850 = vmatpush1.bf16.msra.mxu0 %v3299_v13  ;;  %877 = vmatprep.mubr.bf16.mxu0 %v4280_v24  ;;  %v3324_v35 = vcombine.high %v68_v30, %v72_v31  ;;  %v76_v38 = vld [vmem:[%s5565_s1 + $0x180] sm:$0xff]  ;;  %v3323_v41 = vcombine.low %v68_v30, %v72_v31  ;;  %v81_v61 = vld [vmem:[%s5565_s1 + $0x1a8] sm:$0xff] }
   0xf   :  { %851 = vmatprep.subr.bf16.mxu0 %v3308_v14  ;;  %v80_v39 = vld [vmem:[%s5565_s1 + $0x1a0] sm:$0xff]  ;;  %918 = vmatprep.mubr.bf16.mxu1 %v4280_v24  ;;  %v3334_v2 = vcombine.high %v77_v60, %v81_v61  ;;  %v85_v4 = vld [vmem:[%s5565_s1 + $0x1c8] sm:$0xff]  ;;  %v3333_v8 = vcombine.low %v77_v60, %v81_v61 }
  0x10   :  { %v3332_v43 = vcombine.high %v76_v38, %v80_v39  ;;  %v84_v46 = vld [vmem:[%s5565_s1 + $0x1c0] sm:$0xff]  ;;  %891 = vmatpush1.bf16.msra.mxu1 %v3301_v40  ;;  %v3331_v49 = vcombine.low %v76_v38, %v80_v39  ;;  %v89_v5 = vld [vmem:[%s5565_s1 + $0x1e8] sm:$0xff] }
  0x11   :  { %v88_v47 = vld [vmem:[%s5565_s1 + $0x1e0] sm:$0xff]  ;;  %892 = vmatprep.subr.bf16.mxu1 %v3310_v42  ;;  %v3342_v10 = vcombine.high %v85_v4, %v89_v5  ;;  %v93_v12 = vld [vmem:[%s5565_s1 + $0x208] sm:$0xff]  ;;  %v3341_v16 = vcombine.low %v85_v4, %v89_v5 }
  0x12   :  { %852 = vmatpush1.bf16.msra.mxu0 %v3307_v21  ;;  %v3340_v51 = vcombine.high %v84_v46, %v88_v47  ;;  %v92_v54 = vld [vmem:[%s5565_s1 + $0x200] sm:$0xff]  ;;  %v3339_v57 = vcombine.low %v84_v46, %v88_v47  ;;  %v97_v13 = vld [vmem:[%s5565_s1 + $0x228] sm:$0xff] }
  0x13   :  { %853 = vmatprep.subr.bf16.mxu0 %v3316_v26  ;;  %v96_v55 = vld [vmem:[%s5565_s1 + $0x220] sm:$0xff]  ;;  %v3350_v18 = vcombine.high %v93_v12, %v97_v13  ;;  %v101_v21 = vld [vmem:[%s5565_s1 + $0x248] sm:$0xff]  ;;  %v3349_v26 = vcombine.low %v93_v12, %v97_v13 }
  0x14   :  { %893 = vmatpush1.bf16.msra.mxu1 %v3309_v48  ;;  %v3348_v59 = vcombine.high %v92_v54, %v96_v55  ;;  %v100_v62 = vld [vmem:[%s5565_s1 + $0x240] sm:$0xff]  ;;  %v3347_v1 = vcombine.low %v92_v54, %v96_v55  ;;  %v105_v22 = vld [vmem:[%s5565_s1 + $0x268] sm:$0xff] }
  0x15   :  { %894 = vmatprep.subr.bf16.mxu1 %v3318_v50  ;;  %v104_v63 = vld [vmem:[%s5565_s1 + $0x260] sm:$0xff]  ;;  %v3358_v28 = vcombine.high %v101_v21, %v105_v22  ;;  %v109_v30 = vld [vmem:[%s5565_s1 + $0x288] sm:$0xff]  ;;  %v3357_v34 = vcombine.low %v101_v21, %v105_v22 }
  0x16   :  { %854 = vmatpush1.bf16.msra.mxu0 %v3315_v33  ;;  %v3356_v3 = vcombine.high %v100_v62, %v104_v63  ;;  %v108_v6 = vld [vmem:[%s5565_s1 + $0x280] sm:$0xff]  ;;  %v3355_v9 = vcombine.low %v100_v62, %v104_v63  ;;  %v113_v31 = vld [vmem:[%s5565_s1 + $0x2a8] sm:$0xff] }
  0x17   :  { %855 = vmatprep.subr.bf16.mxu0 %v3324_v35  ;;  %v112_v7 = vld [vmem:[%s5565_s1 + $0x2a0] sm:$0xff]  ;;  %v3366_v36 = vcombine.high %v109_v30, %v113_v31  ;;  %v117_v38 = vld [vmem:[%s5565_s1 + $0x2c8] sm:$0xff]  ;;  %v3365_v42 = vcombine.low %v109_v30, %v113_v31 }
  0x18   :  { %895 = vmatpush1.bf16.msra.mxu1 %v3317_v56  ;;  %v3364_v11 = vcombine.high %v108_v6, %v112_v7  ;;  %v116_v14 = vld [vmem:[%s5565_s1 + $0x2c0] sm:$0xff]  ;;  %v3363_v17 = vcombine.low %v108_v6, %v112_v7  ;;  %v121_v39 = vld [vmem:[%s5565_s1 + $0x2e8] sm:$0xff]  ;;  %v30_v56 = vld [vmem:[%s5565_s1 + $0x10] sm:$0xff] }
  0x19   :  { %896 = vmatprep.subr.bf16.mxu1 %v3326_v58  ;;  %v120_v15 = vld [vmem:[%s5565_s1 + $0x2e0] sm:$0xff]  ;;  %v3374_v44 = vcombine.high %v117_v38, %v121_v39  ;;  %v125_v46 = vld [vmem:[%s5565_s1 + $0x308] sm:$0xff]  ;;  %v3373_v50 = vcombine.low %v117_v38, %v121_v39  ;;  %v78_v38 = vld [vmem:[%s5565_s1 + $0x190] sm:$0xff] }
  0x1a   :  { %856 = vmatpush1.bf16.msra.mxu0 %v3323_v41  ;;  %v3372_v20 = vcombine.high %v116_v14, %v120_v15  ;;  %v124_v23 = vld [vmem:[%s5565_s1 + $0x300] sm:$0xff]  ;;  %v3371_v27 = vcombine.low %v116_v14, %v120_v15  ;;  %v129_v47 = vld [vmem:[%s5565_s1 + $0x328] sm:$0xff]  ;;  %v31_v14 = vld [vmem:[%s5565_s1 + $0x18] sm:$0xff] }
  0x1b   :  { %857 = vmatprep.subr.bf16.mxu0 %v3332_v43  ;;  %v128_v25 = vld [vmem:[%s5565_s1 + $0x320] sm:$0xff]  ;;  %v3382_v52 = vcombine.high %v125_v46, %v129_v47  ;;  %v133_v54 = vld [vmem:[%s5565_s1 + $0x348] sm:$0xff]  ;;  %v3381_v58 = vcombine.low %v125_v46, %v129_v47  ;;  %v35_v15 = vld [vmem:[%s5565_s1 + $0x38] sm:$0xff] }
  0x1c   :  { %897 = vmatpush1.bf16.msra.mxu1 %v3325_v0  ;;  %v3380_v29 = vcombine.high %v124_v23, %v128_v25  ;;  %v132_v32 = vld [vmem:[%s5565_s1 + $0x340] sm:$0xff]  ;;  %v3379_v35 = vcombine.low %v124_v23, %v128_v25  ;;  %v137_v55 = vld [vmem:[%s5565_s1 + $0x368] sm:$0xff]  ;;  %v38_v0 = vld [vmem:[%s5565_s1 + $0x50] sm:$0xff]  ;;  %v3290_v21 = vcombine.high %v31_v14, %v35_v15 }
  0x1d   :  { %898 = vmatprep.subr.bf16.mxu1 %v3334_v2  ;;  %v136_v33 = vld [vmem:[%s5565_s1 + $0x360] sm:$0xff]  ;;  %v3390_v60 = vcombine.high %v133_v54, %v137_v55  ;;  %v141_v61 = vld [vmem:[%s5565_s1 + $0x388] sm:$0xff]  ;;  %v4445_v2 = vcombine.low %v4273_v19, %v4273_v19  ;;  %v46_v19 = vld [vmem:[%s5565_s1 + $0x90] sm:$0xff] }
  0x1e   :  { %858 = vmatpush1.bf16.msra.mxu0 %v3331_v49  ;;  %v3388_v37 = vcombine.high %v132_v32, %v136_v33  ;;  %v140_v40 = vld [vmem:[%s5565_s1 + $0x380] sm:$0xff]  ;;  %v3387_v43 = vcombine.low %v132_v32, %v136_v33  ;;  %v145_v62 = vld [vmem:[%s5565_s1 + $0x3a8] sm:$0xff]  ;;  %v39_v23 = vld [vmem:[%s5565_s1 + $0x58] sm:$0xff] }
  0x1f   :  { %859 = vmatprep.subr.bf16.mxu0 %v3340_v51  ;;  %v144_v41 = vld [vmem:[%s5565_s1 + $0x3a0] sm:$0xff]  ;;  %v3398_v4 = vcombine.high %v141_v61, %v145_v62  ;;  %v149_v6 = vld [vmem:[%s5565_s1 + $0x3c8] sm:$0xff]  ;;  %v43_v25 = vld [vmem:[%s5565_s1 + $0x78] sm:$0xff] }
  0x20   :  { %899 = vmatpush1.bf16.msra.mxu1 %v3333_v8  ;;  %v3396_v45 = vcombine.high %v140_v40, %v144_v41  ;;  %v148_v48 = vld [vmem:[%s5565_s1 + $0x3c0] sm:$0xff]  ;;  %v3395_v51 = vcombine.low %v140_v40, %v144_v41  ;;  %v153_v7 = vld [vmem:[%s5565_s1 + $0x3e8] sm:$0xff]  ;;  %v3298_v30 = vcombine.high %v39_v23, %v43_v25  ;;  %v47_v32 = vld [vmem:[%s5565_s1 + $0x98] sm:$0xff] }
  0x21   :  { %900 = vmatprep.subr.bf16.mxu1 %v3342_v10  ;;  %v152_v49 = vld [vmem:[%s5565_s1 + $0x3e0] sm:$0xff]  ;;  %v3397_v10 = vcombine.low %v141_v61, %v145_v62  ;;  %v51_v33 = vld [vmem:[%s5565_s1 + $0xb8] sm:$0xff]  ;;  %v82_v39 = vld [vmem:[%s5565_s1 + $0x1b0] sm:$0xff] }
  0x22   :  { %860 = vmatpush1.bf16.msra.mxu0 %v3339_v57  ;;  %v3404_v53 = vcombine.high %v148_v48, %v152_v49  ;;  %v34_v57 = vld [vmem:[%s5565_s1 + $0x30] sm:$0xff]  ;;  %v3306_v40 = vcombine.high %v47_v32, %v51_v33  ;;  %v55_v41 = vld [vmem:[%s5565_s1 + $0xd8] sm:$0xff] }
  0x23   :  { %861 = vmatprep.subr.bf16.mxu0 %v3348_v59  ;;  %v3403_v59 = vcombine.low %v148_v48, %v152_v49  ;;  %v3288_v63 = vcombine.high %v30_v56, %v34_v57  ;;  %v3287_v5 = vcombine.low %v30_v56, %v34_v57  ;;  %v86_v47 = vld [vmem:[%s5565_s1 + $0x1d0] sm:$0xff]  ;;  %v83_v61 = vld [vmem:[%s5565_s1 + $0x1b8] sm:$0xff] }
  0x24   :  { %901 = vmatpush1.bf16.msra.mxu1 %v3341_v16  ;;  %v54_v16 = vld [vmem:[%s5565_s1 + $0xd0] sm:$0xff] }
  0x25   :  { %902 = vmatprep.subr.bf16.mxu1 %v3350_v18  ;;  %v3405_v18 = vcombine.low %v149_v6, %v153_v7  ;;  %v90_v48 = vld [vmem:[%s5565_s1 + $0x1f0] sm:$0xff] }
  0x26   :  { %862 = vmatpush1.bf16.msra.mxu0 %v3347_v1  ;;  %v42_v1 = vld [vmem:[%s5565_s1 + $0x70] sm:$0xff]  ;;  %v3343_v62 = vcombine.low %v86_v47, %v90_v48 }
  0x27   :  { %863 = vmatprep.subr.bf16.mxu0 %v3356_v3  ;;  %v3389_v3 = vcombine.low %v133_v54, %v137_v55  ;;  %v3296_v8 = vcombine.high %v38_v0, %v42_v1  ;;  %v3295_v12 = vcombine.low %v38_v0, %v42_v1  ;;  %v3335_v54 = vcombine.low %v78_v38, %v82_v39  ;;  %v94_v55 = vld [vmem:[%s5565_s1 + $0x210] sm:$0xff] }
  0x28   :  { %903 = vmatpush1.bf16.msra.mxu1 %v3349_v26  ;;  %v62_v26 = vld [vmem:[%s5565_s1 + $0x110] sm:$0xff] }
  0x29   :  { %904 = vmatprep.subr.bf16.mxu1 %v3358_v28  ;;  %v3289_v28 = vcombine.low %v31_v14, %v35_v15  ;;  %v98_v56 = vld [vmem:[%s5565_s1 + $0x230] sm:$0xff] }
  0x2a   :  { %864 = vmatpush1.bf16.msra.mxu0 %v3355_v9  ;;  %v50_v9 = vld [vmem:[%s5565_s1 + $0xb0] sm:$0xff] }
  0x2b   :  { %865 = vmatprep.subr.bf16.mxu0 %v3364_v11  ;;  %v3406_v11 = vcombine.high %v149_v6, %v153_v7  ;;  %v3304_v13 = vcombine.high %v46_v19, %v50_v9  ;;  %v106_v0 = vld [vmem:[%s5565_s1 + $0x270] sm:$0xff]  ;;  %v91_v6 = vld [vmem:[%s5565_s1 + $0x1f8] sm:$0xff]  ;;  %v3351_v7 = vcombine.low %v94_v55, %v98_v56 }
  0x2c   :  { %905 = vmatpush1.bf16.msra.mxu1 %v3357_v34  ;;  %v70_v34 = vld [vmem:[%s5565_s1 + $0x150] sm:$0xff] }
  0x2d   :  { %906 = vmatprep.subr.bf16.mxu1 %v3366_v36  ;;  %v3297_v36 = vcombine.low %v39_v23, %v43_v25  ;;  %v118_v15 = vld [vmem:[%s5565_s1 + $0x2d0] sm:$0xff] }
  0x2e   :  { %866 = vmatpush1.bf16.msra.mxu0 %v3363_v17  ;;  %v58_v17 = vld [vmem:[%s5565_s1 + $0xf0] sm:$0xff] }
  0x2f   :  { %867 = vmatprep.subr.bf16.mxu0 %v3372_v20  ;;  %v3303_v20 = vcombine.low %v46_v19, %v50_v9  ;;  %v3312_v22 = vcombine.high %v54_v16, %v58_v17  ;;  %v114_v19 = vld [vmem:[%s5565_s1 + $0x2b0] sm:$0xff] }
  0x30   :  { %907 = vmatpush1.bf16.msra.mxu1 %v3365_v42  ;;  %v126_v25 = vld [vmem:[%s5565_s1 + $0x310] sm:$0xff] }
  0x31   :  { %908 = vmatprep.subr.bf16.mxu1 %v3374_v44  ;;  %v63_v44 = vld [vmem:[%s5565_s1 + $0x118] sm:$0xff] }
  0x32   :  { %868 = vmatpush1.bf16.msra.mxu0 %v3371_v27  ;;  %v66_v27 = vld [vmem:[%s5565_s1 + $0x130] sm:$0xff] }
  0x33   :  { %869 = vmatprep.subr.bf16.mxu0 %v3380_v29  ;;  %v3311_v29 = vcombine.low %v54_v16, %v58_v17  ;;  %v3320_v31 = vcombine.high %v62_v26, %v66_v27  ;;  %v122_v16 = vld [vmem:[%s5565_s1 + $0x2f0] sm:$0xff] }
  0x34   :  { %909 = vmatpush1.bf16.msra.mxu1 %v3373_v50  ;;  %v3336_v50 = vcombine.high %v78_v38, %v82_v39  ;;  %v119_v38 = vld [vmem:[%s5565_s1 + $0x2d8] sm:$0xff] }
  0x35   :  { %910 = vmatprep.subr.bf16.mxu1 %v3382_v52  ;;  %v71_v52 = vld [vmem:[%s5565_s1 + $0x158] sm:$0xff] }
  0x36   :  { %870 = vmatpush1.bf16.msra.mxu0 %v3379_v35  ;;  %v74_v35 = vld [vmem:[%s5565_s1 + $0x170] sm:$0xff]  ;;  %v123_v39 = vld [vmem:[%s5565_s1 + $0x2f8] sm:$0xff] }
  0x37   :  { %871 = vmatprep.subr.bf16.mxu0 %v3388_v37  ;;  %v3319_v37 = vcombine.low %v62_v26, %v66_v27  ;;  %v3328_v42 = vcombine.high %v70_v34, %v74_v35  ;;  %v3327_v46 = vcombine.low %v70_v34, %v74_v35  ;;  %v130_v26 = vld [vmem:[%s5565_s1 + $0x330] sm:$0xff] }
  0x38   :  { %911 = vmatpush1.bf16.msra.mxu1 %v3381_v58  ;;  %v3344_v58 = vcombine.high %v86_v47, %v90_v48  ;;  %v138_v34 = vld [vmem:[%s5565_s1 + $0x370] sm:$0xff] }
  0x39   :  { %912 = vmatprep.subr.bf16.mxu1 %v3390_v60  ;;  %v79_v60 = vld [vmem:[%s5565_s1 + $0x198] sm:$0xff]  ;;  %v150_v48 = vld [vmem:[%s5565_s1 + $0x3d0] sm:$0xff] }
  0x3a   :  { %872 = vmatpush1.bf16.msra.mxu0 %v3387_v43  ;;  %v3305_v43 = vcombine.low %v47_v32, %v51_v33  ;;  %v3338_v9 = vcombine.high %v79_v60, %v83_v61  ;;  %v3375_v32 = vcombine.low %v118_v15, %v122_v16  ;;  %v134_v33 = vld [vmem:[%s5565_s1 + $0x350] sm:$0xff] }
  0x3b   :  { %873 = vmatprep.subr.bf16.mxu0 %v3396_v45  ;;  %v67_v45 = vld [vmem:[%s5565_s1 + $0x138] sm:$0xff]  ;;  %v3391_v47 = vcombine.low %v134_v33, %v138_v34 }
  0x3c   :  { %913 = vmatpush1.bf16.msra.mxu1 %v3389_v3  ;;  %v3322_v57 = vcombine.high %v63_v44, %v67_v45  ;;  %v3352_v3 = vcombine.high %v94_v55, %v98_v56 }
  0x3d   :  { %914 = vmatprep.subr.bf16.mxu1 %v3398_v4 }
  0x3e   :  { %874 = vmatpush1.bf16.msra.mxu0 %v3395_v51 }
  0x3f   :  { %875 = vmatprep.subr.bf16.mxu0 %v3404_v53  ;;  %v75_v53 = vld [vmem:[%s5565_s1 + $0x178] sm:$0xff] }
  0x40   :  { %915 = vmatpush1.bf16.msra.mxu1 %v3397_v10  ;;  %v3330_v1 = vcombine.high %v71_v52, %v75_v53  ;;  %v3329_v4 = vcombine.low %v71_v52, %v75_v53  ;;  %v3377_v52 = vcombine.low %v119_v38, %v123_v39  ;;  %v135_v53 = vld [vmem:[%s5565_s1 + $0x358] sm:$0xff] }
  0x41   :  { %916 = vmatprep.subr.bf16.mxu1 %v3406_v11  ;;  %v3337_v11 = vcombine.low %v79_v60, %v83_v61  ;;  %v147_v60 = vld [vmem:[%s5565_s1 + $0x3b8] sm:$0xff]  ;;  %v3776_v61 = vld [vmem:[%s5567_s3 + $0x4] ss:$16 sps:$4 sm:$0xff]  }
  0x42   :  { %876 = vmatpush1.bf16.msra.mxu0 %v3403_v59  ;;  %v3321_v59 = vcombine.low %v63_v44, %v67_v45  ;;  %v127_v45 = vld [vmem:[%s5565_s1 + $0x318] sm:$0xff] }
  0x43   :  { %927 = vmatprep.subr.bf16.mxu0 %v3288_v63  ;;  %v102_v63 = vld [vmem:[%s5565_s1 + $0x250] sm:$0xff] }
  0x44   :  { %917 = vmatpush1.bf16.msra.mxu1 %v3405_v18  ;;  %v3360_v10 = vcombine.high %v102_v63, %v106_v0  ;;  %v3359_v14 = vcombine.low %v102_v63, %v106_v0  ;;  %v3774_v0 = vld [vmem:[%s5567_s3] ss:$16 sps:$4 sm:$0xff]  }
  0x45   :  { %878 = vmatmul.mubr.bf16.vlgmr.msra.gmra.mrb[0].mxu0 %v4445_v2  ;;  %968 = vmatprep.subr.bf16.mxu1 %v3290_v21  ;;  %v103_v21 = vld [vmem:[%s5565_s1 + $0x258] sm:$0xff] }
  0x46   :  { %928 = vmatpush1.bf16.msra.mxu0 %v3287_v5  ;;  %959 = vmatprep.mubr.bf16.mxu0 %v4280_v24  ;;  %v87_v5 = vld [vmem:[%s5565_s1 + $0x1d8] sm:$0xff] }
  0x47   :  { %929 = vmatprep.subr.bf16.mxu0 %v3296_v8  ;;  %919 = vmatmul.mubr.bf16.vlgmr.msra.gmra.mrb[0].mxu1 %v4445_v2  ;;  %v110_v8 = vld [vmem:[%s5565_s1 + $0x290] sm:$0xff]  ;;  %v3346_v17 = vcombine.high %v87_v5, %v91_v6 }
  0x48   :  { %969 = vmatpush1.bf16.msra.mxu1 %v3289_v28  ;;  %1000 = vmatprep.mubr.bf16.mxu1 %v4280_v24  ;;  %v59_v24 = vld [vmem:[%s5565_s1 + $0xf8] sm:$0xff]  ;;  %v3368_v18 = vcombine.high %v110_v8, %v114_v19  ;;  %v3367_v23 = vcombine.low %v110_v8, %v114_v19  ;;  %v3376_v28 = vcombine.high %v118_v15, %v122_v16  ;;  %v3788_v19 = vld [vmem:[%s5567_s3 + $0x44] ss:$16 sps:$4 sm:$0xff]   ;;  %v3792_v16 = vld [vmem:[%s5567_s3 + $0x60] ss:$16 sps:$4 sm:$0xff]  }
  0x49   :  { %970 = vmatprep.subr.bf16.mxu1 %v3298_v30  ;;  %v3314_v49 = vcombine.high %v55_v41, %v59_v24  ;;  %v3313_v51 = vcombine.low %v55_v41, %v59_v24  ;;  %v111_v30 = vld [vmem:[%s5565_s1 + $0x298] sm:$0xff]  ;;  %v142_v41 = vld [vmem:[%s5565_s1 + $0x390] sm:$0xff] }
  0x4a   :  { %930 = vmatpush1.bf16.msra.mxu0 %v3295_v12  ;;  %v95_v12 = vld [vmem:[%s5565_s1 + $0x218] sm:$0xff]  ;;  %v146_v24 = vld [vmem:[%s5565_s1 + $0x3b0] sm:$0xff] }
  0x4b   :  { %931 = vmatprep.subr.bf16.mxu0 %v3304_v13  ;;  %v99_v13 = vld [vmem:[%s5565_s1 + $0x238] sm:$0xff]  ;;  %v3399_v55 = vcombine.low %v142_v41, %v146_v24 }
  0x4c   :  { %971 = vmatpush1.bf16.msra.mxu1 %v3297_v36  ;;  %v3354_v27 = vcombine.high %v95_v12, %v99_v13  ;;  %v3384_v36 = vcombine.high %v126_v25, %v130_v26  ;;  %v3785_v15 = vld [vmem:[%s5567_s3 + $0x2c] ss:$16 sps:$4 sm:$0xff]  }
  0x4d   :  { %972 = vmatprep.subr.bf16.mxu1 %v3306_v40  ;;  %v3383_v40 = vcombine.low %v126_v25, %v130_v26  ;;  %v3804_v25 = vld [vmem:[%s5567_s3 + $0xa0] ss:$16 sps:$4 sm:$0xff]   ;;  %v3812_v26 = vld [vmem:[%s5567_s3 + $0xc4] ss:$16 sps:$4 sm:$0xff]  }
  0x4e   :  { %932 = vmatpush1.bf16.msra.mxu0 %v3303_v20  ;;  %v3345_v20 = vcombine.low %v87_v5, %v91_v6  ;;  %v3782_v5 = vld [vmem:[%s5567_s3 + $0x24] ss:$16 sps:$4 sm:$0xff]  }
  0x4f   :  { %933 = vmatprep.subr.bf16.mxu0 %v3312_v22  ;;  %v107_v22 = vld [vmem:[%s5565_s1 + $0x278] sm:$0xff] }
  0x50   :  { %973 = vmatpush1.bf16.msra.mxu1 %v3305_v43  ;;  %v3362_v35 = vcombine.high %v103_v21, %v107_v22  ;;  %v3392_v43 = vcombine.high %v134_v33, %v138_v34  ;;  %v3816_v33 = vld [vmem:[%s5567_s3 + $0xe0] ss:$16 sps:$4 sm:$0xff]   ;;  %v3824_v34 = vld [vmem:[%s5567_s3 + $0x104] ss:$16 sps:$4 sm:$0xff]  }
  0x51   :  { %974 = vmatprep.subr.bf16.mxu1 %v3314_v49  ;;  %v154_v49 = vld [vmem:[%s5565_s1 + $0x3f0] sm:$0xff] }
  0x52   :  { %934 = vmatpush1.bf16.msra.mxu0 %v3311_v29  ;;  %v3353_v29 = vcombine.low %v95_v12, %v99_v13  ;;  %v3794_v13 = vld [vmem:[%s5567_s3 + $0x64] ss:$16 sps:$4 sm:$0xff]  }
  0x53   :  { %935 = vmatprep.subr.bf16.mxu0 %v3320_v31  ;;  %v115_v31 = vld [vmem:[%s5565_s1 + $0x2b8] sm:$0xff] }
  0x54   :  { %975 = vmatpush1.bf16.msra.mxu1 %v3313_v51  ;;  %v3369_v44 = vcombine.low %v111_v30, %v115_v31  ;;  %v3400_v51 = vcombine.high %v142_v41, %v146_v24  ;;  %v3828_v41 = vld [vmem:[%s5567_s3 + $0x120] ss:$16 sps:$4 sm:$0xff]   ;;  %v3836_v24 = vld [vmem:[%s5567_s3 + $0x144] ss:$16 sps:$4 sm:$0xff]  }
  0x55   :  { %976 = vmatprep.subr.bf16.mxu1 %v3322_v57  ;;  %v3408_v57 = vcombine.high %v150_v48, %v154_v49 }
  0x56   :  { %936 = vmatpush1.bf16.msra.mxu0 %v3319_v37  ;;  %v3361_v37 = vcombine.low %v103_v21, %v107_v22  ;;  %v3798_v21 = vld [vmem:[%s5567_s3 + $0x80] ss:$16 sps:$4 sm:$0xff]   ;;  %v3806_v22 = vld [vmem:[%s5567_s3 + $0xa4] ss:$16 sps:$4 sm:$0xff]  }
  0x57   :  { %937 = vmatprep.subr.bf16.mxu0 %v3328_v42  ;;  %v3370_v42 = vcombine.high %v111_v30, %v115_v31  ;;  %v3818_v30 = vld [vmem:[%s5567_s3 + $0xe4] ss:$16 sps:$4 sm:$0xff]   ;;  %v3801_v31 = vld [vmem:[%s5567_s3 + $0x88] ss:$16 sps:$4 sm:$0xff]  }
  0x58   :  { %977 = vmatpush1.bf16.msra.mxu1 %v3321_v59  ;;  %v143_v59 = vld [vmem:[%s5565_s1 + $0x398] sm:$0xff] }
  0x59   :  { %978 = vmatprep.subr.bf16.mxu1 %v3330_v1  ;;  %v3402_v6 = vcombine.high %v143_v59, %v147_v60  ;;  %v3401_v8 = vcombine.low %v143_v59, %v147_v60  ;;  %v3851_v59 = vld [vmem:[%s5567_s3 + $0x18c] ss:$16 sps:$4 sm:$0xff]   ;;  %v3858_v60 = vld [vmem:[%s5567_s3 + $0x1c0] ss:$16 sps:$4 sm:$0xff]  }
  0x5a   :  { %938 = vmatpush1.bf16.msra.mxu0 %v3327_v46  ;;  %v131_v46 = vld [vmem:[%s5565_s1 + $0x338] sm:$0xff] }
  0x5b   :  { %939 = vmatprep.subr.bf16.mxu0 %v3336_v50  ;;  %v3378_v50 = vcombine.high %v119_v38, %v123_v39  ;;  %v3386_v56 = vcombine.high %v127_v45, %v131_v46  ;;  %v3830_v38 = vld [vmem:[%s5567_s3 + $0x124] ss:$16 sps:$4 sm:$0xff]   ;;  %v3813_v39 = vld [vmem:[%s5567_s3 + $0xc8] ss:$16 sps:$4 sm:$0xff]  }
  0x5c   :  { %979 = vmatpush1.bf16.msra.mxu1 %v3329_v4  ;;  %v155_v4 = vld [vmem:[%s5565_s1 + $0x3f8] sm:$0xff] }
  0x5d   :  { %980 = vmatprep.subr.bf16.mxu1 %v3338_v9 }
  0x5e   :  { %940 = vmatpush1.bf16.msra.mxu0 %v3335_v54  ;;  %v139_v54 = vld [vmem:[%s5565_s1 + $0x378] sm:$0xff] }
  0x5f   :  { %941 = vmatprep.subr.bf16.mxu0 %v3344_v58  ;;  %v3385_v58 = vcombine.low %v127_v45, %v131_v46  ;;  %v3394_v63 = vcombine.high %v135_v53, %v139_v54  ;;  %v3393_v1 = vcombine.low %v135_v53, %v139_v54  ;;  %v3842_v45 = vld [vmem:[%s5567_s3 + $0x164] ss:$16 sps:$4 sm:$0xff]   ;;  %v3825_v46 = vld [vmem:[%s5567_s3 + $0x108] ss:$16 sps:$4 sm:$0xff]  }
  0x60   :  { %981 = vmatpush1.bf16.msra.mxu1 %v3337_v11  ;;  %v3786_v11 = vld [vmem:[%s5567_s3 + $0x40] ss:$16 sps:$4 sm:$0xff]   ;;  %v3854_v53 = vld [vmem:[%s5567_s3 + $0x1a4] ss:$16 sps:$4 sm:$0xff]   ;;  %v3837_v54 = vld [vmem:[%s5567_s3 + $0x148] ss:$16 sps:$4 sm:$0xff]  }
  0x61   :  { %982 = vmatprep.subr.bf16.mxu1 %v3346_v17  ;;  %v3800_v17 = vld [vmem:[%s5567_s3 + $0x84] ss:$16 sps:$4 sm:$0xff]  }
  0x62   :  { %942 = vmatpush1.bf16.msra.mxu0 %v3343_v62  ;;  %v3407_v62 = vcombine.low %v150_v48, %v154_v49  ;;  %v3840_v48 = vld [vmem:[%s5567_s3 + $0x160] ss:$16 sps:$4 sm:$0xff]   ;;  %v3848_v49 = vld [vmem:[%s5567_s3 + $0x184] ss:$16 sps:$4 sm:$0xff]  }
  0x63   :  { %943 = vmatprep.subr.bf16.mxu0 %v3352_v3  ;;  %v151_v3 = vld [vmem:[%s5565_s1 + $0x3d8] sm:$0xff] }
  0x64   :  { %983 = vmatpush1.bf16.msra.mxu1 %v3345_v20  ;;  %v3410_v9 = vcombine.high %v151_v3, %v155_v4  ;;  %v3409_v12 = vcombine.low %v151_v3, %v155_v4  ;;  %v3791_v20 = vld [vmem:[%s5567_s3 + $0x4c] ss:$16 sps:$4 sm:$0xff]   ;;  %v3855_v3 = vld [vmem:[%s5567_s3 + $0x1a8] ss:$16 sps:$4 sm:$0xff]  }
  0x65   :  { %984 = vmatprep.subr.bf16.mxu1 %v3354_v27  ;;  %v3795_v27 = vld [vmem:[%s5567_s3 + $0x68] ss:$16 sps:$4 sm:$0xff]   ;;  %v3863_v4 = vld [vmem:[%s5567_s3 + $0x1cc] ss:$16 sps:$4 sm:$0xff]  }
  0x66   :  { %944 = vmatpush1.bf16.msra.mxu0 %v3351_v7  ;;  %v3780_v7 = vld [vmem:[%s5567_s3 + $0x20] ss:$16 sps:$4 sm:$0xff]  }
  0x67   :  { %945 = vmatprep.subr.bf16.mxu0 %v3360_v10  ;;  %v3779_v10 = vld [vmem:[%s5567_s3 + $0xc] ss:$16 sps:$4 sm:$0xff]  }
  0x68   :  { %985 = vmatpush1.bf16.msra.mxu1 %v3353_v29  ;;  %v3810_v29 = vld [vmem:[%s5567_s3 + $0xc0] ss:$16 sps:$4 sm:$0xff]  }
  0x69   :  { %986 = vmatprep.subr.bf16.mxu1 %v3362_v35  ;;  %v3807_v35 = vld [vmem:[%s5567_s3 + $0xa8] ss:$16 sps:$4 sm:$0xff]  }
  0x6a   :  { %946 = vmatpush1.bf16.msra.mxu0 %v3359_v14  ;;  %v3777_v14 = vld [vmem:[%s5567_s3 + $0x8] ss:$16 sps:$4 sm:$0xff]  }
  0x6b   :  { %947 = vmatprep.subr.bf16.mxu0 %v3368_v18  ;;  %v3783_v18 = vld [vmem:[%s5567_s3 + $0x28] ss:$16 sps:$4 sm:$0xff]  }
  0x6c   :  { %987 = vmatpush1.bf16.msra.mxu1 %v3361_v37  ;;  %v3822_v37 = vld [vmem:[%s5567_s3 + $0x100] ss:$16 sps:$4 sm:$0xff]  }
  0x6d   :  { %988 = vmatprep.subr.bf16.mxu1 %v3370_v42  ;;  %v3819_v42 = vld [vmem:[%s5567_s3 + $0xe8] ss:$16 sps:$4 sm:$0xff]  }
  0x6e   :  { %948 = vmatpush1.bf16.msra.mxu0 %v3367_v23  ;;  %v3797_v23 = vld [vmem:[%s5567_s3 + $0x6c] ss:$16 sps:$4 sm:$0xff]  }
  0x6f   :  { %949 = vmatprep.subr.bf16.mxu0 %v3376_v28  ;;  %v3803_v28 = vld [vmem:[%s5567_s3 + $0x8c] ss:$16 sps:$4 sm:$0xff]  }
  0x70   :  { %989 = vmatpush1.bf16.msra.mxu1 %v3369_v44  ;;  %v3834_v44 = vld [vmem:[%s5567_s3 + $0x140] ss:$16 sps:$4 sm:$0xff]  }
  0x71   :  { %990 = vmatprep.subr.bf16.mxu1 %v3378_v50  ;;  %v3831_v50 = vld [vmem:[%s5567_s3 + $0x128] ss:$16 sps:$4 sm:$0xff]  }
  0x72   :  { %950 = vmatpush1.bf16.msra.mxu0 %v3375_v32  ;;  %v3809_v32 = vld [vmem:[%s5567_s3 + $0xac] ss:$16 sps:$4 sm:$0xff]  }
  0x73   :  { %951 = vmatprep.subr.bf16.mxu0 %v3384_v36  ;;  %v3815_v36 = vld [vmem:[%s5567_s3 + $0xcc] ss:$16 sps:$4 sm:$0xff]  }
  0x74   :  { %991 = vmatpush1.bf16.msra.mxu1 %v3377_v52  ;;  %v3846_v52 = vld [vmem:[%s5567_s3 + $0x180] ss:$16 sps:$4 sm:$0xff]  }
  0x75   :  { %992 = vmatprep.subr.bf16.mxu1 %v3386_v56  ;;  %v3852_v56 = vld [vmem:[%s5567_s3 + $0x1a0] ss:$16 sps:$4 sm:$0xff]  }
  0x76   :  { %952 = vmatpush1.bf16.msra.mxu0 %v3383_v40  ;;  %v3821_v40 = vld [vmem:[%s5567_s3 + $0xec] ss:$16 sps:$4 sm:$0xff]  }
  0x77   :  { %953 = vmatprep.subr.bf16.mxu0 %v3392_v43  ;;  %v3827_v43 = vld [vmem:[%s5567_s3 + $0x10c] ss:$16 sps:$4 sm:$0xff]  }
  0x78   :  { %993 = vmatpush1.bf16.msra.mxu1 %v3385_v58  ;;  %v3843_v58 = vld [vmem:[%s5567_s3 + $0x168] ss:$16 sps:$4 sm:$0xff]  }
  0x79   :  { %994 = vmatprep.subr.bf16.mxu1 %v3394_v63  ;;  %v3857_v63 = vld [vmem:[%s5567_s3 + $0x1ac] ss:$16 sps:$4 sm:$0xff]  }
  0x7a   :  { %954 = vmatpush1.bf16.msra.mxu0 %v3391_v47  ;;  %v3833_v47 = vld [vmem:[%s5567_s3 + $0x12c] ss:$16 sps:$4 sm:$0xff]  }
  0x7b   :  { %955 = vmatprep.subr.bf16.mxu0 %v3400_v51  ;;  %v3839_v51 = vld [vmem:[%s5567_s3 + $0x14c] ss:$16 sps:$4 sm:$0xff]  }
  0x7c   :  { %995 = vmatpush1.bf16.msra.mxu1 %v3393_v1  ;;  %v3872_v1 = vld [vmem:[%s5567_s3 + $0x204] ss:$16 sps:$4 sm:$0xff]  }
  0x7d   :  { %996 = vmatprep.subr.bf16.mxu1 %v3402_v6  ;;  %v3869_v6 = vld [vmem:[%s5567_s3 + $0x1ec] ss:$16 sps:$4 sm:$0xff]  }
  0x7e   :  { %956 = vmatpush1.bf16.msra.mxu0 %v3399_v55  ;;  %v3845_v55 = vld [vmem:[%s5567_s3 + $0x16c] ss:$16 sps:$4 sm:$0xff]  }
  0x7f   :  { %957 = vmatprep.subr.bf16.mxu0 %v3408_v57  ;;  %v3860_v57 = vld [vmem:[%s5567_s3 + $0x1c4] ss:$16 sps:$4 sm:$0xff]  }
  0x80   :  { %997 = vmatpush1.bf16.msra.mxu1 %v3401_v8  ;;  %v3875_v8 = vld [vmem:[%s5567_s3 + $0x20c] ss:$16 sps:$4 sm:$0xff]  }
  0x81   :  { %998 = vmatprep.subr.bf16.mxu1 %v3410_v9 }
  0x82   :  { %958 = vmatpush1.bf16.msra.mxu0 %v3407_v62  ;;  %v3849_v62 = vld [vmem:[%s5567_s3 + $0x188] ss:$16 sps:$4 sm:$0xff]  }
  0x83   :  { %2583 = vmatprep.subr.bf16.mxu0 %v3776_v61  ;;  %v3866_v61 = vld [vmem:[%s5567_s3 + $0x1e4] ss:$16 sps:$4 sm:$0xff]  }
  0x84   :  { %999 = vmatpush1.bf16.msra.mxu1 %v3409_v12 }
  0x85   :  { %960 = vmatmul.mubr.bf16.vlgmr.msra.gmra.mrb[4].mxu0 %v4445_v2  ;;  %2747 = vmatprep.subr.bf16.mxu1 %v3779_v10 }
  0x86   :  { %2584 = vmatpush1.bf16.msra.mxu0 %v3774_v0  ;;  %v3864_v0 = vld [vmem:[%s5567_s3 + $0x1e0] ss:$16 sps:$4 sm:$0xff]  }
  0x87   :  { %2585 = vmatprep.subr.bf16.mxu0 %v3782_v5  ;;  %1001 = vmatmul.mubr.bf16.vlgmr.msra.gmra.mrb[4].mxu1 %v4445_v2  ;;  %v3789_v2 = vld [vmem:[%s5567_s3 + $0x48] ss:$16 sps:$4 sm:$0xff]  }
  0x88   :  { %2748 = vmatpush1.bf16.msra.mxu1 %v3777_v14  ;;  %v3861_v5 = vld [vmem:[%s5567_s3 + $0x1c8] ss:$16 sps:$4 sm:$0xff]  }
  0x89   :  { %2749 = vmatprep.subr.bf16.mxu1 %v3785_v15 }
  0x8a   :  { %2586 = vmatpush1.bf16.msra.mxu0 %v3780_v7  ;;  %v3867_v7 = vld [vmem:[%s5567_s3 + $0x1e8] ss:$16 sps:$4 sm:$0xff]  }
  0x8b   :  { %2587 = vmatprep.subr.bf16.mxu0 %v3788_v19  ;;  %v158_v19 = vlaneseq }
  0x8c   :  { %2750 = vmatpush1.bf16.msra.mxu1 %v3783_v18 }
  0x8d   :  { %2751 = vmatprep.subr.bf16.mxu1 %v3791_v20  ;;  %v4838_v9 = vshrl.u32 %v158_v19, 7 }
  0x8e   :  { %2588 = vmatpush1.bf16.msra.mxu0 %v3786_v11  ;;  %v4844_v11 = vld [vmem:[%s5568_s2] sm:$0xff] }
  0x8f   :  { %2589 = vmatprep.subr.bf16.mxu0 %v3794_v13  ;;  %v160_v10 = vsub.s32 0, %v4838_v9  ;;  %v164_v12 = vsub.s32 1, %v4838_v9 }
  0x90   :  { %2752 = vmatpush1.bf16.msra.mxu1 %v3789_v2 }
  0x91   :  { %2753 = vmatprep.subr.bf16.mxu1 %v3797_v23  ;;  %v161_v13 = vrot.slane %v4844_v11, %v160_v10  ;;  %v165_v14 = vrot.slane %v4844_v11, %v164_v12  ;;  %v172_v23 = vsub.s32 3, %v4838_v9 }
  0x92   :  { %2590 = vmatpush1.bf16.msra.mxu0 %v3792_v16 }
  0x93   :  { %2591 = vmatprep.subr.bf16.mxu0 %v3800_v17 }
  0x94   :  { %2754 = vmatpush1.bf16.msra.mxu1 %v3795_v27  ;;  %v3873_v27 = vld [vmem:[%s5567_s3 + $0x208] ss:$16 sps:$4 sm:$0xff]  }
  0x95   :  { %2755 = vmatprep.subr.bf16.mxu1 %v3803_v28 }
  0x96   :  { %2592 = vmatpush1.bf16.msra.mxu0 %v3798_v21 }
  0x97   :  { %2593 = vmatprep.subr.bf16.mxu0 %v3806_v22 }
  0x98   :  { %2756 = vmatpush1.bf16.msra.mxu1 %v3801_v31  ;;  %v173_v31 = vrot.slane %v4844_v11, %v172_v23 }
  0x99   :  { %2757 = vmatprep.subr.bf16.mxu1 %v3809_v32  ;;  %v3876_v32 = vld [vmem:[%s5567_s3 + $0x220] ss:$16 sps:$4 sm:$0xff]  }
  0x9a   :  { %2594 = vmatpush1.bf16.msra.mxu0 %v3804_v25 }
  0x9b   :  { %2595 = vmatprep.subr.bf16.mxu0 %v3812_v26  ;;  %v3870_v26 = vld [vmem:[%s5567_s3 + $0x200] ss:$16 sps:$4 sm:$0xff]  }
  0x9c   :  { %2758 = vmatpush1.bf16.msra.mxu1 %v3807_v35  ;;  %v3887_v35 = vld [vmem:[%s5567_s3 + $0x24c] ss:$16 sps:$4 sm:$0xff]  }
  0x9d   :  { %2759 = vmatprep.subr.bf16.mxu1 %v3815_v36 }
  0x9e   :  { %2596 = vmatpush1.bf16.msra.mxu0 %v3810_v29  ;;  %v3878_v29 = vld [vmem:[%s5567_s3 + $0x224] ss:$16 sps:$4 sm:$0xff]  }
  0x9f   :  { %2597 = vmatprep.subr.bf16.mxu0 %v3818_v30  ;;  %v3881_v30 = vld [vmem:[%s5567_s3 + $0x22c] ss:$16 sps:$4 sm:$0xff]  }
  0xa0   :  { %2760 = vmatpush1.bf16.msra.mxu1 %v3813_v39 }
  0xa1   :  { %2761 = vmatprep.subr.bf16.mxu1 %v3821_v40  ;;  %v3882_v40 = vld [vmem:[%s5567_s3 + $0x240] ss:$16 sps:$4 sm:$0xff]  }
  0xa2   :  { %2598 = vmatpush1.bf16.msra.mxu0 %v3816_v33  ;;  %v3879_v33 = vld [vmem:[%s5567_s3 + $0x228] ss:$16 sps:$4 sm:$0xff]  }
  0xa3   :  { %2599 = vmatprep.subr.bf16.mxu0 %v3824_v34  ;;  %v3884_v34 = vld [vmem:[%s5567_s3 + $0x244] ss:$16 sps:$4 sm:$0xff]  }
  0xa4   :  { %2762 = vmatpush1.bf16.msra.mxu1 %v3819_v42  ;;  %v3890_v42 = vld [vmem:[%s5567_s3 + $0x264] ss:$16 sps:$4 sm:$0xff]  }
  0xa5   :  { %2763 = vmatprep.subr.bf16.mxu1 %v3827_v43  ;;  %v3893_v43 = vld [vmem:[%s5567_s3 + $0x26c] ss:$16 sps:$4 sm:$0xff]  }
  0xa6   :  { %2600 = vmatpush1.bf16.msra.mxu0 %v3822_v37 }
  0xa7   :  { %2601 = vmatprep.subr.bf16.mxu0 %v3830_v38 }
  0xa8   :  { %2764 = vmatpush1.bf16.msra.mxu1 %v3825_v46  ;;  %v3888_v46 = vld [vmem:[%s5567_s3 + $0x260] ss:$16 sps:$4 sm:$0xff]  }
  0xa9   :  { %2765 = vmatprep.subr.bf16.mxu1 %v3833_v47  ;;  %v3891_v47 = vld [vmem:[%s5567_s3 + $0x268] ss:$16 sps:$4 sm:$0xff]  }
  0xaa   :  { %2602 = vmatpush1.bf16.msra.mxu0 %v3828_v41  ;;  %v3885_v41 = vld [vmem:[%s5567_s3 + $0x248] ss:$16 sps:$4 sm:$0xff]  }
  0xab   :  { %2603 = vmatprep.subr.bf16.mxu0 %v3836_v24 }
  0xac   :  { %2766 = vmatpush1.bf16.msra.mxu1 %v3831_v50  ;;  %v3894_v50 = vld [vmem:[%s5567_s3 + $0x280] ss:$16 sps:$4 sm:$0xff]  }
  0xad   :  { %2767 = vmatprep.subr.bf16.mxu1 %v3839_v51  ;;  %v3897_v51 = vld [vmem:[%s5567_s3 + $0x288] ss:$16 sps:$4 sm:$0xff]  }
  0xae   :  { %2604 = vmatpush1.bf16.msra.mxu0 %v3834_v44 }
  0xaf   :  { %2605 = vmatprep.subr.bf16.mxu0 %v3842_v45 }
  0xb0   :  { %2768 = vmatpush1.bf16.msra.mxu1 %v3837_v54  ;;  %v3900_v54 = vld [vmem:[%s5567_s3 + $0x2a0] ss:$16 sps:$4 sm:$0xff]  }
  0xb1   :  { %2769 = vmatprep.subr.bf16.mxu1 %v3845_v55  ;;  %v3903_v55 = vld [vmem:[%s5567_s3 + $0x2a8] ss:$16 sps:$4 sm:$0xff]  }
  0xb2   :  { %2606 = vmatpush1.bf16.msra.mxu0 %v3840_v48  ;;  %v3896_v48 = vld [vmem:[%s5567_s3 + $0x284] ss:$16 sps:$4 sm:$0xff]  }
  0xb3   :  { %2607 = vmatprep.subr.bf16.mxu0 %v3848_v49  ;;  %v3899_v49 = vld [vmem:[%s5567_s3 + $0x28c] ss:$16 sps:$4 sm:$0xff]  }
  0xb4   :  { %2770 = vmatpush1.bf16.msra.mxu1 %v3843_v58  ;;  %v3906_v58 = vld [vmem:[%s5567_s3 + $0x2c0] ss:$16 sps:$4 sm:$0xff]  }
  0xb5   :  { %2771 = vmatprep.subr.bf16.mxu1 %v3851_v59  ;;  %v3909_v59 = vld [vmem:[%s5567_s3 + $0x2c8] ss:$16 sps:$4 sm:$0xff]  }
  0xb6   :  { %2608 = vmatpush1.bf16.msra.mxu0 %v3846_v52  ;;  %v3902_v52 = vld [vmem:[%s5567_s3 + $0x2a4] ss:$16 sps:$4 sm:$0xff]  }
  0xb7   :  { %2609 = vmatprep.subr.bf16.mxu0 %v3854_v53  ;;  %v3905_v53 = vld [vmem:[%s5567_s3 + $0x2ac] ss:$16 sps:$4 sm:$0xff]  }
  0xb8   :  { %2772 = vmatpush1.bf16.msra.mxu1 %v3849_v62  ;;  %v3912_v62 = vld [vmem:[%s5567_s3 + $0x2e0] ss:$16 sps:$4 sm:$0xff]  }
  0xb9   :  { %2773 = vmatprep.subr.bf16.mxu1 %v3857_v63  ;;  %v3915_v63 = vld [vmem:[%s5567_s3 + $0x2e8] ss:$16 sps:$4 sm:$0xff]  }
  0xba   :  { %2610 = vmatpush1.bf16.msra.mxu0 %v3852_v56  ;;  %v3908_v56 = vld [vmem:[%s5567_s3 + $0x2c4] ss:$16 sps:$4 sm:$0xff]  }
  0xbb   :  { %2611 = vmatprep.subr.bf16.mxu0 %v3860_v57  ;;  %v3911_v57 = vld [vmem:[%s5567_s3 + $0x2cc] ss:$16 sps:$4 sm:$0xff]  }
  0xbc   :  { %2774 = vmatpush1.bf16.msra.mxu1 %v3855_v3  ;;  %v3918_v3 = vld [vmem:[%s5567_s3 + $0x300] ss:$16 sps:$4 sm:$0xff]  }
  0xbd   :  { %2775 = vmatprep.subr.bf16.mxu1 %v3863_v4  ;;  %v3921_v4 = vld [vmem:[%s5567_s3 + $0x308] ss:$16 sps:$4 sm:$0xff]  }
  0xbe   :  { %2612 = vmatpush1.bf16.msra.mxu0 %v3858_v60  ;;  %v3914_v60 = vld [vmem:[%s5567_s3 + $0x2e4] ss:$16 sps:$4 sm:$0xff]  }
  0xbf   :  { %2613 = vmatprep.subr.bf16.mxu0 %v3866_v61  ;;  %v3917_v61 = vld [vmem:[%s5567_s3 + $0x2ec] ss:$16 sps:$4 sm:$0xff]  }
  0xc0   :  { %2776 = vmatpush1.bf16.msra.mxu1 %v3861_v5  ;;  %v3926_v5 = vld [vmem:[%s5567_s3 + $0x324] ss:$16 sps:$4 sm:$0xff]  }
  0xc1   :  { %2777 = vmatprep.subr.bf16.mxu1 %v3869_v6  ;;  %v3929_v6 = vld [vmem:[%s5567_s3 + $0x32c] ss:$16 sps:$4 sm:$0xff]  }
  0xc2   :  { %2614 = vmatpush1.bf16.msra.mxu0 %v3864_v0  ;;  %v3920_v0 = vld [vmem:[%s5567_s3 + $0x304] ss:$16 sps:$4 sm:$0xff]  }
  0xc3   :  { %2624 = vmatprep.subr.bf16.mxu0 %v3872_v1  ;;  %v3923_v1 = vld [vmem:[%s5567_s3 + $0x30c] ss:$16 sps:$4 sm:$0xff]  }
  0xc4   :  { %2778 = vmatpush1.bf16.msra.mxu1 %v3867_v7  ;;  %v3924_v7 = vld [vmem:[%s5567_s3 + $0x320] ss:$16 sps:$4 sm:$0xff]  }
  0xc5   :  { %2788 = vmatprep.subr.bf16.mxu1 %v3875_v8  ;;  %v3927_v8 = vld [vmem:[%s5567_s3 + $0x328] ss:$16 sps:$4 sm:$0xff]  }
 0x118   :  { %v879_v15 = vpop.f32.mrb[0].mxu0 }
 0x119   :  { %v880_v16 = vadd.f32 %v879_v15, %v161_v13  ;;  %v881_v17 = vpop.f32.mrb[1].mxu0  ;;  %v3932_v13 = vld [vmem:[%s5567_s3 + $0x344] ss:$16 sps:$4 sm:$0xff]   ;;  %v3930_v15 = vld [vmem:[%s5567_s3 + $0x340] ss:$16 sps:$4 sm:$0xff]  }
 0x11a   :  { %v882_v18 = vadd.f32 %v881_v17, %v165_v14  ;;  %v883_v20 = vpop.f32.mrb[2].mxu0  ;;  %v4881_v36 = vpop.f32.mrb[0].mxu1  ;;  %v3935_v14 = vld [vmem:[%s5567_s3 + $0x34c] ss:$16 sps:$4 sm:$0xff]   ;;  %v3938_v17 = vld [vmem:[%s5567_s3 + $0x364] ss:$16 sps:$4 sm:$0xff]  }
 0x11b   :  { %v1009_v21 = vmax.f32 %v880_v16, 0.0  ;;  %v884_v22 = vpop.f32.mrb[3].mxu0  ;;  %v922_v37 = vpop.f32.mrb[1].mxu1  ;;  %v3933_v16 = vld [vmem:[%s5567_s3 + $0x348] ss:$16 sps:$4 sm:$0xff]  }
 0x11c   :  { %v1010_v2 = vmax.f32 %v882_v18, 0.0  ;;  %v923_v38 = vadd.f32 %v922_v37, %v173_v31  ;;  %v924_v39 = vpop.f32.mrb[2].mxu1  ;;  %v3941_v18 = vld [vmem:[%s5567_s3 + $0x36c] ss:$16 sps:$4 sm:$0xff]   ;;  %v3936_v20 = vld [vmem:[%s5567_s3 + $0x360] ss:$16 sps:$4 sm:$0xff]  }
 0x11d   :  { %v1017_v28 = vpack.c.bf16 %v1009_v21, %v1009_v21  ;;  %v925_v24 = vpop.f32.mrb[3].mxu1  ;;  %v3939_v21 = vld [vmem:[%s5567_s3 + $0x368] ss:$16 sps:$4 sm:$0xff]   ;;  %v3944_v22 = vld [vmem:[%s5567_s3 + $0x384] ss:$16 sps:$4 sm:$0xff]  }
 0x11e   :  { %v1018_v25 = vpack.c.bf16 %v1010_v2, %v1010_v2  ;;  %v1012_v44 = vmax.f32 %v923_v38, 0.0  ;;  %v3947_v2 = vld [vmem:[%s5567_s3 + $0x38c] ss:$16 sps:$4 sm:$0xff]   ;;  %v3948_v31 = vld [vmem:[%s5567_s3 + $0x3a0] ss:$16 sps:$4 sm:$0xff]  }
 0x11f   :  { %v3954_v38 = vld [vmem:[%s5567_s3 + $0x3c0] ss:$16 sps:$4 sm:$0xff]   ;;  %v3957_v39 = vld [vmem:[%s5567_s3 + $0x3c8] ss:$16 sps:$4 sm:$0xff]  }
 0x120   :  { %2615 = vmatprep.mubr.bf16.mxu0 %v1018_v25  ;;  %2779 = vmatprep.mubr.bf16.mxu1 %v1018_v25  ;;  %v1020_v45 = vpack.c.bf16 %v1012_v44, %v1012_v44  ;;  %v168_v25 = vsub.s32 2, %v4838_v9  ;;  %v3960_v44 = vld [vmem:[%s5567_s3 + $0x3e0] ss:$16 sps:$4 sm:$0xff]  }
 0x121   :  { %2616 = vmatmul.mubr.bf16.vlgmr.msra.gmra.mrb[8].mxu0 %v1017_v28  ;;  %2780 = vmatmul.mubr.bf16.vlgmr.msra.gmra.mrb[8].mxu1 %v1017_v28  ;;  %v3950_v28 = vld [vmem:[%s5567_s3 + $0x3a4] ss:$16 sps:$4 sm:$0xff]  }
 0x122   :  { %2625 = vmatpush1.bf16.msra.mxu0 %v3870_v26  ;;  %2789 = vmatpush1.bf16.msra.mxu1 %v3873_v27  ;;  %v3942_v26 = vld [vmem:[%s5567_s3 + $0x380] ss:$16 sps:$4 sm:$0xff]   ;;  %v3945_v27 = vld [vmem:[%s5567_s3 + $0x388] ss:$16 sps:$4 sm:$0xff]  }
 0x123   :  { %2626 = vmatprep.subr.bf16.mxu0 %v3878_v29  ;;  %2790 = vmatprep.subr.bf16.mxu1 %v3881_v30  ;;  %v3953_v29 = vld [vmem:[%s5567_s3 + $0x3ac] ss:$16 sps:$4 sm:$0xff]   ;;  %v169_v30 = vrot.slane %v4844_v11, %v168_v25 }
 0x124   :  { %2656 = vmatprep.mubr.bf16.mxu0 %v1020_v45  ;;  %2820 = vmatprep.mubr.bf16.mxu1 %v1020_v45  ;;  %v3963_v45 = vld [vmem:[%s5567_s3 + $0x3e8] ss:$16 sps:$4 sm:$0xff]  }
 0x125   :  { %v921_v37 = vadd.f32 %v4881_v36, %v169_v30  ;;  %v3965_v36 = vld [vmem:[%s5567_s3 + $0x3ec] ss:$16 sps:$4 sm:$0xff]   ;;  %v4008_v30 = vld [vmem:[%s5567_s3 + $0x4e0] ss:$16 sps:$4 sm:$0xff]  }
 0x126   :  { %2627 = vmatpush1.bf16.msra.mxu0 %v3876_v32  ;;  %2791 = vmatpush1.bf16.msra.mxu1 %v3879_v33  ;;  %v3951_v32 = vld [vmem:[%s5567_s3 + $0x3a8] ss:$16 sps:$4 sm:$0xff]   ;;  %v180_v33 = vsub.s32 5, %v4838_v9 }
 0x127   :  { %2628 = vmatprep.subr.bf16.mxu0 %v3884_v34  ;;  %2792 = vmatprep.subr.bf16.mxu1 %v3887_v35  ;;  %v3956_v34 = vld [vmem:[%s5567_s3 + $0x3c4] ss:$16 sps:$4 sm:$0xff]   ;;  %v3959_v35 = vld [vmem:[%s5567_s3 + $0x3cc] ss:$16 sps:$4 sm:$0xff]  }
 0x12a   :  { %2629 = vmatpush1.bf16.msra.mxu0 %v3882_v40  ;;  %2793 = vmatpush1.bf16.msra.mxu1 %v3885_v41  ;;  %v181_v40 = vrot.slane %v4844_v11, %v180_v33  ;;  %v3962_v41 = vld [vmem:[%s5567_s3 + $0x3e4] ss:$16 sps:$4 sm:$0xff]   ;;  %v4019_v33 = vld [vmem:[%s5567_s3 + $0x50c] ss:$16 sps:$4 sm:$0xff]  }
 0x12b   :  { %2630 = vmatprep.subr.bf16.mxu0 %v3890_v42  ;;  %2794 = vmatprep.subr.bf16.mxu1 %v3893_v43  ;;  %v1011_v42 = vmax.f32 %v921_v37, 0.0  ;;  %v4022_v37 = vld [vmem:[%s5567_s3 + $0x524] ss:$16 sps:$4 sm:$0xff]  }
 0x12e   :  { %2631 = vmatpush1.bf16.msra.mxu0 %v3888_v46  ;;  %2795 = vmatpush1.bf16.msra.mxu1 %v3891_v47 }
 0x12f   :  { %2632 = vmatprep.subr.bf16.mxu0 %v3896_v48  ;;  %2796 = vmatprep.subr.bf16.mxu1 %v3899_v49  ;;  %v3968_v48 = vld [vmem:[%s5567_s3 + $0x404] ss:$16 sps:$4 sm:$0xff]   ;;  %v3971_v49 = vld [vmem:[%s5567_s3 + $0x40c] ss:$16 sps:$4 sm:$0xff]  }
 0x132   :  { %2633 = vmatpush1.bf16.msra.mxu0 %v3894_v50  ;;  %2797 = vmatpush1.bf16.msra.mxu1 %v3897_v51 }
 0x133   :  { %2634 = vmatprep.subr.bf16.mxu0 %v3902_v52  ;;  %2798 = vmatprep.subr.bf16.mxu1 %v3905_v53  ;;  %v1019_v52 = vpack.c.bf16 %v1011_v42, %v1011_v42  ;;  %v3966_v53 = vld [vmem:[%s5567_s3 + $0x400] ss:$16 sps:$4 sm:$0xff]  }
 0x134   :  { %v4026_v42 = vld [vmem:[%s5567_s3 + $0x540] ss:$16 sps:$4 sm:$0xff]  }
 0x136   :  { %2635 = vmatpush1.bf16.msra.mxu0 %v3900_v54  ;;  %2799 = vmatpush1.bf16.msra.mxu1 %v3903_v55  ;;  %v3969_v54 = vld [vmem:[%s5567_s3 + $0x408] ss:$16 sps:$4 sm:$0xff]   ;;  %v3974_v55 = vld [vmem:[%s5567_s3 + $0x424] ss:$16 sps:$4 sm:$0xff]  }
 0x137   :  { %2636 = vmatprep.subr.bf16.mxu0 %v3908_v56  ;;  %2800 = vmatprep.subr.bf16.mxu1 %v3911_v57  ;;  %v3977_v56 = vld [vmem:[%s5567_s3 + $0x42c] ss:$16 sps:$4 sm:$0xff]  }
 0x13a   :  { %2637 = vmatpush1.bf16.msra.mxu0 %v3906_v58  ;;  %2801 = vmatpush1.bf16.msra.mxu1 %v3909_v59  ;;  %v3972_v58 = vld [vmem:[%s5567_s3 + $0x420] ss:$16 sps:$4 sm:$0xff]   ;;  %v3975_v59 = vld [vmem:[%s5567_s3 + $0x428] ss:$16 sps:$4 sm:$0xff]  }
 0x13b   :  { %2638 = vmatprep.subr.bf16.mxu0 %v3914_v60  ;;  %2802 = vmatprep.subr.bf16.mxu1 %v3917_v61  ;;  %v3980_v60 = vld [vmem:[%s5567_s3 + $0x444] ss:$16 sps:$4 sm:$0xff]   ;;  %v3983_v61 = vld [vmem:[%s5567_s3 + $0x44c] ss:$16 sps:$4 sm:$0xff]  }
 0x13e   :  { %2639 = vmatpush1.bf16.msra.mxu0 %v3912_v62  ;;  %2803 = vmatpush1.bf16.msra.mxu1 %v3915_v63  ;;  %v3978_v63 = vld [vmem:[%s5567_s3 + $0x440] ss:$16 sps:$4 sm:$0xff]  }
 0x13f   :  { %2640 = vmatprep.subr.bf16.mxu0 %v3920_v0  ;;  %2804 = vmatprep.subr.bf16.mxu1 %v3923_v1  ;;  %v3981_v0 = vld [vmem:[%s5567_s3 + $0x448] ss:$16 sps:$4 sm:$0xff]  }
 0x142   :  { %2641 = vmatpush1.bf16.msra.mxu0 %v3918_v3  ;;  %2805 = vmatpush1.bf16.msra.mxu1 %v3921_v4  ;;  %v3986_v3 = vld [vmem:[%s5567_s3 + $0x464] ss:$16 sps:$4 sm:$0xff]  }
 0x143   :  { %2642 = vmatprep.subr.bf16.mxu0 %v3926_v5  ;;  %2806 = vmatprep.subr.bf16.mxu1 %v3929_v6  ;;  %v3989_v6 = vld [vmem:[%s5567_s3 + $0x46c] ss:$16 sps:$4 sm:$0xff]  }
 0x146   :  { %2643 = vmatpush1.bf16.msra.mxu0 %v3924_v7  ;;  %2807 = vmatpush1.bf16.msra.mxu1 %v3927_v8  ;;  %v3984_v7 = vld [vmem:[%s5567_s3 + $0x460] ss:$16 sps:$4 sm:$0xff]   ;;  %v3987_v8 = vld [vmem:[%s5567_s3 + $0x468] ss:$16 sps:$4 sm:$0xff]  }
 0x147   :  { %2644 = vmatprep.subr.bf16.mxu0 %v3932_v13  ;;  %2808 = vmatprep.subr.bf16.mxu1 %v3935_v14  ;;  %v3992_v13 = vld [vmem:[%s5567_s3 + $0x484] ss:$16 sps:$4 sm:$0xff]   ;;  %v3995_v14 = vld [vmem:[%s5567_s3 + $0x48c] ss:$16 sps:$4 sm:$0xff]  }
 0x14a   :  { %2645 = vmatpush1.bf16.msra.mxu0 %v3930_v15  ;;  %2809 = vmatpush1.bf16.msra.mxu1 %v3933_v16  ;;  %v3990_v15 = vld [vmem:[%s5567_s3 + $0x480] ss:$16 sps:$4 sm:$0xff]   ;;  %v3993_v16 = vld [vmem:[%s5567_s3 + $0x488] ss:$16 sps:$4 sm:$0xff]  }
 0x14b   :  { %2646 = vmatprep.subr.bf16.mxu0 %v3938_v17  ;;  %2810 = vmatprep.subr.bf16.mxu1 %v3941_v18  ;;  %v3998_v17 = vld [vmem:[%s5567_s3 + $0x4a4] ss:$16 sps:$4 sm:$0xff]   ;;  %v4001_v18 = vld [vmem:[%s5567_s3 + $0x4ac] ss:$16 sps:$4 sm:$0xff]  }
 0x14e   :  { %2647 = vmatpush1.bf16.msra.mxu0 %v3936_v20  ;;  %2811 = vmatpush1.bf16.msra.mxu1 %v3939_v21  ;;  %v3996_v20 = vld [vmem:[%s5567_s3 + $0x4a0] ss:$16 sps:$4 sm:$0xff]   ;;  %v3999_v21 = vld [vmem:[%s5567_s3 + $0x4a8] ss:$16 sps:$4 sm:$0xff]  }
 0x14f   :  { %2648 = vmatprep.subr.bf16.mxu0 %v3944_v22  ;;  %2812 = vmatprep.subr.bf16.mxu1 %v3947_v2  ;;  %v4004_v22 = vld [vmem:[%s5567_s3 + $0x4c4] ss:$16 sps:$4 sm:$0xff]   ;;  %v4007_v2 = vld [vmem:[%s5567_s3 + $0x4cc] ss:$16 sps:$4 sm:$0xff]  }
 0x152   :  { %2649 = vmatpush1.bf16.msra.mxu0 %v3942_v26  ;;  %2813 = vmatpush1.bf16.msra.mxu1 %v3945_v27  ;;  %v4002_v26 = vld [vmem:[%s5567_s3 + $0x4c0] ss:$16 sps:$4 sm:$0xff]   ;;  %v4005_v27 = vld [vmem:[%s5567_s3 + $0x4c8] ss:$16 sps:$4 sm:$0xff]  }
 0x153   :  { %2650 = vmatprep.subr.bf16.mxu0 %v3950_v28  ;;  %2814 = vmatprep.subr.bf16.mxu1 %v3953_v29  ;;  %v4010_v28 = vld [vmem:[%s5567_s3 + $0x4e4] ss:$16 sps:$4 sm:$0xff]   ;;  %v4013_v29 = vld [vmem:[%s5567_s3 + $0x4ec] ss:$16 sps:$4 sm:$0xff]  }
 0x156   :  { %2651 = vmatpush1.bf16.msra.mxu0 %v3948_v31  ;;  %2815 = vmatpush1.bf16.msra.mxu1 %v3951_v32  ;;  %v4011_v31 = vld [vmem:[%s5567_s3 + $0x4e8] ss:$16 sps:$4 sm:$0xff]   ;;  %v4016_v32 = vld [vmem:[%s5567_s3 + $0x504] ss:$16 sps:$4 sm:$0xff]  }
 0x157   :  { %2652 = vmatprep.subr.bf16.mxu0 %v3956_v34  ;;  %2816 = vmatprep.subr.bf16.mxu1 %v3959_v35  ;;  %v4014_v34 = vld [vmem:[%s5567_s3 + $0x500] ss:$16 sps:$4 sm:$0xff]   ;;  %v4017_v35 = vld [vmem:[%s5567_s3 + $0x508] ss:$16 sps:$4 sm:$0xff]  }
 0x158   :  { %v5046_v24 = vpop.f32.mrb[4].mxu0 }
 0x159   :  { %v963_v43 = vpop.f32.mrb[5].mxu0 }
 0x15a   :  { %2653 = vmatpush1.bf16.msra.mxu0 %v3954_v38  ;;  %2817 = vmatpush1.bf16.msra.mxu1 %v3957_v39  ;;  %v964_v46 = vadd.f32 %v963_v43, %v181_v40  ;;  %v965_v47 = vpop.f32.mrb[6].mxu0  ;;  %v5084_v62 = vpop.f32.mrb[4].mxu1  ;;  %v4025_v38 = vld [vmem:[%s5567_s3 + $0x52c] ss:$16 sps:$4 sm:$0xff]   ;;  %v4020_v39 = vld [vmem:[%s5567_s3 + $0x520] ss:$16 sps:$4 sm:$0xff]  }
 0x15b   :  { %2654 = vmatprep.subr.bf16.mxu0 %v3962_v41  ;;  %2818 = vmatprep.subr.bf16.mxu1 %v3965_v36  ;;  %v966_v50 = vpop.f32.mrb[7].mxu0  ;;  %v5092_v1 = vpop.f32.mrb[5].mxu1  ;;  %v4023_v40 = vld [vmem:[%s5567_s3 + $0x528] ss:$16 sps:$4 sm:$0xff]   ;;  %v4028_v41 = vld [vmem:[%s5567_s3 + $0x544] ss:$16 sps:$4 sm:$0xff]  }
 0x15c   :  { %v1014_v51 = vmax.f32 %v964_v46, 0.0  ;;  %v1006_v4 = vpop.f32.mrb[6].mxu1  ;;  %v4031_v36 = vld [vmem:[%s5567_s3 + $0x54c] ss:$16 sps:$4 sm:$0xff]   ;;  %v4029_v43 = vld [vmem:[%s5567_s3 + $0x548] ss:$16 sps:$4 sm:$0xff]  }
 0x15d   :  { %v1007_v5 = vpop.f32.mrb[7].mxu1  ;;  %v4032_v46 = vld [vmem:[%s5567_s3 + $0x560] ss:$16 sps:$4 sm:$0xff]   ;;  %v4035_v47 = vld [vmem:[%s5567_s3 + $0x568] ss:$16 sps:$4 sm:$0xff]   ;;  %v176_v50 = vsub.s32 4, %v4838_v9 }
 0x15e   :  { %2655 = vmatpush1.bf16.msra.mxu0 %v3960_v44  ;;  %2819 = vmatpush1.bf16.msra.mxu1 %v3963_v45  ;;  %v1022_v57 = vpack.c.bf16 %v1014_v51, %v1014_v51  ;;  %v4034_v44 = vld [vmem:[%s5567_s3 + $0x564] ss:$16 sps:$4 sm:$0xff]   ;;  %v4037_v45 = vld [vmem:[%s5567_s3 + $0x56c] ss:$16 sps:$4 sm:$0xff]   ;;  %v4038_v51 = vld [vmem:[%s5567_s3 + $0x580] ss:$16 sps:$4 sm:$0xff]  }
 0x15f   :  { %2665 = vmatprep.subr.bf16.mxu0 %v3968_v48  ;;  %2829 = vmatprep.subr.bf16.mxu1 %v3971_v49  ;;  %v4040_v48 = vld [vmem:[%s5567_s3 + $0x584] ss:$16 sps:$4 sm:$0xff]   ;;  %v4043_v49 = vld [vmem:[%s5567_s3 + $0x58c] ss:$16 sps:$4 sm:$0xff]  }
 0x160   :  { %v4058_v4 = vld [vmem:[%s5567_s3 + $0x5e4] ss:$16 sps:$4 sm:$0xff]  }
 0x161   :  { %2657 = vmatmul.mubr.bf16.vlgmr.msra.gmra.mrb[8].mxu0 %v1019_v52  ;;  %2821 = vmatmul.mubr.bf16.vlgmr.msra.gmra.mrb[8].mxu1 %v1019_v52  ;;  %v4041_v52 = vld [vmem:[%s5567_s3 + $0x588] ss:$16 sps:$4 sm:$0xff]  }
 0x162   :  { %2666 = vmatpush1.bf16.msra.mxu0 %v3966_v53  ;;  %2830 = vmatpush1.bf16.msra.mxu1 %v3969_v54  ;;  %v4046_v53 = vld [vmem:[%s5567_s3 + $0x5a4] ss:$16 sps:$4 sm:$0xff]   ;;  %v4049_v54 = vld [vmem:[%s5567_s3 + $0x5ac] ss:$16 sps:$4 sm:$0xff]  }
 0x163   :  { %2667 = vmatprep.subr.bf16.mxu0 %v3974_v55  ;;  %2831 = vmatprep.subr.bf16.mxu1 %v3977_v56  ;;  %v188_v55 = vsub.s32 7, %v4838_v9  ;;  %v177_v56 = vrot.slane %v4844_v11, %v176_v50  ;;  %v4112_v50 = vld [vmem:[%s5567_s3 + $0x704] ss:$16 sps:$4 sm:$0xff]  }
 0x164   :  { %2697 = vmatprep.mubr.bf16.mxu0 %v1022_v57  ;;  %2861 = vmatprep.mubr.bf16.mxu1 %v1022_v57  ;;  %v4044_v57 = vld [vmem:[%s5567_s3 + $0x5a0] ss:$16 sps:$4 sm:$0xff]  }
 0x166   :  { %2668 = vmatpush1.bf16.msra.mxu0 %v3972_v58  ;;  %2832 = vmatpush1.bf16.msra.mxu1 %v3975_v59  ;;  %v4047_v58 = vld [vmem:[%s5567_s3 + $0x5a8] ss:$16 sps:$4 sm:$0xff]   ;;  %v4052_v59 = vld [vmem:[%s5567_s3 + $0x5c4] ss:$16 sps:$4 sm:$0xff]  }
 0x167   :  { %2669 = vmatprep.subr.bf16.mxu0 %v3980_v60  ;;  %2833 = vmatprep.subr.bf16.mxu1 %v3983_v61  ;;  %v4055_v60 = vld [vmem:[%s5567_s3 + $0x5cc] ss:$16 sps:$4 sm:$0xff]   ;;  %v189_v61 = vrot.slane %v4844_v11, %v188_v55 }
 0x168   :  { %v4121_v55 = vld [vmem:[%s5567_s3 + $0x72c] ss:$16 sps:$4 sm:$0xff]  }
 0x169   :  { %v1005_v5 = vadd.f32 %v5092_v1, %v189_v61  ;;  %v4067_v1 = vld [vmem:[%s5567_s3 + $0x60c] ss:$16 sps:$4 sm:$0xff]   ;;  %v4125_v61 = vld [vmem:[%s5567_s3 + $0x748] ss:$16 sps:$4 sm:$0xff]  }
 0x16a   :  { %2670 = vmatpush1.bf16.msra.mxu0 %v3978_v63  ;;  %2834 = vmatpush1.bf16.msra.mxu1 %v3981_v0  ;;  %v962_v63 = vadd.f32 %v5046_v24, %v177_v56  ;;  %v4050_v0 = vld [vmem:[%s5567_s3 + $0x5c0] ss:$16 sps:$4 sm:$0xff]   ;;  %v4061_v24 = vld [vmem:[%s5567_s3 + $0x5ec] ss:$16 sps:$4 sm:$0xff]  }
 0x16b   :  { %2671 = vmatprep.subr.bf16.mxu0 %v3986_v3  ;;  %2835 = vmatprep.subr.bf16.mxu1 %v3989_v6  ;;  %v4053_v3 = vld [vmem:[%s5567_s3 + $0x5c8] ss:$16 sps:$4 sm:$0xff]   ;;  %v4116_v56 = vld [vmem:[%s5567_s3 + $0x720] ss:$16 sps:$4 sm:$0xff]  }
 0x16c   :  { %v1013_v6 = vmax.f32 %v962_v63, 0.0  ;;  %v4130_v63 = vld [vmem:[%s5567_s3 + $0x764] ss:$16 sps:$4 sm:$0xff]  }
 0x16e   :  { %2672 = vmatpush1.bf16.msra.mxu0 %v3984_v7  ;;  %2836 = vmatpush1.bf16.msra.mxu1 %v3987_v8  ;;  %v4056_v7 = vld [vmem:[%s5567_s3 + $0x5e0] ss:$16 sps:$4 sm:$0xff]   ;;  %v4059_v8 = vld [vmem:[%s5567_s3 + $0x5e8] ss:$16 sps:$4 sm:$0xff]  }
 0x16f   :  { %2673 = vmatprep.subr.bf16.mxu0 %v3992_v13  ;;  %2837 = vmatprep.subr.bf16.mxu1 %v3995_v14  ;;  %v4064_v13 = vld [vmem:[%s5567_s3 + $0x604] ss:$16 sps:$4 sm:$0xff]   ;;  %v1016_v14 = vmax.f32 %v1005_v5, 0.0  ;;  %v4139_v5 = vld [vmem:[%s5567_s3 + $0x78c] ss:$16 sps:$4 sm:$0xff]  }
 0x172   :  { %2674 = vmatpush1.bf16.msra.mxu0 %v3990_v15  ;;  %2838 = vmatpush1.bf16.msra.mxu1 %v3993_v16  ;;  %v1021_v15 = vpack.c.bf16 %v1013_v6, %v1013_v6  ;;  %v4062_v16 = vld [vmem:[%s5567_s3 + $0x600] ss:$16 sps:$4 sm:$0xff]  }
 0x173   :  { %2675 = vmatprep.subr.bf16.mxu0 %v3998_v17  ;;  %2839 = vmatprep.subr.bf16.mxu1 %v4001_v18  ;;  %v4065_v17 = vld [vmem:[%s5567_s3 + $0x608] ss:$16 sps:$4 sm:$0xff]   ;;  %v4070_v18 = vld [vmem:[%s5567_s3 + $0x624] ss:$16 sps:$4 sm:$0xff]   ;;  %v4134_v6 = vld [vmem:[%s5567_s3 + $0x780] ss:$16 sps:$4 sm:$0xff]  }
 0x176   :  { %2676 = vmatpush1.bf16.msra.mxu0 %v3996_v20  ;;  %2840 = vmatpush1.bf16.msra.mxu1 %v3999_v21  ;;  %v4073_v20 = vld [vmem:[%s5567_s3 + $0x62c] ss:$16 sps:$4 sm:$0xff]   ;;  %v1024_v21 = vpack.c.bf16 %v1016_v14, %v1016_v14  ;;  %v4140_v14 = vld [vmem:[%s5567_s3 + $0x7a0] ss:$16 sps:$4 sm:$0xff]  }
 0x177   :  { %2677 = vmatprep.subr.bf16.mxu0 %v4004_v22  ;;  %2841 = vmatprep.subr.bf16.mxu1 %v4007_v2  ;;  %v4068_v22 = vld [vmem:[%s5567_s3 + $0x620] ss:$16 sps:$4 sm:$0xff]   ;;  %v4071_v2 = vld [vmem:[%s5567_s3 + $0x628] ss:$16 sps:$4 sm:$0xff]  }
 0x17a   :  { %2678 = vmatpush1.bf16.msra.mxu0 %v4002_v26  ;;  %2842 = vmatpush1.bf16.msra.mxu1 %v4005_v27  ;;  %v4076_v26 = vld [vmem:[%s5567_s3 + $0x644] ss:$16 sps:$4 sm:$0xff]   ;;  %v4079_v27 = vld [vmem:[%s5567_s3 + $0x64c] ss:$16 sps:$4 sm:$0xff]  }
 0x17b   :  { %2679 = vmatprep.subr.bf16.mxu0 %v4010_v28  ;;  %2843 = vmatprep.subr.bf16.mxu1 %v4013_v29  ;;  %v4074_v28 = vld [vmem:[%s5567_s3 + $0x640] ss:$16 sps:$4 sm:$0xff]   ;;  %v4077_v29 = vld [vmem:[%s5567_s3 + $0x648] ss:$16 sps:$4 sm:$0xff]  }
 0x17e   :  { %2680 = vmatpush1.bf16.msra.mxu0 %v4008_v30  ;;  %2844 = vmatpush1.bf16.msra.mxu1 %v4011_v31  ;;  %v4082_v30 = vld [vmem:[%s5567_s3 + $0x664] ss:$16 sps:$4 sm:$0xff]   ;;  %v4085_v31 = vld [vmem:[%s5567_s3 + $0x66c] ss:$16 sps:$4 sm:$0xff]  }
 0x17f   :  { %2681 = vmatprep.subr.bf16.mxu0 %v4016_v32  ;;  %2845 = vmatprep.subr.bf16.mxu1 %v4019_v33  ;;  %v4080_v32 = vld [vmem:[%s5567_s3 + $0x660] ss:$16 sps:$4 sm:$0xff]   ;;  %v4083_v33 = vld [vmem:[%s5567_s3 + $0x668] ss:$16 sps:$4 sm:$0xff]  }
 0x182   :  { %2682 = vmatpush1.bf16.msra.mxu0 %v4014_v34  ;;  %2846 = vmatpush1.bf16.msra.mxu1 %v4017_v35  ;;  %v4088_v34 = vld [vmem:[%s5567_s3 + $0x684] ss:$16 sps:$4 sm:$0xff]   ;;  %v4091_v35 = vld [vmem:[%s5567_s3 + $0x68c] ss:$16 sps:$4 sm:$0xff]  }
 0x183   :  { %2683 = vmatprep.subr.bf16.mxu0 %v4022_v37  ;;  %2847 = vmatprep.subr.bf16.mxu1 %v4025_v38  ;;  %v4086_v37 = vld [vmem:[%s5567_s3 + $0x680] ss:$16 sps:$4 sm:$0xff]   ;;  %v4089_v38 = vld [vmem:[%s5567_s3 + $0x688] ss:$16 sps:$4 sm:$0xff]  }
 0x186   :  { %2684 = vmatpush1.bf16.msra.mxu0 %v4020_v39  ;;  %2848 = vmatpush1.bf16.msra.mxu1 %v4023_v40  ;;  %v4094_v39 = vld [vmem:[%s5567_s3 + $0x6a4] ss:$16 sps:$4 sm:$0xff]   ;;  %v4097_v40 = vld [vmem:[%s5567_s3 + $0x6ac] ss:$16 sps:$4 sm:$0xff]  }
 0x187   :  { %2685 = vmatprep.subr.bf16.mxu0 %v4028_v41  ;;  %2849 = vmatprep.subr.bf16.mxu1 %v4031_v36  ;;  %v4092_v41 = vld [vmem:[%s5567_s3 + $0x6a0] ss:$16 sps:$4 sm:$0xff]   ;;  %v4095_v36 = vld [vmem:[%s5567_s3 + $0x6a8] ss:$16 sps:$4 sm:$0xff]  }
 0x18a   :  { %2686 = vmatpush1.bf16.msra.mxu0 %v4026_v42  ;;  %2850 = vmatpush1.bf16.msra.mxu1 %v4029_v43  ;;  %v4100_v42 = vld [vmem:[%s5567_s3 + $0x6c4] ss:$16 sps:$4 sm:$0xff]   ;;  %v4103_v43 = vld [vmem:[%s5567_s3 + $0x6cc] ss:$16 sps:$4 sm:$0xff]  }
 0x18b   :  { %2687 = vmatprep.subr.bf16.mxu0 %v4034_v44  ;;  %2851 = vmatprep.subr.bf16.mxu1 %v4037_v45  ;;  %v4098_v44 = vld [vmem:[%s5567_s3 + $0x6c0] ss:$16 sps:$4 sm:$0xff]   ;;  %v4101_v45 = vld [vmem:[%s5567_s3 + $0x6c8] ss:$16 sps:$4 sm:$0xff]  }
 0x18e   :  { %2688 = vmatpush1.bf16.msra.mxu0 %v4032_v46  ;;  %2852 = vmatpush1.bf16.msra.mxu1 %v4035_v47  ;;  %v4106_v46 = vld [vmem:[%s5567_s3 + $0x6e4] ss:$16 sps:$4 sm:$0xff]   ;;  %v4109_v47 = vld [vmem:[%s5567_s3 + $0x6ec] ss:$16 sps:$4 sm:$0xff]  }
 0x18f   :  { %2689 = vmatprep.subr.bf16.mxu0 %v4040_v48  ;;  %2853 = vmatprep.subr.bf16.mxu1 %v4043_v49  ;;  %v4104_v48 = vld [vmem:[%s5567_s3 + $0x6e0] ss:$16 sps:$4 sm:$0xff]   ;;  %v4107_v49 = vld [vmem:[%s5567_s3 + $0x6e8] ss:$16 sps:$4 sm:$0xff]  }
 0x192   :  { %2690 = vmatpush1.bf16.msra.mxu0 %v4038_v51  ;;  %2854 = vmatpush1.bf16.msra.mxu1 %v4041_v52  ;;  %v4115_v51 = vld [vmem:[%s5567_s3 + $0x70c] ss:$16 sps:$4 sm:$0xff]   ;;  %v4110_v52 = vld [vmem:[%s5567_s3 + $0x700] ss:$16 sps:$4 sm:$0xff]  }
 0x193   :  { %2691 = vmatprep.subr.bf16.mxu0 %v4046_v53  ;;  %2855 = vmatprep.subr.bf16.mxu1 %v4049_v54  ;;  %v4113_v53 = vld [vmem:[%s5567_s3 + $0x708] ss:$16 sps:$4 sm:$0xff]   ;;  %v4118_v54 = vld [vmem:[%s5567_s3 + $0x724] ss:$16 sps:$4 sm:$0xff]  }
 0x196   :  { %2692 = vmatpush1.bf16.msra.mxu0 %v4044_v57  ;;  %2856 = vmatpush1.bf16.msra.mxu1 %v4047_v58  ;;  %v4119_v57 = vld [vmem:[%s5567_s3 + $0x728] ss:$16 sps:$4 sm:$0xff]   ;;  %v4124_v58 = vld [vmem:[%s5567_s3 + $0x744] ss:$16 sps:$4 sm:$0xff]  }
 0x197   :  { %2693 = vmatprep.subr.bf16.mxu0 %v4052_v59  ;;  %2857 = vmatprep.subr.bf16.mxu1 %v4055_v60  ;;  %v4127_v59 = vld [vmem:[%s5567_s3 + $0x74c] ss:$16 sps:$4 sm:$0xff]   ;;  %v4122_v60 = vld [vmem:[%s5567_s3 + $0x740] ss:$16 sps:$4 sm:$0xff]  }
 0x19a   :  { %2694 = vmatpush1.bf16.msra.mxu0 %v4050_v0  ;;  %2858 = vmatpush1.bf16.msra.mxu1 %v4053_v3  ;;  %v4133_v0 = vld [vmem:[%s5567_s3 + $0x76c] ss:$16 sps:$4 sm:$0xff]   ;;  %v4128_v3 = vld [vmem:[%s5567_s3 + $0x760] ss:$16 sps:$4 sm:$0xff]  }
 0x19b   :  { %2695 = vmatprep.subr.bf16.mxu0 %v4058_v4  ;;  %2859 = vmatprep.subr.bf16.mxu1 %v4061_v24  ;;  %v4131_v4 = vld [vmem:[%s5567_s3 + $0x768] ss:$16 sps:$4 sm:$0xff]   ;;  %v4136_v24 = vld [vmem:[%s5567_s3 + $0x784] ss:$16 sps:$4 sm:$0xff]  }
 0x19e   :  { %2696 = vmatpush1.bf16.msra.mxu0 %v4056_v7  ;;  %2860 = vmatpush1.bf16.msra.mxu1 %v4059_v8  ;;  %v4137_v7 = vld [vmem:[%s5567_s3 + $0x788] ss:$16 sps:$4 sm:$0xff]   ;;  %v184_v8 = vsub.s32 6, %v4838_v9 }
 0x19f   :  { %2706 = vmatprep.subr.bf16.mxu0 %v4064_v13  ;;  %2870 = vmatprep.subr.bf16.mxu1 %v4067_v1  ;;  %v4142_v13 = vld [vmem:[%s5567_s3 + $0x7a4] ss:$16 sps:$4 sm:$0xff]   ;;  %v4145_v1 = vld [vmem:[%s5567_s3 + $0x7ac] ss:$16 sps:$4 sm:$0xff]  }
 0x1a1   :  { %2698 = vmatmul.mubr.bf16.vlgmr.msra.gmra.mrb[8].mxu0 %v1021_v15  ;;  %2862 = vmatmul.mubr.bf16.vlgmr.msra.gmra.mrb[8].mxu1 %v1021_v15  ;;  %v4143_v15 = vld [vmem:[%s5567_s3 + $0x7a8] ss:$16 sps:$4 sm:$0xff]  }
 0x1a2   :  { %2707 = vmatpush1.bf16.msra.mxu0 %v4062_v16  ;;  %2871 = vmatpush1.bf16.msra.mxu1 %v4065_v17  ;;  %v185_v16 = vrot.slane %v4844_v11, %v184_v8  ;;  %v4148_v17 = vld [vmem:[%s5567_s3 + $0x7c4] ss:$16 sps:$4 sm:$0xff]   ;;  %v4149_v11 = vld [vmem:[%s5567_s3 + $0x7c8] ss:$16 sps:$4 sm:$0xff]  }
 0x1a3   :  { %2708 = vmatprep.subr.bf16.mxu0 %v4070_v18  ;;  %2872 = vmatprep.subr.bf16.mxu1 %v4073_v20  ;;  %v4151_v18 = vld [vmem:[%s5567_s3 + $0x7cc] ss:$16 sps:$4 sm:$0xff]   ;;  %v4146_v20 = vld [vmem:[%s5567_s3 + $0x7c0] ss:$16 sps:$4 sm:$0xff]  }
 0x1a4   :  { %2738 = vmatprep.mubr.bf16.mxu0 %v1024_v21  ;;  %2902 = vmatprep.mubr.bf16.mxu1 %v1024_v21  ;;  %v1003_v21 = vadd.f32 %v5084_v62, %v185_v16  ;;  %v4155_v62 = vld [vmem:[%s5567_s3 + $0x7e8] ss:$16 sps:$4 sm:$0xff]  }
 0x1a6   :  { %2709 = vmatpush1.bf16.msra.mxu0 %v4068_v22  ;;  %2873 = vmatpush1.bf16.msra.mxu1 %v4071_v2  ;;  %v4154_v22 = vld [vmem:[%s5567_s3 + $0x7e4] ss:$16 sps:$4 sm:$0xff]   ;;  %v4157_v2 = vld [vmem:[%s5567_s3 + $0x7ec] ss:$16 sps:$4 sm:$0xff]  }
 0x1a7   :  { %2710 = vmatprep.subr.bf16.mxu0 %v4076_v26  ;;  %2874 = vmatprep.subr.bf16.mxu1 %v4079_v27  ;;  %v4152_v26 = vld [vmem:[%s5567_s3 + $0x7e0] ss:$16 sps:$4 sm:$0xff]   ;;  %v1015_v27 = vmax.f32 %v1003_v21, 0.0 }
 0x1aa   :  { %2711 = vmatpush1.bf16.msra.mxu0 %v4074_v28  ;;  %2875 = vmatpush1.bf16.msra.mxu1 %v4077_v29  ;;  %v4158_v28 = vld [vmem:[%s5569_s5 + $0x40] sm:$0xff]  }
 0x1ab   :  { %2712 = vmatprep.subr.bf16.mxu0 %v4082_v30  ;;  %2876 = vmatprep.subr.bf16.mxu1 %v4085_v31  ;;  %v4159_v29 = vld [vmem:[%s5569_s5 + $0xc0] sm:$0xff]  }
 0x1ac   :  { %v4160_v30 = vld [vmem:[%s5569_s5] sm:$0xff]  }
 0x1ad   :  { %v4161_v31 = vld [vmem:[%s5569_s5 + $0x80] sm:$0xff]  }
 0x1ae   :  { %2713 = vmatpush1.bf16.msra.mxu0 %v4080_v32  ;;  %2877 = vmatpush1.bf16.msra.mxu1 %v4083_v33  ;;  %v1023_v32 = vpack.c.bf16 %v1015_v27, %v1015_v27  ;;  %v4162_v33 = vld [vmem:[%s5569_s5 + $0x48] sm:$0xff]  }
 0x1af   :  { %2714 = vmatprep.subr.bf16.mxu0 %v4088_v34  ;;  %2878 = vmatprep.subr.bf16.mxu1 %v4091_v35  ;;  %v4163_v34 = vld [vmem:[%s5569_s5 + $0xc8] sm:$0xff]  }
 0x1b0   :  { %v4164_v35 = vld [vmem:[%s5569_s5 + $0x8] sm:$0xff]  }
 0x1b2   :  { %2715 = vmatpush1.bf16.msra.mxu0 %v4086_v37  ;;  %2879 = vmatpush1.bf16.msra.mxu1 %v4089_v38  ;;  %v4165_v37 = vld [vmem:[%s5569_s5 + $0x88] sm:$0xff]   ;;  %v4166_v38 = vld [vmem:[%s5569_s5 + $0x50] sm:$0xff]  }
 0x1b3   :  { %2716 = vmatprep.subr.bf16.mxu0 %v4094_v39  ;;  %2880 = vmatprep.subr.bf16.mxu1 %v4097_v40  ;;  %v4167_v39 = vld [vmem:[%s5569_s5 + $0xd0] sm:$0xff]  }
 0x1b4   :  { %v4168_v40 = vld [vmem:[%s5569_s5 + $0x10] sm:$0xff]  }
 0x1b6   :  { %2717 = vmatpush1.bf16.msra.mxu0 %v4092_v41  ;;  %2881 = vmatpush1.bf16.msra.mxu1 %v4095_v36  ;;  %v4169_v41 = vld [vmem:[%s5569_s5 + $0x90] sm:$0xff]   ;;  %v4170_v36 = vld [vmem:[%s5569_s5 + $0x58] sm:$0xff]  }
 0x1b7   :  { %2718 = vmatprep.subr.bf16.mxu0 %v4100_v42  ;;  %2882 = vmatprep.subr.bf16.mxu1 %v4103_v43  ;;  %v4171_v42 = vld [vmem:[%s5569_s5 + $0xd8] sm:$0xff]  }
 0x1b8   :  { %v4172_v43 = vld [vmem:[%s5569_s5 + $0x18] sm:$0xff]  }
 0x1ba   :  { %2719 = vmatpush1.bf16.msra.mxu0 %v4098_v44  ;;  %2883 = vmatpush1.bf16.msra.mxu1 %v4101_v45  ;;  %v4173_v44 = vld [vmem:[%s5569_s5 + $0x98] sm:$0xff]   ;;  %v4174_v45 = vld [vmem:[%s5569_s5 + $0x60] sm:$0xff]  }
 0x1bb   :  { %2720 = vmatprep.subr.bf16.mxu0 %v4106_v46  ;;  %2884 = vmatprep.subr.bf16.mxu1 %v4109_v47  ;;  %v4175_v46 = vld [vmem:[%s5569_s5 + $0xe0] sm:$0xff]  }
 0x1bc   :  { %v4176_v47 = vld [vmem:[%s5569_s5 + $0x20] sm:$0xff]  }
 0x1be   :  { %2721 = vmatpush1.bf16.msra.mxu0 %v4104_v48  ;;  %2885 = vmatpush1.bf16.msra.mxu1 %v4107_v49  ;;  %v4177_v48 = vld [vmem:[%s5569_s5 + $0xa0] sm:$0xff]   ;;  %v4178_v49 = vld [vmem:[%s5569_s5 + $0x68] sm:$0xff]  }
 0x1bf   :  { %2722 = vmatprep.subr.bf16.mxu0 %v4112_v50  ;;  %2886 = vmatprep.subr.bf16.mxu1 %v4115_v51  ;;  %v4179_v50 = vld [vmem:[%s5569_s5 + $0xe8] sm:$0xff]  }
 0x1c0   :  { %v4180_v51 = vld [vmem:[%s5569_s5 + $0x28] sm:$0xff]  }
 0x1c2   :  { %2723 = vmatpush1.bf16.msra.mxu0 %v4110_v52  ;;  %2887 = vmatpush1.bf16.msra.mxu1 %v4113_v53  ;;  %v4181_v52 = vld [vmem:[%s5569_s5 + $0xa8] sm:$0xff]   ;;  %v4182_v53 = vld [vmem:[%s5569_s5 + $0x70] sm:$0xff]  }
 0x1c3   :  { %2724 = vmatprep.subr.bf16.mxu0 %v4118_v54  ;;  %2888 = vmatprep.subr.bf16.mxu1 %v4121_v55  ;;  %v4183_v54 = vld [vmem:[%s5569_s5 + $0xf0] sm:$0xff]  }
 0x1c4   :  { %v4184_v55 = vld [vmem:[%s5569_s5 + $0x30] sm:$0xff]  }
 0x1c6   :  { %2725 = vmatpush1.bf16.msra.mxu0 %v4116_v56  ;;  %2889 = vmatpush1.bf16.msra.mxu1 %v4119_v57  ;;  %v4185_v56 = vld [vmem:[%s5569_s5 + $0xb0] sm:$0xff]   ;;  %v4186_v57 = vld [vmem:[%s5569_s5 + $0x78] sm:$0xff]  }
 0x1c7   :  { %2726 = vmatprep.subr.bf16.mxu0 %v4124_v58  ;;  %2890 = vmatprep.subr.bf16.mxu1 %v4127_v59  ;;  %v4187_v58 = vld [vmem:[%s5569_s5 + $0xf8] sm:$0xff]  }
 0x1c8   :  { %v4188_v59 = vld [vmem:[%s5569_s5 + $0x38] sm:$0xff]  }
 0x1ca   :  { %2727 = vmatpush1.bf16.msra.mxu0 %v4122_v60  ;;  %2891 = vmatpush1.bf16.msra.mxu1 %v4125_v61  ;;  %v4189_v60 = vld [vmem:[%s5569_s5 + $0xb8] sm:$0xff]   ;;  %v1281_v61 = vld [vmem:[%s5570_s4] sm:$0xf] }
 0x1cb   :  { %2728 = vmatprep.subr.bf16.mxu0 %v4130_v63  ;;  %2892 = vmatprep.subr.bf16.mxu1 %v4133_v0  ;;  %v1286_v63 = vrot.slane %v1281_v61, %v160_v10  ;;  %v1294_v0 = vrot.slane %v1281_v61, %v168_v25 }
 0x1ce   :  { %2729 = vmatpush1.bf16.msra.mxu0 %v4128_v3  ;;  %2893 = vmatpush1.bf16.msra.mxu1 %v4131_v4  ;;  %v1290_v3 = vrot.slane %v1281_v61, %v164_v12  ;;  %v1298_v4 = vrot.slane %v1281_v61, %v172_v23 }
 0x1cf   :  { %2730 = vmatprep.subr.bf16.mxu0 %v4136_v24  ;;  %2894 = vmatprep.subr.bf16.mxu1 %v4139_v5 }
 0x1d2   :  { %2731 = vmatpush1.bf16.msra.mxu0 %v4134_v6  ;;  %2895 = vmatpush1.bf16.msra.mxu1 %v4137_v7 }
 0x1d3   :  { %2732 = vmatprep.subr.bf16.mxu0 %v4142_v13  ;;  %2896 = vmatprep.subr.bf16.mxu1 %v4145_v1 }
 0x1d6   :  { %2733 = vmatpush1.bf16.msra.mxu0 %v4140_v14  ;;  %2897 = vmatpush1.bf16.msra.mxu1 %v4143_v15 }
 0x1d7   :  { %2734 = vmatprep.subr.bf16.mxu0 %v4148_v17  ;;  %2898 = vmatprep.subr.bf16.mxu1 %v4151_v18 }
 0x1da   :  { %2735 = vmatpush1.bf16.msra.mxu0 %v4146_v20  ;;  %2899 = vmatpush1.bf16.msra.mxu1 %v4149_v11 }
 0x1db   :  { %2736 = vmatprep.subr.bf16.mxu0 %v4154_v22  ;;  %2900 = vmatprep.subr.bf16.mxu1 %v4157_v2 }
 0x1de   :  { %2737 = vmatpush1.bf16.msra.mxu0 %v4152_v26  ;;  %2901 = vmatpush1.bf16.msra.mxu1 %v4155_v62  ;;  %v3667_v26 = vld [vmem:[%s5571_s6] ss:$0 sm:$0xff] }
 0x1df   :  { %3700 = vmatprep.subr.bf16.mxu0 %v4158_v28  ;;  %3722 = vmatprep.subr.bf16.mxu1 %v4159_v29  ;;  %v3263_v28 = vand.u32 127, %v158_v19 }
 0x1e1   :  { %2739 = vmatmul.mubr.bf16.vlgmr.msra.gmra.mrb[8].mxu0 %v1023_v32  ;;  %2903 = vmatmul.mubr.bf16.vlgmr.msra.gmra.mrb[8].mxu1 %v1023_v32  ;;  %vm3264_vm0 = vcmp.lt.s32.totalorder %v3263_v28, 10 }
 0x1e2   :  { %3701 = vmatpush3.bf16.msra.mxu0 %v4160_v30  ;;  %3723 = vmatpush3.bf16.msra.mxu1 %v4161_v31 }
 0x1e3   :  { %3702 = vmatprep.subr.bf16.mxu0 %v4162_v33  ;;  %3724 = vmatprep.subr.bf16.mxu1 %v4163_v34 }
 0x1e6   :  { %3703 = vmatpush3.bf16.msra.mxu0 %v4164_v35  ;;  %3725 = vmatpush3.bf16.msra.mxu1 %v4165_v37 }
 0x1e7   :  { %3704 = vmatprep.subr.bf16.mxu0 %v4166_v38  ;;  %3726 = vmatprep.subr.bf16.mxu1 %v4167_v39 }
 0x1ea   :  { %3705 = vmatpush3.bf16.msra.mxu0 %v4168_v40  ;;  %3727 = vmatpush3.bf16.msra.mxu1 %v4169_v41 }
 0x1eb   :  { %3706 = vmatprep.subr.bf16.mxu0 %v4170_v36  ;;  %3728 = vmatprep.subr.bf16.mxu1 %v4171_v42 }
 0x1ee   :  { %3707 = vmatpush3.bf16.msra.mxu0 %v4172_v43  ;;  %3729 = vmatpush3.bf16.msra.mxu1 %v4173_v44 }
 0x1ef   :  { %3708 = vmatprep.subr.bf16.mxu0 %v4174_v45  ;;  %3730 = vmatprep.subr.bf16.mxu1 %v4175_v46 }
 0x1f2   :  { %3709 = vmatpush3.bf16.msra.mxu0 %v4176_v47  ;;  %3731 = vmatpush3.bf16.msra.mxu1 %v4177_v48 }
 0x1f3   :  { %3710 = vmatprep.subr.bf16.mxu0 %v4178_v49  ;;  %3732 = vmatprep.subr.bf16.mxu1 %v4179_v50 }
 0x1f6   :  { %3711 = vmatpush3.bf16.msra.mxu0 %v4180_v51  ;;  %3733 = vmatpush3.bf16.msra.mxu1 %v4181_v52 }
 0x1f7   :  { %3712 = vmatprep.subr.bf16.mxu0 %v4182_v53  ;;  %3734 = vmatprep.subr.bf16.mxu1 %v4183_v54 }
 0x1fa   :  { %3713 = vmatpush3.bf16.msra.mxu0 %v4184_v55  ;;  %3735 = vmatpush3.bf16.msra.mxu1 %v4185_v56 }
 0x1fb   :  { %3714 = vmatprep.subr.bf16.mxu0 %v4186_v57  ;;  %3736 = vmatprep.subr.bf16.mxu1 %v4187_v58 }
 0x1fe   :  { %3715 = vmatpush3.bf16.msra.mxu0 %v4188_v59  ;;  %3737 = vmatpush3.bf16.msra.mxu1 %v4189_v60 }
 0x2b4   :  { %v2740_v24 = vpop.f32.mrb[8].mxu0  ;;  %v2904_v5 = vpop.f32.mrb[8].mxu1 }
 0x2b5   :  { %v3744_v6 = vadd.f32 %v2740_v24, %v1286_v63  ;;  %v3746_v7 = vadd.f32 %v2904_v5, %v1294_v0  ;;  %v2742_v8 = vpop.f32.mrb[9].mxu0  ;;  %v2906_v13 = vpop.f32.mrb[9].mxu1 }
 0x2b6   :  { %v3745_v1 = vadd.f32 %v2742_v8, %v1290_v3  ;;  %v3747_v14 = vadd.f32 %v2906_v13, %v1298_v4  ;;  %v2744_v15 = vpop.f32.mrb[10].mxu0  ;;  %v2908_v16 = vpop.f32.mrb[10].mxu1 }
 0x2b7   :  { %v2911_v10 = vmax.f32 %v3744_v6, 0.0  ;;  %v2913_v17 = vmax.f32 %v3746_v7, 0.0  ;;  %v2745_v18 = vpop.f32.mrb[11].mxu0  ;;  %v2909_v25 = vpop.f32.mrb[11].mxu1 }
 0x2b8   :  { %v2912_v20 = vmax.f32 %v3745_v1, 0.0  ;;  %v2914_v11 = vmax.f32 %v3747_v14, 0.0 }
 0x2b9   :  { %v2915_v9 = vpack.c.bf16 %v2911_v10, %v2911_v10  ;;  %v2917_v23 = vpack.c.bf16 %v2913_v17, %v2913_v17 }
 0x2ba   :  { %v2916_v12 = vpack.c.bf16 %v2912_v20, %v2912_v20  ;;  %v2918_v21 = vpack.c.bf16 %v2914_v11, %v2914_v11 }
 0x2bc   :  { %3214 = vmatprep.mubr.bf16.mxu0 %v2916_v12  ;;  %3254 = vmatprep.mubr.bf16.mxu1 %v2918_v21 }
 0x2bd   :  { %3215 = vmatmul.mubr.bf16.vlgmr.msra.gmra.mrb[12].mxu0 %v2915_v9  ;;  %3255 = vmatmul.mubr.bf16.vlgmr.msra.gmra.mrb[12].mxu1 %v2917_v23 }
 0x390   :  { %v3716_v22 = vpop.f32.mrb[12].mxu0  ;;  %v3738_v2 = vpop.f32.mrb[12].mxu1 }
 0x391   :  { %v3717_v62 = vpop.f32.mrb[13].mxu0  ;;  %v3739_v27 = vpop.f32.mrb[13].mxu1 }
 0x392   :  { %v3718_v29 = vadd.f32 %v3717_v62, %v3716_v22  ;;  %v3740_v30 = vadd.f32 %v3739_v27, %v3738_v2  ;;  %v3719_v31 = vpop.f32.mrb[14].mxu0  ;;  %v3741_v32 = vpop.f32.mrb[14].mxu1 }
 0x393   :  { %v3720_v33 = vpop.f32.mrb[15].mxu0  ;;  %v3742_v34 = vpop.f32.mrb[15].mxu1 }
 0x394   :  { %v3217_v35 = vadd.f32 %v3718_v29, %v3667_v26 }
 0x396   :  { %v3257_v37 = vadd.f32 %v3740_v30, %v3217_v35 }
 0x398   :  { %v3265_v38 = vsel %vm3264_vm0, %v3257_v37, -1e+30 }
 0x399   :  { %3266 = vmax.xlane.f32.xlu0 %v3265_v38 }
 0x426   :  { %v3267_v39 = vpop.xlane.xlu0 %3266 }
 0x427   :  { %v3268_v40 = vsub.f32 %v3265_v38, %v3267_v39 }
 0x429   :  { %v3269_v41 = vmul.f32 1.442695, %v3268_v40 }
 0x42b   :  { %4190 = vpow2.f32 %v3269_v41 }
 0x435   :  { %v4191_v36 = vpop.eup %4190 }
 0x436   :  { %3271 = vadd.xlane.f32.xlu0 %v4191_v36 }
 0x4c3   :  { %v3272_v42 = vpop.xlane.xlu0 %3271 }
 0x4c4   :  { %4192 = vlog2.f32 %v3272_v42 }
 0x4ce   :  { %v4193_v19 = vpop.eup %4192 }
 0x4cf   :  { %v3274_v43 = vmul.f32 0.6931472, %v4193_v19 }
 0x4d1   :  { %v3275_v44 = vsub.f32 %v3268_v40, %v3274_v43 }
 0x4d3   :  { %3276 = vst [vmem:[%s5572_s7] sm:$0xff] %v3275_v44 }

</bundles_post_ra>
